<compile_context>
chip_gen: v7x
topology: tpu7x:2x2x1
jax: 0.10.0
libtpu: 0.0.40
codegen_flags: <defaults>
</compile_context>

<pallas_src>
import functools

import jax
import jax.numpy as jnp
from jax.experimental import pallas as pl
from jax.experimental.pallas import tpu as pltpu


def _sigmoid(x):
    return 1.0 / (1.0 + jnp.exp(-x))


# ----------------------------------------------------------------------------
# Pallas kernel: time-chunked GRU scan with per-example weights.
# ----------------------------------------------------------------------------
def _gru_scan_kernel(u_ref, x0_ref, wih_ref, whh_ref, bih_ref, bhh_ref,
                     out_ref, x_state, *, t_chunk, nhidden, fp_iters, fp_damp):
    H = nhidden
    c = pl.program_id(0)

    # Hoist loop-invariant operands once (JAX does not CSE broadcast_in_dim).
    whh = whh_ref[...]                               # (B, H, 3H)
    bhh = bhh_ref[...][:, None, :]                   # (B, 1, 3H)

    # Whole-chunk input projection in ONE batched MXU matmul (out of the serial
    # chain): (B, T, I) x (B, I, 3H) -> (B, T, 3H).
    pre_u = (jnp.einsum('bti,bij->btj', u_ref[...], wih_ref[...],
                        preferred_element_type=jnp.float32)
             + bih_ref[...][:, None, :])

    def cell(x, pre_t):
        # x: (B, 1, H), pre_t: (B, 1, 3H); per-example hidden projection.
        gh = jnp.einsum('buh,bhj->buj', x, whh,
                        preferred_element_type=jnp.float32) + bhh
        r = _sigmoid(pre_t[..., 0:H] + gh[..., 0:H])
        z = _sigmoid(pre_t[..., H:2 * H] + gh[..., H:2 * H])
        n = jnp.tanh(pre_t[..., 2 * H:3 * H] + r * gh[..., 2 * H:3 * H])
        return (1.0 - z) * n + z * x

    @pl.when(c == 0)
    def _init():
        x = x0_ref[...].astype(jnp.float32)          # (B, 1, H)
        if fp_iters > 0:
            # gruzero: damped fixed-point iteration of the GRU cell at u0,
            # using the per-example weights already resident in VMEM.
            # TODO(synk): scipy.optimize.fsolve (per batch row, on CPU) has no
            # Pallas equivalent; a fixed-count damped iteration is used instead.
            pre0 = pre_u[:, 0:1, :]

            def fp_body(_, xx):
                return xx + fp_damp * (cell(xx, pre0) - xx)

            x = jax.lax.fori_loop(0, fp_iters, fp_body, x)
        x_state[...] = x

    # Sequential recurrence over the chunk, fully unrolled (t_chunk is static).
    x = x_state[...]
    xs = []
    for t in range(t_chunk):
        x = cell(x, pre_u[:, t:t + 1, :])
        xs.append(x)

    # One lane-dense (B, T, H) store per chunk instead of one tiny store/step.
    out_ref[...] = jnp.concatenate(xs, axis=1).astype(out_ref.dtype)
    x_state[...] = x


def _gru_scan(u, wih_t, whh_t, bih, bhh, x0, *, fp_iters=0, fp_damp=0.5,
              max_chunk=64):
    """Chunked Pallas GRU scan with per-example weights.

    u      (B, S, I)   inputs
    wih_t  (B, I, 3H)  per-example weight_ih, pre-transposed
    whh_t  (B, H, 3H)  per-example weight_hh, pre-transposed
    bih    (B, 3H)     per-example bias_ih
    bhh    (B, 3H)     per-example bias_hh
    x0     (B, H)      initial hidden state (refined in-kernel if fp_iters > 0)
    returns (B, S, H)  hidden state after every input step.
    """
    B, S, I = u.shape
    H = whh_t.shape[1]
    assert whh_t.shape[2] == 3 * H and wih_t.shape[2] == 3 * H

    # Pad batch to a multiple of 8 so the (B, *) gate tiles fill sublanes.
    Bp = max(8, ((B + 7) // 8) * 8)

    def pad_b(a):
        if a.shape[0] == Bp:
            return a
        pad = jnp.broadcast_to(a[-1:], (Bp - a.shape[0],) + a.shape[1:])
        return jnp.concatenate([a, pad], axis=0)

    u_p = pad_b(u.astype(jnp.float32))
    wih_p, whh_p = pad_b(wih_t), pad_b(whh_t)
    bih_p, bhh_p = pad_b(bih), pad_b(bhh)
    x0_p = pad_b(x0)[:, None, :]                     # (Bp, 1, H)

    # Time chunking: amortize the ~0.35us/step grid overhead.  For small S the
    # grid collapses to (1,) and the whole sequence runs inside one kernel
    # invocation.  max_chunk keeps 2x(Bp,T,I)+2x(Bp,T,H) f32 far below the
    # scoped-VMEM default on every generation (incl. v7x's 64 MiB VMEM).
    t_chunk = S
    if S > max_chunk:
        for cand in range(max_chunk, 7, -1):
            if S % cand == 0 and cand % 8 == 0:      # (8,128) tiling rule
                t_chunk = cand
                break
    num_chunks = S // t_chunk

    kernel = functools.partial(_gru_scan_kernel, t_chunk=t_chunk, nhidden=H,
                               fp_iters=fp_iters, fp_damp=fp_damp)

    # NOTE: weights stay f32 here to match the f32 reference exactly; for large
    # H cast W_ih^T / W_hh^T to bf16 (keep f32 accumulation) to halve their
    # VMEM residency and double MXU throughput.
    # NOTE: if B grows large (>=256) add a leading "parallel" batch-tile grid
    # axis so v7x's two TensorCores split the batch.
    out = pl.pallas_call(
        kernel,
        out_shape=jax.ShapeDtypeStruct((Bp, S, H), jnp.float32),
        grid_spec=pltpu.PrefetchScalarGridSpec(
            num_scalar_prefetch=0,
            grid=(num_chunks,),
            in_specs=[
                pl.BlockSpec((Bp, t_chunk, I), lambda c: (0, c, 0)),   # u chunk
                pl.BlockSpec((Bp, 1, H), lambda c: (0, 0, 0)),         # x0
                pl.BlockSpec((Bp, I, 3 * H), lambda c: (0, 0, 0)),     # W_ih^T
                pl.BlockSpec((Bp, H, 3 * H), lambda c: (0, 0, 0)),     # W_hh^T
                pl.BlockSpec((Bp, 3 * H), lambda c: (0, 0)),           # b_ih
                pl.BlockSpec((Bp, 3 * H), lambda c: (0, 0)),           # b_hh
            ],
            out_specs=pl.BlockSpec((Bp, t_chunk, H), lambda c: (0, c, 0)),
            scratch_shapes=[pltpu.VMEM((Bp, 1, H), jnp.float32)],      # state
        ),
        compiler_params=pltpu.CompilerParams(
            dimension_semantics=("arbitrary",)),                       # scan
    )(u_p, x0_p, wih_p, whh_p, bih_p, bhh_p)

    return out[:B]


# ----------------------------------------------------------------------------
# Per-example weight construction (shared by the Pallas path and the reference)
# ----------------------------------------------------------------------------
def _per_example_weights(h_age, params, ninput, nhidden):
    """linearage(h_age) -> per-example inner-GRU weights (PyTorch layout)."""
    I, H = ninput, nhidden
    B = h_age.shape[0]
    dparams = h_age @ params["age_lin_w"].T + params["age_lin_b"]
    # TODO(synk): rnn_v1.GRU's exact dparams->weight mapping is not given; the
    # delta is applied to the candidate ('n') gate block, whose parameter count
    # (I*H + H*H + 2H) matches the linearage output size exactly.
    d_w_in = dparams[:, :I * H].reshape(B, H, I)
    d_w_hn = dparams[:, I * H:I * H + H * H].reshape(B, H, H)
    d_b_in = dparams[:, I * H + H * H:I * H + H * H + H]
    d_b_hn = dparams[:, I * H + H * H + H:]

    wih, whh = params["weight_ih"], params["weight_hh"]      # (3H, I), (3H, H)
    bih, bhh = params["bias_ih"], params["bias_hh"]          # (3H,), (3H,)

    wih_b = jnp.concatenate(
        [jnp.broadcast_to(wih[None, :2 * H], (B, 2 * H, I)),
         wih[None, 2 * H:] + d_w_in], axis=1)                # (B, 3H, I)
    whh_b = jnp.concatenate(
        [jnp.broadcast_to(whh[None, :2 * H], (B, 2 * H, H)),
         whh[None, 2 * H:] + d_w_hn], axis=1)                # (B, 3H, H)
    bih_b = jnp.concatenate(
        [jnp.broadcast_to(bih[None, :2 * H], (B, 2 * H)),
         bih[None, 2 * H:] + d_b_in], axis=1)                # (B, 3H)
    bhh_b = jnp.concatenate(
        [jnp.broadcast_to(bhh[None, :2 * H], (B, 2 * H)),
         bhh[None, 2 * H:] + d_b_hn], axis=1)                # (B, 3H)
    return wih_b, whh_b, bih_b, bhh_b


# ----------------------------------------------------------------------------
# Forward pass (Pallas)
# ----------------------------------------------------------------------------
def gruaging_gru_forward(u, params, *, ninput, nhidden,
                         fp_iters=200, fp_damp=0.5):
    u = u.astype(jnp.float32)
    B, S, C = u.shape
    I, H = ninput, nhidden
    unoage = u[:, :, :I]                                     # (B, S, I)
    uage = u[:, :, C - (I + 1):]                             # (B, S, I+1)

    # ---- aging GRU (shared weights, h0 = 0): final hidden state -------------
    Ha = params["age_w_hh"].shape[1]
    wih_a_t = jnp.transpose(params["age_w_ih"])              # (I+1, 3Ha)
    whh_a_t = jnp.transpose(params["age_w_hh"])              # (Ha, 3Ha)
    out_age = _gru_scan(
        uage,
        jnp.broadcast_to(wih_a_t[None], (B,) + wih_a_t.shape),
        jnp.broadcast_to(whh_a_t[None], (B,) + whh_a_t.shape),
        jnp.broadcast_to(params["age_b_ih"][None], (B, 3 * Ha)),
        jnp.broadcast_to(params["age_b_hh"][None], (B, 3 * Ha)),
        jnp.zeros((B, Ha), jnp.float32),
        fp_iters=0)
    h_age = out_age[:, -1, :]                                # hiddenage[0]

    # ---- per-example inner-GRU weights (linearage glue, plain XLA) ----------
    wih_b, whh_b, bih_b, bhh_b = _per_example_weights(h_age, params, I, H)

    # ---- main scan: in-kernel gruzero fixed point + GRU recurrence ----------
    outrnn = _gru_scan(
        unoage,
        jnp.transpose(wih_b, (0, 2, 1)),                     # (B, I, 3H)
        jnp.transpose(whh_b, (0, 2, 1)),                     # (B, H, 3H)
        bih_b, bhh_b,
        jnp.zeros((B, H), jnp.float32),                      # fsolve xinit = 0
        fp_iters=fp_iters, fp_damp=fp_damp)                  # -> x0, then scan

    # ---- linear readout: one lane-dense XLA matmul over the full sequence ---
    return outrnn @ params["lin_w"].T + params["lin_b"]      # (B, S, O)


# ----------------------------------------------------------------------------
# Pure-JAX reference (same math, no Pallas) for correctness checking
# ----------------------------------------------------------------------------
def _gru_cell_ref(x, u_t, wih, whh, bih, bhh):
    H = x.shape[-1]
    if wih.ndim == 2:                                        # shared weights
        gi = u_t @ wih.T + bih
        gh = x @ whh.T + bhh
    else:                                                    # per-example
        gi = jnp.einsum('bi,bji->bj', u_t, wih) + bih
        gh = jnp.einsum('bh,bjh->bj', x, whh) + bhh
    r = _sigmoid(gi[:, :H] + gh[:, :H])
    z = _sigmoid(gi[:, H:2 * H] + gh[:, H:2 * H])
    n = jnp.tanh(gi[:, 2 * H:] + r * gh[:, 2 * H:])
    return (1.0 - z) * n + z * x


def gruaging_gru_reference(u, params, *, ninput, nhidden,
                           fp_iters=200, fp_damp=0.5):
    u = u.astype(jnp.float32)
    B, S, C = u.shape
    I, H = ninput, nhidden
    unoage = u[:, :, :I]
    uage = u[:, :, C - (I + 1):]

    Ha = params["age_w_hh"].shape[1]
    h = jnp.zeros((B, Ha), jnp.float32)
    for k in range(S):
        h = _gru_cell_ref(h, uage[:, k, :], params["age_w_ih"],
                          params["age_w_hh"], params["age_b_ih"],
                          params["age_b_hh"])

    wih_b, whh_b, bih_b, bhh_b = _per_example_weights(h, params, I, H)

    u0 = unoage[:, 0, :]

    def fp_body(_, xx):
        return xx + fp_damp * (
            _gru_cell_ref(xx, u0, wih_b, whh_b, bih_b, bhh_b) - xx)

    x = jax.lax.fori_loop(0, fp_iters, fp_body, jnp.zeros((B, H), jnp.float32))

    outs = []
    for k in range(S):
        x = _gru_cell_ref(x, unoage[:, k, :], wih_b, whh_b, bih_b, bhh_b)
        outs.append(x)
    outrnn = jnp.stack(outs, axis=1)
    return outrnn @ params["lin_w"].T + params["lin_b"]


# ----------------------------------------------------------------------------
if __name__ == "__main__":
    key = jax.random.PRNGKey(0)
    B, S, I, Ha, H, O = 2, 8, 4, 16, 32, 3
    D = I * H + H * H + 2 * H
    ks = iter(jax.random.split(key, 16))

    def uni(k, shape, bound):
        return jax.random.uniform(k, shape, jnp.float32, -bound, bound)

    ba, bh = 1.0 / (Ha ** 0.5), 1.0 / (H ** 0.5)
    params = {
        # aging GRU: nn.GRU(input_size=I+1, hidden_size=Ha)
        "age_w_ih": uni(next(ks), (3 * Ha, I + 1), ba),
        "age_w_hh": uni(next(ks), (3 * Ha, Ha), ba),
        "age_b_ih": uni(next(ks), (3 * Ha,), ba),
        "age_b_hh": uni(next(ks), (3 * Ha,), ba),
        # linearage (kept small so the per-example deltas are mild and the
        # gruzero fixed-point iteration is well conditioned in this demo)
        "age_lin_w": uni(next(ks), (D, Ha), 0.02),
        "age_lin_b": uni(next(ks), (D,), 0.02),
        # inner GRU base weights: rnn_v1.GRU(input_size=I, hidden_size=H)
        "weight_ih": uni(next(ks), (3 * H, I), bh),
        "weight_hh": uni(next(ks), (3 * H, H), bh),
        "bias_ih":   uni(next(ks), (3 * H,), bh),
        "bias_hh":   uni(next(ks), (3 * H,), bh),
        # readout: nn.Linear(H, O)
        "lin_w": uni(next(ks), (O, H), bh),
        "lin_b": uni(next(ks), (O,), bh),
    }
    u = jax.random.normal(next(ks), (B, S, I + 1), jnp.float32)

    fwd = jax.jit(functools.partial(gruaging_gru_forward, ninput=I, nhidden=H))
    ref = jax.jit(functools.partial(gruaging_gru_reference, ninput=I, nhidden=H))

    out = jax.block_until_ready(fwd(u, params))
    assert out.shape == (B, S, O), out.shape

    expect = jax.block_until_ready(ref(u, params))
    err = float(jnp.max(jnp.abs(out - expect)))
    assert jnp.allclose(out, expect, rtol=3e-4, atol=3e-4), err

    print("KERNEL_OK")
</pallas_src>

<mosaic_0001>
module attributes {stable_mosaic.version = 11 : i64} {
  func.func @_gru_scan_kernel(%arg0: i32, %arg1: memref<8x8x5xf32, #tpu.memory_space<vmem>>, %arg2: memref<8x1x16xf32, #tpu.memory_space<vmem>>, %arg3: memref<8x5x48xf32, #tpu.memory_space<vmem>>, %arg4: memref<8x16x48xf32, #tpu.memory_space<vmem>>, %arg5: memref<8x48xf32, #tpu.memory_space<vmem>>, %arg6: memref<8x48xf32, #tpu.memory_space<vmem>>, %arg7: memref<8x8x16xf32, #tpu.memory_space<vmem>>, %arg8: memref<8x1x16xf32, #tpu.memory_space<vmem>>) attributes {dimension_semantics = [#tpu.dimension_semantics<arbitrary>], iteration_bounds = array<i64: 1>, scalar_prefetch = 0 : i64, scratch_operands = 1 : i64, tpu.core_type = #tpu.core_type<tc>, window_params = [{transform_indices = @transform_0, window_bounds = array<i64: 8, 8, 5>}, {pipeline_mode = #tpu.pipeline_mode<synchronous>, transform_indices = @transform_1, window_bounds = array<i64: 8, 1, 16>}, {pipeline_mode = #tpu.pipeline_mode<synchronous>, transform_indices = @transform_2, window_bounds = array<i64: 8, 5, 48>}, {pipeline_mode = #tpu.pipeline_mode<synchronous>, transform_indices = @transform_3, window_bounds = array<i64: 8, 16, 48>}, {pipeline_mode = #tpu.pipeline_mode<synchronous>, transform_indices = @transform_4, window_bounds = array<i64: 8, 48>}, {pipeline_mode = #tpu.pipeline_mode<synchronous>, transform_indices = @transform_5, window_bounds = array<i64: 8, 48>}, {transform_indices = @transform_6, window_bounds = array<i64: 8, 8, 16>}]} {
    %c0 = arith.constant 0 : index
    %c0_0 = arith.constant 0 : index
    %c0_1 = arith.constant 0 : index
    %0 = vector.load %arg4[%c0, %c0_0, %c0_1] : memref<8x16x48xf32, #tpu.memory_space<vmem>>, vector<8x16x48xf32>
    %c0_2 = arith.constant 0 : index
    %c0_3 = arith.constant 0 : index
    %1 = vector.load %arg6[%c0_2, %c0_3] : memref<8x48xf32, #tpu.memory_space<vmem>>, vector<8x48xf32>
    %2 = vector.shape_cast %1 : vector<8x48xf32> to vector<8x1x48xf32>
    %c0_4 = arith.constant 0 : index
    %c0_5 = arith.constant 0 : index
    %c0_6 = arith.constant 0 : index
    %3 = vector.load %arg1[%c0_4, %c0_5, %c0_6] : memref<8x8x5xf32, #tpu.memory_space<vmem>>, vector<8x8x5xf32>
    %c0_7 = arith.constant 0 : index
    %c0_8 = arith.constant 0 : index
    %c0_9 = arith.constant 0 : index
    %4 = vector.load %arg3[%c0_7, %c0_8, %c0_9] : memref<8x5x48xf32, #tpu.memory_space<vmem>>, vector<8x5x48xf32>
    "tpu.trace_start"() <{level = 10 : i32, message = "bti,bij->btj"}> : () -> ()
    %cst = arith.constant dense<0.000000e+00> : vector<8x8x48xf32>
    %5 = tpu.matmul %3, %4, %cst {dimension_numbers = #tpu.dot_dimension_numbers<[2], [1], [1], [2], [0, 0, 0, 1, 1, 2], [0], [0]>} : vector<8x8x5xf32>, vector<8x5x48xf32>, vector<8x8x48xf32> -> vector<8x8x48xf32>
    "tpu.trace_stop"() : () -> ()
    %c0_10 = arith.constant 0 : index
    %c0_11 = arith.constant 0 : index
    %6 = vector.load %arg5[%c0_10, %c0_11] : memref<8x48xf32, #tpu.memory_space<vmem>>, vector<8x48xf32>
    %7 = vector.shape_cast %6 : vector<8x48xf32> to vector<8x1x48xf32>
    %8 = vector.broadcast %7 : vector<8x1x48xf32> to vector<8x8x48xf32>
    %9 = arith.addf %5, %8 : vector<8x8x48xf32>
    %c0_i32 = arith.constant 0 : i32
    %10 = arith.cmpi eq, %arg0, %c0_i32 : i32
    %11 = arith.extui %10 : i1 to i32
    %c0_i32_12 = arith.constant 0 : i32
    %12 = arith.cmpi ne, %11, %c0_i32_12 : i32
    scf.if %12 {
      %c0_86 = arith.constant 0 : index
      %c0_87 = arith.constant 0 : index
      %c0_88 = arith.constant 0 : index
      %281 = vector.load %arg2[%c0_86, %c0_87, %c0_88] : memref<8x1x16xf32, #tpu.memory_space<vmem>>, vector<8x1x16xf32>
      %c0_89 = arith.constant 0 : index
      %c0_90 = arith.constant 0 : index
      %c0_91 = arith.constant 0 : index
      %282 = vector.load %arg8[%c0_89, %c0_90, %c0_91] : memref<8x1x16xf32, #tpu.memory_space<vmem>>, vector<8x1x16xf32>
      tpu.vector_store %arg8[%c0_89, %c0_90, %c0_91], %281 {strides = array<i32>} : memref<8x1x16xf32, #tpu.memory_space<vmem>>, vector<8x1x16xf32>,
    } else {
    }
    %c0_13 = arith.constant 0 : index
    %c0_14 = arith.constant 0 : index
    %c0_15 = arith.constant 0 : index
    %13 = vector.load %arg8[%c0_13, %c0_14, %c0_15] : memref<8x1x16xf32, #tpu.memory_space<vmem>>, vector<8x1x16xf32>
    %14 = vector.extract_strided_slice %9 {offsets = [0, 0, 0], sizes = [8, 1, 48], strides = [1, 1, 1]} : vector<8x8x48xf32> to vector<8x1x48xf32>
    "tpu.trace_start"() <{level = 10 : i32, message = "buh,bhj->buj"}> : () -> ()
    %cst_16 = arith.constant dense<0.000000e+00> : vector<8x1x48xf32>
    %15 = tpu.matmul %13, %0, %cst_16 {dimension_numbers = #tpu.dot_dimension_numbers<[2], [1], [1], [2], [0, 0, 0, 1, 1, 2], [0], [0]>} : vector<8x1x16xf32>, vector<8x16x48xf32>, vector<8x1x48xf32> -> vector<8x1x48xf32>
    "tpu.trace_stop"() : () -> ()
    %16 = arith.addf %15, %2 : vector<8x1x48xf32>
    %17 = vector.extract_strided_slice %14 {offsets = [0, 0, 0], sizes = [8, 1, 16], strides = [1, 1, 1]} : vector<8x1x48xf32> to vector<8x1x16xf32>
    %18 = vector.extract_strided_slice %16 {offsets = [0, 0, 0], sizes = [8, 1, 16], strides = [1, 1, 1]} : vector<8x1x48xf32> to vector<8x1x16xf32>
    %19 = arith.addf %17, %18 : vector<8x1x16xf32>
    %cst_17 = arith.constant 0.000000e+00 : f32
    %20 = vector.broadcast %cst_17 : f32 to vector<8x1x16xf32>
    %21 = arith.subf %20, %19 : vector<8x1x16xf32>
    %22 = math.exp %21 : vector<8x1x16xf32>
    %cst_18 = arith.constant 1.000000e+00 : f32
    %23 = vector.broadcast %cst_18 : f32 to vector<8x1x16xf32>
    %24 = arith.addf %23, %22 : vector<8x1x16xf32>
    %cst_19 = arith.constant 1.000000e+00 : f32
    %25 = vector.broadcast %cst_19 : f32 to vector<8x1x16xf32>
    %26 = arith.divf %25, %24 : vector<8x1x16xf32>
    %27 = vector.extract_strided_slice %14 {offsets = [0, 0, 16], sizes = [8, 1, 16], strides = [1, 1, 1]} : vector<8x1x48xf32> to vector<8x1x16xf32>
    %28 = vector.extract_strided_slice %16 {offsets = [0, 0, 16], sizes = [8, 1, 16], strides = [1, 1, 1]} : vector<8x1x48xf32> to vector<8x1x16xf32>
    %29 = arith.addf %27, %28 : vector<8x1x16xf32>
    %cst_20 = arith.constant 0.000000e+00 : f32
    %30 = vector.broadcast %cst_20 : f32 to vector<8x1x16xf32>
    %31 = arith.subf %30, %29 : vector<8x1x16xf32>
    %32 = math.exp %31 : vector<8x1x16xf32>
    %cst_21 = arith.constant 1.000000e+00 : f32
    %33 = vector.broadcast %cst_21 : f32 to vector<8x1x16xf32>
    %34 = arith.addf %33, %32 : vector<8x1x16xf32>
    %cst_22 = arith.constant 1.000000e+00 : f32
    %35 = vector.broadcast %cst_22 : f32 to vector<8x1x16xf32>
    %36 = arith.divf %35, %34 : vector<8x1x16xf32>
    %37 = vector.extract_strided_slice %14 {offsets = [0, 0, 32], sizes = [8, 1, 16], strides = [1, 1, 1]} : vector<8x1x48xf32> to vector<8x1x16xf32>
    %38 = vector.extract_strided_slice %16 {offsets = [0, 0, 32], sizes = [8, 1, 16], strides = [1, 1, 1]} : vector<8x1x48xf32> to vector<8x1x16xf32>
    %39 = arith.mulf %26, %38 : vector<8x1x16xf32>
    %40 = arith.addf %37, %39 : vector<8x1x16xf32>
    %41 = math.tanh %40 : vector<8x1x16xf32>
    %cst_23 = arith.constant 1.000000e+00 : f32
    %42 = vector.broadcast %cst_23 : f32 to vector<8x1x16xf32>
    %43 = arith.subf %42, %36 : vector<8x1x16xf32>
    %44 = arith.mulf %43, %41 : vector<8x1x16xf32>
    %45 = arith.mulf %36, %13 : vector<8x1x16xf32>
    %46 = arith.addf %44, %45 : vector<8x1x16xf32>
    %47 = vector.extract_strided_slice %9 {offsets = [0, 1, 0], sizes = [8, 1, 48], strides = [1, 1, 1]} : vector<8x8x48xf32> to vector<8x1x48xf32>
    "tpu.trace_start"() <{level = 10 : i32, message = "buh,bhj->buj"}> : () -> ()
    %cst_24 = arith.constant dense<0.000000e+00> : vector<8x1x48xf32>
    %48 = tpu.matmul %46, %0, %cst_24 {dimension_numbers = #tpu.dot_dimension_numbers<[2], [1], [1], [2], [0, 0, 0, 1, 1, 2], [0], [0]>} : vector<8x1x16xf32>, vector<8x16x48xf32>, vector<8x1x48xf32> -> vector<8x1x48xf32>
    "tpu.trace_stop"() : () -> ()
    %49 = arith.addf %48, %2 : vector<8x1x48xf32>
    %50 = vector.extract_strided_slice %47 {offsets = [0, 0, 0], sizes = [8, 1, 16], strides = [1, 1, 1]} : vector<8x1x48xf32> to vector<8x1x16xf32>
    %51 = vector.extract_strided_slice %49 {offsets = [0, 0, 0], sizes = [8, 1, 16], strides = [1, 1, 1]} : vector<8x1x48xf32> to vector<8x1x16xf32>
    %52 = arith.addf %50, %51 : vector<8x1x16xf32>
    %cst_25 = arith.constant 0.000000e+00 : f32
    %53 = vector.broadcast %cst_25 : f32 to vector<8x1x16xf32>
    %54 = arith.subf %53, %52 : vector<8x1x16xf32>
    %55 = math.exp %54 : vector<8x1x16xf32>
    %cst_26 = arith.constant 1.000000e+00 : f32
    %56 = vector.broadcast %cst_26 : f32 to vector<8x1x16xf32>
    %57 = arith.addf %56, %55 : vector<8x1x16xf32>
    %cst_27 = arith.constant 1.000000e+00 : f32
    %58 = vector.broadcast %cst_27 : f32 to vector<8x1x16xf32>
    %59 = arith.divf %58, %57 : vector<8x1x16xf32>
    %60 = vector.extract_strided_slice %47 {offsets = [0, 0, 16], sizes = [8, 1, 16], strides = [1, 1, 1]} : vector<8x1x48xf32> to vector<8x1x16xf32>
    %61 = vector.extract_strided_slice %49 {offsets = [0, 0, 16], sizes = [8, 1, 16], strides = [1, 1, 1]} : vector<8x1x48xf32> to vector<8x1x16xf32>
    %62 = arith.addf %60, %61 : vector<8x1x16xf32>
    %cst_28 = arith.constant 0.000000e+00 : f32
    %63 = vector.broadcast %cst_28 : f32 to vector<8x1x16xf32>
    %64 = arith.subf %63, %62 : vector<8x1x16xf32>
    %65 = math.exp %64 : vector<8x1x16xf32>
    %cst_29 = arith.constant 1.000000e+00 : f32
    %66 = vector.broadcast %cst_29 : f32 to vector<8x1x16xf32>
    %67 = arith.addf %66, %65 : vector<8x1x16xf32>
    %cst_30 = arith.constant 1.000000e+00 : f32
    %68 = vector.broadcast %cst_30 : f32 to vector<8x1x16xf32>
    %69 = arith.divf %68, %67 : vector<8x1x16xf32>
    %70 = vector.extract_strided_slice %47 {offsets = [0, 0, 32], sizes = [8, 1, 16], strides = [1, 1, 1]} : vector<8x1x48xf32> to vector<8x1x16xf32>
    %71 = vector.extract_strided_slice %49 {offsets = [0, 0, 32], sizes = [8, 1, 16], strides = [1, 1, 1]} : vector<8x1x48xf32> to vector<8x1x16xf32>
    %72 = arith.mulf %59, %71 : vector<8x1x16xf32>
    %73 = arith.addf %70, %72 : vector<8x1x16xf32>
    %74 = math.tanh %73 : vector<8x1x16xf32>
    %cst_31 = arith.constant 1.000000e+00 : f32
    %75 = vector.broadcast %cst_31 : f32 to vector<8x1x16xf32>
    %76 = arith.subf %75, %69 : vector<8x1x16xf32>
    %77 = arith.mulf %76, %74 : vector<8x1x16xf32>
    %78 = arith.mulf %69, %46 : vector<8x1x16xf32>
    %79 = arith.addf %77, %78 : vector<8x1x16xf32>
    %80 = vector.extract_strided_slice %9 {offsets = [0, 2, 0], sizes = [8, 1, 48], strides = [1, 1, 1]} : vector<8x8x48xf32> to vector<8x1x48xf32>
    "tpu.trace_start"() <{level = 10 : i32, message = "buh,bhj->buj"}> : () -> ()
    %cst_32 = arith.constant dense<0.000000e+00> : vector<8x1x48xf32>
    %81 = tpu.matmul %79, %0, %cst_32 {dimension_numbers = #tpu.dot_dimension_numbers<[2], [1], [1], [2], [0, 0, 0, 1, 1, 2], [0], [0]>} : vector<8x1x16xf32>, vector<8x16x48xf32>, vector<8x1x48xf32> -> vector<8x1x48xf32>
    "tpu.trace_stop"() : () -> ()
    %82 = arith.addf %81, %2 : vector<8x1x48xf32>
    %83 = vector.extract_strided_slice %80 {offsets = [0, 0, 0], sizes = [8, 1, 16], strides = [1, 1, 1]} : vector<8x1x48xf32> to vector<8x1x16xf32>
    %84 = vector.extract_strided_slice %82 {offsets = [0, 0, 0], sizes = [8, 1, 16], strides = [1, 1, 1]} : vector<8x1x48xf32> to vector<8x1x16xf32>
    %85 = arith.addf %83, %84 : vector<8x1x16xf32>
    %cst_33 = arith.constant 0.000000e+00 : f32
    %86 = vector.broadcast %cst_33 : f32 to vector<8x1x16xf32>
    %87 = arith.subf %86, %85 : vector<8x1x16xf32>
    %88 = math.exp %87 : vector<8x1x16xf32>
    %cst_34 = arith.constant 1.000000e+00 : f32
    %89 = vector.broadcast %cst_34 : f32 to vector<8x1x16xf32>
    %90 = arith.addf %89, %88 : vector<8x1x16xf32>
    %cst_35 = arith.constant 1.000000e+00 : f32
    %91 = vector.broadcast %cst_35 : f32 to vector<8x1x16xf32>
    %92 = arith.divf %91, %90 : vector<8x1x16xf32>
    %93 = vector.extract_strided_slice %80 {offsets = [0, 0, 16], sizes = [8, 1, 16], strides = [1, 1, 1]} : vector<8x1x48xf32> to vector<8x1x16xf32>
    %94 = vector.extract_strided_slice %82 {offsets = [0, 0, 16], sizes = [8, 1, 16], strides = [1, 1, 1]} : vector<8x1x48xf32> to vector<8x1x16xf32>
    %95 = arith.addf %93, %94 : vector<8x1x16xf32>
    %cst_36 = arith.constant 0.000000e+00 : f32
    %96 = vector.broadcast %cst_36 : f32 to vector<8x1x16xf32>
    %97 = arith.subf %96, %95 : vector<8x1x16xf32>
    %98 = math.exp %97 : vector<8x1x16xf32>
    %cst_37 = arith.constant 1.000000e+00 : f32
    %99 = vector.broadcast %cst_37 : f32 to vector<8x1x16xf32>
    %100 = arith.addf %99, %98 : vector<8x1x16xf32>
    %cst_38 = arith.constant 1.000000e+00 : f32
    %101 = vector.broadcast %cst_38 : f32 to vector<8x1x16xf32>
    %102 = arith.divf %101, %100 : vector<8x1x16xf32>
    %103 = vector.extract_strided_slice %80 {offsets = [0, 0, 32], sizes = [8, 1, 16], strides = [1, 1, 1]} : vector<8x1x48xf32> to vector<8x1x16xf32>
    %104 = vector.extract_strided_slice %82 {offsets = [0, 0, 32], sizes = [8, 1, 16], strides = [1, 1, 1]} : vector<8x1x48xf32> to vector<8x1x16xf32>
    %105 = arith.mulf %92, %104 : vector<8x1x16xf32>
    %106 = arith.addf %103, %105 : vector<8x1x16xf32>
    %107 = math.tanh %106 : vector<8x1x16xf32>
    %cst_39 = arith.constant 1.000000e+00 : f32
    %108 = vector.broadcast %cst_39 : f32 to vector<8x1x16xf32>
    %109 = arith.subf %108, %102 : vector<8x1x16xf32>
    %110 = arith.mulf %109, %107 : vector<8x1x16xf32>
    %111 = arith.mulf %102, %79 : vector<8x1x16xf32>
    %112 = arith.addf %110, %111 : vector<8x1x16xf32>
    %113 = vector.extract_strided_slice %9 {offsets = [0, 3, 0], sizes = [8, 1, 48], strides = [1, 1, 1]} : vector<8x8x48xf32> to vector<8x1x48xf32>
    "tpu.trace_start"() <{level = 10 : i32, message = "buh,bhj->buj"}> : () -> ()
    %cst_40 = arith.constant dense<0.000000e+00> : vector<8x1x48xf32>
    %114 = tpu.matmul %112, %0, %cst_40 {dimension_numbers = #tpu.dot_dimension_numbers<[2], [1], [1], [2], [0, 0, 0, 1, 1, 2], [0], [0]>} : vector<8x1x16xf32>, vector<8x16x48xf32>, vector<8x1x48xf32> -> vector<8x1x48xf32>
    "tpu.trace_stop"() : () -> ()
    %115 = arith.addf %114, %2 : vector<8x1x48xf32>
    %116 = vector.extract_strided_slice %113 {offsets = [0, 0, 0], sizes = [8, 1, 16], strides = [1, 1, 1]} : vector<8x1x48xf32> to vector<8x1x16xf32>
    %117 = vector.extract_strided_slice %115 {offsets = [0, 0, 0], sizes = [8, 1, 16], strides = [1, 1, 1]} : vector<8x1x48xf32> to vector<8x1x16xf32>
    %118 = arith.addf %116, %117 : vector<8x1x16xf32>
    %cst_41 = arith.constant 0.000000e+00 : f32
    %119 = vector.broadcast %cst_41 : f32 to vector<8x1x16xf32>
    %120 = arith.subf %119, %118 : vector<8x1x16xf32>
    %121 = math.exp %120 : vector<8x1x16xf32>
    %cst_42 = arith.constant 1.000000e+00 : f32
    %122 = vector.broadcast %cst_42 : f32 to vector<8x1x16xf32>
    %123 = arith.addf %122, %121 : vector<8x1x16xf32>
    %cst_43 = arith.constant 1.000000e+00 : f32
    %124 = vector.broadcast %cst_43 : f32 to vector<8x1x16xf32>
    %125 = arith.divf %124, %123 : vector<8x1x16xf32>
    %126 = vector.extract_strided_slice %113 {offsets = [0, 0, 16], sizes = [8, 1, 16], strides = [1, 1, 1]} : vector<8x1x48xf32> to vector<8x1x16xf32>
    %127 = vector.extract_strided_slice %115 {offsets = [0, 0, 16], sizes = [8, 1, 16], strides = [1, 1, 1]} : vector<8x1x48xf32> to vector<8x1x16xf32>
    %128 = arith.addf %126, %127 : vector<8x1x16xf32>
    %cst_44 = arith.constant 0.000000e+00 : f32
    %129 = vector.broadcast %cst_44 : f32 to vector<8x1x16xf32>
    %130 = arith.subf %129, %128 : vector<8x1x16xf32>
    %131 = math.exp %130 : vector<8x1x16xf32>
    %cst_45 = arith.constant 1.000000e+00 : f32
    %132 = vector.broadcast %cst_45 : f32 to vector<8x1x16xf32>
    %133 = arith.addf %132, %131 : vector<8x1x16xf32>
    %cst_46 = arith.constant 1.000000e+00 : f32
    %134 = vector.broadcast %cst_46 : f32 to vector<8x1x16xf32>
    %135 = arith.divf %134, %133 : vector<8x1x16xf32>
    %136 = vector.extract_strided_slice %113 {offsets = [0, 0, 32], sizes = [8, 1, 16], strides = [1, 1, 1]} : vector<8x1x48xf32> to vector<8x1x16xf32>
    %137 = vector.extract_strided_slice %115 {offsets = [0, 0, 32], sizes = [8, 1, 16], strides = [1, 1, 1]} : vector<8x1x48xf32> to vector<8x1x16xf32>
    %138 = arith.mulf %125, %137 : vector<8x1x16xf32>
    %139 = arith.addf %136, %138 : vector<8x1x16xf32>
    %140 = math.tanh %139 : vector<8x1x16xf32>
    %cst_47 = arith.constant 1.000000e+00 : f32
    %141 = vector.broadcast %cst_47 : f32 to vector<8x1x16xf32>
    %142 = arith.subf %141, %135 : vector<8x1x16xf32>
    %143 = arith.mulf %142, %140 : vector<8x1x16xf32>
    %144 = arith.mulf %135, %112 : vector<8x1x16xf32>
    %145 = arith.addf %143, %144 : vector<8x1x16xf32>
    %146 = vector.extract_strided_slice %9 {offsets = [0, 4, 0], sizes = [8, 1, 48], strides = [1, 1, 1]} : vector<8x8x48xf32> to vector<8x1x48xf32>
    "tpu.trace_start"() <{level = 10 : i32, message = "buh,bhj->buj"}> : () -> ()
    %cst_48 = arith.constant dense<0.000000e+00> : vector<8x1x48xf32>
    %147 = tpu.matmul %145, %0, %cst_48 {dimension_numbers = #tpu.dot_dimension_numbers<[2], [1], [1], [2], [0, 0, 0, 1, 1, 2], [0], [0]>} : vector<8x1x16xf32>, vector<8x16x48xf32>, vector<8x1x48xf32> -> vector<8x1x48xf32>
    "tpu.trace_stop"() : () -> ()
    %148 = arith.addf %147, %2 : vector<8x1x48xf32>
    %149 = vector.extract_strided_slice %146 {offsets = [0, 0, 0], sizes = [8, 1, 16], strides = [1, 1, 1]} : vector<8x1x48xf32> to vector<8x1x16xf32>
    %150 = vector.extract_strided_slice %148 {offsets = [0, 0, 0], sizes = [8, 1, 16], strides = [1, 1, 1]} : vector<8x1x48xf32> to vector<8x1x16xf32>
    %151 = arith.addf %149, %150 : vector<8x1x16xf32>
    %cst_49 = arith.constant 0.000000e+00 : f32
    %152 = vector.broadcast %cst_49 : f32 to vector<8x1x16xf32>
    %153 = arith.subf %152, %151 : vector<8x1x16xf32>
    %154 = math.exp %153 : vector<8x1x16xf32>
    %cst_50 = arith.constant 1.000000e+00 : f32
    %155 = vector.broadcast %cst_50 : f32 to vector<8x1x16xf32>
    %156 = arith.addf %155, %154 : vector<8x1x16xf32>
    %cst_51 = arith.constant 1.000000e+00 : f32
    %157 = vector.broadcast %cst_51 : f32 to vector<8x1x16xf32>
    %158 = arith.divf %157, %156 : vector<8x1x16xf32>
    %159 = vector.extract_strided_slice %146 {offsets = [0, 0, 16], sizes = [8, 1, 16], strides = [1, 1, 1]} : vector<8x1x48xf32> to vector<8x1x16xf32>
    %160 = vector.extract_strided_slice %148 {offsets = [0, 0, 16], sizes = [8, 1, 16], strides = [1, 1, 1]} : vector<8x1x48xf32> to vector<8x1x16xf32>
    %161 = arith.addf %159, %160 : vector<8x1x16xf32>
    %cst_52 = arith.constant 0.000000e+00 : f32
    %162 = vector.broadcast %cst_52 : f32 to vector<8x1x16xf32>
    %163 = arith.subf %162, %161 : vector<8x1x16xf32>
    %164 = math.exp %163 : vector<8x1x16xf32>
    %cst_53 = arith.constant 1.000000e+00 : f32
    %165 = vector.broadcast %cst_53 : f32 to vector<8x1x16xf32>
    %166 = arith.addf %165, %164 : vector<8x1x16xf32>
    %cst_54 = arith.constant 1.000000e+00 : f32
    %167 = vector.broadcast %cst_54 : f32 to vector<8x1x16xf32>
    %168 = arith.divf %167, %166 : vector<8x1x16xf32>
    %169 = vector.extract_strided_slice %146 {offsets = [0, 0, 32], sizes = [8, 1, 16], strides = [1, 1, 1]} : vector<8x1x48xf32> to vector<8x1x16xf32>
    %170 = vector.extract_strided_slice %148 {offsets = [0, 0, 32], sizes = [8, 1, 16], strides = [1, 1, 1]} : vector<8x1x48xf32> to vector<8x1x16xf32>
    %171 = arith.mulf %158, %170 : vector<8x1x16xf32>
    %172 = arith.addf %169, %171 : vector<8x1x16xf32>
    %173 = math.tanh %172 : vector<8x1x16xf32>
    %cst_55 = arith.constant 1.000000e+00 : f32
    %174 = vector.broadcast %cst_55 : f32 to vector<8x1x16xf32>
    %175 = arith.subf %174, %168 : vector<8x1x16xf32>
    %176 = arith.mulf %175, %173 : vector<8x1x16xf32>
    %177 = arith.mulf %168, %145 : vector<8x1x16xf32>
    %178 = arith.addf %176, %177 : vector<8x1x16xf32>
    %179 = vector.extract_strided_slice %9 {offsets = [0, 5, 0], sizes = [8, 1, 48], strides = [1, 1, 1]} : vector<8x8x48xf32> to vector<8x1x48xf32>
    "tpu.trace_start"() <{level = 10 : i32, message = "buh,bhj->buj"}> : () -> ()
    %cst_56 = arith.constant dense<0.000000e+00> : vector<8x1x48xf32>
    %180 = tpu.matmul %178, %0, %cst_56 {dimension_numbers = #tpu.dot_dimension_numbers<[2], [1], [1], [2], [0, 0, 0, 1, 1, 2], [0], [0]>} : vector<8x1x16xf32>, vector<8x16x48xf32>, vector<8x1x48xf32> -> vector<8x1x48xf32>
    "tpu.trace_stop"() : () -> ()
    %181 = arith.addf %180, %2 : vector<8x1x48xf32>
    %182 = vector.extract_strided_slice %179 {offsets = [0, 0, 0], sizes = [8, 1, 16], strides = [1, 1, 1]} : vector<8x1x48xf32> to vector<8x1x16xf32>
    %183 = vector.extract_strided_slice %181 {offsets = [0, 0, 0], sizes = [8, 1, 16], strides = [1, 1, 1]} : vector<8x1x48xf32> to vector<8x1x16xf32>
    %184 = arith.addf %182, %183 : vector<8x1x16xf32>
    %cst_57 = arith.constant 0.000000e+00 : f32
    %185 = vector.broadcast %cst_57 : f32 to vector<8x1x16xf32>
    %186 = arith.subf %185, %184 : vector<8x1x16xf32>
    %187 = math.exp %186 : vector<8x1x16xf32>
    %cst_58 = arith.constant 1.000000e+00 : f32
    %188 = vector.broadcast %cst_58 : f32 to vector<8x1x16xf32>
    %189 = arith.addf %188, %187 : vector<8x1x16xf32>
    %cst_59 = arith.constant 1.000000e+00 : f32
    %190 = vector.broadcast %cst_59 : f32 to vector<8x1x16xf32>
    %191 = arith.divf %190, %189 : vector<8x1x16xf32>
    %192 = vector.extract_strided_slice %179 {offsets = [0, 0, 16], sizes = [8, 1, 16], strides = [1, 1, 1]} : vector<8x1x48xf32> to vector<8x1x16xf32>
    %193 = vector.extract_strided_slice %181 {offsets = [0, 0, 16], sizes = [8, 1, 16], strides = [1, 1, 1]} : vector<8x1x48xf32> to vector<8x1x16xf32>
    %194 = arith.addf %192, %193 : vector<8x1x16xf32>
    %cst_60 = arith.constant 0.000000e+00 : f32
    %195 = vector.broadcast %cst_60 : f32 to vector<8x1x16xf32>
    %196 = arith.subf %195, %194 : vector<8x1x16xf32>
    %197 = math.exp %196 : vector<8x1x16xf32>
    %cst_61 = arith.constant 1.000000e+00 : f32
    %198 = vector.broadcast %cst_61 : f32 to vector<8x1x16xf32>
    %199 = arith.addf %198, %197 : vector<8x1x16xf32>
    %cst_62 = arith.constant 1.000000e+00 : f32
    %200 = vector.broadcast %cst_62 : f32 to vector<8x1x16xf32>
    %201 = arith.divf %200, %199 : vector<8x1x16xf32>
    %202 = vector.extract_strided_slice %179 {offsets = [0, 0, 32], sizes = [8, 1, 16], strides = [1, 1, 1]} : vector<8x1x48xf32> to vector<8x1x16xf32>
    %203 = vector.extract_strided_slice %181 {offsets = [0, 0, 32], sizes = [8, 1, 16], strides = [1, 1, 1]} : vector<8x1x48xf32> to vector<8x1x16xf32>
    %204 = arith.mulf %191, %203 : vector<8x1x16xf32>
    %205 = arith.addf %202, %204 : vector<8x1x16xf32>
    %206 = math.tanh %205 : vector<8x1x16xf32>
    %cst_63 = arith.constant 1.000000e+00 : f32
    %207 = vector.broadcast %cst_63 : f32 to vector<8x1x16xf32>
    %208 = arith.subf %207, %201 : vector<8x1x16xf32>
    %209 = arith.mulf %208, %206 : vector<8x1x16xf32>
    %210 = arith.mulf %201, %178 : vector<8x1x16xf32>
    %211 = arith.addf %209, %210 : vector<8x1x16xf32>
    %212 = vector.extract_strided_slice %9 {offsets = [0, 6, 0], sizes = [8, 1, 48], strides = [1, 1, 1]} : vector<8x8x48xf32> to vector<8x1x48xf32>
    "tpu.trace_start"() <{level = 10 : i32, message = "buh,bhj->buj"}> : () -> ()
    %cst_64 = arith.constant dense<0.000000e+00> : vector<8x1x48xf32>
    %213 = tpu.matmul %211, %0, %cst_64 {dimension_numbers = #tpu.dot_dimension_numbers<[2], [1], [1], [2], [0, 0, 0, 1, 1, 2], [0], [0]>} : vector<8x1x16xf32>, vector<8x16x48xf32>, vector<8x1x48xf32> -> vector<8x1x48xf32>
    "tpu.trace_stop"() : () -> ()
    %214 = arith.addf %213, %2 : vector<8x1x48xf32>
    %215 = vector.extract_strided_slice %212 {offsets = [0, 0, 0], sizes = [8, 1, 16], strides = [1, 1, 1]} : vector<8x1x48xf32> to vector<8x1x16xf32>
    %216 = vector.extract_strided_slice %214 {offsets = [0, 0, 0], sizes = [8, 1, 16], strides = [1, 1, 1]} : vector<8x1x48xf32> to vector<8x1x16xf32>
    %217 = arith.addf %215, %216 : vector<8x1x16xf32>
    %cst_65 = arith.constant 0.000000e+00 : f32
    %218 = vector.broadcast %cst_65 : f32 to vector<8x1x16xf32>
    %219 = arith.subf %218, %217 : vector<8x1x16xf32>
    %220 = math.exp %219 : vector<8x1x16xf32>
    %cst_66 = arith.constant 1.000000e+00 : f32
    %221 = vector.broadcast %cst_66 : f32 to vector<8x1x16xf32>
    %222 = arith.addf %221, %220 : vector<8x1x16xf32>
    %cst_67 = arith.constant 1.000000e+00 : f32
    %223 = vector.broadcast %cst_67 : f32 to vector<8x1x16xf32>
    %224 = arith.divf %223, %222 : vector<8x1x16xf32>
    %225 = vector.extract_strided_slice %212 {offsets = [0, 0, 16], sizes = [8, 1, 16], strides = [1, 1, 1]} : vector<8x1x48xf32> to vector<8x1x16xf32>
    %226 = vector.extract_strided_slice %214 {offsets = [0, 0, 16], sizes = [8, 1, 16], strides = [1, 1, 1]} : vector<8x1x48xf32> to vector<8x1x16xf32>
    %227 = arith.addf %225, %226 : vector<8x1x16xf32>
    %cst_68 = arith.constant 0.000000e+00 : f32
    %228 = vector.broadcast %cst_68 : f32 to vector<8x1x16xf32>
    %229 = arith.subf %228, %227 : vector<8x1x16xf32>
    %230 = math.exp %229 : vector<8x1x16xf32>
    %cst_69 = arith.constant 1.000000e+00 : f32
    %231 = vector.broadcast %cst_69 : f32 to vector<8x1x16xf32>
    %232 = arith.addf %231, %230 : vector<8x1x16xf32>
    %cst_70 = arith.constant 1.000000e+00 : f32
    %233 = vector.broadcast %cst_70 : f32 to vector<8x1x16xf32>
    %234 = arith.divf %233, %232 : vector<8x1x16xf32>
    %235 = vector.extract_strided_slice %212 {offsets = [0, 0, 32], sizes = [8, 1, 16], strides = [1, 1, 1]} : vector<8x1x48xf32> to vector<8x1x16xf32>
    %236 = vector.extract_strided_slice %214 {offsets = [0, 0, 32], sizes = [8, 1, 16], strides = [1, 1, 1]} : vector<8x1x48xf32> to vector<8x1x16xf32>
    %237 = arith.mulf %224, %236 : vector<8x1x16xf32>
    %238 = arith.addf %235, %237 : vector<8x1x16xf32>
    %239 = math.tanh %238 : vector<8x1x16xf32>
    %cst_71 = arith.constant 1.000000e+00 : f32
    %240 = vector.broadcast %cst_71 : f32 to vector<8x1x16xf32>
    %241 = arith.subf %240, %234 : vector<8x1x16xf32>
    %242 = arith.mulf %241, %239 : vector<8x1x16xf32>
    %243 = arith.mulf %234, %211 : vector<8x1x16xf32>
    %244 = arith.addf %242, %243 : vector<8x1x16xf32>
    %245 = vector.extract_strided_slice %9 {offsets = [0, 7, 0], sizes = [8, 1, 48], strides = [1, 1, 1]} : vector<8x8x48xf32> to vector<8x1x48xf32>
    "tpu.trace_start"() <{level = 10 : i32, message = "buh,bhj->buj"}> : () -> ()
    %cst_72 = arith.constant dense<0.000000e+00> : vector<8x1x48xf32>
    %246 = tpu.matmul %244, %0, %cst_72 {dimension_numbers = #tpu.dot_dimension_numbers<[2], [1], [1], [2], [0, 0, 0, 1, 1, 2], [0], [0]>} : vector<8x1x16xf32>, vector<8x16x48xf32>, vector<8x1x48xf32> -> vector<8x1x48xf32>
    "tpu.trace_stop"() : () -> ()
    %247 = arith.addf %246, %2 : vector<8x1x48xf32>
    %248 = vector.extract_strided_slice %245 {offsets = [0, 0, 0], sizes = [8, 1, 16], strides = [1, 1, 1]} : vector<8x1x48xf32> to vector<8x1x16xf32>
    %249 = vector.extract_strided_slice %247 {offsets = [0, 0, 0], sizes = [8, 1, 16], strides = [1, 1, 1]} : vector<8x1x48xf32> to vector<8x1x16xf32>
    %250 = arith.addf %248, %249 : vector<8x1x16xf32>
    %cst_73 = arith.constant 0.000000e+00 : f32
    %251 = vector.broadcast %cst_73 : f32 to vector<8x1x16xf32>
    %252 = arith.subf %251, %250 : vector<8x1x16xf32>
    %253 = math.exp %252 : vector<8x1x16xf32>
    %cst_74 = arith.constant 1.000000e+00 : f32
    %254 = vector.broadcast %cst_74 : f32 to vector<8x1x16xf32>
    %255 = arith.addf %254, %253 : vector<8x1x16xf32>
    %cst_75 = arith.constant 1.000000e+00 : f32
    %256 = vector.broadcast %cst_75 : f32 to vector<8x1x16xf32>
    %257 = arith.divf %256, %255 : vector<8x1x16xf32>
    %258 = vector.extract_strided_slice %245 {offsets = [0, 0, 16], sizes = [8, 1, 16], strides = [1, 1, 1]} : vector<8x1x48xf32> to vector<8x1x16xf32>
    %259 = vector.extract_strided_slice %247 {offsets = [0, 0, 16], sizes = [8, 1, 16], strides = [1, 1, 1]} : vector<8x1x48xf32> to vector<8x1x16xf32>
    %260 = arith.addf %258, %259 : vector<8x1x16xf32>
    %cst_76 = arith.constant 0.000000e+00 : f32
    %261 = vector.broadcast %cst_76 : f32 to vector<8x1x16xf32>
    %262 = arith.subf %261, %260 : vector<8x1x16xf32>
    %263 = math.exp %262 : vector<8x1x16xf32>
    %cst_77 = arith.constant 1.000000e+00 : f32
    %264 = vector.broadcast %cst_77 : f32 to vector<8x1x16xf32>
    %265 = arith.addf %264, %263 : vector<8x1x16xf32>
    %cst_78 = arith.constant 1.000000e+00 : f32
    %266 = vector.broadcast %cst_78 : f32 to vector<8x1x16xf32>
    %267 = arith.divf %266, %265 : vector<8x1x16xf32>
    %268 = vector.extract_strided_slice %245 {offsets = [0, 0, 32], sizes = [8, 1, 16], strides = [1, 1, 1]} : vector<8x1x48xf32> to vector<8x1x16xf32>
    %269 = vector.extract_strided_slice %247 {offsets = [0, 0, 32], sizes = [8, 1, 16], strides = [1, 1, 1]} : vector<8x1x48xf32> to vector<8x1x16xf32>
    %270 = arith.mulf %257, %269 : vector<8x1x16xf32>
    %271 = arith.addf %268, %270 : vector<8x1x16xf32>
    %272 = math.tanh %271 : vector<8x1x16xf32>
    %cst_79 = arith.constant 1.000000e+00 : f32
    %273 = vector.broadcast %cst_79 : f32 to vector<8x1x16xf32>
    %274 = arith.subf %273, %267 : vector<8x1x16xf32>
    %275 = arith.mulf %274, %272 : vector<8x1x16xf32>
    %276 = arith.mulf %267, %244 : vector<8x1x16xf32>
    %277 = arith.addf %275, %276 : vector<8x1x16xf32>
    %278 = tpu.concatenate %46, %79, %112, %145, %178, %211, %244, %277 in 1 : vector<8x1x16xf32>, vector<8x1x16xf32>, vector<8x1x16xf32>, vector<8x1x16xf32>, vector<8x1x16xf32>, vector<8x1x16xf32>, vector<8x1x16xf32>, vector<8x1x16xf32> -> vector<8x8x16xf32>
    %c0_80 = arith.constant 0 : index
    %c0_81 = arith.constant 0 : index
    %c0_82 = arith.constant 0 : index
    %279 = vector.load %arg7[%c0_80, %c0_81, %c0_82] : memref<8x8x16xf32, #tpu.memory_space<vmem>>, vector<8x8x16xf32>
    tpu.vector_store %arg7[%c0_80, %c0_81, %c0_82], %278 {strides = array<i32>} : memref<8x8x16xf32, #tpu.memory_space<vmem>>, vector<8x8x16xf32>,
    %c0_83 = arith.constant 0 : index
    %c0_84 = arith.constant 0 : index
    %c0_85 = arith.constant 0 : index
    %280 = vector.load %arg8[%c0_83, %c0_84, %c0_85] : memref<8x1x16xf32, #tpu.memory_space<vmem>>, vector<8x1x16xf32>
    tpu.vector_store %arg8[%c0_83, %c0_84, %c0_85], %277 {strides = array<i32>} : memref<8x1x16xf32, #tpu.memory_space<vmem>>, vector<8x1x16xf32>,
    return
  }
  func.func @transform_0(%arg0: i32) -> (i32, i32, i32) {
    %c0_i32 = arith.constant 0 : i32
    %c0_i32_0 = arith.constant 0 : i32
    %c0_i32_1 = arith.constant 0 : i32
    return %c0_i32, %arg0, %c0_i32_0 : i32, i32, i32
  }
  func.func @transform_1(%arg0: i32) -> (i32, i32, i32) {
    %c0_i32 = arith.constant 0 : i32
    %c0_i32_0 = arith.constant 0 : i32
    %c0_i32_1 = arith.constant 0 : i32
    %c0_i32_2 = arith.constant 0 : i32
    return %c0_i32, %c0_i32_0, %c0_i32_1 : i32, i32, i32
  }
  func.func @transform_2(%arg0: i32) -> (i32, i32, i32) {
    %c0_i32 = arith.constant 0 : i32
    %c0_i32_0 = arith.constant 0 : i32
    %c0_i32_1 = arith.constant 0 : i32
    %c0_i32_2 = arith.constant 0 : i32
    return %c0_i32, %c0_i32_0, %c0_i32_1 : i32, i32, i32
  }
  func.func @transform_3(%arg0: i32) -> (i32, i32, i32) {
    %c0_i32 = arith.constant 0 : i32
    %c0_i32_0 = arith.constant 0 : i32
    %c0_i32_1 = arith.constant 0 : i32
    %c0_i32_2 = arith.constant 0 : i32
    return %c0_i32, %c0_i32_0, %c0_i32_1 : i32, i32, i32
  }
  func.func @transform_4(%arg0: i32) -> (i32, i32) {
    %c0_i32 = arith.constant 0 : i32
    %c0_i32_0 = arith.constant 0 : i32
    %c0_i32_1 = arith.constant 0 : i32
    return %c0_i32, %c0_i32_0 : i32, i32
  }
  func.func @transform_5(%arg0: i32) -> (i32, i32) {
    %c0_i32 = arith.constant 0 : i32
    %c0_i32_0 = arith.constant 0 : i32
    %c0_i32_1 = arith.constant 0 : i32
    return %c0_i32, %c0_i32_0 : i32, i32
  }
  func.func @transform_6(%arg0: i32) -> (i32, i32, i32) {
    %c0_i32 = arith.constant 0 : i32
    %c0_i32_0 = arith.constant 0 : i32
    %c0_i32_1 = arith.constant 0 : i32
    return %c0_i32, %arg0, %c0_i32_0 : i32, i32, i32
  }
}

module attributes {stable_mosaic.version = 11 : i64} {
  func.func @_gru_scan_kernel(%arg0: i32, %arg1: memref<8x8x4xf32, #tpu.memory_space<vmem>>, %arg2: memref<8x1x32xf32, #tpu.memory_space<vmem>>, %arg3: memref<8x4x96xf32, #tpu.memory_space<vmem>>, %arg4: memref<8x32x96xf32, #tpu.memory_space<vmem>>, %arg5: memref<8x96xf32, #tpu.memory_space<vmem>>, %arg6: memref<8x96xf32, #tpu.memory_space<vmem>>, %arg7: memref<8x8x32xf32, #tpu.memory_space<vmem>>, %arg8: memref<8x1x32xf32, #tpu.memory_space<vmem>>) attributes {dimension_semantics = [#tpu.dimension_semantics<arbitrary>], iteration_bounds = array<i64: 1>, scalar_prefetch = 0 : i64, scratch_operands = 1 : i64, tpu.core_type = #tpu.core_type<tc>, window_params = [{transform_indices = @transform_0, window_bounds = array<i64: 8, 8, 4>}, {pipeline_mode = #tpu.pipeline_mode<synchronous>, transform_indices = @transform_1, window_bounds = array<i64: 8, 1, 32>}, {pipeline_mode = #tpu.pipeline_mode<synchronous>, transform_indices = @transform_2, window_bounds = array<i64: 8, 4, 96>}, {pipeline_mode = #tpu.pipeline_mode<synchronous>, transform_indices = @transform_3, window_bounds = array<i64: 8, 32, 96>}, {pipeline_mode = #tpu.pipeline_mode<synchronous>, transform_indices = @transform_4, window_bounds = array<i64: 8, 96>}, {pipeline_mode = #tpu.pipeline_mode<synchronous>, transform_indices = @transform_5, window_bounds = array<i64: 8, 96>}, {transform_indices = @transform_6, window_bounds = array<i64: 8, 8, 32>}]} {
    %c0 = arith.constant 0 : index
    %c0_0 = arith.constant 0 : index
    %c0_1 = arith.constant 0 : index
    %0 = vector.load %arg4[%c0, %c0_0, %c0_1] : memref<8x32x96xf32, #tpu.memory_space<vmem>>, vector<8x32x96xf32>
    %c0_2 = arith.constant 0 : index
    %c0_3 = arith.constant 0 : index
    %1 = vector.load %arg6[%c0_2, %c0_3] : memref<8x96xf32, #tpu.memory_space<vmem>>, vector<8x96xf32>
    %2 = vector.shape_cast %1 : vector<8x96xf32> to vector<8x1x96xf32>
    %c0_4 = arith.constant 0 : index
    %c0_5 = arith.constant 0 : index
    %c0_6 = arith.constant 0 : index
    %3 = vector.load %arg1[%c0_4, %c0_5, %c0_6] : memref<8x8x4xf32, #tpu.memory_space<vmem>>, vector<8x8x4xf32>
    %c0_7 = arith.constant 0 : index
    %c0_8 = arith.constant 0 : index
    %c0_9 = arith.constant 0 : index
    %4 = vector.load %arg3[%c0_7, %c0_8, %c0_9] : memref<8x4x96xf32, #tpu.memory_space<vmem>>, vector<8x4x96xf32>
    "tpu.trace_start"() <{level = 10 : i32, message = "bti,bij->btj"}> : () -> ()
    %cst = arith.constant dense<0.000000e+00> : vector<8x8x96xf32>
    %5 = tpu.matmul %3, %4, %cst {dimension_numbers = #tpu.dot_dimension_numbers<[2], [1], [1], [2], [0, 0, 0, 1, 1, 2], [0], [0]>} : vector<8x8x4xf32>, vector<8x4x96xf32>, vector<8x8x96xf32> -> vector<8x8x96xf32>
    "tpu.trace_stop"() : () -> ()
    %c0_10 = arith.constant 0 : index
    %c0_11 = arith.constant 0 : index
    %6 = vector.load %arg5[%c0_10, %c0_11] : memref<8x96xf32, #tpu.memory_space<vmem>>, vector<8x96xf32>
    %7 = vector.shape_cast %6 : vector<8x96xf32> to vector<8x1x96xf32>
    %8 = vector.broadcast %7 : vector<8x1x96xf32> to vector<8x8x96xf32>
    %9 = arith.addf %5, %8 : vector<8x8x96xf32>
    %c0_i32 = arith.constant 0 : i32
    %10 = arith.cmpi eq, %arg0, %c0_i32 : i32
    %11 = arith.extui %10 : i1 to i32
    %c0_i32_12 = arith.constant 0 : i32
    %12 = arith.cmpi ne, %11, %c0_i32_12 : i32
    scf.if %12 {
      %c0_86 = arith.constant 0 : index
      %c0_87 = arith.constant 0 : index
      %c0_88 = arith.constant 0 : index
      %281 = vector.load %arg2[%c0_86, %c0_87, %c0_88] : memref<8x1x32xf32, #tpu.memory_space<vmem>>, vector<8x1x32xf32>
      %282 = vector.extract_strided_slice %9 {offsets = [0, 0, 0], sizes = [8, 1, 96], strides = [1, 1, 1]} : vector<8x8x96xf32> to vector<8x1x96xf32>
      %c0_i32_89 = arith.constant 0 : i32
      %c200_i32 = arith.constant 200 : i32
      %283 = arith.addi %c0_i32_89, %c200_i32 : i32
      %c1_i32 = arith.constant 1 : i32
      %284 = scf.for %arg9 = %c0_i32_89 to %283 step %c1_i32 iter_args(%arg10 = %281) -> (vector<8x1x32xf32>)  : i32 {
        "tpu.trace_start"() <{level = 10 : i32, message = "buh,bhj->buj"}> : () -> ()
        %cst_93 = arith.constant dense<0.000000e+00> : vector<8x1x96xf32>
        %286 = tpu.matmul %arg10, %0, %cst_93 {dimension_numbers = #tpu.dot_dimension_numbers<[2], [1], [1], [2], [0, 0, 0, 1, 1, 2], [0], [0]>} : vector<8x1x32xf32>, vector<8x32x96xf32>, vector<8x1x96xf32> -> vector<8x1x96xf32>
        "tpu.trace_stop"() : () -> ()
        %287 = arith.addf %286, %2 : vector<8x1x96xf32>
        %288 = vector.extract_strided_slice %282 {offsets = [0, 0, 0], sizes = [8, 1, 32], strides = [1, 1, 1]} : vector<8x1x96xf32> to vector<8x1x32xf32>
        %289 = vector.extract_strided_slice %287 {offsets = [0, 0, 0], sizes = [8, 1, 32], strides = [1, 1, 1]} : vector<8x1x96xf32> to vector<8x1x32xf32>
        %290 = arith.addf %288, %289 : vector<8x1x32xf32>
        %cst_94 = arith.constant 0.000000e+00 : f32
        %291 = vector.broadcast %cst_94 : f32 to vector<8x1x32xf32>
        %292 = arith.subf %291, %290 : vector<8x1x32xf32>
        %293 = math.exp %292 : vector<8x1x32xf32>
        %cst_95 = arith.constant 1.000000e+00 : f32
        %294 = vector.broadcast %cst_95 : f32 to vector<8x1x32xf32>
        %295 = arith.addf %294, %293 : vector<8x1x32xf32>
        %cst_96 = arith.constant 1.000000e+00 : f32
        %296 = vector.broadcast %cst_96 : f32 to vector<8x1x32xf32>
        %297 = arith.divf %296, %295 : vector<8x1x32xf32>
        %298 = vector.extract_strided_slice %282 {offsets = [0, 0, 32], sizes = [8, 1, 32], strides = [1, 1, 1]} : vector<8x1x96xf32> to vector<8x1x32xf32>
        %299 = vector.extract_strided_slice %287 {offsets = [0, 0, 32], sizes = [8, 1, 32], strides = [1, 1, 1]} : vector<8x1x96xf32> to vector<8x1x32xf32>
        %300 = arith.addf %298, %299 : vector<8x1x32xf32>
        %cst_97 = arith.constant 0.000000e+00 : f32
        %301 = vector.broadcast %cst_97 : f32 to vector<8x1x32xf32>
        %302 = arith.subf %301, %300 : vector<8x1x32xf32>
        %303 = math.exp %302 : vector<8x1x32xf32>
        %cst_98 = arith.constant 1.000000e+00 : f32
        %304 = vector.broadcast %cst_98 : f32 to vector<8x1x32xf32>
        %305 = arith.addf %304, %303 : vector<8x1x32xf32>
        %cst_99 = arith.constant 1.000000e+00 : f32
        %306 = vector.broadcast %cst_99 : f32 to vector<8x1x32xf32>
        %307 = arith.divf %306, %305 : vector<8x1x32xf32>
        %308 = vector.extract_strided_slice %282 {offsets = [0, 0, 64], sizes = [8, 1, 32], strides = [1, 1, 1]} : vector<8x1x96xf32> to vector<8x1x32xf32>
        %309 = vector.extract_strided_slice %287 {offsets = [0, 0, 64], sizes = [8, 1, 32], strides = [1, 1, 1]} : vector<8x1x96xf32> to vector<8x1x32xf32>
        %310 = arith.mulf %297, %309 : vector<8x1x32xf32>
        %311 = arith.addf %308, %310 : vector<8x1x32xf32>
        %312 = math.tanh %311 : vector<8x1x32xf32>
        %cst_100 = arith.constant 1.000000e+00 : f32
        %313 = vector.broadcast %cst_100 : f32 to vector<8x1x32xf32>
        %314 = arith.subf %313, %307 : vector<8x1x32xf32>
        %315 = arith.mulf %314, %312 : vector<8x1x32xf32>
        %316 = arith.mulf %307, %arg10 : vector<8x1x32xf32>
        %317 = arith.addf %315, %316 : vector<8x1x32xf32>
        %318 = arith.subf %317, %arg10 : vector<8x1x32xf32>
        %cst_101 = arith.constant 5.000000e-01 : f32
        %319 = vector.broadcast %cst_101 : f32 to vector<8x1x32xf32>
        %320 = arith.mulf %319, %318 : vector<8x1x32xf32>
        %321 = arith.addf %arg10, %320 : vector<8x1x32xf32>
        scf.yield %321 : vector<8x1x32xf32>
      }
      %c0_90 = arith.constant 0 : index
      %c0_91 = arith.constant 0 : index
      %c0_92 = arith.constant 0 : index
      %285 = vector.load %arg8[%c0_90, %c0_91, %c0_92] : memref<8x1x32xf32, #tpu.memory_space<vmem>>, vector<8x1x32xf32>
      tpu.vector_store %arg8[%c0_90, %c0_91, %c0_92], %284 {strides = array<i32>} : memref<8x1x32xf32, #tpu.memory_space<vmem>>, vector<8x1x32xf32>,
    } else {
    }
    %c0_13 = arith.constant 0 : index
    %c0_14 = arith.constant 0 : index
    %c0_15 = arith.constant 0 : index
    %13 = vector.load %arg8[%c0_13, %c0_14, %c0_15] : memref<8x1x32xf32, #tpu.memory_space<vmem>>, vector<8x1x32xf32>
    %14 = vector.extract_strided_slice %9 {offsets = [0, 0, 0], sizes = [8, 1, 96], strides = [1, 1, 1]} : vector<8x8x96xf32> to vector<8x1x96xf32>
    "tpu.trace_start"() <{level = 10 : i32, message = "buh,bhj->buj"}> : () -> ()
    %cst_16 = arith.constant dense<0.000000e+00> : vector<8x1x96xf32>
    %15 = tpu.matmul %13, %0, %cst_16 {dimension_numbers = #tpu.dot_dimension_numbers<[2], [1], [1], [2], [0, 0, 0, 1, 1, 2], [0], [0]>} : vector<8x1x32xf32>, vector<8x32x96xf32>, vector<8x1x96xf32> -> vector<8x1x96xf32>
    "tpu.trace_stop"() : () -> ()
    %16 = arith.addf %15, %2 : vector<8x1x96xf32>
    %17 = vector.extract_strided_slice %14 {offsets = [0, 0, 0], sizes = [8, 1, 32], strides = [1, 1, 1]} : vector<8x1x96xf32> to vector<8x1x32xf32>
    %18 = vector.extract_strided_slice %16 {offsets = [0, 0, 0], sizes = [8, 1, 32], strides = [1, 1, 1]} : vector<8x1x96xf32> to vector<8x1x32xf32>
    %19 = arith.addf %17, %18 : vector<8x1x32xf32>
    %cst_17 = arith.constant 0.000000e+00 : f32
    %20 = vector.broadcast %cst_17 : f32 to vector<8x1x32xf32>
    %21 = arith.subf %20, %19 : vector<8x1x32xf32>
    %22 = math.exp %21 : vector<8x1x32xf32>
    %cst_18 = arith.constant 1.000000e+00 : f32
    %23 = vector.broadcast %cst_18 : f32 to vector<8x1x32xf32>
    %24 = arith.addf %23, %22 : vector<8x1x32xf32>
    %cst_19 = arith.constant 1.000000e+00 : f32
    %25 = vector.broadcast %cst_19 : f32 to vector<8x1x32xf32>
    %26 = arith.divf %25, %24 : vector<8x1x32xf32>
    %27 = vector.extract_strided_slice %14 {offsets = [0, 0, 32], sizes = [8, 1, 32], strides = [1, 1, 1]} : vector<8x1x96xf32> to vector<8x1x32xf32>
    %28 = vector.extract_strided_slice %16 {offsets = [0, 0, 32], sizes = [8, 1, 32], strides = [1, 1, 1]} : vector<8x1x96xf32> to vector<8x1x32xf32>
    %29 = arith.addf %27, %28 : vector<8x1x32xf32>
    %cst_20 = arith.constant 0.000000e+00 : f32
    %30 = vector.broadcast %cst_20 : f32 to vector<8x1x32xf32>
    %31 = arith.subf %30, %29 : vector<8x1x32xf32>
    %32 = math.exp %31 : vector<8x1x32xf32>
    %cst_21 = arith.constant 1.000000e+00 : f32
    %33 = vector.broadcast %cst_21 : f32 to vector<8x1x32xf32>
    %34 = arith.addf %33, %32 : vector<8x1x32xf32>
    %cst_22 = arith.constant 1.000000e+00 : f32
    %35 = vector.broadcast %cst_22 : f32 to vector<8x1x32xf32>
    %36 = arith.divf %35, %34 : vector<8x1x32xf32>
    %37 = vector.extract_strided_slice %14 {offsets = [0, 0, 64], sizes = [8, 1, 32], strides = [1, 1, 1]} : vector<8x1x96xf32> to vector<8x1x32xf32>
    %38 = vector.extract_strided_slice %16 {offsets = [0, 0, 64], sizes = [8, 1, 32], strides = [1, 1, 1]} : vector<8x1x96xf32> to vector<8x1x32xf32>
    %39 = arith.mulf %26, %38 : vector<8x1x32xf32>
    %40 = arith.addf %37, %39 : vector<8x1x32xf32>
    %41 = math.tanh %40 : vector<8x1x32xf32>
    %cst_23 = arith.constant 1.000000e+00 : f32
    %42 = vector.broadcast %cst_23 : f32 to vector<8x1x32xf32>
    %43 = arith.subf %42, %36 : vector<8x1x32xf32>
    %44 = arith.mulf %43, %41 : vector<8x1x32xf32>
    %45 = arith.mulf %36, %13 : vector<8x1x32xf32>
    %46 = arith.addf %44, %45 : vector<8x1x32xf32>
    %47 = vector.extract_strided_slice %9 {offsets = [0, 1, 0], sizes = [8, 1, 96], strides = [1, 1, 1]} : vector<8x8x96xf32> to vector<8x1x96xf32>
    "tpu.trace_start"() <{level = 10 : i32, message = "buh,bhj->buj"}> : () -> ()
    %cst_24 = arith.constant dense<0.000000e+00> : vector<8x1x96xf32>
    %48 = tpu.matmul %46, %0, %cst_24 {dimension_numbers = #tpu.dot_dimension_numbers<[2], [1], [1], [2], [0, 0, 0, 1, 1, 2], [0], [0]>} : vector<8x1x32xf32>, vector<8x32x96xf32>, vector<8x1x96xf32> -> vector<8x1x96xf32>
    "tpu.trace_stop"() : () -> ()
    %49 = arith.addf %48, %2 : vector<8x1x96xf32>
    %50 = vector.extract_strided_slice %47 {offsets = [0, 0, 0], sizes = [8, 1, 32], strides = [1, 1, 1]} : vector<8x1x96xf32> to vector<8x1x32xf32>
    %51 = vector.extract_strided_slice %49 {offsets = [0, 0, 0], sizes = [8, 1, 32], strides = [1, 1, 1]} : vector<8x1x96xf32> to vector<8x1x32xf32>
    %52 = arith.addf %50, %51 : vector<8x1x32xf32>
    %cst_25 = arith.constant 0.000000e+00 : f32
    %53 = vector.broadcast %cst_25 : f32 to vector<8x1x32xf32>
    %54 = arith.subf %53, %52 : vector<8x1x32xf32>
    %55 = math.exp %54 : vector<8x1x32xf32>
    %cst_26 = arith.constant 1.000000e+00 : f32
    %56 = vector.broadcast %cst_26 : f32 to vector<8x1x32xf32>
    %57 = arith.addf %56, %55 : vector<8x1x32xf32>
    %cst_27 = arith.constant 1.000000e+00 : f32
    %58 = vector.broadcast %cst_27 : f32 to vector<8x1x32xf32>
    %59 = arith.divf %58, %57 : vector<8x1x32xf32>
    %60 = vector.extract_strided_slice %47 {offsets = [0, 0, 32], sizes = [8, 1, 32], strides = [1, 1, 1]} : vector<8x1x96xf32> to vector<8x1x32xf32>
    %61 = vector.extract_strided_slice %49 {offsets = [0, 0, 32], sizes = [8, 1, 32], strides = [1, 1, 1]} : vector<8x1x96xf32> to vector<8x1x32xf32>
    %62 = arith.addf %60, %61 : vector<8x1x32xf32>
    %cst_28 = arith.constant 0.000000e+00 : f32
    %63 = vector.broadcast %cst_28 : f32 to vector<8x1x32xf32>
    %64 = arith.subf %63, %62 : vector<8x1x32xf32>
    %65 = math.exp %64 : vector<8x1x32xf32>
    %cst_29 = arith.constant 1.000000e+00 : f32
    %66 = vector.broadcast %cst_29 : f32 to vector<8x1x32xf32>
    %67 = arith.addf %66, %65 : vector<8x1x32xf32>
    %cst_30 = arith.constant 1.000000e+00 : f32
    %68 = vector.broadcast %cst_30 : f32 to vector<8x1x32xf32>
    %69 = arith.divf %68, %67 : vector<8x1x32xf32>
    %70 = vector.extract_strided_slice %47 {offsets = [0, 0, 64], sizes = [8, 1, 32], strides = [1, 1, 1]} : vector<8x1x96xf32> to vector<8x1x32xf32>
    %71 = vector.extract_strided_slice %49 {offsets = [0, 0, 64], sizes = [8, 1, 32], strides = [1, 1, 1]} : vector<8x1x96xf32> to vector<8x1x32xf32>
    %72 = arith.mulf %59, %71 : vector<8x1x32xf32>
    %73 = arith.addf %70, %72 : vector<8x1x32xf32>
    %74 = math.tanh %73 : vector<8x1x32xf32>
    %cst_31 = arith.constant 1.000000e+00 : f32
    %75 = vector.broadcast %cst_31 : f32 to vector<8x1x32xf32>
    %76 = arith.subf %75, %69 : vector<8x1x32xf32>
    %77 = arith.mulf %76, %74 : vector<8x1x32xf32>
    %78 = arith.mulf %69, %46 : vector<8x1x32xf32>
    %79 = arith.addf %77, %78 : vector<8x1x32xf32>
    %80 = vector.extract_strided_slice %9 {offsets = [0, 2, 0], sizes = [8, 1, 96], strides = [1, 1, 1]} : vector<8x8x96xf32> to vector<8x1x96xf32>
    "tpu.trace_start"() <{level = 10 : i32, message = "buh,bhj->buj"}> : () -> ()
    %cst_32 = arith.constant dense<0.000000e+00> : vector<8x1x96xf32>
    %81 = tpu.matmul %79, %0, %cst_32 {dimension_numbers = #tpu.dot_dimension_numbers<[2], [1], [1], [2], [0, 0, 0, 1, 1, 2], [0], [0]>} : vector<8x1x32xf32>, vector<8x32x96xf32>, vector<8x1x96xf32> -> vector<8x1x96xf32>
    "tpu.trace_stop"() : () -> ()
    %82 = arith.addf %81, %2 : vector<8x1x96xf32>
    %83 = vector.extract_strided_slice %80 {offsets = [0, 0, 0], sizes = [8, 1, 32], strides = [1, 1, 1]} : vector<8x1x96xf32> to vector<8x1x32xf32>
    %84 = vector.extract_strided_slice %82 {offsets = [0, 0, 0], sizes = [8, 1, 32], strides = [1, 1, 1]} : vector<8x1x96xf32> to vector<8x1x32xf32>
    %85 = arith.addf %83, %84 : vector<8x1x32xf32>
    %cst_33 = arith.constant 0.000000e+00 : f32
    %86 = vector.broadcast %cst_33 : f32 to vector<8x1x32xf32>
    %87 = arith.subf %86, %85 : vector<8x1x32xf32>
    %88 = math.exp %87 : vector<8x1x32xf32>
    %cst_34 = arith.constant 1.000000e+00 : f32
    %89 = vector.broadcast %cst_34 : f32 to vector<8x1x32xf32>
    %90 = arith.addf %89, %88 : vector<8x1x32xf32>
    %cst_35 = arith.constant 1.000000e+00 : f32
    %91 = vector.broadcast %cst_35 : f32 to vector<8x1x32xf32>
    %92 = arith.divf %91, %90 : vector<8x1x32xf32>
    %93 = vector.extract_strided_slice %80 {offsets = [0, 0, 32], sizes = [8, 1, 32], strides = [1, 1, 1]} : vector<8x1x96xf32> to vector<8x1x32xf32>
    %94 = vector.extract_strided_slice %82 {offsets = [0, 0, 32], sizes = [8, 1, 32], strides = [1, 1, 1]} : vector<8x1x96xf32> to vector<8x1x32xf32>
    %95 = arith.addf %93, %94 : vector<8x1x32xf32>
    %cst_36 = arith.constant 0.000000e+00 : f32
    %96 = vector.broadcast %cst_36 : f32 to vector<8x1x32xf32>
    %97 = arith.subf %96, %95 : vector<8x1x32xf32>
    %98 = math.exp %97 : vector<8x1x32xf32>
    %cst_37 = arith.constant 1.000000e+00 : f32
    %99 = vector.broadcast %cst_37 : f32 to vector<8x1x32xf32>
    %100 = arith.addf %99, %98 : vector<8x1x32xf32>
    %cst_38 = arith.constant 1.000000e+00 : f32
    %101 = vector.broadcast %cst_38 : f32 to vector<8x1x32xf32>
    %102 = arith.divf %101, %100 : vector<8x1x32xf32>
    %103 = vector.extract_strided_slice %80 {offsets = [0, 0, 64], sizes = [8, 1, 32], strides = [1, 1, 1]} : vector<8x1x96xf32> to vector<8x1x32xf32>
    %104 = vector.extract_strided_slice %82 {offsets = [0, 0, 64], sizes = [8, 1, 32], strides = [1, 1, 1]} : vector<8x1x96xf32> to vector<8x1x32xf32>
    %105 = arith.mulf %92, %104 : vector<8x1x32xf32>
    %106 = arith.addf %103, %105 : vector<8x1x32xf32>
    %107 = math.tanh %106 : vector<8x1x32xf32>
    %cst_39 = arith.constant 1.000000e+00 : f32
    %108 = vector.broadcast %cst_39 : f32 to vector<8x1x32xf32>
    %109 = arith.subf %108, %102 : vector<8x1x32xf32>
    %110 = arith.mulf %109, %107 : vector<8x1x32xf32>
    %111 = arith.mulf %102, %79 : vector<8x1x32xf32>
    %112 = arith.addf %110, %111 : vector<8x1x32xf32>
    %113 = vector.extract_strided_slice %9 {offsets = [0, 3, 0], sizes = [8, 1, 96], strides = [1, 1, 1]} : vector<8x8x96xf32> to vector<8x1x96xf32>
    "tpu.trace_start"() <{level = 10 : i32, message = "buh,bhj->buj"}> : () -> ()
    %cst_40 = arith.constant dense<0.000000e+00> : vector<8x1x96xf32>
    %114 = tpu.matmul %112, %0, %cst_40 {dimension_numbers = #tpu.dot_dimension_numbers<[2], [1], [1], [2], [0, 0, 0, 1, 1, 2], [0], [0]>} : vector<8x1x32xf32>, vector<8x32x96xf32>, vector<8x1x96xf32> -> vector<8x1x96xf32>
    "tpu.trace_stop"() : () -> ()
    %115 = arith.addf %114, %2 : vector<8x1x96xf32>
    %116 = vector.extract_strided_slice %113 {offsets = [0, 0, 0], sizes = [8, 1, 32], strides = [1, 1, 1]} : vector<8x1x96xf32> to vector<8x1x32xf32>
    %117 = vector.extract_strided_slice %115 {offsets = [0, 0, 0], sizes = [8, 1, 32], strides = [1, 1, 1]} : vector<8x1x96xf32> to vector<8x1x32xf32>
    %118 = arith.addf %116, %117 : vector<8x1x32xf32>
    %cst_41 = arith.constant 0.000000e+00 : f32
    %119 = vector.broadcast %cst_41 : f32 to vector<8x1x32xf32>
    %120 = arith.subf %119, %118 : vector<8x1x32xf32>
    %121 = math.exp %120 : vector<8x1x32xf32>
    %cst_42 = arith.constant 1.000000e+00 : f32
    %122 = vector.broadcast %cst_42 : f32 to vector<8x1x32xf32>
    %123 = arith.addf %122, %121 : vector<8x1x32xf32>
    %cst_43 = arith.constant 1.000000e+00 : f32
    %124 = vector.broadcast %cst_43 : f32 to vector<8x1x32xf32>
    %125 = arith.divf %124, %123 : vector<8x1x32xf32>
    %126 = vector.extract_strided_slice %113 {offsets = [0, 0, 32], sizes = [8, 1, 32], strides = [1, 1, 1]} : vector<8x1x96xf32> to vector<8x1x32xf32>
    %127 = vector.extract_strided_slice %115 {offsets = [0, 0, 32], sizes = [8, 1, 32], strides = [1, 1, 1]} : vector<8x1x96xf32> to vector<8x1x32xf32>
    %128 = arith.addf %126, %127 : vector<8x1x32xf32>
    %cst_44 = arith.constant 0.000000e+00 : f32
    %129 = vector.broadcast %cst_44 : f32 to vector<8x1x32xf32>
    %130 = arith.subf %129, %128 : vector<8x1x32xf32>
    %131 = math.exp %130 : vector<8x1x32xf32>
    %cst_45 = arith.constant 1.000000e+00 : f32
    %132 = vector.broadcast %cst_45 : f32 to vector<8x1x32xf32>
    %133 = arith.addf %132, %131 : vector<8x1x32xf32>
    %cst_46 = arith.constant 1.000000e+00 : f32
    %134 = vector.broadcast %cst_46 : f32 to vector<8x1x32xf32>
    %135 = arith.divf %134, %133 : vector<8x1x32xf32>
    %136 = vector.extract_strided_slice %113 {offsets = [0, 0, 64], sizes = [8, 1, 32], strides = [1, 1, 1]} : vector<8x1x96xf32> to vector<8x1x32xf32>
    %137 = vector.extract_strided_slice %115 {offsets = [0, 0, 64], sizes = [8, 1, 32], strides = [1, 1, 1]} : vector<8x1x96xf32> to vector<8x1x32xf32>
    %138 = arith.mulf %125, %137 : vector<8x1x32xf32>
    %139 = arith.addf %136, %138 : vector<8x1x32xf32>
    %140 = math.tanh %139 : vector<8x1x32xf32>
    %cst_47 = arith.constant 1.000000e+00 : f32
    %141 = vector.broadcast %cst_47 : f32 to vector<8x1x32xf32>
    %142 = arith.subf %141, %135 : vector<8x1x32xf32>
    %143 = arith.mulf %142, %140 : vector<8x1x32xf32>
    %144 = arith.mulf %135, %112 : vector<8x1x32xf32>
    %145 = arith.addf %143, %144 : vector<8x1x32xf32>
    %146 = vector.extract_strided_slice %9 {offsets = [0, 4, 0], sizes = [8, 1, 96], strides = [1, 1, 1]} : vector<8x8x96xf32> to vector<8x1x96xf32>
    "tpu.trace_start"() <{level = 10 : i32, message = "buh,bhj->buj"}> : () -> ()
    %cst_48 = arith.constant dense<0.000000e+00> : vector<8x1x96xf32>
    %147 = tpu.matmul %145, %0, %cst_48 {dimension_numbers = #tpu.dot_dimension_numbers<[2], [1], [1], [2], [0, 0, 0, 1, 1, 2], [0], [0]>} : vector<8x1x32xf32>, vector<8x32x96xf32>, vector<8x1x96xf32> -> vector<8x1x96xf32>
    "tpu.trace_stop"() : () -> ()
    %148 = arith.addf %147, %2 : vector<8x1x96xf32>
    %149 = vector.extract_strided_slice %146 {offsets = [0, 0, 0], sizes = [8, 1, 32], strides = [1, 1, 1]} : vector<8x1x96xf32> to vector<8x1x32xf32>
    %150 = vector.extract_strided_slice %148 {offsets = [0, 0, 0], sizes = [8, 1, 32], strides = [1, 1, 1]} : vector<8x1x96xf32> to vector<8x1x32xf32>
    %151 = arith.addf %149, %150 : vector<8x1x32xf32>
    %cst_49 = arith.constant 0.000000e+00 : f32
    %152 = vector.broadcast %cst_49 : f32 to vector<8x1x32xf32>
    %153 = arith.subf %152, %151 : vector<8x1x32xf32>
    %154 = math.exp %153 : vector<8x1x32xf32>
    %cst_50 = arith.constant 1.000000e+00 : f32
    %155 = vector.broadcast %cst_50 : f32 to vector<8x1x32xf32>
    %156 = arith.addf %155, %154 : vector<8x1x32xf32>
    %cst_51 = arith.constant 1.000000e+00 : f32
    %157 = vector.broadcast %cst_51 : f32 to vector<8x1x32xf32>
    %158 = arith.divf %157, %156 : vector<8x1x32xf32>
    %159 = vector.extract_strided_slice %146 {offsets = [0, 0, 32], sizes = [8, 1, 32], strides = [1, 1, 1]} : vector<8x1x96xf32> to vector<8x1x32xf32>
    %160 = vector.extract_strided_slice %148 {offsets = [0, 0, 32], sizes = [8, 1, 32], strides = [1, 1, 1]} : vector<8x1x96xf32> to vector<8x1x32xf32>
    %161 = arith.addf %159, %160 : vector<8x1x32xf32>
    %cst_52 = arith.constant 0.000000e+00 : f32
    %162 = vector.broadcast %cst_52 : f32 to vector<8x1x32xf32>
    %163 = arith.subf %162, %161 : vector<8x1x32xf32>
    %164 = math.exp %163 : vector<8x1x32xf32>
    %cst_53 = arith.constant 1.000000e+00 : f32
    %165 = vector.broadcast %cst_53 : f32 to vector<8x1x32xf32>
    %166 = arith.addf %165, %164 : vector<8x1x32xf32>
    %cst_54 = arith.constant 1.000000e+00 : f32
    %167 = vector.broadcast %cst_54 : f32 to vector<8x1x32xf32>
    %168 = arith.divf %167, %166 : vector<8x1x32xf32>
    %169 = vector.extract_strided_slice %146 {offsets = [0, 0, 64], sizes = [8, 1, 32], strides = [1, 1, 1]} : vector<8x1x96xf32> to vector<8x1x32xf32>
    %170 = vector.extract_strided_slice %148 {offsets = [0, 0, 64], sizes = [8, 1, 32], strides = [1, 1, 1]} : vector<8x1x96xf32> to vector<8x1x32xf32>
    %171 = arith.mulf %158, %170 : vector<8x1x32xf32>
    %172 = arith.addf %169, %171 : vector<8x1x32xf32>
    %173 = math.tanh %172 : vector<8x1x32xf32>
    %cst_55 = arith.constant 1.000000e+00 : f32
    %174 = vector.broadcast %cst_55 : f32 to vector<8x1x32xf32>
    %175 = arith.subf %174, %168 : vector<8x1x32xf32>
    %176 = arith.mulf %175, %173 : vector<8x1x32xf32>
    %177 = arith.mulf %168, %145 : vector<8x1x32xf32>
    %178 = arith.addf %176, %177 : vector<8x1x32xf32>
    %179 = vector.extract_strided_slice %9 {offsets = [0, 5, 0], sizes = [8, 1, 96], strides = [1, 1, 1]} : vector<8x8x96xf32> to vector<8x1x96xf32>
    "tpu.trace_start"() <{level = 10 : i32, message = "buh,bhj->buj"}> : () -> ()
    %cst_56 = arith.constant dense<0.000000e+00> : vector<8x1x96xf32>
    %180 = tpu.matmul %178, %0, %cst_56 {dimension_numbers = #tpu.dot_dimension_numbers<[2], [1], [1], [2], [0, 0, 0, 1, 1, 2], [0], [0]>} : vector<8x1x32xf32>, vector<8x32x96xf32>, vector<8x1x96xf32> -> vector<8x1x96xf32>
    "tpu.trace_stop"() : () -> ()
    %181 = arith.addf %180, %2 : vector<8x1x96xf32>
    %182 = vector.extract_strided_slice %179 {offsets = [0, 0, 0], sizes = [8, 1, 32], strides = [1, 1, 1]} : vector<8x1x96xf32> to vector<8x1x32xf32>
    %183 = vector.extract_strided_slice %181 {offsets = [0, 0, 0], sizes = [8, 1, 32], strides = [1, 1, 1]} : vector<8x1x96xf32> to vector<8x1x32xf32>
    %184 = arith.addf %182, %183 : vector<8x1x32xf32>
    %cst_57 = arith.constant 0.000000e+00 : f32
    %185 = vector.broadcast %cst_57 : f32 to vector<8x1x32xf32>
    %186 = arith.subf %185, %184 : vector<8x1x32xf32>
    %187 = math.exp %186 : vector<8x1x32xf32>
    %cst_58 = arith.constant 1.000000e+00 : f32
    %188 = vector.broadcast %cst_58 : f32 to vector<8x1x32xf32>
    %189 = arith.addf %188, %187 : vector<8x1x32xf32>
    %cst_59 = arith.constant 1.000000e+00 : f32
    %190 = vector.broadcast %cst_59 : f32 to vector<8x1x32xf32>
    %191 = arith.divf %190, %189 : vector<8x1x32xf32>
    %192 = vector.extract_strided_slice %179 {offsets = [0, 0, 32], sizes = [8, 1, 32], strides = [1, 1, 1]} : vector<8x1x96xf32> to vector<8x1x32xf32>
    %193 = vector.extract_strided_slice %181 {offsets = [0, 0, 32], sizes = [8, 1, 32], strides = [1, 1, 1]} : vector<8x1x96xf32> to vector<8x1x32xf32>
    %194 = arith.addf %192, %193 : vector<8x1x32xf32>
    %cst_60 = arith.constant 0.000000e+00 : f32
    %195 = vector.broadcast %cst_60 : f32 to vector<8x1x32xf32>
    %196 = arith.subf %195, %194 : vector<8x1x32xf32>
    %197 = math.exp %196 : vector<8x1x32xf32>
    %cst_61 = arith.constant 1.000000e+00 : f32
    %198 = vector.broadcast %cst_61 : f32 to vector<8x1x32xf32>
    %199 = arith.addf %198, %197 : vector<8x1x32xf32>
    %cst_62 = arith.constant 1.000000e+00 : f32
    %200 = vector.broadcast %cst_62 : f32 to vector<8x1x32xf32>
    %201 = arith.divf %200, %199 : vector<8x1x32xf32>
    %202 = vector.extract_strided_slice %179 {offsets = [0, 0, 64], sizes = [8, 1, 32], strides = [1, 1, 1]} : vector<8x1x96xf32> to vector<8x1x32xf32>
    %203 = vector.extract_strided_slice %181 {offsets = [0, 0, 64], sizes = [8, 1, 32], strides = [1, 1, 1]} : vector<8x1x96xf32> to vector<8x1x32xf32>
    %204 = arith.mulf %191, %203 : vector<8x1x32xf32>
    %205 = arith.addf %202, %204 : vector<8x1x32xf32>
    %206 = math.tanh %205 : vector<8x1x32xf32>
    %cst_63 = arith.constant 1.000000e+00 : f32
    %207 = vector.broadcast %cst_63 : f32 to vector<8x1x32xf32>
    %208 = arith.subf %207, %201 : vector<8x1x32xf32>
    %209 = arith.mulf %208, %206 : vector<8x1x32xf32>
    %210 = arith.mulf %201, %178 : vector<8x1x32xf32>
    %211 = arith.addf %209, %210 : vector<8x1x32xf32>
    %212 = vector.extract_strided_slice %9 {offsets = [0, 6, 0], sizes = [8, 1, 96], strides = [1, 1, 1]} : vector<8x8x96xf32> to vector<8x1x96xf32>
    "tpu.trace_start"() <{level = 10 : i32, message = "buh,bhj->buj"}> : () -> ()
    %cst_64 = arith.constant dense<0.000000e+00> : vector<8x1x96xf32>
    %213 = tpu.matmul %211, %0, %cst_64 {dimension_numbers = #tpu.dot_dimension_numbers<[2], [1], [1], [2], [0, 0, 0, 1, 1, 2], [0], [0]>} : vector<8x1x32xf32>, vector<8x32x96xf32>, vector<8x1x96xf32> -> vector<8x1x96xf32>
    "tpu.trace_stop"() : () -> ()
    %214 = arith.addf %213, %2 : vector<8x1x96xf32>
    %215 = vector.extract_strided_slice %212 {offsets = [0, 0, 0], sizes = [8, 1, 32], strides = [1, 1, 1]} : vector<8x1x96xf32> to vector<8x1x32xf32>
    %216 = vector.extract_strided_slice %214 {offsets = [0, 0, 0], sizes = [8, 1, 32], strides = [1, 1, 1]} : vector<8x1x96xf32> to vector<8x1x32xf32>
    %217 = arith.addf %215, %216 : vector<8x1x32xf32>
    %cst_65 = arith.constant 0.000000e+00 : f32
    %218 = vector.broadcast %cst_65 : f32 to vector<8x1x32xf32>
    %219 = arith.subf %218, %217 : vector<8x1x32xf32>
    %220 = math.exp %219 : vector<8x1x32xf32>
    %cst_66 = arith.constant 1.000000e+00 : f32
    %221 = vector.broadcast %cst_66 : f32 to vector<8x1x32xf32>
    %222 = arith.addf %221, %220 : vector<8x1x32xf32>
    %cst_67 = arith.constant 1.000000e+00 : f32
    %223 = vector.broadcast %cst_67 : f32 to vector<8x1x32xf32>
    %224 = arith.divf %223, %222 : vector<8x1x32xf32>
    %225 = vector.extract_strided_slice %212 {offsets = [0, 0, 32], sizes = [8, 1, 32], strides = [1, 1, 1]} : vector<8x1x96xf32> to vector<8x1x32xf32>
    %226 = vector.extract_strided_slice %214 {offsets = [0, 0, 32], sizes = [8, 1, 32], strides = [1, 1, 1]} : vector<8x1x96xf32> to vector<8x1x32xf32>
    %227 = arith.addf %225, %226 : vector<8x1x32xf32>
    %cst_68 = arith.constant 0.000000e+00 : f32
    %228 = vector.broadcast %cst_68 : f32 to vector<8x1x32xf32>
    %229 = arith.subf %228, %227 : vector<8x1x32xf32>
    %230 = math.exp %229 : vector<8x1x32xf32>
    %cst_69 = arith.constant 1.000000e+00 : f32
    %231 = vector.broadcast %cst_69 : f32 to vector<8x1x32xf32>
    %232 = arith.addf %231, %230 : vector<8x1x32xf32>
    %cst_70 = arith.constant 1.000000e+00 : f32
    %233 = vector.broadcast %cst_70 : f32 to vector<8x1x32xf32>
    %234 = arith.divf %233, %232 : vector<8x1x32xf32>
    %235 = vector.extract_strided_slice %212 {offsets = [0, 0, 64], sizes = [8, 1, 32], strides = [1, 1, 1]} : vector<8x1x96xf32> to vector<8x1x32xf32>
    %236 = vector.extract_strided_slice %214 {offsets = [0, 0, 64], sizes = [8, 1, 32], strides = [1, 1, 1]} : vector<8x1x96xf32> to vector<8x1x32xf32>
    %237 = arith.mulf %224, %236 : vector<8x1x32xf32>
    %238 = arith.addf %235, %237 : vector<8x1x32xf32>
    %239 = math.tanh %238 : vector<8x1x32xf32>
    %cst_71 = arith.constant 1.000000e+00 : f32
    %240 = vector.broadcast %cst_71 : f32 to vector<8x1x32xf32>
    %241 = arith.subf %240, %234 : vector<8x1x32xf32>
    %242 = arith.mulf %241, %239 : vector<8x1x32xf32>
    %243 = arith.mulf %234, %211 : vector<8x1x32xf32>
    %244 = arith.addf %242, %243 : vector<8x1x32xf32>
    %245 = vector.extract_strided_slice %9 {offsets = [0, 7, 0], sizes = [8, 1, 96], strides = [1, 1, 1]} : vector<8x8x96xf32> to vector<8x1x96xf32>
    "tpu.trace_start"() <{level = 10 : i32, message = "buh,bhj->buj"}> : () -> ()
    %cst_72 = arith.constant dense<0.000000e+00> : vector<8x1x96xf32>
    %246 = tpu.matmul %244, %0, %cst_72 {dimension_numbers = #tpu.dot_dimension_numbers<[2], [1], [1], [2], [0, 0, 0, 1, 1, 2], [0], [0]>} : vector<8x1x32xf32>, vector<8x32x96xf32>, vector<8x1x96xf32> -> vector<8x1x96xf32>
    "tpu.trace_stop"() : () -> ()
    %247 = arith.addf %246, %2 : vector<8x1x96xf32>
    %248 = vector.extract_strided_slice %245 {offsets = [0, 0, 0], sizes = [8, 1, 32], strides = [1, 1, 1]} : vector<8x1x96xf32> to vector<8x1x32xf32>
    %249 = vector.extract_strided_slice %247 {offsets = [0, 0, 0], sizes = [8, 1, 32], strides = [1, 1, 1]} : vector<8x1x96xf32> to vector<8x1x32xf32>
    %250 = arith.addf %248, %249 : vector<8x1x32xf32>
    %cst_73 = arith.constant 0.000000e+00 : f32
    %251 = vector.broadcast %cst_73 : f32 to vector<8x1x32xf32>
    %252 = arith.subf %251, %250 : vector<8x1x32xf32>
    %253 = math.exp %252 : vector<8x1x32xf32>
    %cst_74 = arith.constant 1.000000e+00 : f32
    %254 = vector.broadcast %cst_74 : f32 to vector<8x1x32xf32>
    %255 = arith.addf %254, %253 : vector<8x1x32xf32>
    %cst_75 = arith.constant 1.000000e+00 : f32
    %256 = vector.broadcast %cst_75 : f32 to vector<8x1x32xf32>
    %257 = arith.divf %256, %255 : vector<8x1x32xf32>
    %258 = vector.extract_strided_slice %245 {offsets = [0, 0, 32], sizes = [8, 1, 32], strides = [1, 1, 1]} : vector<8x1x96xf32> to vector<8x1x32xf32>
    %259 = vector.extract_strided_slice %247 {offsets = [0, 0, 32], sizes = [8, 1, 32], strides = [1, 1, 1]} : vector<8x1x96xf32> to vector<8x1x32xf32>
    %260 = arith.addf %258, %259 : vector<8x1x32xf32>
    %cst_76 = arith.constant 0.000000e+00 : f32
    %261 = vector.broadcast %cst_76 : f32 to vector<8x1x32xf32>
    %262 = arith.subf %261, %260 : vector<8x1x32xf32>
    %263 = math.exp %262 : vector<8x1x32xf32>
    %cst_77 = arith.constant 1.000000e+00 : f32
    %264 = vector.broadcast %cst_77 : f32 to vector<8x1x32xf32>
    %265 = arith.addf %264, %263 : vector<8x1x32xf32>
    %cst_78 = arith.constant 1.000000e+00 : f32
    %266 = vector.broadcast %cst_78 : f32 to vector<8x1x32xf32>
    %267 = arith.divf %266, %265 : vector<8x1x32xf32>
    %268 = vector.extract_strided_slice %245 {offsets = [0, 0, 64], sizes = [8, 1, 32], strides = [1, 1, 1]} : vector<8x1x96xf32> to vector<8x1x32xf32>
    %269 = vector.extract_strided_slice %247 {offsets = [0, 0, 64], sizes = [8, 1, 32], strides = [1, 1, 1]} : vector<8x1x96xf32> to vector<8x1x32xf32>
    %270 = arith.mulf %257, %269 : vector<8x1x32xf32>
    %271 = arith.addf %268, %270 : vector<8x1x32xf32>
    %272 = math.tanh %271 : vector<8x1x32xf32>
    %cst_79 = arith.constant 1.000000e+00 : f32
    %273 = vector.broadcast %cst_79 : f32 to vector<8x1x32xf32>
    %274 = arith.subf %273, %267 : vector<8x1x32xf32>
    %275 = arith.mulf %274, %272 : vector<8x1x32xf32>
    %276 = arith.mulf %267, %244 : vector<8x1x32xf32>
    %277 = arith.addf %275, %276 : vector<8x1x32xf32>
    %278 = tpu.concatenate %46, %79, %112, %145, %178, %211, %244, %277 in 1 : vector<8x1x32xf32>, vector<8x1x32xf32>, vector<8x1x32xf32>, vector<8x1x32xf32>, vector<8x1x32xf32>, vector<8x1x32xf32>, vector<8x1x32xf32>, vector<8x1x32xf32> -> vector<8x8x32xf32>
    %c0_80 = arith.constant 0 : index
    %c0_81 = arith.constant 0 : index
    %c0_82 = arith.constant 0 : index
    %279 = vector.load %arg7[%c0_80, %c0_81, %c0_82] : memref<8x8x32xf32, #tpu.memory_space<vmem>>, vector<8x8x32xf32>
    tpu.vector_store %arg7[%c0_80, %c0_81, %c0_82], %278 {strides = array<i32>} : memref<8x8x32xf32, #tpu.memory_space<vmem>>, vector<8x8x32xf32>,
    %c0_83 = arith.constant 0 : index
    %c0_84 = arith.constant 0 : index
    %c0_85 = arith.constant 0 : index
    %280 = vector.load %arg8[%c0_83, %c0_84, %c0_85] : memref<8x1x32xf32, #tpu.memory_space<vmem>>, vector<8x1x32xf32>
    tpu.vector_store %arg8[%c0_83, %c0_84, %c0_85], %277 {strides = array<i32>} : memref<8x1x32xf32, #tpu.memory_space<vmem>>, vector<8x1x32xf32>,
    return
  }
  func.func @transform_0(%arg0: i32) -> (i32, i32, i32) {
    %c0_i32 = arith.constant 0 : i32
    %c0_i32_0 = arith.constant 0 : i32
    %c0_i32_1 = arith.constant 0 : i32
    return %c0_i32, %arg0, %c0_i32_0 : i32, i32, i32
  }
  func.func @transform_1(%arg0: i32) -> (i32, i32, i32) {
    %c0_i32 = arith.constant 0 : i32
    %c0_i32_0 = arith.constant 0 : i32
    %c0_i32_1 = arith.constant 0 : i32
    %c0_i32_2 = arith.constant 0 : i32
    return %c0_i32, %c0_i32_0, %c0_i32_1 : i32, i32, i32
  }
  func.func @transform_2(%arg0: i32) -> (i32, i32, i32) {
    %c0_i32 = arith.constant 0 : i32
    %c0_i32_0 = arith.constant 0 : i32
    %c0_i32_1 = arith.constant 0 : i32
    %c0_i32_2 = arith.constant 0 : i32
    return %c0_i32, %c0_i32_0, %c0_i32_1 : i32, i32, i32
  }
  func.func @transform_3(%arg0: i32) -> (i32, i32, i32) {
    %c0_i32 = arith.constant 0 : i32
    %c0_i32_0 = arith.constant 0 : i32
    %c0_i32_1 = arith.constant 0 : i32
    %c0_i32_2 = arith.constant 0 : i32
    return %c0_i32, %c0_i32_0, %c0_i32_1 : i32, i32, i32
  }
  func.func @transform_4(%arg0: i32) -> (i32, i32) {
    %c0_i32 = arith.constant 0 : i32
    %c0_i32_0 = arith.constant 0 : i32
    %c0_i32_1 = arith.constant 0 : i32
    return %c0_i32, %c0_i32_0 : i32, i32
  }
  func.func @transform_5(%arg0: i32) -> (i32, i32) {
    %c0_i32 = arith.constant 0 : i32
    %c0_i32_0 = arith.constant 0 : i32
    %c0_i32_1 = arith.constant 0 : i32
    return %c0_i32, %c0_i32_0 : i32, i32
  }
  func.func @transform_6(%arg0: i32) -> (i32, i32, i32) {
    %c0_i32 = arith.constant 0 : i32
    %c0_i32_0 = arith.constant 0 : i32
    %c0_i32_1 = arith.constant 0 : i32
    return %c0_i32, %arg0, %c0_i32_0 : i32, i32, i32
  }
}

</mosaic_0001>

<bundles_post_ra>
// kernel: gruaging_gru_forward.2
= control target key start
LH: loop header
LB: loop body
LE: loop exit
PB: predicated region body
PF: predicated region fallthrough
CT: control target
= control target key end

     0   :  { %vm209_vm0 = vcmask 1044480   ;;  %v9130_v0 = vmov 0.0   ;;  %vm205_vm1 = vcmask 39936   ;;  %vm9131_vm2 = vmmov 0   ;;  %s9137_s28 = smov 112   ;;  %s11095_s2 = inlined_call_operand.vmem [shape: f32[8,5,48], index: 2, kind: input, shape index: {}]   ;;  %s11096_s0 = inlined_call_operand.vmem [shape: f32[8,8,5], index: 0, kind: input, shape index: {}]   ;;  %s11097_s1 = inlined_call_operand.vmem [shape: f32[8,1,16], index: 1, kind: input, shape index: {}]   ;;  %s11098_s3 = inlined_call_operand.vmem [shape: f32[8,16,48], index: 3, kind: input, shape index: {}]   ;;  %s11099_s5 = inlined_call_operand.vmem [shape: f32[8,48], index: 5, kind: input, shape index: {}]   ;;  %s11100_s4 = inlined_call_operand.vmem [shape: f32[8,48], index: 4, kind: input, shape index: {}]   ;;  %s11101_s6 = inlined_call_operand.vmem [shape: f32[8,8,16], index: 6, kind: output, shape index: {}]  }
   0x1   :  { %8056 = vmatprep.subr.mxu0 %v9130_v0  ;;  %8061 = vmatprep.subr.mxu1 %v9130_v0  ;;  %v106_v1 = vld [vmem:[%s11095_s2] sm:$0x1f]  ;;  %v107_v2 = vld [vmem:[%s11095_s2 + $0x8] sm:$0x1f]  ;;  %v108_v5 = vld [vmem:[%s11095_s2 + $0x10] sm:$0x1f]  ;;  %v45_v60 = vlaneseq }
   0x2   :  { %v98_v3 = vld [vmem:[%s11096_s0] sm:$0xff]  ;;  %8057 = vmatpush3.msk.msra.mxu0 %vm209_vm0, %v106_v1  ;;  %8058 = vmatprep.mubr.msk.f32.mxu0 %vm9131_vm2, %v9130_v0  ;;  %v99_v4 = vld [vmem:[%s11096_s0 + $0x8] sm:$0xff]  ;;  %v109_v6 = vld [vmem:[%s11095_s2 + $0x18] sm:$0x1f]  ;;  %vm827_vm3 = vcmask 122880   ;;  %v9132_v35 = vmov 0.0|0.0  }
   0x3   :  { %8062 = vmatpush3.msk.msra.mxu1 %vm209_vm0, %v107_v2  ;;  %8063 = vmatprep.mubr.msk.f32.mxu1 %vm9131_vm2, %v9130_v0  ;;  %v100_v7 = vld [vmem:[%s11096_s0 + $0x10] sm:$0xff]  ;;  %v101_v8 = vld [vmem:[%s11096_s0 + $0x18] sm:$0xff]  ;;  %v110_v9 = vld [vmem:[%s11095_s2 + $0x20] sm:$0x1f]  ;;  %vm844_vm4 = vcmask 130048   ;;  %vm7621_vm5 = vcmask 1040384  }
   0x4   :  { %8059 = vmatmul.mubr.msk.f32.vlgmr.msra.gmra.mrb[0].mxu0 %vm205_vm1, %v98_v3  ;;  %8064 = vmatmul.mubr.msk.f32.vlgmr.msra.gmra.mrb[0].mxu1 %vm205_vm1, %v99_v4  ;;  %v819_v10 = vld [vmem:[%s11097_s1] sm:$0x1]  ;;  %v111_v11 = vld [vmem:[%s11095_s2 + $0x28] sm:$0x1f]  ;;  %v820_v13 = vld [vmem:[%s11097_s1 + $0x1] sm:$0x1] }
   0x5   :  { %8066 = vmatprep.subr.mxu0 %v9130_v0  ;;  %8071 = vmatprep.subr.mxu1 %v9130_v0  ;;  %v102_v12 = vld [vmem:[%s11096_s0 + $0x20] sm:$0xff]  ;;  %828 = vst.msk [vmem:[#allocation2] sm:$0x1] %vm827_vm3, %v819_v10  ;;  %v103_v14 = vld [vmem:[%s11096_s0 + $0x28] sm:$0xff]  ;;  %v112_v15 = vld [vmem:[%s11095_s2 + $0x30] sm:$0x1f] }
   0x6   :  { %8067 = vmatpush3.msk.msra.mxu0 %vm209_vm0, %v108_v5  ;;  %8068 = vmatprep.mubr.msk.f32.mxu0 %vm9131_vm2, %v9130_v0  ;;  %829 = vst.msk [vmem:[#allocation2 + $0x1] sm:$0x1] %vm827_vm3, %v820_v13  ;;  %v821_v16 = vld [vmem:[%s11097_s1 + $0x2] sm:$0x1]  ;;  %v24_v18 = vld [vmem:[%s11098_s3 + $0x8] sm:$0xff]  ;;  %v25_v20 = vld [vmem:[%s11098_s3 + $0x10] sm:$0xff] }
   0x7   :  { %8072 = vmatpush3.msk.msra.mxu1 %vm209_vm0, %v109_v6  ;;  %8073 = vmatprep.mubr.msk.f32.mxu1 %vm9131_vm2, %v9130_v0  ;;  %v23_v17 = vld [vmem:[%s11098_s3] sm:$0xff]  ;;  %830 = vst.msk [vmem:[#allocation2 + $0x2] sm:$0x1] %vm827_vm3, %v821_v16  ;;  %v26_v21 = vld [vmem:[%s11098_s3 + $0x18] sm:$0xff]  ;;  %v104_v25 = vld [vmem:[%s11096_s0 + $0x30] sm:$0xff]  ;;  %v9435_v3 = vshrl.u32 %v45_v60, 7 }
   0x8   :  { %8069 = vmatmul.mubr.msk.f32.vlgmr.msra.gmra.mrb[2].mxu0 %vm205_vm1, %v100_v7  ;;  %8074 = vmatmul.mubr.msk.f32.vlgmr.msra.gmra.mrb[2].mxu1 %vm205_vm1, %v101_v8  ;;  %v822_v19 = vld [vmem:[%s11097_s1 + $0x3] sm:$0x1]  ;;  %v823_v22 = vld [vmem:[%s11097_s1 + $0x4] sm:$0x1]  ;;  %v113_v23 = vld [vmem:[%s11095_s2 + $0x38] sm:$0x1f]  ;;  %v9295_v28 = vpack.c.bf16 %v24_v18, %v23_v17  ;;  %v9297_v29 = vpack.c.bf16 %v26_v21, %v25_v20 }
   0x9   :  { %8076 = vmatprep.subr.mxu0 %v9130_v0  ;;  %8081 = vmatprep.subr.mxu1 %v9130_v0  ;;  %831 = vst.msk [vmem:[#allocation2 + $0x3] sm:$0x1] %vm827_vm3, %v822_v19  ;;  %832 = vst.msk [vmem:[#allocation2 + $0x4] sm:$0x1] %vm827_vm3, %v823_v22  ;;  %v824_v24 = vld [vmem:[%s11097_s1 + $0x5] sm:$0x1] }
   0xa   :  { %8077 = vmatpush3.msk.msra.mxu0 %vm209_vm0, %v110_v9  ;;  %8078 = vmatprep.mubr.msk.f32.mxu0 %vm9131_vm2, %v9130_v0  ;;  %v105_v26 = vld [vmem:[%s11096_s0 + $0x38] sm:$0xff]  ;;  %833 = vst.msk [vmem:[#allocation2 + $0x5] sm:$0x1] %vm827_vm3, %v824_v24  ;;  %v825_v27 = vld [vmem:[%s11097_s1 + $0x6] sm:$0x1]  ;;  %v28_v32 = vld [vmem:[%s11098_s3 + $0x28] sm:$0xff] }
   0xb   :  { %8082 = vmatpush3.msk.msra.mxu1 %vm209_vm0, %v111_v11  ;;  %8083 = vmatprep.mubr.msk.f32.mxu1 %vm9131_vm2, %v9130_v0  ;;  %v27_v30 = vld [vmem:[%s11098_s3 + $0x20] sm:$0xff]  ;;  %834 = vst.msk [vmem:[#allocation2 + $0x6] sm:$0x1] %vm827_vm3, %v825_v27  ;;  %v29_v33 = vld [vmem:[%s11098_s3 + $0x30] sm:$0xff]  ;;  %v30_v34 = vld [vmem:[%s11098_s3 + $0x38] sm:$0xff]  ;;  %s9136_s0 = smov 16  }
   0xc   :  { %8079 = vmatmul.mubr.msk.f32.vlgmr.msra.gmra.mrb[4].mxu0 %vm205_vm1, %v102_v12  ;;  %8084 = vmatmul.mubr.msk.f32.vlgmr.msra.gmra.mrb[4].mxu1 %vm205_vm1, %v103_v14  ;;  %v826_v31 = vld [vmem:[%s11097_s1 + $0x7] sm:$0x1]  ;;  %v9325_v36 = vld [vmem:[#allocation2] sm:$0x1]  ;;  %v9329_v38 = vpack.c.bf16 %v28_v32, %v27_v30  ;;  %v9331_v39 = vpack.c.bf16 %v30_v34, %v29_v33  ;;  %v32_v41 = vld [vmem:[%s11098_s3 + $0x48] sm:$0xff]  ;;  %vm7630_vm6 = vcmask 1041408  }
   0xd   :  { %8086 = vmatprep.subr.mxu0 %v9130_v0  ;;  %8091 = vmatprep.subr.mxu1 %v9130_v0  ;;  %835 = vst.msk [vmem:[#allocation2 + $0x7] sm:$0x1] %vm827_vm3, %v826_v31  ;;  %v9327_v37 = vld [vmem:[#allocation2 + $0x1] sm:$0x1]  ;;  %v33_v42 = vld [vmem:[%s11098_s3 + $0x50] sm:$0xff]  ;;  %v34_v43 = vld [vmem:[%s11098_s3 + $0x58] sm:$0xff] }
   0xe   :  { %8087 = vmatpush3.msk.msra.mxu0 %vm209_vm0, %v112_v15  ;;  %8088 = vmatprep.mubr.msk.f32.mxu0 %vm9131_vm2, %v9130_v0  ;;  %v31_v40 = vld [vmem:[%s11098_s3 + $0x40] sm:$0xff]  ;;  %v9363_v47 = vpack.c.bf16 %v34_v43, %v33_v42  ;;  %v36_v49 = vld [vmem:[%s11098_s3 + $0x68] sm:$0xff]  ;;  %v37_v50 = vld [vmem:[%s11098_s3 + $0x70] sm:$0xff]  ;;  %v9133_v58 = vmov 1966171168   ;;  %vm7639_vm7 = vcmask 1042432  }
   0xf   :  { %8092 = vmatpush3.msk.msra.mxu1 %vm209_vm0, %v113_v23  ;;  %8093 = vmatprep.mubr.msk.f32.mxu1 %vm9131_vm2, %v9130_v0  ;;  %v9357_v44 = vld [vmem:[#allocation2 + $0x2] sm:$0x1]  ;;  %v9361_v46 = vpack.c.bf16 %v32_v41, %v31_v40  ;;  %v38_v51 = vld [vmem:[%s11098_s3 + $0x78] sm:$0xff]  ;;  %v43_v59 = vunpack.c.l.s4 %v9133_v58  ;;  %vm7648_vm8 = vcmask 1043456   ;;  %vm7665_vm9 = vcmask 1045504  }
  0x10   :  { %8089 = vmatmul.mubr.msk.f32.vlgmr.msra.gmra.mrb[6].mxu0 %vm205_vm1, %v104_v25  ;;  %8094 = vmatmul.mubr.msk.f32.vlgmr.msra.gmra.mrb[6].mxu1 %vm205_vm1, %v105_v26  ;;  %v9359_v45 = vld [vmem:[#allocation2 + $0x3] sm:$0x1]  ;;  %v9389_v52 = vld [vmem:[#allocation2 + $0x4] sm:$0x1]  ;;  %v9395_v55 = vpack.c.bf16 %v38_v51, %v37_v50  ;;  %vm7674_vm10 = vcmask 1046528   ;;  %vm7755_vm11 = vcmask 130055  }
  0x11   :  { %8544 = vmatprep.subr.bf16.mxu0 %v9132_v35  ;;  %8547 = vmatprep.subr.bf16.mxu1 %v9132_v35  ;;  %v35_v48 = vld [vmem:[%s11098_s3 + $0x60] sm:$0xff]  ;;  %v44_v2 = vunpack.c.0.s8 %v43_v59 }
  0x12   :  { %8546 = vmatpush3.bf16.msra.mxu0 %v9295_v28  ;;  %8549 = vmatpush3.bf16.msra.mxu1 %v9297_v29  ;;  %v9391_v53 = vld [vmem:[#allocation2 + $0x5] sm:$0x1]  ;;  %v9393_v54 = vpack.c.bf16 %v36_v49, %v35_v48  ;;  %v9409_v56 = vld [vmem:[#allocation2 + $0x6] sm:$0x1] }
  0x13   :  { %8100 = vmatprep.mubr.msk.f32.mxu0 %vm9131_vm2, %v9130_v0  ;;  %8107 = vmatprep.mubr.msk.f32.mxu1 %vm9131_vm2, %v9130_v0  ;;  %v39_v8 = vld [vmem:[%s11099_s5] sm:$0xff]  ;;  %v9445_v9 = vsub.s32 %v44_v2, %v9435_v3  ;;  %s9134_s5 = smov 96  }
  0x14   :  { %8550 = vmatprep.subr.bf16.mxu0 %v9132_v35  ;;  %8553 = vmatprep.subr.bf16.mxu1 %v9132_v35  ;;  %v9411_v57 = vld [vmem:[#allocation2 + $0x7] sm:$0x1]  ;;  %v41_v21 = vcombine.high %v39_v8, %v39_v8 }
  0x15   :  { %8101 = vmatmul.mubr.msk.f32.vlgmr.msra.gmra.mrb[8].mxu0 %vm844_vm4, %v9325_v36  ;;  %8108 = vmatmul.mubr.msk.f32.vlgmr.msra.gmra.mrb[8].mxu1 %vm844_vm4, %v9327_v37  ;;  %v48_v14 = vrot.slane %v39_v8, %v9445_v9 }
  0x16   :  { %8552 = vmatpush3.bf16.msra.mxu0 %v9329_v38  ;;  %8555 = vmatpush3.bf16.msra.mxu1 %v9331_v39  ;;  %v55_v31 = vrot.slane %v41_v21, %v9445_v9 }
  0x17   :  { %8114 = vmatprep.mubr.msk.f32.mxu0 %vm9131_vm2, %v9130_v0  ;;  %8121 = vmatprep.mubr.msk.f32.mxu1 %vm9131_vm2, %v9130_v0  ;;  %v9457_v19 = vrot.slane %v48_v14, %v9445_v9  ;;  %v56_v20 = vcombine.high %v48_v14, %v48_v14 }
  0x18   :  { %8556 = vmatprep.subr.bf16.mxu0 %v9132_v35  ;;  %8559 = vmatprep.subr.bf16.mxu1 %v9132_v35  ;;  %v9476_v48 = vrot.slane %v55_v31, %v9445_v9  ;;  %v57_v49 = vcombine.high %v55_v31, %v55_v31 }
  0x19   :  { %8115 = vmatmul.mubr.msk.f32.vlgmr.msra.gmra.mrb[10].mxu0 %vm844_vm4, %v9357_v44  ;;  %8122 = vmatmul.mubr.msk.f32.vlgmr.msra.gmra.mrb[10].mxu1 %vm844_vm4, %v9359_v45  ;;  %v9461_v25 = vrot.slane %v56_v20, %v9445_v9  ;;  %v9465_v30 = vcombine.high %v9457_v19, %v9457_v19  ;;  %v114_v20 = vld [vmem:[%s11100_s4] sm:$0xff]  ;;  %s9135_s4 = smov 32  }
  0x1a   :  { %8558 = vmatpush3.bf16.msra.mxu0 %v9361_v46  ;;  %8561 = vmatpush3.bf16.msra.mxu1 %v9363_v47  ;;  %v9483_v60 = vrot.slane %v57_v49, %v9445_v9  ;;  %v9487_v2 = vcombine.high %v9476_v48, %v9476_v48  ;;  %v123_v21 = vrot.slane %v114_v20, %v9445_v9 }
  0x1b   :  { %8128 = vmatprep.mubr.msk.f32.mxu0 %vm9131_vm2, %v9130_v0  ;;  %8135 = vmatprep.mubr.msk.f32.mxu1 %vm9131_vm2, %v9130_v0  ;;  %v9471_v33 = vcombine.high %v9461_v25, %v9461_v25 }
  0x1c   :  { %8562 = vmatprep.subr.bf16.mxu0 %v9132_v35  ;;  %8565 = vmatprep.subr.bf16.mxu1 %v9132_v35 }
  0x1d   :  { %8129 = vmatmul.mubr.msk.f32.vlgmr.msra.gmra.mrb[12].mxu0 %vm844_vm4, %v9389_v52  ;;  %8136 = vmatmul.mubr.msk.f32.vlgmr.msra.gmra.mrb[12].mxu1 %vm844_vm4, %v9391_v53 }
  0x1e   :  { %8564 = vmatpush3.bf16.msra.mxu0 %v9393_v54  ;;  %8567 = vmatpush3.bf16.msra.mxu1 %v9395_v55 }
  0x1f   :  { %8142 = vmatprep.mubr.msk.f32.mxu0 %vm9131_vm2, %v9130_v0  ;;  %8149 = vmatprep.mubr.msk.f32.mxu1 %vm9131_vm2, %v9130_v0 }
  0x20   :  { %8568 = vmatprep.subr.bf16.mxu0 %v9132_v35  ;;  %8571 = vmatprep.subr.bf16.mxu1 %v9132_v35 }
  0x21   :  { %8143 = vmatmul.mubr.msk.f32.vlgmr.msra.gmra.mrb[14].mxu0 %vm844_vm4, %v9409_v56  ;;  %8150 = vmatmul.mubr.msk.f32.vlgmr.msra.gmra.mrb[14].mxu1 %vm844_vm4, %v9411_v57 }
  0x22   :  { %8570 = vmatpush3.bf16.msra.mxu0 %v9295_v28  ;;  %8156 = vmatprep.mubr.msk.f32.mxu0 %vm9131_vm2, %v9130_v0 }
  0x23   :  { %8574 = vmatprep.subr.bf16.mxu0 %v9132_v35  ;;  %8573 = vmatpush3.bf16.msra.mxu1 %v9297_v29 }
  0x24   :  { %8163 = vmatprep.mubr.msk.f32.mxu1 %vm9131_vm2, %v9130_v0  ;;  %8577 = vmatprep.subr.bf16.mxu1 %v9132_v35 }
  0xd7   :  { %v9431_v61 = vpop.f32.mrb[0].mxu0  ;;  %v9433_v62 = vpop.f32.mrb[0].mxu1 }
  0xd8   :  { %v8060_v63 = vpop.f32.mrb[1].mxu0  ;;  %v8065_v1 = vpop.f32.mrb[1].mxu1 }
  0xdb   :  { %v9437_v4 = vpop.f32.mrb[2].mxu0  ;;  %v9439_v5 = vpop.f32.mrb[2].mxu1 }
  0xdc   :  { %v8070_v6 = vpop.f32.mrb[3].mxu0  ;;  %v8075_v7 = vpop.f32.mrb[3].mxu1 }
  0xdf   :  { %v9447_v10 = vpop.f32.mrb[4].mxu0  ;;  %v9449_v11 = vpop.f32.mrb[4].mxu1 }
  0xe0   :  { %v8080_v12 = vpop.f32.mrb[5].mxu0  ;;  %v8085_v13 = vpop.f32.mrb[5].mxu1 }
  0xe1   :  { %v9495_v13 = vcombine.high %v9483_v60, %v9483_v60 }
  0xe3   :  { %v9452_v15 = vpop.f32.mrb[6].mxu0  ;;  %v9454_v16 = vpop.f32.mrb[6].mxu1 }
  0xe4   :  { %v8090_v17 = vpop.f32.mrb[7].mxu0  ;;  %v8095_v18 = vpop.f32.mrb[7].mxu1 }
  0xe8   :  { %v914_v22 = vpop.f32.mrb[8].mxu0  ;;  %v987_v23 = vpop.f32.mrb[8].mxu1 }
  0xe9   :  { %v915_v24 = vadd.f32 %v914_v22, %v9457_v19  ;;  %v8102_v26 = vpop.f32.mrb[9].mxu0  ;;  %v8109_v27 = vpop.f32.mrb[9].mxu1  ;;  %v988_v40 = vadd.f32 %v987_v23, %v9461_v25  ;;  %v131_v22 = vcombine.high %v123_v21, %v123_v21  ;;  %v139_v23 = vrot.slane %v123_v21, %v9445_v9 }
  0xea   :  { %v9507_v26 = vsub.s32 0, %v9435_v3  ;;  %v116_v27 = vcombine.high %v114_v20, %v114_v20 }
  0xeb   :  { %1493 = vrot.lane.b32.xlu0 %v915_v24, %s9134_s5  ;;  %v153_v31 = vrot.slane %v131_v22, %v9445_v9 }
  0xec   :  { %v1060_v32 = vpop.f32.mrb[10].mxu0  ;;  %v1133_v34 = vpop.f32.mrb[10].mxu1 }
  0xed   :  { %v1061_v41 = vadd.f32 %v1060_v32, %v9465_v30  ;;  %v8123_v42 = vpop.f32.mrb[11].mxu1  ;;  %v8116_v43 = vpop.f32.mrb[11].mxu0  ;;  %v1134_v58 = vadd.f32 %v1133_v34, %v9471_v33  ;;  %v168_v32 = vrot.slane %v139_v23, %v9507_v26  ;;  %v161_v34 = vcombine.high %v139_v23, %v139_v23 }
  0xee   :  { %v130_v42 = vrot.slane %v116_v27, %v9445_v9  ;;  %v172_v43 = vrot.slane %v153_v31, %v9507_v26  ;;  %v163_v49 = vcombine.high %v153_v31, %v153_v31 }
  0xef   :  { %1495 = vrot.lane.b32.xlu0 %v988_v40, %s9134_s5  ;;  %1497 = vrot.lane.b32.xlu1 %v1061_v41, %s9134_s5 }
  0xf0   :  { %v1206_v50 = vpop.f32.mrb[12].mxu0  ;;  %v1279_v51 = vpop.f32.mrb[12].mxu1  ;;  %v146_v3 = vrot.slane %v130_v42, %v9445_v9 }
  0xf1   :  { %v1207_v59 = vadd.f32 %v1206_v50, %v9476_v48  ;;  %v8137_v63 = vpop.f32.mrb[13].mxu1  ;;  %v8130_v1 = vpop.f32.mrb[13].mxu0  ;;  %v1280_v8 = vadd.f32 %v1279_v51, %v9483_v60  ;;  %v132_v50 = vcombine.high %v130_v42, %v130_v42  ;;  %v9514_v51 = vadd.f32 %v9431_v61, %v168_v32 }
  0xf2   :  { %v176_v63 = vrot.slane %v161_v34, %v9507_v26  ;;  %v184_v20 = vrot.slane %v146_v3, %v9507_v26  ;;  %v162_v61 = vcombine.high %v146_v3, %v146_v3 }
  0xf3   :  { %1499 = vrot.lane.b32.xlu1 %v1134_v58, %s9134_s5  ;;  %1501 = vrot.lane.b32.xlu0 %v1207_v59, %s9134_s5  ;;  %v1429_v1 = vadd.f32 %v915_v24, %v9514_v51 }
  0xf4   :  { %v1352_v6 = vpop.f32.mrb[14].mxu0  ;;  %v1425_v7 = vpop.f32.mrb[14].mxu1  ;;  %v9535_v27 = vadd.f32 %v9447_v10, %v184_v20 }
  0xf5   :  { %v1353_v12 = vadd.f32 %v1352_v6, %v9487_v2  ;;  %v8144_v14 = vpop.f32.mrb[15].mxu0  ;;  %v8151_v17 = vpop.f32.mrb[15].mxu1  ;;  %v1426_v18 = vadd.f32 %v1425_v7, %v9495_v13  ;;  %v9520_v6 = vadd.f32 %v9433_v62, %v172_v43  ;;  %v180_v7 = vrot.slane %v163_v49, %v9507_v26 }
  0xf6   :  { %v160_v14 = vrot.slane %v132_v50, %v9445_v9  ;;  %v9525_v17 = vadd.f32 %v9437_v4, %v176_v63  ;;  %v1437_v22 = vsub.f32 0.0, %v1429_v1  ;;  %v192_v9 = vrot.slane %v162_v61, %v9507_v26 }
  0xf7   :  { %1503 = vrot.lane.b32.xlu1 %v1280_v8, %s9134_s5  ;;  %1505 = vrot.lane.b32.xlu0 %v1353_v12, %s9134_s5  ;;  %v1430_v21 = vadd.f32 %v988_v40, %v9520_v6  ;;  %v9531_v24 = vadd.f32 %v9439_v5, %v180_v7  ;;  %v1433_v40 = vadd.f32 %v1207_v59, %v9535_v27 }
  0xf8   :  { %v1431_v23 = vadd.f32 %v1061_v41, %v9525_v17  ;;  %v188_v62 = vrot.slane %v160_v14, %v9507_v26  ;;  %v164_v4 = vcombine.high %v160_v14, %v160_v14  ;;  %v1445_v34 = vmul.f32 1.442695, %v1437_v22 }
  0xf9   :  { %v1438_v31 = vsub.f32 0.0, %v1430_v21  ;;  %v1432_v32 = vadd.f32 %v1134_v58, %v9531_v24  ;;  %v9544_v5 = vadd.f32 %v9452_v15, %v192_v9  ;;  %v1441_v3 = vsub.f32 0.0, %v1433_v40 }
  0xfa   :  { %v1439_v42 = vsub.f32 0.0, %v1431_v23  ;;  %v9541_v41 = vadd.f32 %v9449_v11, %v188_v62  ;;  %v196_v43 = vrot.slane %v164_v4, %v9507_v26  ;;  %8746 = vpow2.f32 %v1445_v34 }
  0xfb   :  { %1507 = vrot.lane.b32.xlu1 %v1426_v18, %s9134_s5  ;;  %v1447_v10 = vmul.f32 1.442695, %v1438_v31  ;;  %v1440_v49 = vsub.f32 0.0, %v1432_v32  ;;  %v1435_v58 = vadd.f32 %v1353_v12, %v9544_v5  ;;  %v1453_v15 = vmul.f32 1.442695, %v1441_v3 }
  0xfc   :  { %v1434_v50 = vadd.f32 %v1280_v8, %v9541_v41  ;;  %v1449_v63 = vmul.f32 1.442695, %v1439_v42  ;;  %v9550_v1 = vadd.f32 %v9454_v16, %v196_v43 }
  0xfd   :  { %8748 = vpow2.f32 %v1447_v10  ;;  %v1451_v11 = vmul.f32 1.442695, %v1440_v49  ;;  %v1443_v7 = vsub.f32 0.0, %v1435_v58 }
  0xfe   :  { %v1442_v59 = vsub.f32 0.0, %v1434_v50  ;;  %8750 = vpow2.f32 %v1449_v63  ;;  %v1436_v14 = vadd.f32 %v1426_v18, %v9550_v1 }
  0xff   :  { %8752 = vpow2.f32 %v1451_v11  ;;  %v1457_v8 = vmul.f32 1.442695, %v1443_v7 }
 0x100   :  { %v1455_v20 = vmul.f32 1.442695, %v1442_v59  ;;  %8754 = vpow2.f32 %v1453_v15  ;;  %v1444_v61 = vsub.f32 0.0, %v1436_v14 }
 0x102   :  { %8756 = vpow2.f32 %v1455_v20  ;;  %v1459_v12 = vmul.f32 1.442695, %v1444_v61 }
 0x103   :  { %8758 = vpow2.f32 %v1457_v8 }
 0x104   :  { %v8747_v21 = vpop.eup %8746  ;;  %8760 = vpow2.f32 %v1459_v12 }
 0x105   :  { %v1461_v16 = vadd.f32 1.0, %v8747_v21 }
 0x107   :  { %v8749_v22 = vpop.eup %8748  ;;  %8762 = vrcp.f32 %v1461_v16 }
 0x108   :  { %v8751_v23 = vpop.eup %8750  ;;  %v1462_v62 = vadd.f32 1.0, %v8749_v22 }
 0x109   :  { %v8753_v9 = vpop.eup %8752  ;;  %v1463_v4 = vadd.f32 1.0, %v8751_v23 }
 0x10a   :  { %v8755_v31 = vpop.eup %8754  ;;  %8764 = vrcp.f32 %v1462_v62  ;;  %v1464_v18 = vadd.f32 1.0, %v8753_v9 }
 0x10b   :  { %8766 = vrcp.f32 %v1463_v4  ;;  %v1465_v34 = vadd.f32 1.0, %v8755_v31 }
 0x10c   :  { %v8757_v32 = vpop.eup %8756  ;;  %8768 = vrcp.f32 %v1464_v18  ;;  %v1624_v18 = vrot.slane %v9325_v36, %v9507_v26  ;;  %v1636_v36 = vrot.slane %v9359_v45, %v9507_v26 }
 0x10d   :  { %v8759_v42 = vpop.eup %8758  ;;  %v1466_v40 = vadd.f32 1.0, %v8757_v32  ;;  %8770 = vrcp.f32 %v1465_v34 }
 0x10e   :  { %v1467_v43 = vadd.f32 1.0, %v8759_v42  ;;  %v8761_v10 = vpop.eup %8760 }
 0x10f   :  { %8772 = vrcp.f32 %v1466_v40  ;;  %v1468_v3 = vadd.f32 1.0, %v8761_v10  ;;  %v1628_v40 = vrot.slane %v9327_v37, %v9507_v26  ;;  %v1640_v10 = vrot.slane %v9389_v52, %v9507_v26 }
 0x110   :  { %8774 = vrcp.f32 %v1467_v43  ;;  %v1632_v43 = vrot.slane %v9357_v44, %v9507_v26  ;;  %v1644_v37 = vrot.slane %v9391_v53, %v9507_v26 }
 0x111   :  { %v9553_v49 = vpop.eup %8762  ;;  %8776 = vrcp.f32 %v1468_v3 }
 0x114   :  { %v9556_v58 = vpop.eup %8764 }
 0x115   :  { %v9559_v11 = vpop.eup %8766 }
 0x116   :  { %v9563_v20 = vpop.eup %8768 }
 0x117   :  { %v9567_v8 = vpop.eup %8770 }
 0x119   :  { %v9571_v16 = vpop.eup %8772 }
 0x11a   :  { %v9575_v23 = vpop.eup %8774 }
 0x11b   :  { %v9583_v32 = vpop.eup %8776 }
 0x15d   :  { %v1494_v50 = vpop.permute.xlu0 %1493 }
 0x15e   :  { %v1517_v63 = vmul.f32 %v9553_v49, %v1494_v50 }
 0x160   :  { %1533 = vrot.lane.b32.xlu0 %v1517_v63, %s9135_s4 }
 0x161   :  { %v1496_v59 = vpop.permute.xlu0 %1495  ;;  %v1498_v15 = vpop.permute.xlu1 %1497 }
 0x162   :  { %v1518_v7 = vmul.f32 %v9556_v58, %v1496_v59  ;;  %v1519_v14 = vmul.f32 %v9559_v11, %v1498_v15 }
 0x164   :  { %1535 = vrot.lane.b32.xlu1 %v1518_v7, %s9135_s4  ;;  %1537 = vrot.lane.b32.xlu0 %v1519_v14, %s9135_s4 }
 0x165   :  { %v1500_v61 = vpop.permute.xlu1 %1499  ;;  %v1502_v21 = vpop.permute.xlu0 %1501 }
 0x166   :  { %v1520_v12 = vmul.f32 %v9563_v20, %v1500_v61  ;;  %v1521_v22 = vmul.f32 %v9567_v8, %v1502_v21 }
 0x168   :  { %1539 = vrot.lane.b32.xlu1 %v1520_v12, %s9135_s4  ;;  %1541 = vrot.lane.b32.xlu0 %v1521_v22, %s9135_s4 }
 0x169   :  { %v1504_v62 = vpop.permute.xlu1 %1503  ;;  %v1506_v9 = vpop.permute.xlu0 %1505 }
 0x16a   :  { %v1522_v4 = vmul.f32 %v9571_v16, %v1504_v62  ;;  %v1523_v31 = vmul.f32 %v9575_v23, %v1506_v9 }
 0x16c   :  { %1543 = vrot.lane.b32.xlu1 %v1522_v4, %s9135_s4  ;;  %1545 = vrot.lane.b32.xlu0 %v1523_v31, %s9135_s4 }
 0x16d   :  { %v1508_v34 = vpop.permute.xlu1 %1507 }
 0x16e   :  { %v1524_v42 = vmul.f32 %v9583_v32, %v1508_v34 }
 0x170   :  { %1547 = vrot.lane.b32.xlu1 %v1524_v42, %s9135_s4  ;;  %1653 = vrot.lane.b32.xlu0 %v1624_v18, %s9136_s0 }
 0x174   :  { %1655 = vrot.lane.b32.xlu1 %v1628_v40, %s9136_s0  ;;  %1657 = vrot.lane.b32.xlu0 %v1632_v43, %s9136_s0  ;;  %v1648_v43 = vrot.slane %v9409_v56, %v9507_v26 }
 0x178   :  { %1659 = vrot.lane.b32.xlu1 %v1636_v36, %s9136_s0  ;;  %1661 = vrot.lane.b32.xlu0 %v1640_v10, %s9136_s0  ;;  %v1652_v10 = vrot.slane %v9411_v57, %v9507_v26  ;;  %v1574_v57 = vsub.f32 1.0, %v9556_v58 }
 0x17c   :  { %1663 = vrot.lane.b32.xlu1 %v1644_v37, %s9136_s0 }
 0x1d2   :  { %v1534_v44 = vpop.permute.xlu0 %1533 }
 0x1d3   :  { %v1557_v50 = vadd.f32 %v1534_v44, %v9514_v51 }
 0x1d5   :  { %8778 = vtanh.f32 %v1557_v50 }
 0x1d6   :  { %v1536_v63 = vpop.permute.xlu1 %1535  ;;  %v1538_v3 = vpop.permute.xlu0 %1537 }
 0x1d7   :  { %v1558_v45 = vadd.f32 %v1536_v63, %v9520_v6  ;;  %v1559_v59 = vadd.f32 %v1538_v3, %v9525_v17 }
 0x1d9   :  { %8780 = vtanh.f32 %v1558_v45  ;;  %v1573_v45 = vsub.f32 1.0, %v9553_v49 }
 0x1da   :  { %8782 = vtanh.f32 %v1559_v59  ;;  %v1540_v52 = vpop.permute.xlu1 %1539  ;;  %v1542_v15 = vpop.permute.xlu0 %1541 }
 0x1db   :  { %v1560_v7 = vadd.f32 %v1540_v52, %v9531_v24  ;;  %v1561_v53 = vadd.f32 %v1542_v15, %v9535_v27 }
 0x1dd   :  { %8784 = vtanh.f32 %v1560_v7 }
 0x1de   :  { %8786 = vtanh.f32 %v1561_v53  ;;  %v1544_v14 = vpop.permute.xlu1 %1543  ;;  %v1546_v61 = vpop.permute.xlu0 %1545  ;;  %v1575_v53 = vsub.f32 1.0, %v9559_v11 }
 0x1df   :  { %v8779_v21 = vpop.eup %8778  ;;  %v1562_v12 = vadd.f32 %v1544_v14, %v9541_v41  ;;  %v1563_v22 = vadd.f32 %v1546_v61, %v9544_v5 }
 0x1e0   :  { %1589 = vrot.lane.b32.xlu0 %v8779_v21, %s9137_s28 }
 0x1e1   :  { %8788 = vtanh.f32 %v1562_v12 }
 0x1e2   :  { %8790 = vtanh.f32 %v1563_v22  ;;  %v1548_v62 = vpop.permute.xlu1 %1547  ;;  %v1654_v37 = vpop.permute.xlu0 %1653 }
 0x1e3   :  { %v8781_v9 = vpop.eup %8780  ;;  %v1564_v4 = vadd.f32 %v1548_v62, %v9550_v1  ;;  %v1677_v56 = vmul.f32 %v9553_v49, %v1654_v37  ;;  %v1576_v49 = vsub.f32 1.0, %v9563_v20 }
 0x1e4   :  { %v8783_v31 = vpop.eup %8782  ;;  %1591 = vrot.lane.b32.xlu1 %v8781_v9, %s9137_s28 }
 0x1e5   :  { %8792 = vtanh.f32 %v1564_v4  ;;  %1593 = vrot.lane.b32.xlu0 %v8783_v31, %s9137_s28  ;;  %v1577_v31 = vsub.f32 1.0, %v9567_v8 }
 0x1e6   :  { %v1656_v44 = vpop.permute.xlu1 %1655  ;;  %v1658_v50 = vpop.permute.xlu0 %1657 }
 0x1e7   :  { %v8785_v18 = vpop.eup %8784  ;;  %v1678_v14 = vmul.f32 %v9556_v58, %v1656_v44  ;;  %v1679_v12 = vmul.f32 %v9559_v11, %v1658_v50  ;;  %v1579_v50 = vsub.f32 1.0, %v9575_v23 }
 0x1e8   :  { %v8787_v34 = vpop.eup %8786  ;;  %1595 = vrot.lane.b32.xlu1 %v8785_v18, %s9137_s28 }
 0x1e9   :  { %1597 = vrot.lane.b32.xlu0 %v8787_v34, %s9137_s28 }
 0x1ea   :  { %v1660_v63 = vpop.permute.xlu1 %1659  ;;  %v1662_v3 = vpop.permute.xlu0 %1661 }
 0x1eb   :  { %v8789_v42 = vpop.eup %8788  ;;  %v1680_v18 = vmul.f32 %v9563_v20, %v1660_v63 }
 0x1ec   :  { %v8791_v40 = vpop.eup %8790  ;;  %1599 = vrot.lane.b32.xlu1 %v8789_v42, %s9137_s28  ;;  %v1681_v42 = vmul.f32 %v9567_v8, %v1662_v3 }
 0x1ed   :  { %1601 = vrot.lane.b32.xlu0 %v8791_v40, %s9137_s28 }
 0x1ee   :  { %v1664_v59 = vpop.permute.xlu1 %1663 }
 0x1ef   :  { %v8793_v36 = vpop.eup %8792  ;;  %v1682_v20 = vmul.f32 %v9571_v16, %v1664_v59  ;;  %v1580_v59 = vsub.f32 1.0, %v9583_v32 }
 0x1f0   :  { %1603 = vrot.lane.b32.xlu1 %v8793_v36, %s9137_s28 }
 0x1f1   :  { %1665 = vrot.lane.b32.xlu0 %v1648_v43, %s9136_s0  ;;  %v1578_v43 = vsub.f32 1.0, %v9571_v16 }
 0x1f4   :  { %1667 = vrot.lane.b32.xlu1 %v1652_v10, %s9136_s0 }
 0x252   :  { %v1590_v52 = vpop.permute.xlu0 %1589 }
 0x253   :  { %v1613_v15 = vmul.f32 %v1590_v52, %v1573_v45 }
 0x255   :  { %v9627_v7 = vadd.f32 %v1677_v56, %v1613_v15 }
 0x256   :  { %v1592_v26 = vpop.permute.xlu1 %1591 }
 0x257   :  { %v1614_v61 = vmul.f32 %v1592_v26, %v1574_v57  ;;  %v1594_v21 = vpop.permute.xlu0 %1593  ;;  %1694 = vrot.lane.b32.xlu0 %v9627_v7, %s9137_s28 }
 0x258   :  { %v1615_v22 = vmul.f32 %v1594_v21, %v1575_v53 }
 0x259   :  { %v9635_v62 = vadd.f32 %v1678_v14, %v1614_v61 }
 0x25a   :  { %v9638_v9 = vadd.f32 %v1679_v12, %v1615_v22  ;;  %v1596_v4 = vpop.permute.xlu1 %1595 }
 0x25b   :  { %v1616_v58 = vmul.f32 %v1596_v4, %v1576_v49  ;;  %v1598_v34 = vpop.permute.xlu0 %1597  ;;  %1769 = vrot.lane.b32.xlu1 %v9635_v62, %s9137_s28 }
 0x25c   :  { %v1617_v11 = vmul.f32 %v1598_v34, %v1577_v31  ;;  %1844 = vrot.lane.b32.xlu0 %v9638_v9, %s9137_s28 }
 0x25d   :  { %v9647_v40 = vadd.f32 %v1680_v18, %v1616_v58 }
 0x25e   :  { %v9650_v36 = vadd.f32 %v1681_v42, %v1617_v11  ;;  %v1600_v10 = vpop.permute.xlu1 %1599 }
 0x25f   :  { %v1618_v37 = vmul.f32 %v1600_v10, %v1578_v43  ;;  %v1602_v44 = vpop.permute.xlu0 %1601  ;;  %1919 = vrot.lane.b32.xlu1 %v9647_v40, %s9137_s28 }
 0x260   :  { %1994 = vrot.lane.b32.xlu0 %v9650_v36, %s9137_s28  ;;  %v1619_v45 = vmul.f32 %v1602_v44, %v1579_v50 }
 0x261   :  { %v9657_v8 = vadd.f32 %v1682_v20, %v1618_v37 }
 0x262   :  { %v1604_v63 = vpop.permute.xlu1 %1603 }
 0x263   :  { %v1666_v3 = vpop.permute.xlu0 %1665  ;;  %2069 = vrot.lane.b32.xlu1 %v9657_v8, %s9137_s28  ;;  %v1620_v15 = vmul.f32 %v1604_v63, %v1580_v59 }
 0x264   :  { %v1683_v16 = vmul.f32 %v9575_v23, %v1666_v3 }
 0x266   :  { %v9664_v52 = vadd.f32 %v1683_v16, %v1619_v45  ;;  %v1668_v56 = vpop.permute.xlu1 %1667 }
 0x267   :  { %v1684_v57 = vmul.f32 %v9583_v32, %v1668_v56 }
 0x268   :  { %2144 = vrot.lane.b32.xlu0 %v9664_v52, %s9137_s28 }
 0x269   :  { %v9669_v26 = vadd.f32 %v1684_v57, %v1620_v15 }
 0x26b   :  { %2219 = vrot.lane.b32.xlu1 %v9669_v26, %s9137_s28 }
 0x2c9   :  { %v1695_v53 = vpop.permute.xlu0 %1694 }
 0x2ca   :  { %8157 = vmatmul.mubr.msk.f32.vlgmr.msra.gmra.mrb[16].mxu0 %vm844_vm4, %v1695_v53 }
 0x2cb   :  { %8576 = vmatpush3.bf16.msra.mxu0 %v9329_v38  ;;  %8170 = vmatprep.mubr.msk.f32.mxu0 %vm9131_vm2, %v9130_v0 }
 0x2cc   :  { %8580 = vmatprep.subr.bf16.mxu0 %v9132_v35 }
 0x2cd   :  { %v1770_v23 = vpop.permute.xlu1 %1769 }
 0x2ce   :  { %v1845_v32 = vpop.permute.xlu0 %1844  ;;  %8164 = vmatmul.mubr.msk.f32.vlgmr.msra.gmra.mrb[16].mxu1 %vm844_vm4, %v1770_v23 }
 0x2cf   :  { %8171 = vmatmul.mubr.msk.f32.vlgmr.msra.gmra.mrb[18].mxu0 %vm844_vm4, %v1845_v32  ;;  %8579 = vmatpush3.bf16.msra.mxu1 %v9331_v39 }
 0x2d0   :  { %8582 = vmatpush3.bf16.msra.mxu0 %v9361_v46  ;;  %8177 = vmatprep.mubr.msk.f32.mxu1 %vm9131_vm2, %v9130_v0 }
 0x2d1   :  { %v1920_v14 = vpop.permute.xlu1 %1919  ;;  %8184 = vmatprep.mubr.msk.f32.mxu0 %vm9131_vm2, %v9130_v0  ;;  %8583 = vmatprep.subr.bf16.mxu1 %v9132_v35 }
 0x2d2   :  { %v1995_v61 = vpop.permute.xlu0 %1994  ;;  %8178 = vmatmul.mubr.msk.f32.vlgmr.msra.gmra.mrb[18].mxu1 %vm844_vm4, %v1920_v14  ;;  %8586 = vmatprep.subr.bf16.mxu0 %v9132_v35 }
 0x2d3   :  { %8185 = vmatmul.mubr.msk.f32.vlgmr.msra.gmra.mrb[20].mxu0 %vm844_vm4, %v1995_v61  ;;  %8585 = vmatpush3.bf16.msra.mxu1 %v9363_v47 }
 0x2d4   :  { %8191 = vmatprep.mubr.msk.f32.mxu1 %vm9131_vm2, %v9130_v0  ;;  %8588 = vmatpush3.bf16.msra.mxu0 %v9393_v54 }
 0x2d5   :  { %v2070_v21 = vpop.permute.xlu1 %2069  ;;  %8198 = vmatprep.mubr.msk.f32.mxu0 %vm9131_vm2, %v9130_v0  ;;  %8589 = vmatprep.subr.bf16.mxu1 %v9132_v35 }
 0x2d6   :  { %8192 = vmatmul.mubr.msk.f32.vlgmr.msra.gmra.mrb[20].mxu1 %vm844_vm4, %v2070_v21  ;;  %8592 = vmatprep.subr.bf16.mxu0 %v9132_v35 }
 0x2d7   :  { %8591 = vmatpush3.bf16.msra.mxu1 %v9395_v55  ;;  %8205 = vmatprep.mubr.msk.f32.mxu1 %vm9131_vm2, %v9130_v0 }
 0x2d8   :  { %8595 = vmatprep.subr.bf16.mxu1 %v9132_v35 }
 0x2da   :  { %v2145_v12 = vpop.permute.xlu0 %2144 }
 0x2db   :  { %8199 = vmatmul.mubr.msk.f32.vlgmr.msra.gmra.mrb[22].mxu0 %vm844_vm4, %v2145_v12 }
 0x2dc   :  { %8594 = vmatpush3.bf16.msra.mxu0 %v9295_v28  ;;  %8212 = vmatprep.mubr.msk.f32.mxu0 %vm9131_vm2, %v9130_v0 }
 0x2dd   :  { %v2220_v22 = vpop.permute.xlu1 %2219  ;;  %8598 = vmatprep.subr.bf16.mxu0 %v9132_v35 }
 0x2de   :  { %8206 = vmatmul.mubr.msk.f32.vlgmr.msra.gmra.mrb[22].mxu1 %vm844_vm4, %v2220_v22 }
 0x2df   :  { %8597 = vmatpush3.bf16.msra.mxu1 %v9297_v29  ;;  %8219 = vmatprep.mubr.msk.f32.mxu1 %vm9131_vm2, %v9130_v0 }
 0x2e0   :  { %8601 = vmatprep.subr.bf16.mxu1 %v9132_v35 }
 0x39d   :  { %v1764_v49 = vpop.f32.mrb[16].mxu0 }
 0x39e   :  { %v1765_v4 = vadd.f32 %v1764_v49, %v9457_v19  ;;  %v8158_v31 = vpop.f32.mrb[17].mxu0 }
 0x3a0   :  { %v2301_v18 = vrot.slane %v1765_v4, 7 }
 0x3a1   :  { %v1839_v58 = vpop.f32.mrb[16].mxu1 }
 0x3a2   :  { %v1840_v34 = vadd.f32 %v1839_v58, %v9461_v25  ;;  %v1914_v42 = vpop.f32.mrb[18].mxu0  ;;  %v8165_v11 = vpop.f32.mrb[17].mxu1  ;;  %2373 = vrot.lane.b32.xlu0 %v2301_v18, %s9134_s5  ;;  %v2317_v31 = vadd.f32 %v2301_v18, %v9514_v51 }
 0x3a3   :  { %v1915_v43 = vadd.f32 %v1914_v42, %v9465_v30  ;;  %v8172_v10 = vpop.f32.mrb[19].mxu0 }
 0x3a4   :  { %v2302_v20 = vrot.slane %v1840_v34, 7  ;;  %v2325_v58 = vsub.f32 0.0, %v2317_v31 }
 0x3a5   :  { %v2303_v37 = vrot.slane %v1915_v43, 7  ;;  %v1989_v44 = vpop.f32.mrb[18].mxu1 }
 0x3a6   :  { %v1990_v50 = vadd.f32 %v1989_v44, %v9471_v33  ;;  %v2064_v63 = vpop.f32.mrb[20].mxu0  ;;  %2375 = vrot.lane.b32.xlu1 %v2302_v20, %s9134_s5  ;;  %v8179_v3 = vpop.f32.mrb[19].mxu1  ;;  %v2318_v34 = vadd.f32 %v2302_v20, %v9520_v6  ;;  %v2333_v11 = vmul.f32 1.442695, %v2325_v58 }
 0x3a7   :  { %v2065_v45 = vadd.f32 %v2064_v63, %v9476_v48  ;;  %2377 = vrot.lane.b32.xlu0 %v2303_v37, %s9134_s5  ;;  %v8186_v16 = vpop.f32.mrb[21].mxu0  ;;  %v2319_v42 = vadd.f32 %v2303_v37, %v9525_v17 }
 0x3a8   :  { %v2304_v59 = vrot.slane %v1990_v50, 7  ;;  %v2326_v43 = vsub.f32 0.0, %v2318_v34  ;;  %8794 = vpow2.f32 %v2333_v11 }
 0x3a9   :  { %v2305_v56 = vrot.slane %v2065_v45, 7  ;;  %v2139_v15 = vpop.f32.mrb[20].mxu1  ;;  %v2327_v44 = vsub.f32 0.0, %v2319_v42 }
 0x3aa   :  { %v2140_v57 = vadd.f32 %v2139_v15, %v9483_v60  ;;  %2379 = vrot.lane.b32.xlu1 %v2304_v59, %s9134_s5  ;;  %v8193_v53 = vpop.f32.mrb[21].mxu1  ;;  %v2320_v10 = vadd.f32 %v2304_v59, %v9531_v24  ;;  %v2335_v63 = vmul.f32 1.442695, %v2326_v43 }
 0x3ab   :  { %2381 = vrot.lane.b32.xlu0 %v2305_v56, %s9134_s5  ;;  %v2321_v50 = vadd.f32 %v2305_v56, %v9535_v27  ;;  %v2337_v16 = vmul.f32 1.442695, %v2327_v44 }
 0x3ac   :  { %v2306_v23 = vrot.slane %v2140_v57, 7  ;;  %v2328_v3 = vsub.f32 0.0, %v2320_v10  ;;  %8796 = vpow2.f32 %v2335_v63 }
 0x3ad   :  { %v2329_v15 = vsub.f32 0.0, %v2321_v50  ;;  %8798 = vpow2.f32 %v2337_v16 }
 0x3ae   :  { %v2214_v32 = vpop.f32.mrb[22].mxu0  ;;  %2383 = vrot.lane.b32.xlu1 %v2306_v23, %s9134_s5  ;;  %v2322_v45 = vadd.f32 %v2306_v23, %v9541_v41  ;;  %v2339_v18 = vmul.f32 1.442695, %v2328_v3 }
 0x3af   :  { %v2215_v14 = vadd.f32 %v2214_v32, %v9487_v2  ;;  %v8200_v61 = vpop.f32.mrb[23].mxu0  ;;  %v2341_v20 = vmul.f32 1.442695, %v2329_v15 }
 0x3b0   :  { %v2330_v57 = vsub.f32 0.0, %v2322_v45  ;;  %8800 = vpow2.f32 %v2339_v18 }
 0x3b1   :  { %v2307_v21 = vrot.slane %v2215_v14, 7  ;;  %v2289_v12 = vpop.f32.mrb[22].mxu1  ;;  %8802 = vpow2.f32 %v2341_v20 }
 0x3b2   :  { %v2290_v22 = vadd.f32 %v2289_v12, %v9495_v13  ;;  %v8207_v49 = vpop.f32.mrb[23].mxu1  ;;  %v2343_v53 = vmul.f32 1.442695, %v2330_v57  ;;  %v8795_v32 = vpop.eup %8794 }
 0x3b3   :  { %2385 = vrot.lane.b32.xlu0 %v2307_v21, %s9134_s5  ;;  %v2323_v37 = vadd.f32 %v2307_v21, %v9544_v5  ;;  %v2349_v14 = vadd.f32 1.0, %v8795_v32 }
 0x3b4   :  { %v2308_v4 = vrot.slane %v2290_v22, 7  ;;  %8804 = vpow2.f32 %v2343_v53 }
 0x3b5   :  { %v2331_v56 = vsub.f32 0.0, %v2323_v37  ;;  %8806 = vrcp.f32 %v2349_v14 }
 0x3b6   :  { %2387 = vrot.lane.b32.xlu1 %v2308_v4, %s9134_s5  ;;  %v2324_v59 = vadd.f32 %v2308_v4, %v9550_v1  ;;  %v8797_v12 = vpop.eup %8796 }
 0x3b7   :  { %v2345_v23 = vmul.f32 1.442695, %v2331_v56  ;;  %v8799_v22 = vpop.eup %8798  ;;  %v2350_v31 = vadd.f32 1.0, %v8797_v12 }
 0x3b8   :  { %v2332_v61 = vsub.f32 0.0, %v2324_v59  ;;  %v2351_v34 = vadd.f32 1.0, %v8799_v22 }
 0x3b9   :  { %8808 = vpow2.f32 %v2345_v23 }
 0x3ba   :  { %v2347_v49 = vmul.f32 1.442695, %v2332_v61  ;;  %v8801_v58 = vpop.eup %8800 }
 0x3bb   :  { %v8803_v21 = vpop.eup %8802  ;;  %v2352_v42 = vadd.f32 1.0, %v8801_v58 }
 0x3bc   :  { %8810 = vpow2.f32 %v2347_v49  ;;  %v2353_v11 = vadd.f32 1.0, %v8803_v21 }
 0x3bd   :  { %8812 = vrcp.f32 %v2350_v31 }
 0x3be   :  { %v8805_v4 = vpop.eup %8804  ;;  %8814 = vrcp.f32 %v2351_v34 }
 0x3bf   :  { %8816 = vrcp.f32 %v2352_v42  ;;  %v2354_v43 = vadd.f32 1.0, %v8805_v4  ;;  %v9737_v10 = vpop.eup %8806 }
 0x3c0   :  { %8818 = vrcp.f32 %v2353_v11 }
 0x3c1   :  { %8820 = vrcp.f32 %v2354_v43 }
 0x3c3   :  { %v8809_v44 = vpop.eup %8808 }
 0x3c4   :  { %v2355_v45 = vadd.f32 1.0, %v8809_v44 }
 0x3c6   :  { %v8811_v3 = vpop.eup %8810  ;;  %8822 = vrcp.f32 %v2355_v45 }
 0x3c7   :  { %v9741_v16 = vpop.eup %8812  ;;  %v2356_v37 = vadd.f32 1.0, %v8811_v3 }
 0x3c8   :  { %v9743_v18 = vpop.eup %8814 }
 0x3c9   :  { %v9748_v59 = vpop.eup %8816  ;;  %8824 = vrcp.f32 %v2356_v37 }
 0x3ca   :  { %v9751_v56 = vpop.eup %8818 }
 0x3cb   :  { %v9756_v12 = vpop.eup %8820 }
 0x3d0   :  { %v9761_v31 = vpop.eup %8822 }
 0x3d3   :  { %v9764_v21 = vpop.eup %8824 }
 0x414   :  { %v2374_v50 = vpop.permute.xlu0 %2373 }
 0x415   :  { %v2397_v63 = vmul.f32 %v9737_v10, %v2374_v50 }
 0x417   :  { %2413 = vrot.lane.b32.xlu0 %v2397_v63, %s9135_s4 }
 0x418   :  { %v2376_v15 = vpop.permute.xlu1 %2375 }
 0x419   :  { %v2398_v57 = vmul.f32 %v9741_v16, %v2376_v15  ;;  %v2378_v20 = vpop.permute.xlu0 %2377 }
 0x41a   :  { %v2399_v53 = vmul.f32 %v9743_v18, %v2378_v20 }
 0x41b   :  { %2415 = vrot.lane.b32.xlu1 %v2398_v57, %s9135_s4 }
 0x41c   :  { %2417 = vrot.lane.b32.xlu0 %v2399_v53, %s9135_s4  ;;  %v2380_v32 = vpop.permute.xlu1 %2379 }
 0x41d   :  { %v2400_v14 = vmul.f32 %v9748_v59, %v2380_v32  ;;  %v2382_v61 = vpop.permute.xlu0 %2381 }
 0x41e   :  { %v2401_v23 = vmul.f32 %v9751_v56, %v2382_v61 }
 0x41f   :  { %2419 = vrot.lane.b32.xlu1 %v2400_v14, %s9135_s4 }
 0x420   :  { %2421 = vrot.lane.b32.xlu0 %v2401_v23, %s9135_s4  ;;  %v2384_v22 = vpop.permute.xlu1 %2383 }
 0x421   :  { %v2402_v49 = vmul.f32 %v9756_v12, %v2384_v22 }
 0x423   :  { %2423 = vrot.lane.b32.xlu1 %v2402_v49, %s9135_s4 }
 0x425   :  { %v2386_v58 = vpop.permute.xlu0 %2385 }
 0x426   :  { %v2403_v34 = vmul.f32 %v9761_v31, %v2386_v58 }
 0x428   :  { %2425 = vrot.lane.b32.xlu0 %v2403_v34, %s9135_s4  ;;  %v2388_v42 = vpop.permute.xlu1 %2387 }
 0x429   :  { %v2404_v4 = vmul.f32 %v9764_v21, %v2388_v42 }
 0x42b   :  { %2427 = vrot.lane.b32.xlu1 %v2404_v4, %s9135_s4 }
 0x489   :  { %v2414_v11 = vpop.permute.xlu0 %2413 }
 0x48a   :  { %v2437_v43 = vadd.f32 %v2414_v11, %v9514_v51 }
 0x48c   :  { %8826 = vtanh.f32 %v2437_v43 }
 0x48d   :  { %v2416_v44 = vpop.permute.xlu1 %2415 }
 0x48e   :  { %v2438_v50 = vadd.f32 %v2416_v44, %v9520_v6  ;;  %v2418_v63 = vpop.permute.xlu0 %2417  ;;  %v2453_v44 = vsub.f32 1.0, %v9737_v10 }
 0x48f   :  { %v2439_v3 = vadd.f32 %v2418_v63, %v9525_v17 }
 0x490   :  { %8828 = vtanh.f32 %v2438_v50  ;;  %v2501_v50 = vrot.slane %v9627_v7, 7 }
 0x491   :  { %8830 = vtanh.f32 %v2439_v3  ;;  %v2420_v45 = vpop.permute.xlu1 %2419 }
 0x492   :  { %v2440_v15 = vadd.f32 %v2420_v45, %v9531_v24  ;;  %v2422_v57 = vpop.permute.xlu0 %2421  ;;  %v2517_v3 = vmul.f32 %v9737_v10, %v2501_v50 }
 0x493   :  { %v2441_v20 = vadd.f32 %v2422_v57, %v9535_v27  ;;  %v2454_v57 = vsub.f32 1.0, %v9741_v16 }
 0x494   :  { %8832 = vtanh.f32 %v2440_v15 }
 0x495   :  { %8834 = vtanh.f32 %v2441_v20  ;;  %v2424_v37 = vpop.permute.xlu1 %2423  ;;  %v2502_v20 = vrot.slane %v9635_v62, 7 }
 0x496   :  { %v8827_v53 = vpop.eup %8826  ;;  %v2442_v32 = vadd.f32 %v2424_v37, %v9541_v41 }
 0x497   :  { %2469 = vrot.lane.b32.xlu0 %v8827_v53, %s9137_s28  ;;  %v2455_v53 = vsub.f32 1.0, %v9743_v18 }
 0x498   :  { %8836 = vtanh.f32 %v2442_v32  ;;  %v2503_v32 = vrot.slane %v9638_v9, 7 }
 0x49a   :  { %v8829_v14 = vpop.eup %8828  ;;  %v2426_v61 = vpop.permute.xlu0 %2425  ;;  %v2519_v10 = vmul.f32 %v9743_v18, %v2503_v32 }
 0x49b   :  { %v8831_v23 = vpop.eup %8830  ;;  %v2443_v22 = vadd.f32 %v2426_v61, %v9544_v5  ;;  %2471 = vrot.lane.b32.xlu1 %v8829_v14, %s9137_s28  ;;  %v2518_v14 = vmul.f32 %v9741_v16, %v2502_v20  ;;  %v2457_v16 = vsub.f32 1.0, %v9751_v56 }
 0x49c   :  { %2473 = vrot.lane.b32.xlu0 %v8831_v23, %s9137_s28 }
 0x49d   :  { %8838 = vtanh.f32 %v2443_v22  ;;  %v2428_v49 = vpop.permute.xlu1 %2427 }
 0x49e   :  { %v8833_v58 = vpop.eup %8832  ;;  %v2444_v34 = vadd.f32 %v2428_v49, %v9550_v1 }
 0x49f   :  { %v8835_v42 = vpop.eup %8834  ;;  %2475 = vrot.lane.b32.xlu1 %v8833_v58, %s9137_s28 }
 0x4a0   :  { %8840 = vtanh.f32 %v2444_v34  ;;  %2477 = vrot.lane.b32.xlu0 %v8835_v42, %s9137_s28  ;;  %v2456_v34 = vsub.f32 1.0, %v9748_v59  ;;  %v2504_v42 = vrot.slane %v9647_v40, 7 }
 0x4a2   :  { %v8837_v4 = vpop.eup %8836 }
 0x4a3   :  { %2479 = vrot.lane.b32.xlu1 %v8837_v4, %s9137_s28 }
 0x4a7   :  { %v8839_v11 = vpop.eup %8838 }
 0x4a8   :  { %2481 = vrot.lane.b32.xlu0 %v8839_v11, %s9137_s28 }
 0x4aa   :  { %v8841_v43 = vpop.eup %8840 }
 0x4ab   :  { %2483 = vrot.lane.b32.xlu1 %v8841_v43, %s9137_s28  ;;  %v2505_v43 = vrot.slane %v9650_v36, 7 }
 0x509   :  { %v2470_v63 = vpop.permute.xlu0 %2469 }
 0x50a   :  { %v2493_v45 = vmul.f32 %v2470_v63, %v2453_v44  ;;  %v2520_v44 = vmul.f32 %v9748_v59, %v2504_v42 }
 0x50c   :  { %v9788_v15 = vadd.f32 %v2517_v3, %v2493_v45  ;;  %v2521_v3 = vmul.f32 %v9751_v56, %v2505_v43  ;;  %v2508_v43 = vrot.slane %v9669_v26, 7 }
 0x50d   :  { %v2472_v37 = vpop.permute.xlu1 %2471 }
 0x50e   :  { %v2494_v61 = vmul.f32 %v2472_v37, %v2454_v57  ;;  %v2474_v23 = vpop.permute.xlu0 %2473  ;;  %v2534_v22 = vrot.slane %v9788_v15, 1  ;;  %v2458_v37 = vsub.f32 1.0, %v9756_v12 }
 0x50f   :  { %v2495_v49 = vmul.f32 %v2474_v23, %v2455_v53  ;;  %v2506_v53 = vrot.slane %v9657_v8, 7 }
 0x510   :  { %v9797_v58 = vadd.f32 %v2518_v14, %v2494_v61  ;;  %2535 = vrot.lane.b32.xlu0 %v2534_v22, %s9137_s28 }
 0x511   :  { %v9802_v4 = vadd.f32 %v2519_v10, %v2495_v49  ;;  %v2476_v11 = vpop.permute.xlu1 %2475  ;;  %v2522_v14 = vmul.f32 %v9756_v12, %v2506_v53  ;;  %v2459_v10 = vsub.f32 1.0, %v9761_v31  ;;  %v2507_v49 = vrot.slane %v9664_v52, 7 }
 0x512   :  { %v2496_v50 = vmul.f32 %v2476_v11, %v2456_v34  ;;  %v2478_v18 = vpop.permute.xlu0 %2477  ;;  %v2610_v63 = vrot.slane %v9797_v58, 1 }
 0x513   :  { %v2497_v45 = vmul.f32 %v2478_v18, %v2457_v16  ;;  %v2686_v57 = vrot.slane %v9802_v4, 1  ;;  %v2523_v12 = vmul.f32 %v9761_v31, %v2507_v49  ;;  %v2460_v16 = vsub.f32 1.0, %v9764_v21 }
 0x514   :  { %v9810_v20 = vadd.f32 %v2520_v44, %v2496_v50  ;;  %2611 = vrot.lane.b32.xlu1 %v2610_v63, %s9137_s28  ;;  %v2524_v18 = vmul.f32 %v9764_v21, %v2508_v43 }
 0x515   :  { %v9815_v32 = vadd.f32 %v2521_v3, %v2497_v45  ;;  %2687 = vrot.lane.b32.xlu0 %v2686_v57, %s9137_s28  ;;  %v2480_v59 = vpop.permute.xlu1 %2479 }
 0x516   :  { %v2498_v61 = vmul.f32 %v2480_v59, %v2458_v37  ;;  %v2762_v56 = vrot.slane %v9810_v20, 1 }
 0x517   :  { %v2838_v23 = vrot.slane %v9815_v32, 1 }
 0x518   :  { %v9821_v22 = vadd.f32 %v2522_v14, %v2498_v61  ;;  %2763 = vrot.lane.b32.xlu1 %v2762_v56, %s9137_s28 }
 0x519   :  { %2839 = vrot.lane.b32.xlu0 %v2838_v23, %s9137_s28 }
 0x51a   :  { %v2482_v34 = vpop.permute.xlu0 %2481  ;;  %v2914_v42 = vrot.slane %v9821_v22, 1 }
 0x51b   :  { %v2499_v11 = vmul.f32 %v2482_v34, %v2459_v10 }
 0x51c   :  { %2915 = vrot.lane.b32.xlu1 %v2914_v42, %s9137_s28 }
 0x51d   :  { %v9832_v44 = vadd.f32 %v2523_v12, %v2499_v11  ;;  %v2484_v50 = vpop.permute.xlu1 %2483 }
 0x51e   :  { %v2500_v63 = vmul.f32 %v2484_v50, %v2460_v16 }
 0x51f   :  { %v2990_v3 = vrot.slane %v9832_v44, 1 }
 0x520   :  { %v9836_v45 = vadd.f32 %v2524_v18, %v2500_v63 }
 0x521   :  { %2991 = vrot.lane.b32.xlu0 %v2990_v3, %s9137_s28 }
 0x522   :  { %v3066_v31 = vrot.slane %v9836_v45, 1 }
 0x524   :  { %3067 = vrot.lane.b32.xlu1 %v3066_v31, %s9137_s28 }
 0x582   :  { %v2536_v57 = vpop.permute.xlu0 %2535 }
 0x583   :  { %8213 = vmatmul.mubr.msk.f32.vlgmr.msra.gmra.mrb[24].mxu0 %vm844_vm4, %v2536_v57 }
 0x584   :  { %8600 = vmatpush3.bf16.msra.mxu0 %v9329_v38  ;;  %8226 = vmatprep.mubr.msk.f32.mxu0 %vm9131_vm2, %v9130_v0 }
 0x585   :  { %8604 = vmatprep.subr.bf16.mxu0 %v9132_v35 }
 0x586   :  { %v2612_v21 = vpop.permute.xlu1 %2611 }
 0x587   :  { %v2688_v37 = vpop.permute.xlu0 %2687  ;;  %8220 = vmatmul.mubr.msk.f32.vlgmr.msra.gmra.mrb[24].mxu1 %vm844_vm4, %v2612_v21 }
 0x588   :  { %8227 = vmatmul.mubr.msk.f32.vlgmr.msra.gmra.mrb[26].mxu0 %vm844_vm4, %v2688_v37  ;;  %8603 = vmatpush3.bf16.msra.mxu1 %v9331_v39 }
 0x589   :  { %8606 = vmatpush3.bf16.msra.mxu0 %v9361_v46  ;;  %8233 = vmatprep.mubr.msk.f32.mxu1 %vm9131_vm2, %v9130_v0 }
 0x58a   :  { %v2764_v53 = vpop.permute.xlu1 %2763  ;;  %8240 = vmatprep.mubr.msk.f32.mxu0 %vm9131_vm2, %v9130_v0  ;;  %8607 = vmatprep.subr.bf16.mxu1 %v9132_v35 }
 0x58b   :  { %v2840_v59 = vpop.permute.xlu0 %2839  ;;  %8234 = vmatmul.mubr.msk.f32.vlgmr.msra.gmra.mrb[26].mxu1 %vm844_vm4, %v2764_v53  ;;  %8610 = vmatprep.subr.bf16.mxu0 %v9132_v35 }
 0x58c   :  { %8241 = vmatmul.mubr.msk.f32.vlgmr.msra.gmra.mrb[28].mxu0 %vm844_vm4, %v2840_v59  ;;  %8609 = vmatpush3.bf16.msra.mxu1 %v9363_v47 }
 0x58d   :  { %8247 = vmatprep.mubr.msk.f32.mxu1 %vm9131_vm2, %v9130_v0  ;;  %8612 = vmatpush3.bf16.msra.mxu0 %v9393_v54 }
 0x58e   :  { %v2916_v14 = vpop.permute.xlu1 %2915  ;;  %8254 = vmatprep.mubr.msk.f32.mxu0 %vm9131_vm2, %v9130_v0  ;;  %8613 = vmatprep.subr.bf16.mxu1 %v9132_v35 }
 0x58f   :  { %8248 = vmatmul.mubr.msk.f32.vlgmr.msra.gmra.mrb[28].mxu1 %vm844_vm4, %v2916_v14  ;;  %8616 = vmatprep.subr.bf16.mxu0 %v9132_v35 }
 0x590   :  { %8615 = vmatpush3.bf16.msra.mxu1 %v9395_v55  ;;  %8261 = vmatprep.mubr.msk.f32.mxu1 %vm9131_vm2, %v9130_v0 }
 0x591   :  { %8619 = vmatprep.subr.bf16.mxu1 %v9132_v35 }
 0x593   :  { %v2992_v61 = vpop.permute.xlu0 %2991 }
 0x594   :  { %8255 = vmatmul.mubr.msk.f32.vlgmr.msra.gmra.mrb[30].mxu0 %vm844_vm4, %v2992_v61 }
 0x595   :  { %8618 = vmatpush3.bf16.msra.mxu0 %v9295_v28  ;;  %8268 = vmatprep.mubr.msk.f32.mxu0 %vm9131_vm2, %v9130_v0 }
 0x596   :  { %v3068_v56 = vpop.permute.xlu1 %3067  ;;  %8622 = vmatprep.subr.bf16.mxu0 %v9132_v35 }
 0x597   :  { %8262 = vmatmul.mubr.msk.f32.vlgmr.msra.gmra.mrb[30].mxu1 %vm844_vm4, %v3068_v56 }
 0x598   :  { %8621 = vmatpush3.bf16.msra.mxu1 %v9297_v29  ;;  %8275 = vmatprep.mubr.msk.f32.mxu1 %vm9131_vm2, %v9130_v0 }
 0x599   :  { %8625 = vmatprep.subr.bf16.mxu1 %v9132_v35 }
 0x656   :  { %v2605_v23 = vpop.f32.mrb[24].mxu0 }
 0x657   :  { %v2606_v10 = vadd.f32 %v2605_v23, %v9457_v19  ;;  %v8214_v49 = vpop.f32.mrb[25].mxu0 }
 0x659   :  { %v3149_v34 = vrot.slane %v2606_v10, 6 }
 0x65a   :  { %v2681_v42 = vpop.f32.mrb[24].mxu1 }
 0x65b   :  { %v2682_v12 = vadd.f32 %v2681_v42, %v9461_v25  ;;  %v2757_v11 = vpop.f32.mrb[26].mxu0  ;;  %v8221_v16 = vpop.f32.mrb[25].mxu1  ;;  %3221 = vrot.lane.b32.xlu0 %v3149_v34, %s9134_s5 }
 0x65c   :  { %v2758_v43 = vadd.f32 %v2757_v11, %v9465_v30  ;;  %v8228_v50 = vpop.f32.mrb[27].mxu0 }
 0x65d   :  { %v3150_v18 = vrot.slane %v2682_v12, 6 }
 0x65e   :  { %v3151_v63 = vrot.slane %v2758_v43, 6  ;;  %v2833_v3 = vpop.f32.mrb[26].mxu1 }
 0x65f   :  { %v2834_v31 = vadd.f32 %v2833_v3, %v9471_v33  ;;  %v2909_v57 = vpop.f32.mrb[28].mxu0  ;;  %3223 = vrot.lane.b32.xlu1 %v3150_v18, %s9134_s5  ;;  %v8235_v21 = vpop.f32.mrb[27].mxu1 }
 0x660   :  { %v2910_v37 = vadd.f32 %v2909_v57, %v9476_v48  ;;  %3225 = vrot.lane.b32.xlu0 %v3151_v63, %s9134_s5  ;;  %v8242_v53 = vpop.f32.mrb[29].mxu0  ;;  %v3166_v21 = vadd.f32 %v3150_v18, %v9520_v6 }
 0x661   :  { %v3152_v59 = vrot.slane %v2834_v31, 6  ;;  %v3165_v31 = vadd.f32 %v3149_v34, %v9514_v51 }
 0x662   :  { %v3153_v14 = vrot.slane %v2910_v37, 6  ;;  %v2985_v61 = vpop.f32.mrb[28].mxu1  ;;  %v3167_v37 = vadd.f32 %v3151_v63, %v9525_v17 }
 0x663   :  { %v2986_v56 = vadd.f32 %v2985_v61, %v9483_v60  ;;  %3227 = vrot.lane.b32.xlu1 %v3152_v59, %s9134_s5  ;;  %v8249_v23 = vpop.f32.mrb[29].mxu1  ;;  %v3173_v57 = vsub.f32 0.0, %v3165_v31  ;;  %v3174_v61 = vsub.f32 0.0, %v3166_v21 }
 0x664   :  { %3229 = vrot.lane.b32.xlu0 %v3153_v14, %s9134_s5  ;;  %v3175_v23 = vsub.f32 0.0, %v3167_v37 }
 0x665   :  { %v3154_v10 = vrot.slane %v2986_v56, 6  ;;  %v3181_v53 = vmul.f32 1.442695, %v3173_v57  ;;  %v3168_v56 = vadd.f32 %v3152_v59, %v9531_v24 }
 0x667   :  { %v3061_v49 = vpop.f32.mrb[30].mxu0  ;;  %3231 = vrot.lane.b32.xlu1 %v3154_v10, %s9134_s5  ;;  %8842 = vpow2.f32 %v3181_v53 }
 0x668   :  { %v3062_v42 = vadd.f32 %v3061_v49, %v9487_v2  ;;  %v8256_v12 = vpop.f32.mrb[31].mxu0  ;;  %v3169_v49 = vadd.f32 %v3153_v14, %v9535_v27 }
 0x669   :  { %v3176_v12 = vsub.f32 0.0, %v3168_v56 }
 0x66a   :  { %v3155_v11 = vrot.slane %v3062_v42, 6  ;;  %v3137_v16 = vpop.f32.mrb[30].mxu1  ;;  %v3183_v42 = vmul.f32 1.442695, %v3174_v61 }
 0x66b   :  { %v3138_v43 = vadd.f32 %v3137_v16, %v9495_v13  ;;  %v8263_v50 = vpop.f32.mrb[31].mxu1  ;;  %v3170_v16 = vadd.f32 %v3154_v10, %v9541_v41  ;;  %v3187_v34 = vmul.f32 1.442695, %v3176_v12 }
 0x66c   :  { %3233 = vrot.lane.b32.xlu0 %v3155_v11, %s9134_s5  ;;  %v3177_v50 = vsub.f32 0.0, %v3169_v49  ;;  %8844 = vpow2.f32 %v3183_v42  ;;  %v3171_v63 = vadd.f32 %v3155_v11, %v9544_v5 }
 0x66d   :  { %v3156_v3 = vrot.slane %v3138_v43, 6  ;;  %v3185_v43 = vmul.f32 1.442695, %v3175_v23  ;;  %v3178_v31 = vsub.f32 0.0, %v3170_v16 }
 0x66e   :  { %v3189_v18 = vmul.f32 1.442695, %v3177_v50  ;;  %v3179_v14 = vsub.f32 0.0, %v3171_v63 }
 0x66f   :  { %3235 = vrot.lane.b32.xlu1 %v3156_v3, %s9134_s5  ;;  %8846 = vpow2.f32 %v3185_v43  ;;  %v3191_v57 = vmul.f32 1.442695, %v3178_v31  ;;  %v3172_v59 = vadd.f32 %v3156_v3, %v9550_v1 }
 0x670   :  { %8848 = vpow2.f32 %v3187_v34  ;;  %v3193_v10 = vmul.f32 1.442695, %v3179_v14 }
 0x671   :  { %v8843_v21 = vpop.eup %8842  ;;  %8850 = vpow2.f32 %v3189_v18  ;;  %v3180_v53 = vsub.f32 0.0, %v3172_v59 }
 0x672   :  { %v3197_v37 = vadd.f32 1.0, %v8843_v21  ;;  %8852 = vpow2.f32 %v3191_v57 }
 0x673   :  { %v3195_v23 = vmul.f32 1.442695, %v3180_v53 }
 0x674   :  { %8854 = vrcp.f32 %v3197_v37 }
 0x675   :  { %8856 = vpow2.f32 %v3193_v10 }
 0x676   :  { %v8845_v61 = vpop.eup %8844  ;;  %8858 = vpow2.f32 %v3195_v23 }
 0x677   :  { %v3198_v49 = vadd.f32 1.0, %v8845_v61 }
 0x679   :  { %v8847_v56 = vpop.eup %8846  ;;  %8860 = vrcp.f32 %v3198_v49 }
 0x67a   :  { %v8849_v42 = vpop.eup %8848  ;;  %v3199_v12 = vadd.f32 1.0, %v8847_v56 }
 0x67b   :  { %v8851_v11 = vpop.eup %8850  ;;  %v3200_v16 = vadd.f32 1.0, %v8849_v42 }
 0x67c   :  { %v8853_v3 = vpop.eup %8852  ;;  %8862 = vrcp.f32 %v3199_v12  ;;  %v3201_v43 = vadd.f32 1.0, %v8851_v11 }
 0x67d   :  { %8864 = vrcp.f32 %v3200_v16  ;;  %v3202_v50 = vadd.f32 1.0, %v8853_v3 }
 0x67e   :  { %v9905_v34 = vpop.eup %8854  ;;  %8866 = vrcp.f32 %v3201_v43 }
 0x67f   :  { %v8857_v31 = vpop.eup %8856  ;;  %8868 = vrcp.f32 %v3202_v50 }
 0x680   :  { %v8859_v57 = vpop.eup %8858  ;;  %v3203_v59 = vadd.f32 1.0, %v8857_v31 }
 0x681   :  { %v3204_v61 = vadd.f32 1.0, %v8859_v57 }
 0x682   :  { %8870 = vrcp.f32 %v3203_v59 }
 0x683   :  { %v9909_v21 = vpop.eup %8860  ;;  %8872 = vrcp.f32 %v3204_v61 }
 0x686   :  { %v9911_v37 = vpop.eup %8862 }
 0x687   :  { %v9916_v23 = vpop.eup %8864 }
 0x688   :  { %v9919_v42 = vpop.eup %8866 }
 0x689   :  { %v9924_v3 = vpop.eup %8868 }
 0x68c   :  { %v9929_v31 = vpop.eup %8870 }
 0x68d   :  { %v9932_v57 = vpop.eup %8872 }
 0x6cd   :  { %v3222_v18 = vpop.permute.xlu0 %3221 }
 0x6ce   :  { %v3245_v63 = vmul.f32 %v9905_v34, %v3222_v18 }
 0x6d0   :  { %3261 = vrot.lane.b32.xlu0 %v3245_v63, %s9135_s4 }
 0x6d1   :  { %v3224_v14 = vpop.permute.xlu1 %3223 }
 0x6d2   :  { %v3246_v53 = vmul.f32 %v9909_v21, %v3224_v14  ;;  %v3226_v10 = vpop.permute.xlu0 %3225 }
 0x6d3   :  { %v3247_v56 = vmul.f32 %v9911_v37, %v3226_v10 }
 0x6d4   :  { %3263 = vrot.lane.b32.xlu1 %v3246_v53, %s9135_s4 }
 0x6d5   :  { %3265 = vrot.lane.b32.xlu0 %v3247_v56, %s9135_s4  ;;  %v3228_v49 = vpop.permute.xlu1 %3227 }
 0x6d6   :  { %v3248_v12 = vmul.f32 %v9916_v23, %v3228_v49  ;;  %v3230_v11 = vpop.permute.xlu0 %3229 }
 0x6d7   :  { %v3249_v16 = vmul.f32 %v9919_v42, %v3230_v11 }
 0x6d8   :  { %3267 = vrot.lane.b32.xlu1 %v3248_v12, %s9135_s4 }
 0x6d9   :  { %3269 = vrot.lane.b32.xlu0 %v3249_v16, %s9135_s4  ;;  %v3232_v43 = vpop.permute.xlu1 %3231 }
 0x6da   :  { %v3250_v50 = vmul.f32 %v9924_v3, %v3232_v43 }
 0x6dc   :  { %3271 = vrot.lane.b32.xlu1 %v3250_v50, %s9135_s4 }
 0x6de   :  { %v3234_v18 = vpop.permute.xlu0 %3233 }
 0x6df   :  { %v3251_v63 = vmul.f32 %v9929_v31, %v3234_v18 }
 0x6e1   :  { %3273 = vrot.lane.b32.xlu0 %v3251_v63, %s9135_s4  ;;  %v3236_v59 = vpop.permute.xlu1 %3235 }
 0x6e2   :  { %v3252_v14 = vmul.f32 %v9932_v57, %v3236_v59 }
 0x6e4   :  { %3275 = vrot.lane.b32.xlu1 %v3252_v14, %s9135_s4 }
 0x742   :  { %v3262_v53 = vpop.permute.xlu0 %3261 }
 0x743   :  { %v3285_v10 = vadd.f32 %v3262_v53, %v9514_v51 }
 0x745   :  { %8874 = vtanh.f32 %v3285_v10 }
 0x746   :  { %v3264_v61 = vpop.permute.xlu1 %3263 }
 0x747   :  { %v3286_v56 = vadd.f32 %v3264_v61, %v9520_v6  ;;  %v3266_v49 = vpop.permute.xlu0 %3265 }
 0x748   :  { %v3287_v12 = vadd.f32 %v3266_v49, %v9525_v17 }
 0x749   :  { %8876 = vtanh.f32 %v3286_v56 }
 0x74a   :  { %8878 = vtanh.f32 %v3287_v12  ;;  %v3268_v11 = vpop.permute.xlu1 %3267 }
 0x74b   :  { %v3288_v16 = vadd.f32 %v3268_v11, %v9531_v24  ;;  %v3270_v43 = vpop.permute.xlu0 %3269 }
 0x74c   :  { %v3289_v50 = vadd.f32 %v3270_v43, %v9535_v27 }
 0x74d   :  { %8880 = vtanh.f32 %v3288_v16 }
 0x74e   :  { %8882 = vtanh.f32 %v3289_v50  ;;  %v3272_v18 = vpop.permute.xlu1 %3271 }
 0x74f   :  { %v8875_v63 = vpop.eup %8874  ;;  %v3290_v59 = vadd.f32 %v3272_v18, %v9541_v41  ;;  %v3301_v18 = vsub.f32 1.0, %v9905_v34 }
 0x750   :  { %3317 = vrot.lane.b32.xlu0 %v8875_v63, %s9137_s28  ;;  %v3349_v63 = vrot.slane %v9788_v15, 7 }
 0x751   :  { %8884 = vtanh.f32 %v3290_v59 }
 0x753   :  { %v8877_v14 = vpop.eup %8876  ;;  %v3274_v53 = vpop.permute.xlu0 %3273 }
 0x754   :  { %v8879_v10 = vpop.eup %8878  ;;  %v3291_v61 = vadd.f32 %v3274_v53, %v9544_v5  ;;  %3319 = vrot.lane.b32.xlu1 %v8877_v14, %s9137_s28  ;;  %v3365_v14 = vmul.f32 %v9905_v34, %v3349_v63 }
 0x755   :  { %3321 = vrot.lane.b32.xlu0 %v8879_v10, %s9137_s28 }
 0x756   :  { %8886 = vtanh.f32 %v3291_v61  ;;  %v3276_v56 = vpop.permute.xlu1 %3275  ;;  %v3302_v61 = vsub.f32 1.0, %v9909_v21 }
 0x757   :  { %v8881_v49 = vpop.eup %8880  ;;  %v3292_v12 = vadd.f32 %v3276_v56, %v9550_v1  ;;  %v3350_v56 = vrot.slane %v9797_v58, 7 }
 0x758   :  { %v8883_v11 = vpop.eup %8882  ;;  %3323 = vrot.lane.b32.xlu1 %v8881_v49, %s9137_s28  ;;  %v7622_v49 = vsel %vm7621_vm5, %v9627_v7, %v9788_v15  ;;  %v7623_v7 = vsel %vm7621_vm5, %v9635_v62, %v9797_v58 }
 0x759   :  { %8888 = vtanh.f32 %v3292_v12  ;;  %3325 = vrot.lane.b32.xlu0 %v8883_v11, %s9137_s28  ;;  %v3303_v11 = vsub.f32 1.0, %v9911_v37 }
 0x75b   :  { %v8885_v16 = vpop.eup %8884 }
 0x75c   :  { %3327 = vrot.lane.b32.xlu1 %v8885_v16, %s9137_s28  ;;  %v3351_v16 = vrot.slane %v9802_v4, 7 }
 0x760   :  { %v8887_v43 = vpop.eup %8886 }
 0x761   :  { %3329 = vrot.lane.b32.xlu0 %v8887_v43, %s9137_s28  ;;  %v3366_v43 = vmul.f32 %v9909_v21, %v3350_v56  ;;  %v7624_v21 = vsel %vm7621_vm5, %v9638_v9, %v9802_v4  ;;  %v3305_v56 = vsub.f32 1.0, %v9919_v42 }
 0x763   :  { %v8889_v50 = vpop.eup %8888 }
 0x764   :  { %3331 = vrot.lane.b32.xlu1 %v8889_v50, %s9137_s28 }
 0x7c2   :  { %v3318_v59 = vpop.permute.xlu0 %3317 }
 0x7c3   :  { %v3341_v53 = vmul.f32 %v3318_v59, %v3301_v18  ;;  %v3367_v59 = vmul.f32 %v9911_v37, %v3351_v16 }
 0x7c5   :  { %v9956_v10 = vadd.f32 %v3365_v14, %v3341_v53  ;;  %v3304_v53 = vsub.f32 1.0, %v9916_v23 }
 0x7c6   :  { %v3320_v12 = vpop.permute.xlu1 %3319 }
 0x7c7   :  { %v9967_v34 = vsel %vm7630_vm6, %v7622_v49, %v9956_v10  ;;  %v3342_v50 = vmul.f32 %v3320_v12, %v3302_v61  ;;  %v3322_v18 = vpop.permute.xlu0 %3321  ;;  %v3382_v63 = vrot.slane %v9956_v10, 2  ;;  %v3352_v49 = vrot.slane %v9810_v20, 7 }
 0x7c8   :  { %v3343_v14 = vmul.f32 %v3322_v18, %v3303_v11  ;;  %v3353_v12 = vrot.slane %v9815_v32, 7 }
 0x7c9   :  { %v9975_v15 = vadd.f32 %v3366_v43, %v3342_v50  ;;  %3383 = vrot.lane.b32.xlu0 %v3382_v63, %s9137_s28  ;;  %v3368_v58 = vmul.f32 %v9916_v23, %v3352_v49  ;;  %v3354_v23 = vrot.slane %v9821_v22, 7 }
 0x7ca   :  { %v9983_v61 = vadd.f32 %v3367_v59, %v3343_v14  ;;  %v3324_v37 = vpop.permute.xlu1 %3323  ;;  %v3369_v4 = vmul.f32 %v9919_v42, %v3353_v12  ;;  %v3306_v59 = vsub.f32 1.0, %v9924_v3  ;;  %v7625_v14 = vsel %vm7621_vm5, %v9647_v40, %v9810_v20 }
 0x7cb   :  { %v9989_v62 = vsel %vm7630_vm6, %v7623_v7, %v9975_v15  ;;  %v3344_v11 = vmul.f32 %v3324_v37, %v3304_v53  ;;  %v3326_v16 = vpop.permute.xlu0 %3325  ;;  %v3458_v43 = vrot.slane %v9975_v15, 2  ;;  %v7626_v7 = vsel %vm7621_vm5, %v9650_v36, %v9815_v32 }
 0x7cc   :  { %v9995_v9 = vsel %vm7630_vm6, %v7624_v21, %v9983_v61  ;;  %v3345_v50 = vmul.f32 %v3326_v16, %v3305_v56  ;;  %v3534_v18 = vrot.slane %v9983_v61, 2  ;;  %v3370_v21 = vmul.f32 %v9924_v3, %v3354_v23 }
 0x7cd   :  { %v9999_v63 = vadd.f32 %v3368_v58, %v3344_v11  ;;  %3459 = vrot.lane.b32.xlu1 %v3458_v43, %s9137_s28  ;;  %v7627_v32 = vsel %vm7621_vm5, %v9657_v8, %v9821_v22  ;;  %v3307_v3 = vsub.f32 1.0, %v9929_v31  ;;  %v3355_v12 = vrot.slane %v9832_v44, 7 }
 0x7ce   :  { %v10010_v42 = vadd.f32 %v3369_v4, %v3345_v50  ;;  %3535 = vrot.lane.b32.xlu0 %v3534_v18, %s9137_s28  ;;  %v3328_v53 = vpop.permute.xlu1 %3327  ;;  %v3308_v8 = vsub.f32 1.0, %v9932_v57  ;;  %v3356_v22 = vrot.slane %v9836_v45, 7 }
 0x7cf   :  { %v10015_v49 = vsel %vm7630_vm6, %v7625_v14, %v9999_v63  ;;  %v3346_v37 = vmul.f32 %v3328_v53, %v3306_v59  ;;  %v3610_v56 = vrot.slane %v9999_v63, 2  ;;  %v3371_v43 = vmul.f32 %v9929_v31, %v3355_v12 }
 0x7d0   :  { %v10021_v40 = vsel %vm7630_vm6, %v7626_v7, %v10010_v42  ;;  %v3686_v36 = vrot.slane %v10010_v42, 2  ;;  %v7628_v59 = vsel %vm7621_vm5, %v9664_v52, %v9832_v44  ;;  %v3372_v23 = vmul.f32 %v9932_v57, %v3356_v22 }
 0x7d1   :  { %v10024_v20 = vadd.f32 %v3370_v21, %v3346_v37  ;;  %3611 = vrot.lane.b32.xlu1 %v3610_v56, %s9137_s28  ;;  %v7629_v21 = vsel %vm7621_vm5, %v9669_v26, %v9836_v45 }
 0x7d2   :  { %3687 = vrot.lane.b32.xlu0 %v3686_v36, %s9137_s28 }
 0x7d3   :  { %v10035_v58 = vsel %vm7630_vm6, %v7627_v32, %v10024_v20  ;;  %v3330_v11 = vpop.permute.xlu0 %3329  ;;  %v3762_v16 = vrot.slane %v10024_v20, 2 }
 0x7d4   :  { %v3347_v4 = vmul.f32 %v3330_v11, %v3307_v3 }
 0x7d5   :  { %3763 = vrot.lane.b32.xlu1 %v3762_v16, %s9137_s28 }
 0x7d6   :  { %v10042_v50 = vadd.f32 %v3371_v43, %v3347_v4  ;;  %v3332_v18 = vpop.permute.xlu1 %3331 }
 0x7d7   :  { %v3348_v14 = vmul.f32 %v3332_v18, %v3308_v8 }
 0x7d8   :  { %v10050_v31 = vsel %vm7630_vm6, %v7628_v59, %v10042_v50  ;;  %v3838_v7 = vrot.slane %v10042_v50, 2 }
 0x7d9   :  { %v10053_v53 = vadd.f32 %v3372_v23, %v3348_v14 }
 0x7da   :  { %3839 = vrot.lane.b32.xlu0 %v3838_v7, %s9137_s28 }
 0x7db   :  { %v10061_v52 = vsel %vm7630_vm6, %v7629_v21, %v10053_v53  ;;  %v3914_v44 = vrot.slane %v10053_v53, 2 }
 0x7dd   :  { %3915 = vrot.lane.b32.xlu1 %v3914_v44, %s9137_s28 }
 0x83b   :  { %v3384_v57 = vpop.permute.xlu0 %3383 }
 0x83c   :  { %8269 = vmatmul.mubr.msk.f32.vlgmr.msra.gmra.mrb[32].mxu0 %vm844_vm4, %v3384_v57 }
 0x83d   :  { %8624 = vmatpush3.bf16.msra.mxu0 %v9329_v38  ;;  %8282 = vmatprep.mubr.msk.f32.mxu0 %vm9131_vm2, %v9130_v0 }
 0x83e   :  { %8628 = vmatprep.subr.bf16.mxu0 %v9132_v35 }
 0x83f   :  { %v3460_v26 = vpop.permute.xlu1 %3459 }
 0x840   :  { %v3536_v45 = vpop.permute.xlu0 %3535  ;;  %8276 = vmatmul.mubr.msk.f32.vlgmr.msra.gmra.mrb[32].mxu1 %vm844_vm4, %v3460_v26 }
 0x841   :  { %8283 = vmatmul.mubr.msk.f32.vlgmr.msra.gmra.mrb[34].mxu0 %vm844_vm4, %v3536_v45  ;;  %8627 = vmatpush3.bf16.msra.mxu1 %v9331_v39 }
 0x842   :  { %8630 = vmatpush3.bf16.msra.mxu0 %v9361_v46  ;;  %8289 = vmatprep.mubr.msk.f32.mxu1 %vm9131_vm2, %v9130_v0 }
 0x843   :  { %v3612_v37 = vpop.permute.xlu1 %3611  ;;  %8296 = vmatprep.mubr.msk.f32.mxu0 %vm9131_vm2, %v9130_v0  ;;  %8631 = vmatprep.subr.bf16.mxu1 %v9132_v35 }
 0x844   :  { %v3688_v56 = vpop.permute.xlu0 %3687  ;;  %8290 = vmatmul.mubr.msk.f32.vlgmr.msra.gmra.mrb[34].mxu1 %vm844_vm4, %v3612_v37  ;;  %8634 = vmatprep.subr.bf16.mxu0 %v9132_v35 }
 0x845   :  { %8297 = vmatmul.mubr.msk.f32.vlgmr.msra.gmra.mrb[36].mxu0 %vm844_vm4, %v3688_v56  ;;  %8633 = vmatpush3.bf16.msra.mxu1 %v9363_v47 }
 0x846   :  { %8303 = vmatprep.mubr.msk.f32.mxu1 %vm9131_vm2, %v9130_v0  ;;  %8636 = vmatpush3.bf16.msra.mxu0 %v9393_v54 }
 0x847   :  { %v3764_v36 = vpop.permute.xlu1 %3763  ;;  %8310 = vmatprep.mubr.msk.f32.mxu0 %vm9131_vm2, %v9130_v0  ;;  %8637 = vmatprep.subr.bf16.mxu1 %v9132_v35 }
 0x848   :  { %8304 = vmatmul.mubr.msk.f32.vlgmr.msra.gmra.mrb[36].mxu1 %vm844_vm4, %v3764_v36  ;;  %8640 = vmatprep.subr.bf16.mxu0 %v9132_v35 }
 0x849   :  { %8639 = vmatpush3.bf16.msra.mxu1 %v9395_v55  ;;  %8317 = vmatprep.mubr.msk.f32.mxu1 %vm9131_vm2, %v9130_v0 }
 0x84a   :  { %8643 = vmatprep.subr.bf16.mxu1 %v9132_v35 }
 0x84c   :  { %v3840_v32 = vpop.permute.xlu0 %3839 }
 0x84d   :  { %8311 = vmatmul.mubr.msk.f32.vlgmr.msra.gmra.mrb[38].mxu0 %vm844_vm4, %v3840_v32 }
 0x84e   :  { %8642 = vmatpush3.bf16.msra.mxu0 %v9295_v28  ;;  %8324 = vmatprep.mubr.msk.f32.mxu0 %vm9131_vm2, %v9130_v0 }
 0x84f   :  { %v3916_v3 = vpop.permute.xlu1 %3915  ;;  %8646 = vmatprep.subr.bf16.mxu0 %v9132_v35 }
 0x850   :  { %8318 = vmatmul.mubr.msk.f32.vlgmr.msra.gmra.mrb[38].mxu1 %vm844_vm4, %v3916_v3 }
 0x851   :  { %8645 = vmatpush3.bf16.msra.mxu1 %v9297_v29  ;;  %8331 = vmatprep.mubr.msk.f32.mxu1 %vm9131_vm2, %v9130_v0 }
 0x852   :  { %8649 = vmatprep.subr.bf16.mxu1 %v9132_v35 }
 0x90f   :  { %v3453_v12 = vpop.f32.mrb[32].mxu0 }
 0x910   :  { %v3454_v11 = vadd.f32 %v3453_v12, %v9457_v19  ;;  %v8270_v16 = vpop.f32.mrb[33].mxu0 }
 0x912   :  { %v3997_v43 = vrot.slane %v3454_v11, 5 }
 0x913   :  { %v3529_v4 = vpop.f32.mrb[32].mxu1 }
 0x914   :  { %v3530_v8 = vadd.f32 %v3529_v4, %v9461_v25  ;;  %v3605_v22 = vpop.f32.mrb[34].mxu0  ;;  %v8277_v18 = vpop.f32.mrb[33].mxu1  ;;  %4069 = vrot.lane.b32.xlu0 %v3997_v43, %s9134_s5 }
 0x915   :  { %v3606_v59 = vadd.f32 %v3605_v22, %v9465_v30  ;;  %v8284_v23 = vpop.f32.mrb[35].mxu0 }
 0x916   :  { %v3998_v14 = vrot.slane %v3530_v8, 5 }
 0x917   :  { %v3999_v7 = vrot.slane %v3606_v59, 5  ;;  %v3681_v21 = vpop.f32.mrb[34].mxu1 }
 0x918   :  { %v3682_v44 = vadd.f32 %v3681_v21, %v9471_v33  ;;  %v3757_v57 = vpop.f32.mrb[36].mxu0  ;;  %4071 = vrot.lane.b32.xlu1 %v3998_v14, %s9134_s5  ;;  %v8291_v26 = vpop.f32.mrb[35].mxu1 }
 0x919   :  { %v3758_v45 = vadd.f32 %v3757_v57, %v9476_v48  ;;  %4073 = vrot.lane.b32.xlu0 %v3999_v7, %s9134_s5  ;;  %v8298_v37 = vpop.f32.mrb[37].mxu0  ;;  %v4014_v26 = vadd.f32 %v3998_v14, %v9520_v6 }
 0x91a   :  { %v4000_v56 = vrot.slane %v3682_v44, 5  ;;  %v4013_v44 = vadd.f32 %v3997_v43, %v9514_v51 }
 0x91b   :  { %v4001_v36 = vrot.slane %v3758_v45, 5  ;;  %v3833_v32 = vpop.f32.mrb[36].mxu1  ;;  %v4015_v45 = vadd.f32 %v3999_v7, %v9525_v17 }
 0x91c   :  { %v3834_v3 = vadd.f32 %v3833_v32, %v9483_v60  ;;  %4075 = vrot.lane.b32.xlu1 %v4000_v56, %s9134_s5  ;;  %v8305_v12 = vpop.f32.mrb[37].mxu1  ;;  %v4021_v57 = vsub.f32 0.0, %v4013_v44  ;;  %v4022_v32 = vsub.f32 0.0, %v4014_v26 }
 0x91d   :  { %4077 = vrot.lane.b32.xlu0 %v4001_v36, %s9134_s5  ;;  %v4023_v12 = vsub.f32 0.0, %v4015_v45 }
 0x91e   :  { %v4002_v11 = vrot.slane %v3834_v3, 5  ;;  %v4029_v37 = vmul.f32 1.442695, %v4021_v57  ;;  %v4016_v3 = vadd.f32 %v4000_v56, %v9531_v24 }
 0x920   :  { %v3909_v16 = vpop.f32.mrb[38].mxu0  ;;  %4079 = vrot.lane.b32.xlu1 %v4002_v11, %s9134_s5  ;;  %8890 = vpow2.f32 %v4029_v37 }
 0x921   :  { %v3910_v4 = vadd.f32 %v3909_v16, %v9487_v2  ;;  %v8312_v8 = vpop.f32.mrb[39].mxu0  ;;  %v4017_v16 = vadd.f32 %v4001_v36, %v9535_v27 }
 0x922   :  { %v4024_v8 = vsub.f32 0.0, %v4016_v3 }
 0x923   :  { %v4003_v22 = vrot.slane %v3910_v4, 5  ;;  %v3985_v18 = vpop.f32.mrb[38].mxu1  ;;  %v4031_v4 = vmul.f32 1.442695, %v4022_v32 }
 0x924   :  { %v3986_v59 = vadd.f32 %v3985_v18, %v9495_v13  ;;  %v8319_v23 = vpop.f32.mrb[39].mxu1  ;;  %v4018_v18 = vadd.f32 %v4002_v11, %v9541_v41  ;;  %v4035_v43 = vmul.f32 1.442695, %v4024_v8 }
 0x925   :  { %4081 = vrot.lane.b32.xlu0 %v4003_v22, %s9134_s5  ;;  %v4025_v23 = vsub.f32 0.0, %v4017_v16  ;;  %8892 = vpow2.f32 %v4031_v4  ;;  %v4019_v7 = vadd.f32 %v4003_v22, %v9544_v5 }
 0x926   :  { %v4004_v21 = vrot.slane %v3986_v59, 5  ;;  %v4033_v59 = vmul.f32 1.442695, %v4023_v12  ;;  %v4026_v44 = vsub.f32 0.0, %v4018_v18 }
 0x927   :  { %v4037_v14 = vmul.f32 1.442695, %v4025_v23  ;;  %v4027_v36 = vsub.f32 0.0, %v4019_v7 }
 0x928   :  { %4083 = vrot.lane.b32.xlu1 %v4004_v21, %s9134_s5  ;;  %8894 = vpow2.f32 %v4033_v59  ;;  %v4039_v57 = vmul.f32 1.442695, %v4026_v44  ;;  %v4020_v56 = vadd.f32 %v4004_v21, %v9550_v1 }
 0x929   :  { %8896 = vpow2.f32 %v4035_v43  ;;  %v4041_v11 = vmul.f32 1.442695, %v4027_v36 }
 0x92a   :  { %v8891_v26 = vpop.eup %8890  ;;  %8898 = vpow2.f32 %v4037_v14  ;;  %v4028_v37 = vsub.f32 0.0, %v4020_v56 }
 0x92b   :  { %v4045_v45 = vadd.f32 1.0, %v8891_v26  ;;  %8900 = vpow2.f32 %v4039_v57 }
 0x92c   :  { %v4043_v12 = vmul.f32 1.442695, %v4028_v37 }
 0x92d   :  { %8902 = vrcp.f32 %v4045_v45 }
 0x92e   :  { %8904 = vpow2.f32 %v4041_v11 }
 0x92f   :  { %v8893_v32 = vpop.eup %8892  ;;  %8906 = vpow2.f32 %v4043_v12 }
 0x930   :  { %v4046_v16 = vadd.f32 1.0, %v8893_v32 }
 0x932   :  { %v8895_v3 = vpop.eup %8894  ;;  %8908 = vrcp.f32 %v4046_v16 }
 0x933   :  { %v8897_v4 = vpop.eup %8896  ;;  %v4047_v8 = vadd.f32 1.0, %v8895_v3 }
 0x934   :  { %v8899_v22 = vpop.eup %8898  ;;  %v4048_v18 = vadd.f32 1.0, %v8897_v4 }
 0x935   :  { %v8901_v21 = vpop.eup %8900  ;;  %8910 = vrcp.f32 %v4047_v8  ;;  %v4049_v59 = vadd.f32 1.0, %v8899_v22 }
 0x936   :  { %8912 = vrcp.f32 %v4048_v18  ;;  %v4050_v23 = vadd.f32 1.0, %v8901_v21 }
 0x937   :  { %v10129_v43 = vpop.eup %8902  ;;  %8914 = vrcp.f32 %v4049_v59 }
 0x938   :  { %v8905_v44 = vpop.eup %8904  ;;  %8916 = vrcp.f32 %v4050_v23 }
 0x939   :  { %v8907_v57 = vpop.eup %8906  ;;  %v4051_v56 = vadd.f32 1.0, %v8905_v44 }
 0x93a   :  { %v4052_v32 = vadd.f32 1.0, %v8907_v57 }
 0x93b   :  { %8918 = vrcp.f32 %v4051_v56 }
 0x93c   :  { %v10133_v26 = vpop.eup %8908  ;;  %8920 = vrcp.f32 %v4052_v32 }
 0x93f   :  { %v10135_v45 = vpop.eup %8910 }
 0x940   :  { %v10140_v12 = vpop.eup %8912 }
 0x941   :  { %v10143_v4 = vpop.eup %8914 }
 0x942   :  { %v10148_v21 = vpop.eup %8916 }
 0x945   :  { %v10153_v44 = vpop.eup %8918 }
 0x946   :  { %v10156_v57 = vpop.eup %8920 }
 0x986   :  { %v4070_v14 = vpop.permute.xlu0 %4069 }
 0x987   :  { %v4093_v7 = vmul.f32 %v10129_v43, %v4070_v14 }
 0x989   :  { %4109 = vrot.lane.b32.xlu0 %v4093_v7, %s9135_s4 }
 0x98a   :  { %v4072_v36 = vpop.permute.xlu1 %4071 }
 0x98b   :  { %v4094_v37 = vmul.f32 %v10133_v26, %v4072_v36  ;;  %v4074_v11 = vpop.permute.xlu0 %4073 }
 0x98c   :  { %v4095_v3 = vmul.f32 %v10135_v45, %v4074_v11 }
 0x98d   :  { %4111 = vrot.lane.b32.xlu1 %v4094_v37, %s9135_s4 }
 0x98e   :  { %4113 = vrot.lane.b32.xlu0 %v4095_v3, %s9135_s4  ;;  %v4076_v16 = vpop.permute.xlu1 %4075 }
 0x98f   :  { %v4096_v8 = vmul.f32 %v10140_v12, %v4076_v16  ;;  %v4078_v22 = vpop.permute.xlu0 %4077 }
 0x990   :  { %v4097_v18 = vmul.f32 %v10143_v4, %v4078_v22 }
 0x991   :  { %4115 = vrot.lane.b32.xlu1 %v4096_v8, %s9135_s4 }
 0x992   :  { %4117 = vrot.lane.b32.xlu0 %v4097_v18, %s9135_s4  ;;  %v4080_v59 = vpop.permute.xlu1 %4079 }
 0x993   :  { %v4098_v23 = vmul.f32 %v10148_v21, %v4080_v59 }
 0x995   :  { %4119 = vrot.lane.b32.xlu1 %v4098_v23, %s9135_s4 }
 0x997   :  { %v4082_v14 = vpop.permute.xlu0 %4081 }
 0x998   :  { %v4099_v7 = vmul.f32 %v10153_v44, %v4082_v14 }
 0x99a   :  { %4121 = vrot.lane.b32.xlu0 %v4099_v7, %s9135_s4  ;;  %v4084_v56 = vpop.permute.xlu1 %4083 }
 0x99b   :  { %v4100_v36 = vmul.f32 %v10156_v57, %v4084_v56 }
 0x99d   :  { %4123 = vrot.lane.b32.xlu1 %v4100_v36, %s9135_s4 }
 0x9fb   :  { %v4110_v37 = vpop.permute.xlu0 %4109 }
 0x9fc   :  { %v4133_v11 = vadd.f32 %v4110_v37, %v9514_v51 }
 0x9fe   :  { %8922 = vtanh.f32 %v4133_v11 }
 0x9ff   :  { %v4112_v32 = vpop.permute.xlu1 %4111 }
 0xa00   :  { %v4134_v3 = vadd.f32 %v4112_v32, %v9520_v6  ;;  %v4114_v16 = vpop.permute.xlu0 %4113 }
 0xa01   :  { %v4135_v8 = vadd.f32 %v4114_v16, %v9525_v17 }
 0xa02   :  { %8924 = vtanh.f32 %v4134_v3 }
 0xa03   :  { %8926 = vtanh.f32 %v4135_v8  ;;  %v4116_v22 = vpop.permute.xlu1 %4115 }
 0xa04   :  { %v4136_v18 = vadd.f32 %v4116_v22, %v9531_v24  ;;  %v4118_v59 = vpop.permute.xlu0 %4117 }
 0xa05   :  { %v4137_v23 = vadd.f32 %v4118_v59, %v9535_v27 }
 0xa06   :  { %8928 = vtanh.f32 %v4136_v18 }
 0xa07   :  { %8930 = vtanh.f32 %v4137_v23  ;;  %v4120_v14 = vpop.permute.xlu1 %4119 }
 0xa08   :  { %v8923_v7 = vpop.eup %8922  ;;  %v4138_v56 = vadd.f32 %v4120_v14, %v9541_v41  ;;  %v4149_v14 = vsub.f32 1.0, %v10129_v43 }
 0xa09   :  { %4165 = vrot.lane.b32.xlu0 %v8923_v7, %s9137_s28  ;;  %v4197_v7 = vrot.slane %v9956_v10, 7 }
 0xa0a   :  { %8932 = vtanh.f32 %v4138_v56 }
 0xa0c   :  { %v8925_v36 = vpop.eup %8924  ;;  %v4122_v37 = vpop.permute.xlu0 %4121 }
 0xa0d   :  { %v8927_v11 = vpop.eup %8926  ;;  %v4139_v32 = vadd.f32 %v4122_v37, %v9544_v5  ;;  %4167 = vrot.lane.b32.xlu1 %v8925_v36, %s9137_s28  ;;  %v4213_v36 = vmul.f32 %v10129_v43, %v4197_v7 }
 0xa0e   :  { %4169 = vrot.lane.b32.xlu0 %v8927_v11, %s9137_s28 }
 0xa0f   :  { %8934 = vtanh.f32 %v4139_v32  ;;  %v4124_v3 = vpop.permute.xlu1 %4123  ;;  %v4150_v32 = vsub.f32 1.0, %v10133_v26 }
 0xa10   :  { %v8929_v16 = vpop.eup %8928  ;;  %v4140_v8 = vadd.f32 %v4124_v3, %v9550_v1  ;;  %v4198_v3 = vrot.slane %v9975_v15, 7 }
 0xa11   :  { %v8931_v22 = vpop.eup %8930  ;;  %4171 = vrot.lane.b32.xlu1 %v8929_v16, %s9137_s28 }
 0xa12   :  { %8936 = vtanh.f32 %v4140_v8  ;;  %4173 = vrot.lane.b32.xlu0 %v8931_v22, %s9137_s28  ;;  %v4151_v8 = vsub.f32 1.0, %v10135_v45  ;;  %v4199_v22 = vrot.slane %v9983_v61, 7  ;;  %v4214_v43 = vmul.f32 %v10133_v26, %v4198_v3 }
 0xa13   :  { %v4152_v61 = vsub.f32 1.0, %v10140_v12  ;;  %v4153_v26 = vsub.f32 1.0, %v10143_v4 }
 0xa14   :  { %v8933_v18 = vpop.eup %8932 }
 0xa15   :  { %4175 = vrot.lane.b32.xlu1 %v8933_v18, %s9137_s28 }
 0xa19   :  { %v8935_v59 = vpop.eup %8934 }
 0xa1a   :  { %4177 = vrot.lane.b32.xlu0 %v8935_v59, %s9137_s28 }
 0xa1c   :  { %v8937_v23 = vpop.eup %8936 }
 0xa1d   :  { %4179 = vrot.lane.b32.xlu1 %v8937_v23, %s9137_s28 }
 0xa7b   :  { %v4166_v56 = vpop.permute.xlu0 %4165 }
 0xa7c   :  { %v4189_v37 = vmul.f32 %v4166_v56, %v4149_v14  ;;  %v4215_v14 = vmul.f32 %v10135_v45, %v4199_v22  ;;  %v4200_v56 = vrot.slane %v9999_v63, 7 }
 0xa7e   :  { %v10180_v11 = vadd.f32 %v4213_v36, %v4189_v37  ;;  %v4201_v37 = vrot.slane %v10010_v42, 7 }
 0xa7f   :  { %v4168_v16 = vpop.permute.xlu1 %4167 }
 0xa80   :  { %v10189_v10 = vsel %vm7639_vm7, %v9967_v34, %v10180_v11  ;;  %v4190_v18 = vmul.f32 %v4168_v16, %v4150_v32  ;;  %v4170_v59 = vpop.permute.xlu0 %4169  ;;  %v4230_v23 = vrot.slane %v10180_v11, 3  ;;  %v4216_v32 = vmul.f32 %v10140_v12, %v4200_v56 }
 0xa81   :  { %v4191_v7 = vmul.f32 %v4170_v59, %v4151_v8  ;;  %v4217_v22 = vmul.f32 %v10143_v4, %v4201_v37  ;;  %v4202_v12 = vrot.slane %v10024_v20, 7 }
 0xa82   :  { %v10194_v15 = vadd.f32 %v4214_v43, %v4190_v18  ;;  %4231 = vrot.lane.b32.xlu0 %v4230_v23, %s9137_s28 }
 0xa83   :  { %v10199_v36 = vadd.f32 %v4215_v14, %v4191_v7  ;;  %v4172_v34 = vpop.permute.xlu1 %4171  ;;  %v4218_v4 = vmul.f32 %v10148_v21, %v4202_v12 }
 0xa84   :  { %v10206_v45 = vsel %vm7639_vm7, %v9989_v62, %v10194_v15  ;;  %v4192_v3 = vmul.f32 %v4172_v34, %v4152_v61  ;;  %v4174_v16 = vpop.permute.xlu0 %4173  ;;  %v4306_v8 = vrot.slane %v10194_v15, 3  ;;  %v4154_v62 = vsub.f32 1.0, %v10148_v21 }
 0xa85   :  { %v10213_v63 = vsel %vm7639_vm7, %v9995_v9, %v10199_v36  ;;  %v4193_v43 = vmul.f32 %v4174_v16, %v4153_v26  ;;  %v4382_v42 = vrot.slane %v10199_v36, 3  ;;  %v4203_v21 = vrot.slane %v10042_v50, 7 }
 0xa86   :  { %v10217_v18 = vadd.f32 %v4216_v32, %v4192_v3  ;;  %4307 = vrot.lane.b32.xlu1 %v4306_v8, %s9137_s28  ;;  %v4156_v3 = vsub.f32 1.0, %v10156_v57  ;;  %v4204_v16 = vrot.slane %v10053_v53, 7 }
 0xa87   :  { %v10222_v59 = vadd.f32 %v4217_v22, %v4193_v43  ;;  %4383 = vrot.lane.b32.xlu0 %v4382_v42, %s9137_s28  ;;  %v4176_v23 = vpop.permute.xlu1 %4175  ;;  %v4219_v37 = vmul.f32 %v10153_v44, %v4203_v21 }
 0xa88   :  { %v10228_v9 = vsel %vm7639_vm7, %v10015_v49, %v10217_v18  ;;  %v4194_v14 = vmul.f32 %v4176_v23, %v4154_v62  ;;  %v4458_v7 = vrot.slane %v10217_v18, 3  ;;  %v4155_v49 = vsub.f32 1.0, %v10153_v44 }
 0xa89   :  { %v10235_v61 = vsel %vm7639_vm7, %v10021_v40, %v10222_v59  ;;  %v4534_v20 = vrot.slane %v10222_v59, 3  ;;  %v4220_v22 = vmul.f32 %v10156_v57, %v4204_v16 }
 0xa8a   :  { %v10238_v56 = vadd.f32 %v4218_v4, %v4194_v14  ;;  %4459 = vrot.lane.b32.xlu1 %v4458_v7, %s9137_s28 }
 0xa8b   :  { %4535 = vrot.lane.b32.xlu0 %v4534_v20, %s9137_s28 }
 0xa8c   :  { %v10247_v34 = vsel %vm7639_vm7, %v10035_v58, %v10238_v56  ;;  %v4178_v26 = vpop.permute.xlu0 %4177  ;;  %v4610_v40 = vrot.slane %v10238_v56, 3 }
 0xa8d   :  { %v4195_v32 = vmul.f32 %v4178_v26, %v4155_v49 }
 0xa8e   :  { %4611 = vrot.lane.b32.xlu1 %v4610_v40, %s9137_s28 }
 0xa8f   :  { %v10254_v8 = vadd.f32 %v4219_v37, %v4195_v32  ;;  %v4180_v50 = vpop.permute.xlu1 %4179 }
 0xa90   :  { %v4196_v43 = vmul.f32 %v4180_v50, %v4156_v3 }
 0xa91   :  { %v10260_v58 = vsel %vm7639_vm7, %v10050_v31, %v10254_v8  ;;  %v4686_v44 = vrot.slane %v10254_v8, 3 }
 0xa92   :  { %v10263_v42 = vadd.f32 %v4220_v22, %v4196_v43 }
 0xa93   :  { %4687 = vrot.lane.b32.xlu0 %v4686_v44, %s9137_s28 }
 0xa94   :  { %v10269_v53 = vsel %vm7639_vm7, %v10061_v52, %v10263_v42  ;;  %v4762_v62 = vrot.slane %v10263_v42, 3 }
 0xa96   :  { %4763 = vrot.lane.b32.xlu1 %v4762_v62, %s9137_s28 }
 0xaf4   :  { %v4232_v57 = vpop.permute.xlu0 %4231 }
 0xaf5   :  { %8325 = vmatmul.mubr.msk.f32.vlgmr.msra.gmra.mrb[40].mxu0 %vm844_vm4, %v4232_v57 }
 0xaf6   :  { %8648 = vmatpush3.bf16.msra.mxu0 %v9329_v38  ;;  %8338 = vmatprep.mubr.msk.f32.mxu0 %vm9131_vm2, %v9130_v0 }
 0xaf7   :  { %8652 = vmatprep.subr.bf16.mxu0 %v9132_v35 }
 0xaf8   :  { %v4308_v31 = vpop.permute.xlu1 %4307 }
 0xaf9   :  { %v4384_v12 = vpop.permute.xlu0 %4383  ;;  %8332 = vmatmul.mubr.msk.f32.vlgmr.msra.gmra.mrb[40].mxu1 %vm844_vm4, %v4308_v31 }
 0xafa   :  { %8339 = vmatmul.mubr.msk.f32.vlgmr.msra.gmra.mrb[42].mxu0 %vm844_vm4, %v4384_v12  ;;  %8651 = vmatpush3.bf16.msra.mxu1 %v9331_v39 }
 0xafb   :  { %8654 = vmatpush3.bf16.msra.mxu0 %v9361_v46  ;;  %8345 = vmatprep.mubr.msk.f32.mxu1 %vm9131_vm2, %v9130_v0 }
 0xafc   :  { %v4460_v52 = vpop.permute.xlu1 %4459  ;;  %8352 = vmatprep.mubr.msk.f32.mxu0 %vm9131_vm2, %v9130_v0  ;;  %8655 = vmatprep.subr.bf16.mxu1 %v9132_v35 }
 0xafd   :  { %v4536_v23 = vpop.permute.xlu0 %4535  ;;  %8346 = vmatmul.mubr.msk.f32.vlgmr.msra.gmra.mrb[42].mxu1 %vm844_vm4, %v4460_v52  ;;  %8658 = vmatprep.subr.bf16.mxu0 %v9132_v35 }
 0xafe   :  { %8353 = vmatmul.mubr.msk.f32.vlgmr.msra.gmra.mrb[44].mxu0 %vm844_vm4, %v4536_v23  ;;  %8657 = vmatpush3.bf16.msra.mxu1 %v9363_v47 }
 0xaff   :  { %8359 = vmatprep.mubr.msk.f32.mxu1 %vm9131_vm2, %v9130_v0  ;;  %8660 = vmatpush3.bf16.msra.mxu0 %v9393_v54 }
 0xb00   :  { %v4612_v4 = vpop.permute.xlu1 %4611  ;;  %8366 = vmatprep.mubr.msk.f32.mxu0 %vm9131_vm2, %v9130_v0  ;;  %8661 = vmatprep.subr.bf16.mxu1 %v9132_v35 }
 0xb01   :  { %8360 = vmatmul.mubr.msk.f32.vlgmr.msra.gmra.mrb[44].mxu1 %vm844_vm4, %v4612_v4  ;;  %8664 = vmatprep.subr.bf16.mxu0 %v9132_v35 }
 0xb02   :  { %8663 = vmatpush3.bf16.msra.mxu1 %v9395_v55  ;;  %8373 = vmatprep.mubr.msk.f32.mxu1 %vm9131_vm2, %v9130_v0 }
 0xb03   :  { %8667 = vmatprep.subr.bf16.mxu1 %v9132_v35 }
 0xb05   :  { %v4688_v14 = vpop.permute.xlu0 %4687 }
 0xb06   :  { %8367 = vmatmul.mubr.msk.f32.vlgmr.msra.gmra.mrb[46].mxu0 %vm844_vm4, %v4688_v14 }
 0xb07   :  { %8666 = vmatpush3.bf16.msra.mxu0 %v9295_v28  ;;  %8380 = vmatprep.mubr.msk.f32.mxu0 %vm9131_vm2, %v9130_v0 }
 0xb08   :  { %v4764_v7 = vpop.permute.xlu1 %4763  ;;  %8670 = vmatprep.subr.bf16.mxu0 %v9132_v35 }
 0xb09   :  { %8374 = vmatmul.mubr.msk.f32.vlgmr.msra.gmra.mrb[46].mxu1 %vm844_vm4, %v4764_v7 }
 0xb0a   :  { %8669 = vmatpush3.bf16.msra.mxu1 %v9297_v29  ;;  %8387 = vmatprep.mubr.msk.f32.mxu1 %vm9131_vm2, %v9130_v0 }
 0xb0b   :  { %8673 = vmatprep.subr.bf16.mxu1 %v9132_v35 }
 0xbc8   :  { %v4301_v20 = vpop.f32.mrb[40].mxu0 }
 0xbc9   :  { %v4302_v49 = vadd.f32 %v4301_v20, %v9457_v19  ;;  %v8326_v21 = vpop.f32.mrb[41].mxu0 }
 0xbcb   :  { %v4845_v26 = vrot.slane %v4302_v49, 4 }
 0xbcc   :  { %v4377_v40 = vpop.f32.mrb[40].mxu1 }
 0xbcd   :  { %v4378_v37 = vadd.f32 %v4377_v40, %v9461_v25  ;;  %v4453_v32 = vpop.f32.mrb[42].mxu0  ;;  %v8333_v3 = vpop.f32.mrb[41].mxu1  ;;  %4917 = vrot.lane.b32.xlu0 %v4845_v26, %s9134_s5 }
 0xbce   :  { %v4454_v16 = vadd.f32 %v4453_v32, %v9465_v30  ;;  %v8340_v50 = vpop.f32.mrb[43].mxu0 }
 0xbcf   :  { %v4846_v22 = vrot.slane %v4378_v37, 4 }
 0xbd0   :  { %v4847_v43 = vrot.slane %v4454_v16, 4  ;;  %v4529_v44 = vpop.f32.mrb[42].mxu1 }
 0xbd1   :  { %v4530_v62 = vadd.f32 %v4529_v44, %v9471_v33  ;;  %v4605_v57 = vpop.f32.mrb[44].mxu0  ;;  %4919 = vrot.lane.b32.xlu1 %v4846_v22, %s9134_s5  ;;  %v8347_v31 = vpop.f32.mrb[43].mxu1 }
 0xbd2   :  { %v4606_v12 = vadd.f32 %v4605_v57, %v9476_v48  ;;  %4921 = vrot.lane.b32.xlu0 %v4847_v43, %s9134_s5  ;;  %v8354_v52 = vpop.f32.mrb[45].mxu0  ;;  %v4862_v31 = vadd.f32 %v4846_v22, %v9520_v6 }
 0xbd3   :  { %v4848_v23 = vrot.slane %v4530_v62, 4  ;;  %v4861_v62 = vadd.f32 %v4845_v26, %v9514_v51 }
 0xbd4   :  { %v4849_v4 = vrot.slane %v4606_v12, 4  ;;  %v4681_v14 = vpop.f32.mrb[44].mxu1  ;;  %v4863_v12 = vadd.f32 %v4847_v43, %v9525_v17 }
 0xbd5   :  { %v4682_v7 = vadd.f32 %v4681_v14, %v9483_v60  ;;  %4923 = vrot.lane.b32.xlu1 %v4848_v23, %s9134_s5  ;;  %v8361_v20 = vpop.f32.mrb[45].mxu1  ;;  %v4869_v57 = vsub.f32 0.0, %v4861_v62  ;;  %v4870_v14 = vsub.f32 0.0, %v4862_v31 }
 0xbd6   :  { %4925 = vrot.lane.b32.xlu0 %v4849_v4, %s9134_s5  ;;  %v4871_v20 = vsub.f32 0.0, %v4863_v12 }
 0xbd7   :  { %v4850_v49 = vrot.slane %v4682_v7, 4  ;;  %v4877_v52 = vmul.f32 1.442695, %v4869_v57  ;;  %v4864_v7 = vadd.f32 %v4848_v23, %v9531_v24 }
 0xbd9   :  { %v4757_v21 = vpop.f32.mrb[46].mxu0  ;;  %4927 = vrot.lane.b32.xlu1 %v4850_v49, %s9134_s5  ;;  %8938 = vpow2.f32 %v4877_v52 }
 0xbda   :  { %v4758_v40 = vadd.f32 %v4757_v21, %v9487_v2  ;;  %v8368_v37 = vpop.f32.mrb[47].mxu0  ;;  %v4865_v21 = vadd.f32 %v4849_v4, %v9535_v27 }
 0xbdb   :  { %v4872_v37 = vsub.f32 0.0, %v4864_v7 }
 0xbdc   :  { %v4851_v32 = vrot.slane %v4758_v40, 4  ;;  %v4833_v3 = vpop.f32.mrb[46].mxu1  ;;  %v4879_v40 = vmul.f32 1.442695, %v4870_v14 }
 0xbdd   :  { %v4834_v16 = vadd.f32 %v4833_v3, %v9495_v13  ;;  %v8375_v50 = vpop.f32.mrb[47].mxu1  ;;  %v4866_v3 = vadd.f32 %v4850_v49, %v9541_v41  ;;  %v4883_v26 = vmul.f32 1.442695, %v4872_v37 }
 0xbde   :  { %4929 = vrot.lane.b32.xlu0 %v4851_v32, %s9134_s5  ;;  %v4873_v50 = vsub.f32 0.0, %v4865_v21  ;;  %8940 = vpow2.f32 %v4879_v40  ;;  %v4867_v43 = vadd.f32 %v4851_v32, %v9544_v5 }
 0xbdf   :  { %v4852_v44 = vrot.slane %v4834_v16, 4  ;;  %v4881_v16 = vmul.f32 1.442695, %v4871_v20  ;;  %v4874_v62 = vsub.f32 0.0, %v4866_v3 }
 0xbe0   :  { %v4885_v22 = vmul.f32 1.442695, %v4873_v50  ;;  %v4875_v4 = vsub.f32 0.0, %v4867_v43 }
 0xbe1   :  { %4931 = vrot.lane.b32.xlu1 %v4852_v44, %s9134_s5  ;;  %8942 = vpow2.f32 %v4881_v16  ;;  %v4887_v57 = vmul.f32 1.442695, %v4874_v62  ;;  %v4868_v23 = vadd.f32 %v4852_v44, %v9550_v1 }
 0xbe2   :  { %8944 = vpow2.f32 %v4883_v26  ;;  %v4889_v49 = vmul.f32 1.442695, %v4875_v4 }
 0xbe3   :  { %v8939_v31 = vpop.eup %8938  ;;  %8946 = vpow2.f32 %v4885_v22  ;;  %v4876_v52 = vsub.f32 0.0, %v4868_v23 }
 0xbe4   :  { %v4893_v12 = vadd.f32 1.0, %v8939_v31  ;;  %8948 = vpow2.f32 %v4887_v57 }
 0xbe5   :  { %v4891_v20 = vmul.f32 1.442695, %v4876_v52 }
 0xbe6   :  { %8950 = vrcp.f32 %v4893_v12 }
 0xbe7   :  { %8952 = vpow2.f32 %v4889_v49 }
 0xbe8   :  { %v8941_v14 = vpop.eup %8940  ;;  %8954 = vpow2.f32 %v4891_v20 }
 0xbe9   :  { %v4894_v21 = vadd.f32 1.0, %v8941_v14 }
 0xbeb   :  { %v8943_v7 = vpop.eup %8942  ;;  %8956 = vrcp.f32 %v4894_v21 }
 0xbec   :  { %v8945_v40 = vpop.eup %8944  ;;  %v4895_v37 = vadd.f32 1.0, %v8943_v7 }
 0xbed   :  { %v8947_v32 = vpop.eup %8946  ;;  %v4896_v3 = vadd.f32 1.0, %v8945_v40 }
 0xbee   :  { %v8949_v44 = vpop.eup %8948  ;;  %8958 = vrcp.f32 %v4895_v37  ;;  %v4897_v16 = vadd.f32 1.0, %v8947_v32 }
 0xbef   :  { %8960 = vrcp.f32 %v4896_v3  ;;  %v4898_v50 = vadd.f32 1.0, %v8949_v44 }
 0xbf0   :  { %v10337_v26 = vpop.eup %8950  ;;  %8962 = vrcp.f32 %v4897_v16 }
 0xbf1   :  { %v8953_v62 = vpop.eup %8952  ;;  %8964 = vrcp.f32 %v4898_v50 }
 0xbf2   :  { %v8955_v57 = vpop.eup %8954  ;;  %v4899_v23 = vadd.f32 1.0, %v8953_v62 }
 0xbf3   :  { %v4900_v14 = vadd.f32 1.0, %v8955_v57 }
 0xbf4   :  { %8966 = vrcp.f32 %v4899_v23 }
 0xbf5   :  { %v10341_v31 = vpop.eup %8956  ;;  %8968 = vrcp.f32 %v4900_v14 }
 0xbf8   :  { %v10343_v12 = vpop.eup %8958 }
 0xbf9   :  { %v10348_v20 = vpop.eup %8960 }
 0xbfa   :  { %v10351_v40 = vpop.eup %8962 }
 0xbfb   :  { %v10356_v44 = vpop.eup %8964 }
 0xbfe   :  { %v10361_v62 = vpop.eup %8966 }
 0xbff   :  { %v10364_v57 = vpop.eup %8968 }
 0xc3f   :  { %v4918_v22 = vpop.permute.xlu0 %4917 }
 0xc40   :  { %v4941_v43 = vmul.f32 %v10337_v26, %v4918_v22 }
 0xc42   :  { %4957 = vrot.lane.b32.xlu0 %v4941_v43, %s9135_s4 }
 0xc43   :  { %v4920_v4 = vpop.permute.xlu1 %4919 }
 0xc44   :  { %v4942_v52 = vmul.f32 %v10341_v31, %v4920_v4  ;;  %v4922_v49 = vpop.permute.xlu0 %4921 }
 0xc45   :  { %v4943_v7 = vmul.f32 %v10343_v12, %v4922_v49 }
 0xc46   :  { %4959 = vrot.lane.b32.xlu1 %v4942_v52, %s9135_s4 }
 0xc47   :  { %4961 = vrot.lane.b32.xlu0 %v4943_v7, %s9135_s4  ;;  %v4924_v21 = vpop.permute.xlu1 %4923 }
 0xc48   :  { %v4944_v37 = vmul.f32 %v10348_v20, %v4924_v21  ;;  %v4926_v32 = vpop.permute.xlu0 %4925 }
 0xc49   :  { %v4945_v3 = vmul.f32 %v10351_v40, %v4926_v32 }
 0xc4a   :  { %4963 = vrot.lane.b32.xlu1 %v4944_v37, %s9135_s4 }
 0xc4b   :  { %4965 = vrot.lane.b32.xlu0 %v4945_v3, %s9135_s4  ;;  %v4928_v16 = vpop.permute.xlu1 %4927 }
 0xc4c   :  { %v4946_v50 = vmul.f32 %v10356_v44, %v4928_v16 }
 0xc4e   :  { %4967 = vrot.lane.b32.xlu1 %v4946_v50, %s9135_s4 }
 0xc50   :  { %v4930_v22 = vpop.permute.xlu0 %4929 }
 0xc51   :  { %v4947_v43 = vmul.f32 %v10361_v62, %v4930_v22 }
 0xc53   :  { %4969 = vrot.lane.b32.xlu0 %v4947_v43, %s9135_s4  ;;  %v4932_v23 = vpop.permute.xlu1 %4931 }
 0xc54   :  { %v4948_v4 = vmul.f32 %v10364_v57, %v4932_v23 }
 0xc56   :  { %4971 = vrot.lane.b32.xlu1 %v4948_v4, %s9135_s4 }
 0xcb4   :  { %v4958_v52 = vpop.permute.xlu0 %4957 }
 0xcb5   :  { %v4981_v49 = vadd.f32 %v4958_v52, %v9514_v51 }
 0xcb7   :  { %8970 = vtanh.f32 %v4981_v49 }
 0xcb8   :  { %v4960_v14 = vpop.permute.xlu1 %4959 }
 0xcb9   :  { %v4982_v7 = vadd.f32 %v4960_v14, %v9520_v6  ;;  %v4962_v21 = vpop.permute.xlu0 %4961 }
 0xcba   :  { %v4983_v37 = vadd.f32 %v4962_v21, %v9525_v17 }
 0xcbb   :  { %8972 = vtanh.f32 %v4982_v7 }
 0xcbc   :  { %8974 = vtanh.f32 %v4983_v37  ;;  %v4964_v32 = vpop.permute.xlu1 %4963 }
 0xcbd   :  { %v4984_v3 = vadd.f32 %v4964_v32, %v9531_v24  ;;  %v4966_v16 = vpop.permute.xlu0 %4965 }
 0xcbe   :  { %v4985_v50 = vadd.f32 %v4966_v16, %v9535_v27 }
 0xcbf   :  { %8976 = vtanh.f32 %v4984_v3 }
 0xcc0   :  { %8978 = vtanh.f32 %v4985_v50  ;;  %v4968_v22 = vpop.permute.xlu1 %4967 }
 0xcc1   :  { %v8971_v43 = vpop.eup %8970  ;;  %v4986_v23 = vadd.f32 %v4968_v22, %v9541_v41  ;;  %v4997_v22 = vsub.f32 1.0, %v10337_v26 }
 0xcc2   :  { %5013 = vrot.lane.b32.xlu0 %v8971_v43, %s9137_s28  ;;  %v5045_v43 = vrot.slane %v10180_v11, 7 }
 0xcc3   :  { %8980 = vtanh.f32 %v4986_v23 }
 0xcc5   :  { %v8973_v4 = vpop.eup %8972  ;;  %v4970_v52 = vpop.permute.xlu0 %4969 }
 0xcc6   :  { %v8975_v49 = vpop.eup %8974  ;;  %v4987_v14 = vadd.f32 %v4970_v52, %v9544_v5  ;;  %5015 = vrot.lane.b32.xlu1 %v8973_v4, %s9137_s28  ;;  %v5061_v4 = vmul.f32 %v10337_v26, %v5045_v43 }
 0xcc7   :  { %5017 = vrot.lane.b32.xlu0 %v8975_v49, %s9137_s28 }
 0xcc8   :  { %8982 = vtanh.f32 %v4987_v14  ;;  %v4972_v7 = vpop.permute.xlu1 %4971  ;;  %v4998_v14 = vsub.f32 1.0, %v10341_v31 }
 0xcc9   :  { %v8977_v21 = vpop.eup %8976  ;;  %v4988_v37 = vadd.f32 %v4972_v7, %v9550_v1  ;;  %v5046_v7 = vrot.slane %v10194_v15, 7 }
 0xcca   :  { %v8979_v32 = vpop.eup %8978  ;;  %5019 = vrot.lane.b32.xlu1 %v8977_v21, %s9137_s28 }
 0xccb   :  { %8984 = vtanh.f32 %v4988_v37  ;;  %5021 = vrot.lane.b32.xlu0 %v8979_v32, %s9137_s28  ;;  %v4999_v37 = vsub.f32 1.0, %v10343_v12  ;;  %v5047_v32 = vrot.slane %v10199_v36, 7  ;;  %v5062_v26 = vmul.f32 %v10341_v31, %v5046_v7 }
 0xccc   :  { %v5000_v36 = vsub.f32 1.0, %v10348_v20  ;;  %v5001_v31 = vsub.f32 1.0, %v10351_v40 }
 0xccd   :  { %v8981_v3 = vpop.eup %8980 }
 0xcce   :  { %5023 = vrot.lane.b32.xlu1 %v8981_v3, %s9137_s28 }
 0xcd2   :  { %v8983_v16 = vpop.eup %8982 }
 0xcd3   :  { %5025 = vrot.lane.b32.xlu0 %v8983_v16, %s9137_s28 }
 0xcd5   :  { %v8985_v50 = vpop.eup %8984 }
 0xcd6   :  { %5027 = vrot.lane.b32.xlu1 %v8985_v50, %s9137_s28 }
 0xd34   :  { %v5014_v23 = vpop.permute.xlu0 %5013 }
 0xd35   :  { %v5037_v52 = vmul.f32 %v5014_v23, %v4997_v22  ;;  %v5063_v22 = vmul.f32 %v10343_v12, %v5047_v32  ;;  %v5048_v23 = vrot.slane %v10217_v18, 7 }
 0xd37   :  { %v10388_v49 = vadd.f32 %v5061_v4, %v5037_v52  ;;  %v5049_v52 = vrot.slane %v10222_v59, 7 }
 0xd38   :  { %v5016_v21 = vpop.permute.xlu1 %5015 }
 0xd39   :  { %v10397_v11 = vsel %vm7648_vm8, %v10189_v10, %v10388_v49  ;;  %v5038_v3 = vmul.f32 %v5016_v21, %v4998_v14  ;;  %v5018_v16 = vpop.permute.xlu0 %5017  ;;  %v5078_v50 = vrot.slane %v10388_v49, 4  ;;  %v5064_v14 = vmul.f32 %v10348_v20, %v5048_v23 }
 0xd3a   :  { %v5039_v43 = vmul.f32 %v5018_v16, %v4999_v37  ;;  %v5065_v32 = vmul.f32 %v10351_v40, %v5049_v52  ;;  %v5050_v20 = vrot.slane %v10238_v56, 7 }
 0xd3b   :  { %v10402_v15 = vadd.f32 %v5062_v26, %v5038_v3  ;;  %5079 = vrot.lane.b32.xlu0 %v5078_v50, %s9137_s28 }
 0xd3c   :  { %v10407_v4 = vadd.f32 %v5063_v22, %v5039_v43  ;;  %v5020_v10 = vpop.permute.xlu1 %5019  ;;  %v5066_v40 = vmul.f32 %v10356_v44, %v5050_v20 }
 0xd3d   :  { %v10414_v12 = vsel %vm7648_vm8, %v10206_v45, %v10402_v15  ;;  %v5040_v7 = vmul.f32 %v5020_v10, %v5000_v36  ;;  %v5022_v21 = vpop.permute.xlu0 %5021  ;;  %v5154_v37 = vrot.slane %v10402_v15, 4  ;;  %v5002_v45 = vsub.f32 1.0, %v10356_v44 }
 0xd3e   :  { %v10421_v18 = vsel %vm7648_vm8, %v10213_v63, %v10407_v4  ;;  %v5041_v26 = vmul.f32 %v5022_v21, %v5001_v31  ;;  %v5230_v59 = vrot.slane %v10407_v4, 4  ;;  %v5051_v44 = vrot.slane %v10254_v8, 7 }
 0xd3f   :  { %v10425_v3 = vadd.f32 %v5064_v14, %v5040_v7  ;;  %5155 = vrot.lane.b32.xlu1 %v5154_v37, %s9137_s28  ;;  %v5004_v7 = vsub.f32 1.0, %v10364_v57  ;;  %v5052_v21 = vrot.slane %v10263_v42, 7 }
 0xd40   :  { %v10430_v16 = vadd.f32 %v5065_v32, %v5041_v26  ;;  %5231 = vrot.lane.b32.xlu0 %v5230_v59, %s9137_s28  ;;  %v5024_v50 = vpop.permute.xlu1 %5023  ;;  %v5067_v52 = vmul.f32 %v10361_v62, %v5051_v44 }
 0xd41   :  { %v10436_v63 = vsel %vm7648_vm8, %v10228_v9, %v10425_v3  ;;  %v5042_v22 = vmul.f32 %v5024_v50, %v5002_v45  ;;  %v5306_v43 = vrot.slane %v10425_v3, 4  ;;  %v5003_v9 = vsub.f32 1.0, %v10361_v62 }
 0xd42   :  { %v10443_v36 = vsel %vm7648_vm8, %v10235_v61, %v10430_v16  ;;  %v5382_v56 = vrot.slane %v10430_v16, 4  ;;  %v5068_v32 = vmul.f32 %v10364_v57, %v5052_v21 }
 0xd43   :  { %v10446_v23 = vadd.f32 %v5066_v40, %v5042_v22  ;;  %5307 = vrot.lane.b32.xlu1 %v5306_v43, %s9137_s28 }
 0xd44   :  { %5383 = vrot.lane.b32.xlu0 %v5382_v56, %s9137_s28 }
 0xd45   :  { %v10455_v10 = vsel %vm7648_vm8, %v10247_v34, %v10446_v23  ;;  %v5026_v31 = vpop.permute.xlu0 %5025  ;;  %v5458_v61 = vrot.slane %v10446_v23, 4 }
 0xd46   :  { %v5043_v14 = vmul.f32 %v5026_v31, %v5003_v9 }
 0xd47   :  { %5459 = vrot.lane.b32.xlu1 %v5458_v61, %s9137_s28 }
 0xd48   :  { %v10462_v37 = vadd.f32 %v5067_v52, %v5043_v14  ;;  %v5028_v8 = vpop.permute.xlu1 %5027 }
 0xd49   :  { %v5044_v26 = vmul.f32 %v5028_v8, %v5004_v7 }
 0xd4a   :  { %v10468_v34 = vsel %vm7648_vm8, %v10260_v58, %v10462_v37  ;;  %v5534_v62 = vrot.slane %v10462_v37, 4 }
 0xd4b   :  { %v10471_v59 = vadd.f32 %v5068_v32, %v5044_v26 }
 0xd4c   :  { %5535 = vrot.lane.b32.xlu0 %v5534_v62, %s9137_s28 }
 0xd4d   :  { %v10477_v42 = vsel %vm7648_vm8, %v10269_v53, %v10471_v59  ;;  %v5610_v45 = vrot.slane %v10471_v59, 4 }
 0xd4f   :  { %5611 = vrot.lane.b32.xlu1 %v5610_v45, %s9137_s28 }
 0xdad   :  { %v5080_v57 = vpop.permute.xlu0 %5079 }
 0xdae   :  { %8381 = vmatmul.mubr.msk.f32.vlgmr.msra.gmra.mrb[48].mxu0 %vm844_vm4, %v5080_v57 }
 0xdaf   :  { %8672 = vmatpush3.bf16.msra.mxu0 %v9329_v38  ;;  %8394 = vmatprep.mubr.msk.f32.mxu0 %vm9131_vm2, %v9130_v0 }
 0xdb0   :  { %8676 = vmatprep.subr.bf16.mxu0 %v9132_v35 }
 0xdb1   :  { %v5156_v58 = vpop.permute.xlu1 %5155 }
 0xdb2   :  { %v5232_v20 = vpop.permute.xlu0 %5231  ;;  %8388 = vmatmul.mubr.msk.f32.vlgmr.msra.gmra.mrb[48].mxu1 %vm844_vm4, %v5156_v58 }
 0xdb3   :  { %8395 = vmatmul.mubr.msk.f32.vlgmr.msra.gmra.mrb[50].mxu0 %vm844_vm4, %v5232_v20  ;;  %8675 = vmatpush3.bf16.msra.mxu1 %v9331_v39 }
 0xdb4   :  { %8678 = vmatpush3.bf16.msra.mxu0 %v9361_v46  ;;  %8401 = vmatprep.mubr.msk.f32.mxu1 %vm9131_vm2, %v9130_v0 }
 0xdb5   :  { %v5308_v53 = vpop.permute.xlu1 %5307  ;;  %8408 = vmatprep.mubr.msk.f32.mxu0 %vm9131_vm2, %v9130_v0  ;;  %8679 = vmatprep.subr.bf16.mxu1 %v9132_v35 }
 0xdb6   :  { %v5384_v50 = vpop.permute.xlu0 %5383  ;;  %8402 = vmatmul.mubr.msk.f32.vlgmr.msra.gmra.mrb[50].mxu1 %vm844_vm4, %v5308_v53  ;;  %8682 = vmatprep.subr.bf16.mxu0 %v9132_v35 }
 0xdb7   :  { %8409 = vmatmul.mubr.msk.f32.vlgmr.msra.gmra.mrb[52].mxu0 %vm844_vm4, %v5384_v50  ;;  %8681 = vmatpush3.bf16.msra.mxu1 %v9363_v47 }
 0xdb8   :  { %8415 = vmatprep.mubr.msk.f32.mxu1 %vm9131_vm2, %v9130_v0  ;;  %8684 = vmatpush3.bf16.msra.mxu0 %v9393_v54 }
 0xdb9   :  { %v5460_v40 = vpop.permute.xlu1 %5459  ;;  %8422 = vmatprep.mubr.msk.f32.mxu0 %vm9131_vm2, %v9130_v0  ;;  %8685 = vmatprep.subr.bf16.mxu1 %v9132_v35 }
 0xdba   :  { %8416 = vmatmul.mubr.msk.f32.vlgmr.msra.gmra.mrb[52].mxu1 %vm844_vm4, %v5460_v40  ;;  %8688 = vmatprep.subr.bf16.mxu0 %v9132_v35 }
 0xdbb   :  { %8687 = vmatpush3.bf16.msra.mxu1 %v9395_v55  ;;  %8429 = vmatprep.mubr.msk.f32.mxu1 %vm9131_vm2, %v9130_v0 }
 0xdbc   :  { %8691 = vmatprep.subr.bf16.mxu1 %v9132_v35 }
 0xdbe   :  { %v5536_v22 = vpop.permute.xlu0 %5535 }
 0xdbf   :  { %8423 = vmatmul.mubr.msk.f32.vlgmr.msra.gmra.mrb[54].mxu0 %vm844_vm4, %v5536_v22 }
 0xdc0   :  { %8690 = vmatpush3.bf16.msra.mxu0 %v9295_v28  ;;  %8436 = vmatprep.mubr.msk.f32.mxu0 %vm9131_vm2, %v9130_v0 }
 0xdc1   :  { %v5612_v43 = vpop.permute.xlu1 %5611  ;;  %8694 = vmatprep.subr.bf16.mxu0 %v9132_v35 }
 0xdc2   :  { %8430 = vmatmul.mubr.msk.f32.vlgmr.msra.gmra.mrb[54].mxu1 %vm844_vm4, %v5612_v43 }
 0xdc3   :  { %8693 = vmatpush3.bf16.msra.mxu1 %v9297_v29  ;;  %8443 = vmatprep.mubr.msk.f32.mxu1 %vm9131_vm2, %v9130_v0 }
 0xdc4   :  { %8697 = vmatprep.subr.bf16.mxu1 %v9132_v35 }
 0xe81   :  { %v5149_v56 = vpop.f32.mrb[48].mxu0 }
 0xe82   :  { %v5150_v9 = vadd.f32 %v5149_v56, %v9457_v19  ;;  %v8382_v44 = vpop.f32.mrb[49].mxu0 }
 0xe84   :  { %v5693_v31 = vrot.slane %v5150_v9, 3 }
 0xe85   :  { %v5225_v61 = vpop.f32.mrb[48].mxu1 }
 0xe86   :  { %v5226_v52 = vadd.f32 %v5225_v61, %v9461_v25  ;;  %v5301_v14 = vpop.f32.mrb[50].mxu0  ;;  %v8389_v7 = vpop.f32.mrb[49].mxu1  ;;  %5765 = vrot.lane.b32.xlu0 %v5693_v31, %s9134_s5 }
 0xe87   :  { %v5302_v21 = vadd.f32 %v5301_v14, %v9465_v30  ;;  %v8396_v8 = vpop.f32.mrb[51].mxu0 }
 0xe88   :  { %v5694_v32 = vrot.slane %v5226_v52, 3 }
 0xe89   :  { %v5695_v26 = vrot.slane %v5302_v21, 3  ;;  %v5377_v62 = vpop.f32.mrb[50].mxu1 }
 0xe8a   :  { %v5378_v45 = vadd.f32 %v5377_v62, %v9471_v33  ;;  %v5453_v57 = vpop.f32.mrb[52].mxu0  ;;  %5767 = vrot.lane.b32.xlu1 %v5694_v32, %s9134_s5  ;;  %v8403_v58 = vpop.f32.mrb[51].mxu1 }
 0xe8b   :  { %v5454_v20 = vadd.f32 %v5453_v57, %v9476_v48  ;;  %5769 = vrot.lane.b32.xlu0 %v5695_v26, %s9134_s5  ;;  %v8410_v53 = vpop.f32.mrb[53].mxu0  ;;  %v5710_v58 = vadd.f32 %v5694_v32, %v9520_v6 }
 0xe8c   :  { %v5696_v50 = vrot.slane %v5378_v45, 3  ;;  %v5709_v45 = vadd.f32 %v5693_v31, %v9514_v51 }
 0xe8d   :  { %v5697_v40 = vrot.slane %v5454_v20, 3  ;;  %v5529_v22 = vpop.f32.mrb[52].mxu1  ;;  %v5711_v20 = vadd.f32 %v5695_v26, %v9525_v17 }
 0xe8e   :  { %v5530_v43 = vadd.f32 %v5529_v22, %v9483_v60  ;;  %5771 = vrot.lane.b32.xlu1 %v5696_v50, %s9134_s5  ;;  %v8417_v56 = vpop.f32.mrb[53].mxu1  ;;  %v5717_v57 = vsub.f32 0.0, %v5709_v45  ;;  %v5718_v22 = vsub.f32 0.0, %v5710_v58 }
 0xe8f   :  { %5773 = vrot.lane.b32.xlu0 %v5697_v40, %s9134_s5  ;;  %v5719_v56 = vsub.f32 0.0, %v5711_v20 }
 0xe90   :  { %v5698_v9 = vrot.slane %v5530_v43, 3  ;;  %v5725_v53 = vmul.f32 1.442695, %v5717_v57  ;;  %v5712_v43 = vadd.f32 %v5696_v50, %v9531_v24 }
 0xe92   :  { %v5605_v44 = vpop.f32.mrb[54].mxu0  ;;  %5775 = vrot.lane.b32.xlu1 %v5698_v9, %s9134_s5  ;;  %8986 = vpow2.f32 %v5725_v53 }
 0xe93   :  { %v5606_v61 = vadd.f32 %v5605_v44, %v9487_v2  ;;  %v8424_v52 = vpop.f32.mrb[55].mxu0  ;;  %v5713_v44 = vadd.f32 %v5697_v40, %v9535_v27 }
 0xe94   :  { %v5720_v52 = vsub.f32 0.0, %v5712_v43 }
 0xe95   :  { %v5699_v14 = vrot.slane %v5606_v61, 3  ;;  %v5681_v7 = vpop.f32.mrb[54].mxu1  ;;  %v5727_v61 = vmul.f32 1.442695, %v5718_v22 }
 0xe96   :  { %v5682_v21 = vadd.f32 %v5681_v7, %v9495_v13  ;;  %v8431_v8 = vpop.f32.mrb[55].mxu1  ;;  %v5714_v7 = vadd.f32 %v5698_v9, %v9541_v41  ;;  %v5731_v31 = vmul.f32 1.442695, %v5720_v52 }
 0xe97   :  { %5777 = vrot.lane.b32.xlu0 %v5699_v14, %s9134_s5  ;;  %v5721_v8 = vsub.f32 0.0, %v5713_v44  ;;  %8988 = vpow2.f32 %v5727_v61  ;;  %v5715_v26 = vadd.f32 %v5699_v14, %v9544_v5 }
 0xe98   :  { %v5700_v62 = vrot.slane %v5682_v21, 3  ;;  %v5729_v21 = vmul.f32 1.442695, %v5719_v56  ;;  %v5722_v45 = vsub.f32 0.0, %v5714_v7 }
 0xe99   :  { %v5733_v32 = vmul.f32 1.442695, %v5721_v8  ;;  %v5723_v40 = vsub.f32 0.0, %v5715_v26 }
 0xe9a   :  { %5779 = vrot.lane.b32.xlu1 %v5700_v62, %s9134_s5  ;;  %8990 = vpow2.f32 %v5729_v21  ;;  %v5735_v57 = vmul.f32 1.442695, %v5722_v45  ;;  %v5716_v50 = vadd.f32 %v5700_v62, %v9550_v1 }
 0xe9b   :  { %8992 = vpow2.f32 %v5731_v31  ;;  %v5737_v9 = vmul.f32 1.442695, %v5723_v40 }
 0xe9c   :  { %v8987_v58 = vpop.eup %8986  ;;  %8994 = vpow2.f32 %v5733_v32  ;;  %v5724_v53 = vsub.f32 0.0, %v5716_v50 }
 0xe9d   :  { %v5741_v20 = vadd.f32 1.0, %v8987_v58  ;;  %8996 = vpow2.f32 %v5735_v57 }
 0xe9e   :  { %v5739_v56 = vmul.f32 1.442695, %v5724_v53 }
 0xe9f   :  { %8998 = vrcp.f32 %v5741_v20 }
 0xea0   :  { %9000 = vpow2.f32 %v5737_v9 }
 0xea1   :  { %v8989_v22 = vpop.eup %8988  ;;  %9002 = vpow2.f32 %v5739_v56 }
 0xea2   :  { %v5742_v44 = vadd.f32 1.0, %v8989_v22 }
 0xea4   :  { %v8991_v43 = vpop.eup %8990  ;;  %9004 = vrcp.f32 %v5742_v44 }
 0xea5   :  { %v8993_v61 = vpop.eup %8992  ;;  %v5743_v52 = vadd.f32 1.0, %v8991_v43 }
 0xea6   :  { %v8995_v14 = vpop.eup %8994  ;;  %v5744_v7 = vadd.f32 1.0, %v8993_v61 }
 0xea7   :  { %v8997_v62 = vpop.eup %8996  ;;  %9006 = vrcp.f32 %v5743_v52  ;;  %v5745_v21 = vadd.f32 1.0, %v8995_v14 }
 0xea8   :  { %9008 = vrcp.f32 %v5744_v7  ;;  %v5746_v8 = vadd.f32 1.0, %v8997_v62 }
 0xea9   :  { %v10545_v31 = vpop.eup %8998  ;;  %9010 = vrcp.f32 %v5745_v21 }
 0xeaa   :  { %v9001_v45 = vpop.eup %9000  ;;  %9012 = vrcp.f32 %v5746_v8 }
 0xeab   :  { %v9003_v57 = vpop.eup %9002  ;;  %v5747_v50 = vadd.f32 1.0, %v9001_v45 }
 0xeac   :  { %v5748_v22 = vadd.f32 1.0, %v9003_v57 }
 0xead   :  { %9014 = vrcp.f32 %v5747_v50 }
 0xeae   :  { %v10549_v58 = vpop.eup %9004  ;;  %9016 = vrcp.f32 %v5748_v22 }
 0xeb1   :  { %v10551_v20 = vpop.eup %9006 }
 0xeb2   :  { %v10556_v56 = vpop.eup %9008 }
 0xeb3   :  { %v10559_v61 = vpop.eup %9010 }
 0xeb4   :  { %v10564_v62 = vpop.eup %9012 }
 0xeb7   :  { %v10569_v45 = vpop.eup %9014 }
 0xeb8   :  { %v10572_v57 = vpop.eup %9016 }
 0xef8   :  { %v5766_v32 = vpop.permute.xlu0 %5765 }
 0xef9   :  { %v5789_v26 = vmul.f32 %v10545_v31, %v5766_v32 }
 0xefb   :  { %5805 = vrot.lane.b32.xlu0 %v5789_v26, %s9135_s4 }
 0xefc   :  { %v5768_v40 = vpop.permute.xlu1 %5767 }
 0xefd   :  { %v5790_v53 = vmul.f32 %v10549_v58, %v5768_v40  ;;  %v5770_v9 = vpop.permute.xlu0 %5769 }
 0xefe   :  { %v5791_v43 = vmul.f32 %v10551_v20, %v5770_v9 }
 0xeff   :  { %5807 = vrot.lane.b32.xlu1 %v5790_v53, %s9135_s4 }
 0xf00   :  { %5809 = vrot.lane.b32.xlu0 %v5791_v43, %s9135_s4  ;;  %v5772_v44 = vpop.permute.xlu1 %5771 }
 0xf01   :  { %v5792_v52 = vmul.f32 %v10556_v56, %v5772_v44  ;;  %v5774_v14 = vpop.permute.xlu0 %5773 }
 0xf02   :  { %v5793_v7 = vmul.f32 %v10559_v61, %v5774_v14 }
 0xf03   :  { %5811 = vrot.lane.b32.xlu1 %v5792_v52, %s9135_s4 }
 0xf04   :  { %5813 = vrot.lane.b32.xlu0 %v5793_v7, %s9135_s4  ;;  %v5776_v21 = vpop.permute.xlu1 %5775 }
 0xf05   :  { %v5794_v8 = vmul.f32 %v10564_v62, %v5776_v21 }
 0xf07   :  { %5815 = vrot.lane.b32.xlu1 %v5794_v8, %s9135_s4 }
 0xf09   :  { %v5778_v32 = vpop.permute.xlu0 %5777 }
 0xf0a   :  { %v5795_v26 = vmul.f32 %v10569_v45, %v5778_v32 }
 0xf0c   :  { %5817 = vrot.lane.b32.xlu0 %v5795_v26, %s9135_s4  ;;  %v5780_v50 = vpop.permute.xlu1 %5779 }
 0xf0d   :  { %v5796_v40 = vmul.f32 %v10572_v57, %v5780_v50 }
 0xf0f   :  { %5819 = vrot.lane.b32.xlu1 %v5796_v40, %s9135_s4 }
 0xf6d   :  { %v5806_v53 = vpop.permute.xlu0 %5805 }
 0xf6e   :  { %v5829_v9 = vadd.f32 %v5806_v53, %v9514_v51 }
 0xf70   :  { %9018 = vtanh.f32 %v5829_v9 }
 0xf71   :  { %v5808_v22 = vpop.permute.xlu1 %5807 }
 0xf72   :  { %v5830_v43 = vadd.f32 %v5808_v22, %v9520_v6  ;;  %v5810_v44 = vpop.permute.xlu0 %5809 }
 0xf73   :  { %v5831_v52 = vadd.f32 %v5810_v44, %v9525_v17 }
 0xf74   :  { %9020 = vtanh.f32 %v5830_v43 }
 0xf75   :  { %9022 = vtanh.f32 %v5831_v52  ;;  %v5812_v14 = vpop.permute.xlu1 %5811 }
 0xf76   :  { %v5832_v7 = vadd.f32 %v5812_v14, %v9531_v24  ;;  %v5814_v21 = vpop.permute.xlu0 %5813 }
 0xf77   :  { %v5833_v8 = vadd.f32 %v5814_v21, %v9535_v27 }
 0xf78   :  { %9024 = vtanh.f32 %v5832_v7 }
 0xf79   :  { %9026 = vtanh.f32 %v5833_v8  ;;  %v5816_v32 = vpop.permute.xlu1 %5815 }
 0xf7a   :  { %v9019_v26 = vpop.eup %9018  ;;  %v5834_v50 = vadd.f32 %v5816_v32, %v9541_v41  ;;  %v5845_v32 = vsub.f32 1.0, %v10545_v31 }
 0xf7b   :  { %5861 = vrot.lane.b32.xlu0 %v9019_v26, %s9137_s28  ;;  %v5893_v26 = vrot.slane %v10388_v49, 7 }
 0xf7c   :  { %9028 = vtanh.f32 %v5834_v50 }
 0xf7e   :  { %v9021_v40 = vpop.eup %9020  ;;  %v5818_v53 = vpop.permute.xlu0 %5817 }
 0xf7f   :  { %v9023_v9 = vpop.eup %9022  ;;  %v5835_v22 = vadd.f32 %v5818_v53, %v9544_v5  ;;  %5863 = vrot.lane.b32.xlu1 %v9021_v40, %s9137_s28  ;;  %v5909_v40 = vmul.f32 %v10545_v31, %v5893_v26 }
 0xf80   :  { %5865 = vrot.lane.b32.xlu0 %v9023_v9, %s9137_s28 }
 0xf81   :  { %9030 = vtanh.f32 %v5835_v22  ;;  %v5820_v43 = vpop.permute.xlu1 %5819  ;;  %v5846_v22 = vsub.f32 1.0, %v10549_v58 }
 0xf82   :  { %v9025_v44 = vpop.eup %9024  ;;  %v5836_v52 = vadd.f32 %v5820_v43, %v9550_v1  ;;  %v5894_v43 = vrot.slane %v10402_v15, 7 }
 0xf83   :  { %v9027_v14 = vpop.eup %9026  ;;  %5867 = vrot.lane.b32.xlu1 %v9025_v44, %s9137_s28 }
 0xf84   :  { %9032 = vtanh.f32 %v5836_v52  ;;  %5869 = vrot.lane.b32.xlu0 %v9027_v14, %s9137_s28  ;;  %v5847_v52 = vsub.f32 1.0, %v10551_v20  ;;  %v5895_v14 = vrot.slane %v10407_v4, 7  ;;  %v5910_v31 = vmul.f32 %v10549_v58, %v5894_v43 }
 0xf85   :  { %v5848_v4 = vsub.f32 1.0, %v10556_v56  ;;  %v5897_v58 = vrot.slane %v10430_v16, 7 }
 0xf86   :  { %v9029_v7 = vpop.eup %9028 }
 0xf87   :  { %5871 = vrot.lane.b32.xlu1 %v9029_v7, %s9137_s28  ;;  %v5913_v16 = vmul.f32 %v10559_v61, %v5897_v58 }
 0xf8b   :  { %v9031_v21 = vpop.eup %9030 }
 0xf8c   :  { %5873 = vrot.lane.b32.xlu0 %v9031_v21, %s9137_s28 }
 0xf8e   :  { %v9033_v8 = vpop.eup %9032 }
 0xf8f   :  { %5875 = vrot.lane.b32.xlu1 %v9033_v8, %s9137_s28 }
 0xfed   :  { %v5862_v50 = vpop.permute.xlu0 %5861 }
 0xfee   :  { %v5885_v53 = vmul.f32 %v5862_v50, %v5845_v32  ;;  %v5911_v32 = vmul.f32 %v10551_v20, %v5895_v14  ;;  %v5896_v50 = vrot.slane %v10425_v3, 7 }
 0xff0   :  { %v10596_v9 = vadd.f32 %v5909_v40, %v5885_v53  ;;  %v5912_v43 = vmul.f32 %v10556_v56, %v5896_v50  ;;  %v5898_v56 = vrot.slane %v10446_v23, 7 }
 0xff1   :  { %v5864_v44 = vpop.permute.xlu1 %5863 }
 0xff2   :  { %v5926_v7 = vrot.slane %v10596_v9, 5  ;;  %v10606_v49 = vsel %vm209_vm0, %v10397_v11, %v10596_v9  ;;  %v5886_v21 = vmul.f32 %v5864_v44, %v5846_v22  ;;  %v5866_v8 = vpop.permute.xlu0 %5865  ;;  %v5849_v11 = vsub.f32 1.0, %v10559_v61 }
 0xff3   :  { %v5887_v26 = vmul.f32 %v5866_v8, %v5847_v52  ;;  %v5914_v61 = vmul.f32 %v10564_v62, %v5898_v56 }
 0xff4   :  { %v10610_v15 = vadd.f32 %v5910_v31, %v5886_v21  ;;  %5927 = vrot.lane.b32.xlu0 %v5926_v7, %s9137_s28 }
 0xff5   :  { %v10615_v40 = vadd.f32 %v5911_v32, %v5887_v26  ;;  %v5868_v53 = vpop.permute.xlu1 %5867 }
 0xff6   :  { %v6002_v22 = vrot.slane %v10610_v15, 5  ;;  %v10623_v20 = vsel %vm209_vm0, %v10414_v12, %v10610_v15  ;;  %v5888_v44 = vmul.f32 %v5868_v53, %v5848_v4  ;;  %v5870_v52 = vpop.permute.xlu0 %5869  ;;  %v5850_v12 = vsub.f32 1.0, %v10564_v62 }
 0xff7   :  { %v6078_v3 = vrot.slane %v10615_v40, 5  ;;  %v10630_v14 = vsel %vm209_vm0, %v10421_v18, %v10615_v40  ;;  %v5889_v7 = vmul.f32 %v5870_v52, %v5849_v11  ;;  %v5851_v53 = vsub.f32 1.0, %v10569_v45 }
 0xff8   :  { %v10633_v31 = vadd.f32 %v5912_v43, %v5888_v44  ;;  %6003 = vrot.lane.b32.xlu1 %v6002_v22, %s9137_s28  ;;  %v5852_v43 = vsub.f32 1.0, %v10572_v57  ;;  %v5900_v44 = vrot.slane %v10471_v59, 7 }
 0xff9   :  { %v10638_v21 = vadd.f32 %v5913_v16, %v5889_v7  ;;  %6079 = vrot.lane.b32.xlu0 %v6078_v3, %s9137_s28  ;;  %v5872_v8 = vpop.permute.xlu1 %5871 }
 0xffa   :  { %v6154_v32 = vrot.slane %v10633_v31, 5  ;;  %v10645_v18 = vsel %vm209_vm0, %v10436_v63, %v10633_v31  ;;  %v5890_v26 = vmul.f32 %v5872_v8, %v5850_v12  ;;  %v5899_v63 = vrot.slane %v10462_v37, 7 }
 0xffb   :  { %v6230_v4 = vrot.slane %v10638_v21, 5  ;;  %v10652_v23 = vsel %vm209_vm0, %v10443_v36, %v10638_v21  ;;  %v5916_v3 = vmul.f32 %v10572_v57, %v5900_v44 }
 0xffc   :  { %v10654_v50 = vadd.f32 %v5914_v61, %v5890_v26  ;;  %6155 = vrot.lane.b32.xlu1 %v6154_v32, %s9137_s28  ;;  %v5915_v36 = vmul.f32 %v10569_v45, %v5899_v63 }
 0xffd   :  { %6231 = vrot.lane.b32.xlu0 %v6230_v4, %s9137_s28 }
 0xffe   :  { %v6306_v62 = vrot.slane %v10654_v50, 5  ;;  %v10664_v11 = vsel %vm209_vm0, %v10455_v10, %v10654_v50  ;;  %v5874_v58 = vpop.permute.xlu0 %5873 }
 0xfff   :  { %v5891_v22 = vmul.f32 %v5874_v58, %v5851_v53 }
0x1000   :  { %6307 = vrot.lane.b32.xlu1 %v6306_v62, %s9137_s28 }
0x1001   :  { %v10670_v52 = vadd.f32 %v5915_v36, %v5891_v22  ;;  %v5876_v37 = vpop.permute.xlu1 %5875 }
0x1002   :  { %v5892_v16 = vmul.f32 %v5876_v37, %v5852_v43 }
0x1003   :  { %v6382_v7 = vrot.slane %v10670_v52, 5  ;;  %v10677_v10 = vsel %vm209_vm0, %v10468_v34, %v10670_v52 }
0x1004   :  { %v10679_v45 = vadd.f32 %v5916_v3, %v5892_v16 }
0x1005   :  { %6383 = vrot.lane.b32.xlu0 %v6382_v7, %s9137_s28 }
0x1006   :  { %v6458_v12 = vrot.slane %v10679_v45, 5  ;;  %v10686_v59 = vsel %vm209_vm0, %v10477_v42, %v10679_v45 }
0x1008   :  { %6459 = vrot.lane.b32.xlu1 %v6458_v12, %s9137_s28 }
0x1066   :  { %v5928_v57 = vpop.permute.xlu0 %5927 }
0x1067   :  { %8437 = vmatmul.mubr.msk.f32.vlgmr.msra.gmra.mrb[56].mxu0 %vm844_vm4, %v5928_v57 }
0x1068   :  { %8696 = vmatpush3.bf16.msra.mxu0 %v9329_v38  ;;  %8450 = vmatprep.mubr.msk.f32.mxu0 %vm9131_vm2, %v9130_v0 }
0x1069   :  { %8700 = vmatprep.subr.bf16.mxu0 %v9132_v35 }
0x106a   :  { %v6004_v34 = vpop.permute.xlu1 %6003 }
0x106b   :  { %v6080_v56 = vpop.permute.xlu0 %6079  ;;  %8444 = vmatmul.mubr.msk.f32.vlgmr.msra.gmra.mrb[56].mxu1 %vm844_vm4, %v6004_v34 }
0x106c   :  { %8451 = vmatmul.mubr.msk.f32.vlgmr.msra.gmra.mrb[58].mxu0 %vm844_vm4, %v6080_v56  ;;  %8699 = vmatpush3.bf16.msra.mxu1 %v9331_v39 }
0x106d   :  { %8702 = vmatpush3.bf16.msra.mxu0 %v9361_v46  ;;  %8457 = vmatprep.mubr.msk.f32.mxu1 %vm9131_vm2, %v9130_v0 }
0x106e   :  { %v6156_v42 = vpop.permute.xlu1 %6155  ;;  %8464 = vmatprep.mubr.msk.f32.mxu0 %vm9131_vm2, %v9130_v0  ;;  %8703 = vmatprep.subr.bf16.mxu1 %v9132_v35 }
0x106f   :  { %v6232_v8 = vpop.permute.xlu0 %6231  ;;  %8458 = vmatmul.mubr.msk.f32.vlgmr.msra.gmra.mrb[58].mxu1 %vm844_vm4, %v6156_v42  ;;  %8706 = vmatprep.subr.bf16.mxu0 %v9132_v35 }
0x1070   :  { %8465 = vmatmul.mubr.msk.f32.vlgmr.msra.gmra.mrb[60].mxu0 %vm844_vm4, %v6232_v8  ;;  %8705 = vmatpush3.bf16.msra.mxu1 %v9363_v47 }
0x1071   :  { %8471 = vmatprep.mubr.msk.f32.mxu1 %vm9131_vm2, %v9130_v0  ;;  %8708 = vmatpush3.bf16.msra.mxu0 %v9393_v54 }
0x1072   :  { %v6308_v32 = vpop.permute.xlu1 %6307  ;;  %8478 = vmatprep.mubr.msk.f32.mxu0 %vm9131_vm2, %v9130_v0  ;;  %8709 = vmatprep.subr.bf16.mxu1 %v9132_v35 }
0x1073   :  { %8472 = vmatmul.mubr.msk.f32.vlgmr.msra.gmra.mrb[60].mxu1 %vm844_vm4, %v6308_v32  ;;  %8712 = vmatprep.subr.bf16.mxu0 %v9132_v35 }
0x1074   :  { %8711 = vmatpush3.bf16.msra.mxu1 %v9395_v55  ;;  %8485 = vmatprep.mubr.msk.f32.mxu1 %vm9131_vm2, %v9130_v0 }
0x1075   :  { %8715 = vmatprep.subr.bf16.mxu1 %v9132_v35 }
0x1077   :  { %v6384_v61 = vpop.permute.xlu0 %6383 }
0x1078   :  { %8479 = vmatmul.mubr.msk.f32.vlgmr.msra.gmra.mrb[62].mxu0 %vm844_vm4, %v6384_v61 }
0x1079   :  { %8714 = vmatpush3.bf16.msra.mxu0 %v9295_v28  ;;  %8492 = vmatprep.mubr.msk.f32.mxu0 %vm9131_vm2, %v9130_v0 }
0x107a   :  { %v6460_v26 = vpop.permute.xlu1 %6459  ;;  %8718 = vmatprep.subr.bf16.mxu0 %v9132_v35 }
0x107b   :  { %8486 = vmatmul.mubr.msk.f32.vlgmr.msra.gmra.mrb[62].mxu1 %vm844_vm4, %v6460_v26 }
0x107c   :  { %8717 = vmatpush3.bf16.msra.mxu1 %v9297_v29  ;;  %8499 = vmatprep.mubr.msk.f32.mxu1 %vm9131_vm2, %v9130_v0 }
0x107d   :  { %8721 = vmatprep.subr.bf16.mxu1 %v9132_v35 }
0x113a   :  { %v5997_v4 = vpop.f32.mrb[56].mxu0 }
0x113b   :  { %v5998_v53 = vadd.f32 %v5997_v4, %v9457_v19  ;;  %v8438_v63 = vpop.f32.mrb[57].mxu0 }
0x113d   :  { %v6541_v28 = vrot.slane %v5998_v53, 2 }
0x113e   :  { %v6073_v62 = vpop.f32.mrb[56].mxu1 }
0x113f   :  { %v6074_v58 = vadd.f32 %v6073_v62, %v9461_v25  ;;  %v6149_v36 = vpop.f32.mrb[58].mxu0  ;;  %v8445_v22 = vpop.f32.mrb[57].mxu1  ;;  %6613 = vrot.lane.b32.xlu0 %v6541_v28, %s9134_s5 }
0x1140   :  { %v6150_v43 = vadd.f32 %v6149_v36, %v9465_v30  ;;  %v8452_v29 = vpop.f32.mrb[59].mxu0 }
0x1141   :  { %v6542_v44 = vrot.slane %v6074_v58, 2  ;;  %v6557_v29 = vadd.f32 %v6541_v28, %v9514_v51 }
0x1142   :  { %v6543_v37 = vrot.slane %v6150_v43, 2  ;;  %v6225_v3 = vpop.f32.mrb[58].mxu1 }
0x1143   :  { %v6226_v16 = vadd.f32 %v6225_v3, %v9471_v33  ;;  %v6301_v7 = vpop.f32.mrb[60].mxu0  ;;  %6615 = vrot.lane.b32.xlu1 %v6542_v44, %s9134_s5  ;;  %v8459_v12 = vpop.f32.mrb[59].mxu1  ;;  %v6565_v3 = vsub.f32 0.0, %v6557_v29 }
0x1144   :  { %v6302_v57 = vadd.f32 %v6301_v7, %v9476_v48  ;;  %6617 = vrot.lane.b32.xlu0 %v6543_v37, %s9134_s5  ;;  %v8466_v34 = vpop.f32.mrb[61].mxu0  ;;  %v6559_v7 = vadd.f32 %v6543_v37, %v9525_v17 }
0x1145   :  { %v6544_v56 = vrot.slane %v6226_v16, 2  ;;  %v6558_v16 = vadd.f32 %v6542_v44, %v9520_v6  ;;  %v6573_v12 = vmul.f32 1.442695, %v6565_v3 }
0x1146   :  { %v6545_v42 = vrot.slane %v6302_v57, 2  ;;  %v6377_v8 = vpop.f32.mrb[60].mxu1 }
0x1147   :  { %v6378_v32 = vadd.f32 %v6377_v8, %v9483_v60  ;;  %6619 = vrot.lane.b32.xlu1 %v6544_v56, %s9134_s5  ;;  %v8473_v61 = vpop.f32.mrb[61].mxu1  ;;  %v6566_v57 = vsub.f32 0.0, %v6558_v16  ;;  %v6560_v34 = vadd.f32 %v6544_v56, %v9531_v24  ;;  %v6567_v8 = vsub.f32 0.0, %v6559_v7 }
0x1148   :  { %6621 = vrot.lane.b32.xlu0 %v6545_v42, %s9134_s5  ;;  %9034 = vpow2.f32 %v6573_v12 }
0x1149   :  { %v6546_v26 = vrot.slane %v6378_v32, 2  ;;  %v6561_v32 = vadd.f32 %v6545_v42, %v9535_v27  ;;  %v6575_v61 = vmul.f32 1.442695, %v6566_v57 }
0x114b   :  { %v6453_v4 = vpop.f32.mrb[62].mxu0  ;;  %6623 = vrot.lane.b32.xlu1 %v6546_v26, %s9134_s5  ;;  %9036 = vpow2.f32 %v6575_v61 }
0x114c   :  { %v6454_v53 = vadd.f32 %v6453_v4, %v9487_v2  ;;  %v8480_v63 = vpop.f32.mrb[63].mxu0  ;;  %v6568_v4 = vsub.f32 0.0, %v6560_v34 }
0x114d   :  { %v6577_v63 = vmul.f32 1.442695, %v6567_v8 }
0x114e   :  { %v6547_v62 = vrot.slane %v6454_v53, 2  ;;  %v6529_v58 = vpop.f32.mrb[62].mxu1  ;;  %v6562_v53 = vadd.f32 %v6546_v26, %v9541_v41  ;;  %v6579_v28 = vmul.f32 1.442695, %v6568_v4 }
0x114f   :  { %v6530_v36 = vadd.f32 %v6529_v58, %v9495_v13  ;;  %v8487_v22 = vpop.f32.mrb[63].mxu1  ;;  %v6569_v58 = vsub.f32 0.0, %v6561_v32  ;;  %9038 = vpow2.f32 %v6577_v63 }
0x1150   :  { %6625 = vrot.lane.b32.xlu0 %v6547_v62, %s9134_s5  ;;  %v6563_v37 = vadd.f32 %v6547_v62, %v9544_v5  ;;  %9040 = vpow2.f32 %v6579_v28 }
0x1151   :  { %v6548_v43 = vrot.slane %v6530_v36, 2  ;;  %v6570_v36 = vsub.f32 0.0, %v6562_v53  ;;  %v6581_v44 = vmul.f32 1.442695, %v6569_v58 }
0x1152   :  { %v9035_v29 = vpop.eup %9034  ;;  %v6571_v42 = vsub.f32 0.0, %v6563_v37 }
0x1153   :  { %6627 = vrot.lane.b32.xlu1 %v6548_v43, %s9134_s5  ;;  %v6583_v22 = vmul.f32 1.442695, %v6570_v36  ;;  %v6564_v56 = vadd.f32 %v6548_v43, %v9550_v1  ;;  %9042 = vpow2.f32 %v6581_v44  ;;  %v6589_v3 = vadd.f32 1.0, %v9035_v29 }
0x1154   :  { %v6585_v26 = vmul.f32 1.442695, %v6571_v42 }
0x1155   :  { %9044 = vpow2.f32 %v6583_v22  ;;  %v6572_v16 = vsub.f32 0.0, %v6564_v56  ;;  %v9037_v7 = vpop.eup %9036 }
0x1156   :  { %9046 = vrcp.f32 %v6589_v3  ;;  %v6590_v34 = vadd.f32 1.0, %v9037_v7 }
0x1157   :  { %v6587_v57 = vmul.f32 1.442695, %v6572_v16  ;;  %9048 = vpow2.f32 %v6585_v26 }
0x1159   :  { %v9039_v12 = vpop.eup %9038  ;;  %9050 = vpow2.f32 %v6587_v57 }
0x115a   :  { %v9041_v8 = vpop.eup %9040  ;;  %v6591_v32 = vadd.f32 1.0, %v9039_v12  ;;  %9052 = vrcp.f32 %v6590_v34 }
0x115b   :  { %v6592_v61 = vadd.f32 1.0, %v9041_v8 }
0x115c   :  { %9054 = vrcp.f32 %v6591_v32 }
0x115d   :  { %v9043_v62 = vpop.eup %9042  ;;  %9056 = vrcp.f32 %v6592_v61 }
0x115e   :  { %v6593_v4 = vadd.f32 1.0, %v9043_v62 }
0x115f   :  { %v9045_v43 = vpop.eup %9044 }
0x1160   :  { %v6594_v53 = vadd.f32 1.0, %v9045_v43  ;;  %v10753_v63 = vpop.eup %9046  ;;  %9058 = vrcp.f32 %v6593_v4 }
0x1161   :  { %v9049_v58 = vpop.eup %9048 }
0x1162   :  { %9060 = vrcp.f32 %v6594_v53  ;;  %v6595_v37 = vadd.f32 1.0, %v9049_v58 }
0x1163   :  { %v9051_v44 = vpop.eup %9050 }
0x1164   :  { %v10757_v22 = vpop.eup %9052  ;;  %v6596_v16 = vadd.f32 1.0, %v9051_v44  ;;  %9062 = vrcp.f32 %v6595_v37 }
0x1166   :  { %v10759_v29 = vpop.eup %9054  ;;  %9064 = vrcp.f32 %v6596_v16 }
0x1167   :  { %v10764_v7 = vpop.eup %9056 }
0x116a   :  { %v10767_v57 = vpop.eup %9058 }
0x116c   :  { %v10772_v62 = vpop.eup %9060 }
0x116e   :  { %v10777_v4 = vpop.eup %9062 }
0x11b1   :  { %v6614_v28 = vpop.permute.xlu0 %6613 }
0x11b2   :  { %v6637_v36 = vmul.f32 %v10753_v63, %v6614_v28  ;;  %v10780_v28 = vpop.eup %9064 }
0x11b4   :  { %6653 = vrot.lane.b32.xlu0 %v6637_v36, %s9135_s4 }
0x11b5   :  { %v6616_v56 = vpop.permute.xlu1 %6615 }
0x11b6   :  { %v6638_v42 = vmul.f32 %v10757_v22, %v6616_v56  ;;  %v6618_v3 = vpop.permute.xlu0 %6617 }
0x11b7   :  { %v6639_v26 = vmul.f32 %v10759_v29, %v6618_v3 }
0x11b8   :  { %6655 = vrot.lane.b32.xlu1 %v6638_v42, %s9135_s4 }
0x11b9   :  { %6657 = vrot.lane.b32.xlu0 %v6639_v26, %s9135_s4  ;;  %v6620_v12 = vpop.permute.xlu1 %6619 }
0x11ba   :  { %v6640_v34 = vmul.f32 %v10764_v7, %v6620_v12  ;;  %v6622_v8 = vpop.permute.xlu0 %6621 }
0x11bb   :  { %v6641_v32 = vmul.f32 %v10767_v57, %v6622_v8 }
0x11bc   :  { %6659 = vrot.lane.b32.xlu1 %v6640_v34, %s9135_s4 }
0x11bd   :  { %6661 = vrot.lane.b32.xlu0 %v6641_v32, %s9135_s4  ;;  %v6624_v61 = vpop.permute.xlu1 %6623 }
0x11be   :  { %v6642_v43 = vmul.f32 %v10772_v62, %v6624_v61 }
0x11c0   :  { %6663 = vrot.lane.b32.xlu1 %v6642_v43, %s9135_s4 }
0x11c2   :  { %v6626_v53 = vpop.permute.xlu0 %6625 }
0x11c3   :  { %v6643_v58 = vmul.f32 %v10777_v4, %v6626_v53 }
0x11c5   :  { %6665 = vrot.lane.b32.xlu0 %v6643_v58, %s9135_s4  ;;  %v6628_v36 = vpop.permute.xlu1 %6627 }
0x11c6   :  { %v6644_v44 = vmul.f32 %v10780_v28, %v6628_v36 }
0x11c8   :  { %6667 = vrot.lane.b32.xlu1 %v6644_v44, %s9135_s4 }
0x1226   :  { %v6654_v37 = vpop.permute.xlu0 %6653 }
0x1227   :  { %v6677_v56 = vadd.f32 %v6654_v37, %v9514_v51 }
0x1229   :  { %9066 = vtanh.f32 %v6677_v56 }
0x122a   :  { %v6656_v42 = vpop.permute.xlu1 %6655 }
0x122b   :  { %v6678_v3 = vadd.f32 %v6656_v42, %v9520_v6  ;;  %v6658_v16 = vpop.permute.xlu0 %6657 }
0x122c   :  { %v6679_v26 = vadd.f32 %v6658_v16, %v9525_v17 }
0x122d   :  { %9068 = vtanh.f32 %v6678_v3 }
0x122e   :  { %9070 = vtanh.f32 %v6679_v26  ;;  %v6660_v12 = vpop.permute.xlu1 %6659 }
0x122f   :  { %v6680_v34 = vadd.f32 %v6660_v12, %v9531_v24  ;;  %v6662_v8 = vpop.permute.xlu0 %6661 }
0x1230   :  { %v6681_v32 = vadd.f32 %v6662_v8, %v9535_v27  ;;  %v6693_v8 = vsub.f32 1.0, %v10753_v63 }
0x1231   :  { %9072 = vtanh.f32 %v6680_v34 }
0x1232   :  { %9074 = vtanh.f32 %v6681_v32  ;;  %v6664_v61 = vpop.permute.xlu1 %6663  ;;  %v6741_v32 = vrot.slane %v10596_v9, 7 }
0x1233   :  { %v9067_v43 = vpop.eup %9066  ;;  %v6682_v53 = vadd.f32 %v6664_v61, %v9541_v41 }
0x1234   :  { %6709 = vrot.lane.b32.xlu0 %v9067_v43, %s9137_s28  ;;  %v6757_v43 = vmul.f32 %v10753_v63, %v6741_v32 }
0x1235   :  { %9076 = vtanh.f32 %v6682_v53 }
0x1237   :  { %v9069_v58 = vpop.eup %9068  ;;  %v6666_v36 = vpop.permute.xlu0 %6665 }
0x1238   :  { %v9071_v44 = vpop.eup %9070  ;;  %v6683_v37 = vadd.f32 %v6666_v36, %v9544_v5  ;;  %6711 = vrot.lane.b32.xlu1 %v9069_v58, %s9137_s28  ;;  %v6694_v36 = vsub.f32 1.0, %v10757_v22 }
0x1239   :  { %6713 = vrot.lane.b32.xlu0 %v9071_v44, %s9137_s28  ;;  %v6742_v44 = vrot.slane %v10610_v15, 7 }
0x123a   :  { %9078 = vtanh.f32 %v6683_v37  ;;  %v6668_v56 = vpop.permute.xlu1 %6667 }
0x123b   :  { %v9073_v42 = vpop.eup %9072  ;;  %v6684_v3 = vadd.f32 %v6668_v56, %v9550_v1  ;;  %v6695_v56 = vsub.f32 1.0, %v10759_v29  ;;  %v6758_v9 = vmul.f32 %v10757_v22, %v6742_v44 }
0x123c   :  { %v9075_v16 = vpop.eup %9074  ;;  %6715 = vrot.lane.b32.xlu1 %v9073_v42, %s9137_s28  ;;  %v6743_v42 = vrot.slane %v10615_v40, 7  ;;  %v6696_v40 = vsub.f32 1.0, %v10764_v7 }
0x123d   :  { %9080 = vtanh.f32 %v6684_v3  ;;  %6717 = vrot.lane.b32.xlu0 %v9075_v16, %s9137_s28 }
0x123f   :  { %v9077_v26 = vpop.eup %9076 }
0x1240   :  { %6719 = vrot.lane.b32.xlu1 %v9077_v26, %s9137_s28 }
0x1244   :  { %v9079_v12 = vpop.eup %9078 }
0x1245   :  { %6721 = vrot.lane.b32.xlu0 %v9079_v12, %s9137_s28  ;;  %v6759_v12 = vmul.f32 %v10759_v29, %v6743_v42 }
0x1247   :  { %v9081_v34 = vpop.eup %9080 }
0x1248   :  { %6723 = vrot.lane.b32.xlu1 %v9081_v34, %s9137_s28 }
0x12a6   :  { %v6710_v61 = vpop.permute.xlu0 %6709 }
0x12a7   :  { %v6733_v53 = vmul.f32 %v6710_v61, %v6693_v8  ;;  %v6744_v8 = vrot.slane %v10633_v31, 7  ;;  %v6697_v61 = vsub.f32 1.0, %v10767_v57 }
0x12a9   :  { %v10804_v58 = vadd.f32 %v6757_v43, %v6733_v53  ;;  %v6745_v43 = vrot.slane %v10638_v21, 7  ;;  %v6760_v29 = vmul.f32 %v10764_v7, %v6744_v8  ;;  %v6698_v7 = vsub.f32 1.0, %v10772_v62 }
0x12aa   :  { %v6712_v37 = vpop.permute.xlu1 %6711 }
0x12ab   :  { %v6774_v3 = vrot.slane %v10804_v58, 6  ;;  %v6734_v16 = vmul.f32 %v6712_v37, %v6694_v36  ;;  %v6714_v26 = vpop.permute.xlu0 %6713  ;;  %v10815_v63 = vsel %vm7665_vm9, %v10606_v49, %v10804_v58  ;;  %v6761_v37 = vmul.f32 %v10767_v57, %v6745_v43 }
0x12ac   :  { %v6735_v34 = vmul.f32 %v6714_v26, %v6695_v56  ;;  %v6700_v43 = vsub.f32 1.0, %v10780_v28 }
0x12ad   :  { %v10818_v15 = vadd.f32 %v6758_v9, %v6734_v16  ;;  %6775 = vrot.lane.b32.xlu0 %v6774_v3, %s9137_s28  ;;  %v6746_v3 = vrot.slane %v10654_v50, 7 }
0x12ae   :  { %v10823_v32 = vadd.f32 %v6759_v12, %v6735_v34  ;;  %v6716_v22 = vpop.permute.xlu1 %6715 }
0x12af   :  { %v6850_v49 = vrot.slane %v10818_v15, 6  ;;  %v6736_v53 = vmul.f32 %v6716_v22, %v6696_v40  ;;  %v6718_v36 = vpop.permute.xlu0 %6717  ;;  %v10832_v44 = vsel %vm7665_vm9, %v10623_v20, %v10818_v15  ;;  %v6762_v16 = vmul.f32 %v10772_v62, %v6746_v3 }
0x12b0   :  { %v6926_v31 = vrot.slane %v10823_v32, 6  ;;  %v6737_v56 = vmul.f32 %v6718_v36, %v6697_v61  ;;  %v10839_v21 = vsel %vm7665_vm9, %v10630_v14, %v10823_v32  ;;  %v6699_v62 = vsub.f32 1.0, %v10777_v4 }
0x12b1   :  { %v10841_v42 = vadd.f32 %v6760_v29, %v6736_v53  ;;  %6851 = vrot.lane.b32.xlu1 %v6850_v49, %s9137_s28  ;;  %v6747_v40 = vrot.slane %v10670_v52, 7  ;;  %v6748_v49 = vrot.slane %v10679_v45, 7 }
0x12b2   :  { %v10846_v20 = vadd.f32 %v6761_v37, %v6737_v56  ;;  %6927 = vrot.lane.b32.xlu0 %v6926_v31, %s9137_s28  ;;  %v6720_v9 = vpop.permute.xlu1 %6719 }
0x12b3   :  { %v7002_v57 = vrot.slane %v10841_v42, 6  ;;  %v6738_v26 = vmul.f32 %v6720_v9, %v6698_v7  ;;  %v10854_v14 = vsel %vm7665_vm9, %v10645_v18, %v10841_v42  ;;  %v6764_v53 = vmul.f32 %v10780_v28, %v6748_v49 }
0x12b4   :  { %v7078_v12 = vrot.slane %v10846_v20, 6  ;;  %v10860_v50 = vsel %vm7665_vm9, %v10652_v23, %v10846_v20  ;;  %v6763_v23 = vmul.f32 %v10777_v4, %v6747_v40 }
0x12b5   :  { %v10862_v34 = vadd.f32 %v6762_v16, %v6738_v26  ;;  %7003 = vrot.lane.b32.xlu1 %v7002_v57, %s9137_s28 }
0x12b6   :  { %7079 = vrot.lane.b32.xlu0 %v7078_v12, %s9137_s28 }
0x12b7   :  { %v7154_v18 = vrot.slane %v10862_v34, 6  ;;  %v6722_v8 = vpop.permute.xlu0 %6721  ;;  %v10872_v22 = vsel %vm7665_vm9, %v10664_v11, %v10862_v34 }
0x12b8   :  { %v6739_v61 = vmul.f32 %v6722_v8, %v6699_v62 }
0x12b9   :  { %7155 = vrot.lane.b32.xlu1 %v7154_v18, %s9137_s28 }
0x12ba   :  { %v10878_v29 = vadd.f32 %v6763_v23, %v6739_v61  ;;  %v6724_v52 = vpop.permute.xlu1 %6723 }
0x12bb   :  { %v6740_v36 = vmul.f32 %v6724_v52, %v6700_v43 }
0x12bc   :  { %v7230_v31 = vrot.slane %v10878_v29, 6  ;;  %v10885_v11 = vsel %vm7665_vm9, %v10677_v10, %v10878_v29 }
0x12bd   :  { %v10887_v4 = vadd.f32 %v6764_v53, %v6740_v36 }
0x12be   :  { %7231 = vrot.lane.b32.xlu0 %v7230_v31, %s9137_s28 }
0x12bf   :  { %v7306_v37 = vrot.slane %v10887_v4, 6  ;;  %v10894_v45 = vsel %vm7665_vm9, %v10686_v59, %v10887_v4 }
0x12c1   :  { %7307 = vrot.lane.b32.xlu1 %v7306_v37, %s9137_s28 }
0x131f   :  { %v6776_v28 = vpop.permute.xlu0 %6775 }
0x1320   :  { %8493 = vmatmul.mubr.msk.f32.vlgmr.msra.gmra.mrb[64].mxu0 %vm844_vm4, %v6776_v28 }
0x1321   :  { %8720 = vmatpush3.bf16.msra.mxu0 %v9329_v38  ;;  %8506 = vmatprep.mubr.msk.f32.mxu0 %vm9131_vm2, %v9130_v0 }
0x1322   :  { %8724 = vmatprep.subr.bf16.mxu0 %v9132_v35 }
0x1323   :  { %v6852_v10 = vpop.permute.xlu1 %6851 }
0x1324   :  { %v6928_v56 = vpop.permute.xlu0 %6927  ;;  %8500 = vmatmul.mubr.msk.f32.vlgmr.msra.gmra.mrb[64].mxu1 %vm844_vm4, %v6852_v10 }
0x1325   :  { %8507 = vmatmul.mubr.msk.f32.vlgmr.msra.gmra.mrb[66].mxu0 %vm844_vm4, %v6928_v56  ;;  %8723 = vmatpush3.bf16.msra.mxu1 %v9331_v39 }
0x1326   :  { %8726 = vmatpush3.bf16.msra.mxu0 %v9361_v46  ;;  %8513 = vmatprep.mubr.msk.f32.mxu1 %vm9131_vm2, %v9130_v0 }
0x1327   :  { %v7004_v59 = vpop.permute.xlu1 %7003  ;;  %8520 = vmatprep.mubr.msk.f32.mxu0 %vm9131_vm2, %v9130_v0  ;;  %8727 = vmatprep.subr.bf16.mxu1 %v9132_v35 }
0x1328   :  { %v7080_v38 = vpop.permute.xlu0 %7079  ;;  %8514 = vmatmul.mubr.msk.f32.vlgmr.msra.gmra.mrb[66].mxu1 %vm844_vm4, %v7004_v59  ;;  %8730 = vmatprep.subr.bf16.mxu0 %v9132_v35 }
0x1329   :  { %8521 = vmatmul.mubr.msk.f32.vlgmr.msra.gmra.mrb[68].mxu0 %vm844_vm4, %v7080_v38  ;;  %8729 = vmatpush3.bf16.msra.mxu1 %v9363_v47 }
0x132a   :  { %8527 = vmatprep.mubr.msk.f32.mxu1 %vm9131_vm2, %v9130_v0  ;;  %8732 = vmatpush3.bf16.msra.mxu0 %v9393_v54 }
0x132b   :  { %v7156_v39 = vpop.permute.xlu1 %7155  ;;  %8534 = vmatprep.mubr.msk.f32.mxu0 %vm9131_vm2, %v9130_v0  ;;  %8733 = vmatprep.subr.bf16.mxu1 %v9132_v35 }
0x132c   :  { %8528 = vmatmul.mubr.msk.f32.vlgmr.msra.gmra.mrb[68].mxu1 %vm844_vm4, %v7156_v39 }
0x132d   :  { %8735 = vmatpush3.bf16.msra.mxu1 %v9395_v55  ;;  %8541 = vmatprep.mubr.msk.f32.mxu1 %vm9131_vm2, %v9130_v0 }
0x1330   :  { %v7232_v46 = vpop.permute.xlu0 %7231 }
0x1331   :  { %8535 = vmatmul.mubr.msk.f32.vlgmr.msra.gmra.mrb[70].mxu0 %vm844_vm4, %v7232_v46 }
0x1333   :  { %v7308_v47 = vpop.permute.xlu1 %7307 }
0x1334   :  { %8542 = vmatmul.mubr.msk.f32.vlgmr.msra.gmra.mrb[70].mxu1 %vm844_vm4, %v7308_v47 }
0x13f3   :  { %v6845_v54 = vpop.f32.mrb[64].mxu0 }
0x13f4   :  { %v6846_v7 = vadd.f32 %v6845_v54, %v9457_v19  ;;  %v8494_v3 = vpop.f32.mrb[65].mxu0 }
0x13f6   :  { %v7389_v9 = vrot.slane %v6846_v7, 1 }
0x13f7   :  { %v6921_v57 = vpop.f32.mrb[64].mxu1 }
0x13f8   :  { %v6922_v35 = vadd.f32 %v6921_v57, %v9461_v25  ;;  %v6997_v16 = vpop.f32.mrb[66].mxu0  ;;  %v8501_v26 = vpop.f32.mrb[65].mxu1  ;;  %7461 = vrot.lane.b32.xlu0 %v7389_v9, %s9134_s5  ;;  %v7405_v56 = vadd.f32 %v7389_v9, %v9514_v51 }
0x13f9   :  { %v6998_v0 = vadd.f32 %v6997_v16, %v9465_v30  ;;  %v8508_v55 = vpop.f32.mrb[67].mxu0 }
0x13fa   :  { %v7390_v12 = vrot.slane %v6922_v35, 1  ;;  %v7413_v59 = vsub.f32 0.0, %v7405_v56 }
0x13fb   :  { %v7391_v62 = vrot.slane %v6998_v0, 1  ;;  %v7073_v40 = vpop.f32.mrb[66].mxu1 }
0x13fc   :  { %v7074_v18 = vadd.f32 %v7073_v40, %v9471_v33  ;;  %v7149_v8 = vpop.f32.mrb[68].mxu0  ;;  %7463 = vrot.lane.b32.xlu1 %v7390_v12, %s9134_s5  ;;  %v8515_v19 = vpop.f32.mrb[67].mxu1  ;;  %v7406_v38 = vadd.f32 %v7390_v12, %v9520_v6  ;;  %v7421_v46 = vmul.f32 1.442695, %v7413_v59 }
0x13fd   :  { %v7150_v23 = vadd.f32 %v7149_v8, %v9476_v48  ;;  %7465 = vrot.lane.b32.xlu0 %v7391_v62, %s9134_s5  ;;  %v8522_v25 = vpop.f32.mrb[69].mxu0  ;;  %v7407_v39 = vadd.f32 %v7391_v62, %v9525_v17 }
0x13fe   :  { %v7392_v61 = vrot.slane %v7074_v18, 1  ;;  %9082 = vpow2.f32 %v7421_v46 }
0x13ff   :  { %v7393_v43 = vrot.slane %v7150_v23, 1  ;;  %v7225_v49 = vpop.f32.mrb[68].mxu1  ;;  %v7415_v54 = vsub.f32 0.0, %v7407_v39 }
0x1400   :  { %v7226_v30 = vadd.f32 %v7225_v49, %v9483_v60  ;;  %7467 = vrot.lane.b32.xlu1 %v7392_v61, %s9134_s5  ;;  %v8529_v52 = vpop.f32.mrb[69].mxu1  ;;  %v7408_v47 = vadd.f32 %v7392_v61, %v9531_v24 }
0x1401   :  { %7469 = vrot.lane.b32.xlu0 %v7393_v43, %s9134_s5  ;;  %v7425_v35 = vmul.f32 1.442695, %v7415_v54 }
0x1402   :  { %v7394_v33 = vrot.slane %v7226_v30, 1  ;;  %v7416_v3 = vsub.f32 0.0, %v7408_v47 }
0x1404   :  { %v7301_v53 = vpop.f32.mrb[70].mxu0  ;;  %7471 = vrot.lane.b32.xlu1 %v7394_v33, %s9134_s5  ;;  %v7410_v57 = vadd.f32 %v7394_v33, %v9541_v41  ;;  %v7427_v9 = vmul.f32 1.442695, %v7416_v3 }
0x1405   :  { %v7302_v36 = vadd.f32 %v7301_v53, %v9487_v2  ;;  %v8536_v48 = vpop.f32.mrb[71].mxu0  ;;  %v7414_v2 = vsub.f32 0.0, %v7406_v38 }
0x1406   :  { %v7418_v26 = vsub.f32 0.0, %v7410_v57 }
0x1407   :  { %v7395_v31 = vrot.slane %v7302_v36, 1  ;;  %v7377_v37 = vpop.f32.mrb[70].mxu1  ;;  %v7423_v7 = vmul.f32 1.442695, %v7414_v2 }
0x1408   :  { %v7378_v28 = vadd.f32 %v7377_v37, %v9495_v13  ;;  %v8543_v10 = vpop.f32.mrb[71].mxu1  ;;  %v7409_v13 = vadd.f32 %v7393_v43, %v9535_v27  ;;  %v7431_v12 = vmul.f32 1.442695, %v7418_v26  ;;  %v9083_v40 = vpop.eup %9082 }
0x1409   :  { %7473 = vrot.lane.b32.xlu0 %v7395_v31, %s9134_s5  ;;  %9084 = vpow2.f32 %v7423_v7  ;;  %v7411_v55 = vadd.f32 %v7395_v31, %v9544_v5  ;;  %v7437_v8 = vadd.f32 1.0, %v9083_v40 }
0x140a   :  { %v7396_v60 = vrot.slane %v7378_v28, 1  ;;  %v7417_v16 = vsub.f32 0.0, %v7409_v13  ;;  %9086 = vpow2.f32 %v7425_v35 }
0x140b   :  { %9088 = vpow2.f32 %v7427_v9  ;;  %v7419_v18 = vsub.f32 0.0, %v7411_v55 }
0x140c   :  { %7475 = vrot.lane.b32.xlu1 %v7396_v60, %s9134_s5  ;;  %v7429_v0 = vmul.f32 1.442695, %v7417_v16  ;;  %v7412_v62 = vadd.f32 %v7396_v60, %v9550_v1 }
0x140d   :  { %v7433_v23 = vmul.f32 1.442695, %v7419_v18 }
0x140e   :  { %9090 = vpow2.f32 %v7429_v0  ;;  %v7420_v19 = vsub.f32 0.0, %v7412_v62 }
0x140f   :  { %9092 = vpow2.f32 %v7431_v12 }
0x1410   :  { %9094 = vrcp.f32 %v7437_v8  ;;  %v7435_v43 = vmul.f32 1.442695, %v7420_v19 }
0x1411   :  { %9096 = vpow2.f32 %v7433_v23 }
0x1412   :  { %9098 = vpow2.f32 %v7435_v43 }
0x1413   :  { %v9085_v25 = vpop.eup %9084 }
0x1414   :  { %v9087_v61 = vpop.eup %9086  ;;  %v7438_v49 = vadd.f32 1.0, %v9085_v25 }
0x1415   :  { %v9089_v30 = vpop.eup %9088  ;;  %v7439_v52 = vadd.f32 1.0, %v9087_v61 }
0x1416   :  { %9100 = vrcp.f32 %v7438_v49  ;;  %v7440_v53 = vadd.f32 1.0, %v9089_v30 }
0x1417   :  { %9102 = vrcp.f32 %v7439_v52 }
0x1418   :  { %v9091_v33 = vpop.eup %9090  ;;  %9104 = vrcp.f32 %v7440_v53 }
0x1419   :  { %v9093_v36 = vpop.eup %9092  ;;  %v7441_v48 = vadd.f32 1.0, %v9091_v33 }
0x141a   :  { %v7442_v31 = vadd.f32 1.0, %v9093_v36  ;;  %v10951_v37 = vpop.eup %9094 }
0x141b   :  { %9106 = vrcp.f32 %v7441_v48  ;;  %v9097_v28 = vpop.eup %9096 }
0x141c   :  { %9108 = vrcp.f32 %v7442_v31  ;;  %v9099_v56 = vpop.eup %9098  ;;  %v7443_v59 = vadd.f32 1.0, %v9097_v28 }
0x141d   :  { %v7444_v54 = vadd.f32 1.0, %v9099_v56 }
0x141e   :  { %9110 = vrcp.f32 %v7443_v59 }
0x141f   :  { %9112 = vrcp.f32 %v7444_v54 }
0x1420   :  { %v10955_v38 = vpop.eup %9100 }
0x1421   :  { %v10957_v46 = vpop.eup %9102 }
0x1422   :  { %v10962_v7 = vpop.eup %9104 }
0x1425   :  { %v10965_v57 = vpop.eup %9106 }
0x1426   :  { %v10970_v26 = vpop.eup %9108 }
0x1428   :  { %v10975_v12 = vpop.eup %9110 }
0x1429   :  { %v10978_v18 = vpop.eup %9112 }
0x146a   :  { %v7462_v10 = vpop.permute.xlu0 %7461 }
0x146b   :  { %v7485_v60 = vmul.f32 %v10951_v37, %v7462_v10 }
0x146d   :  { %7501 = vrot.lane.b32.xlu0 %v7485_v60, %s9135_s4 }
0x146e   :  { %v7464_v39 = vpop.permute.xlu1 %7463 }
0x146f   :  { %v7486_v2 = vmul.f32 %v10955_v38, %v7464_v39  ;;  %v7466_v47 = vpop.permute.xlu0 %7465  ;;  %v7541_v39 = vsub.f32 1.0, %v10951_v37 }
0x1470   :  { %v7487_v13 = vmul.f32 %v10957_v46, %v7466_v47 }
0x1471   :  { %7503 = vrot.lane.b32.xlu1 %v7486_v2, %s9135_s4  ;;  %v7589_v2 = vrot.slane %v10804_v58, 7 }
0x1472   :  { %7505 = vrot.lane.b32.xlu0 %v7487_v13, %s9135_s4  ;;  %v7468_v3 = vpop.permute.xlu1 %7467 }
0x1473   :  { %v7488_v35 = vmul.f32 %v10962_v7, %v7468_v3  ;;  %v7470_v16 = vpop.permute.xlu0 %7469  ;;  %v7605_v47 = vmul.f32 %v10951_v37, %v7589_v2  ;;  %v7542_v3 = vsub.f32 1.0, %v10955_v38 }
0x1474   :  { %v7489_v9 = vmul.f32 %v10965_v57, %v7470_v16 }
0x1475   :  { %7507 = vrot.lane.b32.xlu1 %v7488_v35, %s9135_s4  ;;  %v7590_v35 = vrot.slane %v10818_v15, 7  ;;  %v7544_v15 = vsub.f32 1.0, %v10962_v7 }
0x1476   :  { %7509 = vrot.lane.b32.xlu0 %v7489_v9, %s9135_s4  ;;  %v7472_v0 = vpop.permute.xlu1 %7471  ;;  %v7543_v9 = vsub.f32 1.0, %v10957_v46 }
0x1477   :  { %v7490_v55 = vmul.f32 %v10970_v26, %v7472_v0  ;;  %v7591_v0 = vrot.slane %v10823_v32, 7  ;;  %v7545_v32 = vsub.f32 1.0, %v10965_v57 }
0x1479   :  { %7511 = vrot.lane.b32.xlu1 %v7490_v55, %s9135_s4  ;;  %v7606_v55 = vmul.f32 %v10955_v38, %v7590_v35  ;;  %v7607_v37 = vmul.f32 %v10957_v46, %v7591_v0  ;;  %v7593_v38 = vrot.slane %v10846_v20, 7  ;;  %v7546_v20 = vsub.f32 1.0, %v10970_v26 }
0x147b   :  { %v7474_v62 = vpop.permute.xlu0 %7473  ;;  %v7609_v46 = vmul.f32 %v10965_v57, %v7593_v38 }
0x147c   :  { %v7491_v40 = vmul.f32 %v10975_v12, %v7474_v62 }
0x147e   :  { %7513 = vrot.lane.b32.xlu0 %v7491_v40, %s9135_s4  ;;  %v7476_v8 = vpop.permute.xlu1 %7475 }
0x147f   :  { %v7492_v19 = vmul.f32 %v10978_v18, %v7476_v8 }
0x1481   :  { %7515 = vrot.lane.b32.xlu1 %v7492_v19, %s9135_s4 }
0x14df   :  { %v7502_v23 = vpop.permute.xlu0 %7501 }
0x14e0   :  { %v7525_v25 = vadd.f32 %v7502_v23, %v9514_v51  ;;  %v7592_v23 = vrot.slane %v10841_v42, 7 }
0x14e2   :  { %9114 = vtanh.f32 %v7525_v25 }
0x14e3   :  { %v7504_v61 = vpop.permute.xlu1 %7503 }
0x14e4   :  { %v7526_v43 = vadd.f32 %v7504_v61, %v9520_v6  ;;  %v7506_v49 = vpop.permute.xlu0 %7505 }
0x14e5   :  { %v7527_v30 = vadd.f32 %v7506_v49, %v9525_v17 }
0x14e6   :  { %9116 = vtanh.f32 %v7526_v43  ;;  %v7608_v43 = vmul.f32 %v10962_v7, %v7592_v23  ;;  %v7594_v7 = vrot.slane %v10862_v34, 7  ;;  %v7595_v34 = vrot.slane %v10878_v29, 7 }
0x14e7   :  { %9118 = vtanh.f32 %v7527_v30  ;;  %v7508_v52 = vpop.permute.xlu1 %7507 }
0x14e8   :  { %v7528_v33 = vadd.f32 %v7508_v52, %v9531_v24  ;;  %v7510_v53 = vpop.permute.xlu0 %7509 }
0x14e9   :  { %v7529_v36 = vadd.f32 %v7510_v53, %v9535_v27 }
0x14ea   :  { %9120 = vtanh.f32 %v7528_v33 }
0x14eb   :  { %9122 = vtanh.f32 %v7529_v36  ;;  %v7512_v48 = vpop.permute.xlu1 %7511 }
0x14ec   :  { %v9115_v31 = vpop.eup %9114  ;;  %v7530_v51 = vadd.f32 %v7512_v48, %v9541_v41  ;;  %v7610_v48 = vmul.f32 %v10970_v26, %v7594_v7 }
0x14ed   :  { %7557 = vrot.lane.b32.xlu0 %v9115_v31, %s9137_s28 }
0x14ee   :  { %9124 = vtanh.f32 %v7530_v51  ;;  %v7547_v51 = vsub.f32 1.0, %v10975_v12 }
0x14f0   :  { %v9117_v6 = vpop.eup %9116  ;;  %v7514_v28 = vpop.permute.xlu0 %7513 }
0x14f1   :  { %v9119_v17 = vpop.eup %9118  ;;  %v7531_v10 = vadd.f32 %v7514_v28, %v9544_v5  ;;  %7559 = vrot.lane.b32.xlu1 %v9117_v6, %s9137_s28  ;;  %v7611_v28 = vmul.f32 %v10975_v12, %v7595_v34 }
0x14f2   :  { %7561 = vrot.lane.b32.xlu0 %v9119_v17, %s9137_s28 }
0x14f3   :  { %9126 = vtanh.f32 %v7531_v10  ;;  %v7516_v24 = vpop.permute.xlu1 %7515 }
0x14f4   :  { %v9121_v27 = vpop.eup %9120  ;;  %v7532_v60 = vadd.f32 %v7516_v24, %v9550_v1 }
0x14f5   :  { %v9123_v56 = vpop.eup %9122  ;;  %7563 = vrot.lane.b32.xlu1 %v9121_v27, %s9137_s28 }
0x14f6   :  { %9128 = vtanh.f32 %v7532_v60  ;;  %7565 = vrot.lane.b32.xlu0 %v9123_v56, %s9137_s28 }
0x14f8   :  { %v9125_v41 = vpop.eup %9124 }
0x14f9   :  { %7567 = vrot.lane.b32.xlu1 %v9125_v41, %s9137_s28 }
0x14fd   :  { %v9127_v59 = vpop.eup %9126 }
0x14fe   :  { %7569 = vrot.lane.b32.xlu0 %v9127_v59, %s9137_s28 }
0x1500   :  { %v9129_v5 = vpop.eup %9128 }
0x1501   :  { %7571 = vrot.lane.b32.xlu1 %v9129_v5, %s9137_s28 }
0x155f   :  { %v7558_v1 = vpop.permute.xlu0 %7557 }
0x1560   :  { %v7581_v54 = vmul.f32 %v7558_v1, %v7541_v39 }
0x1562   :  { %v7613_v13 = vadd.f32 %v7605_v47, %v7581_v54 }
0x1563   :  { %v7560_v16 = vpop.permute.xlu1 %7559 }
0x1564   :  { %v7582_v62 = vmul.f32 %v7560_v16, %v7542_v3  ;;  %v7562_v40 = vpop.permute.xlu0 %7561  ;;  %7731 = vrot.lane.b32.xlu0 %v7613_v13, %s9137_s28  ;;  %v7675_v58 = vsel %vm7674_vm10, %v10815_v63, %v7613_v13 }
0x1565   :  { %v7583_v8 = vmul.f32 %v7562_v40, %v7543_v9 }
0x1566   :  { %v7614_v19 = vadd.f32 %v7606_v55, %v7582_v62 }
0x1567   :  { %v7615_v25 = vadd.f32 %v7607_v37, %v7583_v8  ;;  %v7564_v61 = vpop.permute.xlu1 %7563 }
0x1568   :  { %v7584_v49 = vmul.f32 %v7564_v61, %v7544_v15  ;;  %v7566_v30 = vpop.permute.xlu0 %7565  ;;  %7733 = vrot.lane.b32.xlu1 %v7614_v19, %s9137_s28  ;;  %7691 = vrot.lane.b32.xlu0 %v7675_v58, %s9137_s28  ;;  %v7676_v63 = vsel %vm7674_vm10, %v10832_v44, %v7614_v19 }
0x1569   :  { %v7585_v42 = vmul.f32 %v7566_v30, %v7545_v32  ;;  %v7677_v52 = vsel %vm7674_vm10, %v10839_v21, %v7615_v25 }
0x156a   :  { %v7616_v33 = vadd.f32 %v7608_v43, %v7584_v49 }
0x156b   :  { %v7617_v53 = vadd.f32 %v7609_v46, %v7585_v42  ;;  %v7568_v36 = vpop.permute.xlu1 %7567 }
0x156c   :  { %v7586_v31 = vmul.f32 %v7568_v36, %v7546_v20  ;;  %7693 = vrot.lane.b32.xlu1 %v7676_v63, %s9137_s28  ;;  %7735 = vrot.lane.b32.xlu0 %v7615_v25, %s9137_s28  ;;  %v7678_v44 = vsel %vm7674_vm10, %v10854_v14, %v7616_v33  ;;  %v7548_v14 = vsub.f32 1.0, %v10978_v18 }
0x156d   :  { %v7679_v21 = vsel %vm7674_vm10, %v10860_v50, %v7617_v53  ;;  %v7596_v50 = vrot.slane %v10887_v4, 7 }
0x156e   :  { %v7618_v57 = vadd.f32 %v7610_v48, %v7586_v31 }
0x156f   :  { %v7612_v27 = vmul.f32 %v10978_v18, %v7596_v50 }
0x1570   :  { %v7570_v6 = vpop.permute.xlu0 %7569  ;;  %7737 = vrot.lane.b32.xlu1 %v7616_v33, %s9137_s28  ;;  %7695 = vrot.lane.b32.xlu0 %v7677_v52, %s9137_s28  ;;  %v7680_v26 = vsel %vm7674_vm10, %v10872_v22, %v7618_v57 }
0x1571   :  { %v7587_v17 = vmul.f32 %v7570_v6, %v7547_v51 }
0x1573   :  { %v7619_v10 = vadd.f32 %v7611_v28, %v7587_v17  ;;  %v7572_v24 = vpop.permute.xlu1 %7571 }
0x1574   :  { %v7588_v29 = vmul.f32 %v7572_v24, %v7548_v14  ;;  %7697 = vrot.lane.b32.xlu1 %v7678_v44, %s9137_s28  ;;  %7739 = vrot.lane.b32.xlu0 %v7617_v53, %s9137_s28 }
0x1575   :  { %v7681_v60 = vsel %vm7674_vm10, %v10885_v11, %v7619_v10 }
0x1576   :  { %v7620_v22 = vadd.f32 %v7612_v27, %v7588_v29 }
0x1578   :  { %7741 = vrot.lane.b32.xlu1 %v7618_v57, %s9137_s28  ;;  %7699 = vrot.lane.b32.xlu0 %v7679_v21, %s9137_s28  ;;  %v7682_v4 = vsel %vm7674_vm10, %v10894_v45, %v7620_v22 }
0x157c   :  { %7701 = vrot.lane.b32.xlu1 %v7680_v26, %s9137_s28  ;;  %7703 = vrot.lane.b32.xlu0 %v7681_v60, %s9137_s28 }
0x1580   :  { %7705 = vrot.lane.b32.xlu1 %v7682_v4, %s9137_s28  ;;  %7743 = vrot.lane.b32.xlu0 %v7619_v10, %s9137_s28 }
0x1584   :  { %7745 = vrot.lane.b32.xlu1 %v7620_v22, %s9137_s28 }
0x15d6   :  { %v7732_v11 = vpop.permute.xlu0 %7731 }
0x15d7   :  { %7756 = vst.msk [vmem:[#allocation2 - $0x7] sm:$0x80] %vm7755_vm11, %v7732_v11 }
0x15da   :  { %v7734_v12 = vpop.permute.xlu1 %7733  ;;  %v7692_v18 = vpop.permute.xlu0 %7691 }
0x15db   :  { %7757 = vst.msk [vmem:[#allocation2 - $0x6] sm:$0x80] %vm7755_vm11, %v7734_v12 }
0x15dc   :  { %7715 = vst.msk [vmem:[%s11101_s6] sm:$0xff] %vm844_vm4, %v7692_v18 }
0x15de   :  { %v7694_v45 = vpop.permute.xlu1 %7693  ;;  %v7736_v56 = vpop.permute.xlu0 %7735 }
0x15df   :  { %7716 = vst.msk [vmem:[%s11101_s6 + $0x8] sm:$0xff] %vm844_vm4, %v7694_v45 }
0x15e0   :  { %7758 = vst.msk [vmem:[#allocation2 - $0x5] sm:$0x80] %vm7755_vm11, %v7736_v56 }
0x15e2   :  { %v7738_v41 = vpop.permute.xlu1 %7737  ;;  %v7696_v59 = vpop.permute.xlu0 %7695 }
0x15e3   :  { %7759 = vst.msk [vmem:[#allocation2 - $0x4] sm:$0x80] %vm7755_vm11, %v7738_v41 }
0x15e4   :  { %7717 = vst.msk [vmem:[%s11101_s6 + $0x10] sm:$0xff] %vm844_vm4, %v7696_v59 }
0x15e6   :  { %v7698_v5 = vpop.permute.xlu1 %7697  ;;  %v7740_v39 = vpop.permute.xlu0 %7739 }
0x15e7   :  { %7718 = vst.msk [vmem:[%s11101_s6 + $0x18] sm:$0xff] %vm844_vm4, %v7698_v5 }
0x15e8   :  { %7760 = vst.msk [vmem:[#allocation2 - $0x3] sm:$0x80] %vm7755_vm11, %v7740_v39 }
0x15ea   :  { %v7742_v2 = vpop.permute.xlu1 %7741  ;;  %v7700_v1 = vpop.permute.xlu0 %7699 }
0x15eb   :  { %7761 = vst.msk [vmem:[#allocation2 - $0x2] sm:$0x80] %vm7755_vm11, %v7742_v2 }
0x15ec   :  { %7719 = vst.msk [vmem:[%s11101_s6 + $0x20] sm:$0xff] %vm844_vm4, %v7700_v1 }
0x15ee   :  { %v7702_v47 = vpop.permute.xlu1 %7701  ;;  %v7704_v54 = vpop.permute.xlu0 %7703 }
0x15ef   :  { %7720 = vst.msk [vmem:[%s11101_s6 + $0x28] sm:$0xff] %vm844_vm4, %v7702_v47  ;;  %7721 = vst.msk [vmem:[%s11101_s6 + $0x30] sm:$0xff] %vm844_vm4, %v7704_v54 }
0x15f2   :  { %v7706_v13 = vpop.permute.xlu1 %7705  ;;  %v7744_v3 = vpop.permute.xlu0 %7743 }
0x15f3   :  { %7722 = vst.msk [vmem:[%s11101_s6 + $0x38] sm:$0xff] %vm844_vm4, %v7706_v13 }
0x15f4   :  { %7762 = vst.msk [vmem:[#allocation2 - $0x1] sm:$0x80] %vm7755_vm11, %v7744_v3 }
0x15f6   :  { %v7746_v35 = vpop.permute.xlu1 %7745 }
0x15f7   :  { %7763 = vst.msk [vmem:[#allocation2] sm:$0x80] %vm7755_vm11, %v7746_v35 }

// kernel: gruaging_gru_forward.3
= control target key start
LH: loop header
LB: loop body
LE: loop exit
PB: predicated region body
PF: predicated region fallthrough
CT: control target
= control target key end

     0   :  { %v13644_v3 = vmov 0.0   ;;  %vm11164_vm0 = vmmov 0   ;;  %v11165_v25 = vmov 1966171168   ;;  %v61_v27 = vlaneseq  ;;  %s13637_s3 = inlined_call_operand.vmem [shape: f32[8,32,96], index: 3, kind: input, shape index: {}]   ;;  %s13638_s6 = inlined_call_operand.vmem [shape: f32[8,8,32], index: 6, kind: output, shape index: {}]   ;;  %s13639_s2 = inlined_call_operand.vmem [shape: f32[8,4,96], index: 2, kind: input, shape index: {}]   ;;  %s13640_s0 = inlined_call_operand.vmem [shape: f32[8,8,4], index: 0, kind: input, shape index: {}]   ;;  %s13641_s5 = inlined_call_operand.vmem [shape: f32[8,96], index: 5, kind: input, shape index: {}]   ;;  %s13642_s1 = inlined_call_operand.vmem [shape: f32[8,1,32], index: 1, kind: input, shape index: {}]   ;;  %s13643_s4 = inlined_call_operand.vmem [shape: f32[8,96], index: 4, kind: input, shape index: {}]  }
   0x1   :  { %v11214_v0 = vld [vmem:[%s13637_s3] sm:$0xff]  ;;  %v11219_v1 = vld [vmem:[%s13637_s3 + $0x8] sm:$0xff]  ;;  %v11224_v2 = vld [vmem:[%s13637_s3 + $0x10] sm:$0xff]  ;;  %9308 = vmatprep.subr.mxu0 %v13644_v3  ;;  %9313 = vmatprep.subr.mxu1 %v13644_v3  ;;  %v59_v26 = vunpack.c.l.s4 %v11165_v25  ;;  %vm225_vm1 = vcmask 1043456   ;;  %vm221_vm2 = vcmask 31744  }
   0x2   :  { %13675 = vst [vmem:[#allocation3_spill] sm:$0xff] %v11214_v0  ;;  %13676 = vst [vmem:[#allocation4_spill] sm:$0xff] %v11219_v1  ;;  %v11231_v4 = vld [vmem:[%s13637_s3 + $0x18] sm:$0xff]  ;;  %v11236_v5 = vld [vmem:[%s13637_s3 + $0x20] sm:$0xff]  ;;  %9310 = vmatprep.mubr.msk.f32.mxu0 %vm11164_vm0, %v13644_v3  ;;  %9315 = vmatprep.mubr.msk.f32.mxu1 %vm11164_vm0, %v13644_v3  ;;  %v11390_v41 = vshrl.u32 %v61_v27, 7 }
   0x3   :  { %13677 = vst [vmem:[#allocation5_spill] sm:$0xff] %v11224_v2  ;;  %13678 = vst [vmem:[#allocation6_spill] sm:$0xff] %v11231_v4  ;;  %v11241_v6 = vld [vmem:[%s13637_s3 + $0x28] sm:$0xff]  ;;  %v11250_v7 = vld [vmem:[%s13637_s3 + $0x30] sm:$0xff]  ;;  %v60_v40 = vunpack.c.0.s8 %v59_v26 }
   0x4   :  { %13679 = vst [vmem:[#allocation7_spill] sm:$0xff] %v11236_v5  ;;  %13680 = vst [vmem:[#allocation8_spill] sm:$0xff] %v11241_v6  ;;  %v11255_v8 = vld [vmem:[%s13637_s3 + $0x38] sm:$0xff]  ;;  %v11260_v9 = vld [vmem:[%s13637_s3 + $0x40] sm:$0xff] }
   0x5   :  { %13681 = vst [vmem:[#allocation9_spill] sm:$0xff] %v11250_v7  ;;  %13682 = vst [vmem:[#allocation10_spill] sm:$0xff] %v11255_v8  ;;  %v11265_v10 = vld [vmem:[%s13637_s3 + $0x48] sm:$0xff]  ;;  %v11270_v11 = vld [vmem:[%s13637_s3 + $0x50] sm:$0xff]  ;;  %v11417_v47 = vsub.s32 %v60_v40, %v11390_v41 }
   0x6   :  { %13683 = vst [vmem:[#allocation11_spill] sm:$0xff] %v11260_v9  ;;  %13684 = vst [vmem:[#allocation12_spill] sm:$0xff] %v11265_v10  ;;  %v11275_v12 = vld [vmem:[%s13637_s3 + $0x58] sm:$0xff]  ;;  %v11280_v13 = vld [vmem:[%s13637_s3 + $0x60] sm:$0xff] }
   0x7   :  { %13685 = vst [vmem:[#allocation13_spill] sm:$0xff] %v11270_v11  ;;  %13686 = vst [vmem:[#allocation14_spill] sm:$0xff] %v11275_v12  ;;  %v11285_v14 = vld [vmem:[%s13637_s3 + $0x68] sm:$0xff]  ;;  %v11290_v15 = vld [vmem:[%s13637_s3 + $0x70] sm:$0xff] }
   0x8   :  { %13687 = vst [vmem:[#allocation15_spill] sm:$0xff] %v11280_v13  ;;  %13688 = vst [vmem:[#allocation16_spill] sm:$0xff] %v11285_v14  ;;  %v11295_v16 = vld [vmem:[%s13637_s3 + $0x78] sm:$0xff]  ;;  %v11300_v17 = vld [vmem:[%s13637_s3 + $0x80] sm:$0xff] }
   0x9   :  { %13689 = vst [vmem:[#allocation17_spill] sm:$0xff] %v11290_v15  ;;  %13690 = vst [vmem:[#allocation18_spill] sm:$0xff] %v11295_v16  ;;  %v11305_v18 = vld [vmem:[%s13637_s3 + $0x88] sm:$0xff]  ;;  %v11310_v19 = vld [vmem:[%s13637_s3 + $0x90] sm:$0xff] }
   0xa   :  { %13691 = vst [vmem:[#allocation19_spill] sm:$0xff] %v11300_v17  ;;  %13692 = vst [vmem:[#allocation20_spill] sm:$0xff] %v11305_v18  ;;  %v11315_v20 = vld [vmem:[%s13637_s3 + $0x98] sm:$0xff]  ;;  %v11320_v21 = vld [vmem:[%s13637_s3 + $0xa0] sm:$0xff] }
   0xb   :  { %13693 = vst [vmem:[#allocation21_spill] sm:$0xff] %v11310_v19  ;;  %13694 = vst [vmem:[#allocation22_spill] sm:$0xff] %v11315_v20  ;;  %v11325_v22 = vld [vmem:[%s13637_s3 + $0xa8] sm:$0xff]  ;;  %v11330_v23 = vld [vmem:[%s13637_s3 + $0xb0] sm:$0xff] }
   0xc   :  { %13695 = vst [vmem:[#allocation23_spill] sm:$0xff] %v11320_v21  ;;  %13696 = vst [vmem:[#allocation24_spill] sm:$0xff] %v11325_v22  ;;  %v11335_v24 = vld [vmem:[%s13637_s3 + $0xb8] sm:$0xff]  ;;  %v11340_v28 = vld [vmem:[%s13637_s3 + $0xc0] sm:$0xff] }
   0xd   :  { %13697 = vst [vmem:[#allocation25_spill] sm:$0xff] %v11330_v23  ;;  %13698 = vst [vmem:[#allocation26_spill] sm:$0xff] %v11335_v24  ;;  %v11345_v29 = vld [vmem:[%s13637_s3 + $0xc8] sm:$0xff]  ;;  %v11350_v30 = vld [vmem:[%s13637_s3 + $0xd0] sm:$0xff] }
   0xe   :  { %13699 = vst [vmem:[#allocation27_spill] sm:$0xff] %v11340_v28  ;;  %13700 = vst [vmem:[#allocation28_spill] sm:$0xff] %v11345_v29  ;;  %v11355_v31 = vld [vmem:[%s13637_s3 + $0xd8] sm:$0xff]  ;;  %v11360_v32 = vld [vmem:[%s13637_s3 + $0xe0] sm:$0xff] }
   0xf   :  { %13701 = vst [vmem:[#allocation29_spill] sm:$0xff] %v11350_v30  ;;  %13702 = vst [vmem:[#allocation30_spill] sm:$0xff] %v11355_v31  ;;  %v11365_v33 = vld [vmem:[%s13637_s3 + $0xe8] sm:$0xff]  ;;  %v11370_v34 = vld [vmem:[%s13637_s3 + $0xf0] sm:$0xff] }
  0x10   :  { %13703 = vst [vmem:[#allocation31_spill] sm:$0xff] %v11360_v32  ;;  %13704 = vst [vmem:[#allocation32_spill] sm:$0xff] %v11365_v33  ;;  %v11375_v35 = vld [vmem:[%s13637_s3 + $0xf8] sm:$0xff]  ;;  %v122_v36 = vld [vmem:[%s13639_s2] sm:$0xf] }
  0x11   :  { %13705 = vst [vmem:[#allocation33_spill] sm:$0xff] %v11370_v34  ;;  %13706 = vst [vmem:[#allocation34_spill] sm:$0xff] %v11375_v35  ;;  %9309 = vmatpush3.msk.msra.mxu0 %vm225_vm1, %v122_v36  ;;  %v123_v37 = vld [vmem:[%s13639_s2 + $0x4] sm:$0xf]  ;;  %v115_v39 = vld [vmem:[%s13640_s0 + $0x8] sm:$0xff] }
  0x12   :  { %v114_v38 = vld [vmem:[%s13640_s0] sm:$0xff]  ;;  %9314 = vmatpush3.msk.msra.mxu1 %vm225_vm1, %v123_v37  ;;  %v124_v42 = vld [vmem:[%s13639_s2 + $0x8] sm:$0xf]  ;;  %v125_v43 = vld [vmem:[%s13639_s2 + $0xc] sm:$0xf]  ;;  %9318 = vmatprep.subr.mxu0 %v13644_v3  ;;  %13707 = vst [vmem:[#allocation35_spill] sm:$0xff] %v11417_v47 }
  0x13   :  { %9311 = vmatmul.mubr.msk.f32.vlgmr.msra.gmra.mrb[0].mxu0 %vm221_vm2, %v114_v38  ;;  %9316 = vmatmul.mubr.msk.f32.vlgmr.msra.gmra.mrb[0].mxu1 %vm221_vm2, %v115_v39  ;;  %v116_v44 = vld [vmem:[%s13640_s0 + $0x10] sm:$0xff]  ;;  %v117_v45 = vld [vmem:[%s13640_s0 + $0x18] sm:$0xff]  ;;  %v55_v49 = vld [vmem:[%s13641_s5] sm:$0xff] }
  0x14   :  { %9323 = vmatprep.subr.mxu1 %v13644_v3  ;;  %9319 = vmatpush3.msk.msra.mxu0 %vm225_vm1, %v124_v42  ;;  %v126_v46 = vld [vmem:[%s13639_s2 + $0x10] sm:$0xf]  ;;  %v127_v48 = vld [vmem:[%s13639_s2 + $0x14] sm:$0xf]  ;;  %v118_v50 = vld [vmem:[%s13640_s0 + $0x20] sm:$0xff]  ;;  %v57_v51 = vcombine.high %v55_v49, %v55_v49  ;;  %v64_v52 = vrot.slane %v55_v49, %v11417_v47 }
  0x15   :  { %9324 = vmatpush3.msk.msra.mxu1 %vm225_vm1, %v125_v43  ;;  %9320 = vmatprep.mubr.msk.f32.mxu0 %vm11164_vm0, %v13644_v3  ;;  %v119_v53 = vld [vmem:[%s13640_s0 + $0x28] sm:$0xff]  ;;  %v128_v54 = vld [vmem:[%s13639_s2 + $0x18] sm:$0xf]  ;;  %v129_v58 = vld [vmem:[%s13639_s2 + $0x1c] sm:$0xf] }
  0x16   :  { %9325 = vmatprep.mubr.msk.f32.mxu1 %vm11164_vm0, %v13644_v3  ;;  %9328 = vmatprep.subr.mxu0 %v13644_v3  ;;  %v71_v55 = vrot.slane %v57_v51, %v11417_v47  ;;  %v72_v56 = vcombine.high %v64_v52, %v64_v52  ;;  %v11447_v57 = vrot.slane %v64_v52, %v11417_v47  ;;  %v120_v59 = vld [vmem:[%s13640_s0 + $0x30] sm:$0xff]  ;;  %v121_v63 = vld [vmem:[%s13640_s0 + $0x38] sm:$0xff]  ;;  %v835_v38 = vld [vmem:[%s13642_s1] sm:$0x1]  }
  0x17   :  { %9321 = vmatmul.mubr.msk.f32.vlgmr.msra.gmra.mrb[2].mxu0 %vm221_vm2, %v116_v44  ;;  %9326 = vmatmul.mubr.msk.f32.vlgmr.msra.gmra.mrb[2].mxu1 %vm221_vm2, %v117_v45  ;;  %v836_v39 = vld [vmem:[%s13642_s1 + $0x1] sm:$0x1]   ;;  %v837_v40 = vld [vmem:[%s13642_s1 + $0x2] sm:$0x1]   ;;  %v838_v42 = vld [vmem:[%s13642_s1 + $0x3] sm:$0x1]  }
  0x18   :  { %9333 = vmatprep.subr.mxu1 %v13644_v3  ;;  %9329 = vmatpush3.msk.msra.mxu0 %vm225_vm1, %v126_v46  ;;  %13708 = vst [vmem:[#allocation36_spill] sm:$0xff] %v11447_v57  ;;  %v73_v60 = vcombine.high %v71_v55, %v71_v55  ;;  %v11461_v61 = vrot.slane %v71_v55, %v11417_v47  ;;  %v839_v43 = vld [vmem:[%s13642_s1 + $0x4] sm:$0x1]   ;;  %v840_v44 = vld [vmem:[%s13642_s1 + $0x5] sm:$0x1]  }
  0x19   :  { %9334 = vmatpush3.msk.msra.mxu1 %vm225_vm1, %v127_v48  ;;  %9330 = vmatprep.mubr.msk.f32.mxu0 %vm11164_vm0, %v13644_v3  ;;  %v11464_v62 = vrot.slane %v72_v56, %v11417_v47  ;;  %v11473_v25 = vcombine.high %v11447_v57, %v11447_v57  ;;  %v841_v45 = vld [vmem:[%s13642_s1 + $0x6] sm:$0x1]   ;;  %v842_v46 = vld [vmem:[%s13642_s1 + $0x7] sm:$0x1]   ;;  %s11573_s1 = smov 0  }
  0x1a   :  { %9335 = vmatprep.mubr.msk.f32.mxu1 %vm11164_vm0, %v13644_v3  ;;  %9338 = vmatprep.subr.mxu0 %v13644_v3  ;;  %13709 = vst [vmem:[#allocation37_spill] sm:$0xff] %v11461_v61  ;;  %v11479_v26 = vrot.slane %v73_v60, %v11417_v47  ;;  %v11483_v27 = vcombine.high %v11461_v61, %v11461_v61  ;;  %v130_v48 = vld [vmem:[%s13643_s4] sm:$0xff] }
  0x1b   :  { %9331 = vmatmul.mubr.msk.f32.vlgmr.msra.gmra.mrb[4].mxu0 %vm221_vm2, %v118_v50  ;;  %9336 = vmatmul.mubr.msk.f32.vlgmr.msra.gmra.mrb[4].mxu1 %vm221_vm2, %v119_v53  ;;  %13710 = vst [vmem:[#allocation38_spill] sm:$0xff] %v11464_v62  ;;  %13711 = vst [vmem:[#allocation39_spill] sm:$0xff] %v11473_v25  ;;  %v11487_v36 = vcombine.high %v11464_v62, %v11464_v62  ;;  %v139_v49 = vrot.slane %v130_v48, %v11417_v47  ;;  %v11527_v53 = vsub.s32 0, %v11390_v41 }
  0x1c   :  { %9343 = vmatprep.subr.mxu1 %v13644_v3  ;;  %9339 = vmatpush3.msk.msra.mxu0 %vm225_vm1, %v128_v54  ;;  %13712 = vst [vmem:[#allocation40_spill] sm:$0xff] %v11479_v26  ;;  %13713 = vst [vmem:[#allocation41_spill] sm:$0xff] %v11483_v27  ;;  %v11495_v37 = vcombine.high %v11479_v26, %v11479_v26  ;;  %v132_v51 = vcombine.high %v130_v48, %v130_v48 }
  0x1d   :  { %9344 = vmatpush3.msk.msra.mxu1 %vm225_vm1, %v129_v58  ;;  %9340 = vmatprep.mubr.msk.f32.mxu0 %vm11164_vm0, %v13644_v3  ;;  %13714 = vst [vmem:[#allocation42_spill] sm:$0xff] %v11487_v36  ;;  %v147_v50 = vcombine.high %v139_v49, %v139_v49  ;;  %v155_v52 = vrot.slane %v139_v49, %v11417_v47  ;;  %13716 = vst [vmem:[#allocation44_spill] sm:$0xff] %v11527_v53 }
  0x1e   :  { %9345 = vmatprep.mubr.msk.f32.mxu1 %vm11164_vm0, %v13644_v3  ;;  %13715 = vst [vmem:[#allocation43_spill] sm:$0xff] %v11495_v37  ;;  %v146_v55 = vrot.slane %v132_v51, %v11417_v47 }
  0x1f   :  { %9341 = vmatmul.mubr.msk.f32.vlgmr.msra.gmra.mrb[6].mxu0 %vm221_vm2, %v120_v59  ;;  %9346 = vmatmul.mubr.msk.f32.vlgmr.msra.gmra.mrb[6].mxu1 %vm221_vm2, %v121_v63  ;;  %v169_v54 = vrot.slane %v147_v50, %v11417_v47  ;;  %v184_v56 = vrot.slane %v155_v52, %v11527_v53  ;;  %v177_v58 = vcombine.high %v155_v52, %v155_v52 }
  0x20   :  { %v148_v63 = vcombine.high %v146_v55, %v146_v55  ;;  %v162_v41 = vrot.slane %v146_v55, %v11417_v47 }
  0x21   :  { %v188_v59 = vrot.slane %v169_v54, %v11527_v53  ;;  %v179_v60 = vcombine.high %v169_v54, %v169_v54  ;;  %v192_v49 = vrot.slane %v177_v58, %v11527_v53 }
  0x22   :  { %v176_v52 = vrot.slane %v148_v63, %v11417_v47 }
  0x23   :  { %v196_v51 = vrot.slane %v179_v60, %v11527_v53 }
  0x24   :  { %v204_v55 = vrot.slane %v176_v52, %v11527_v53 }
  0xe6   :  { %v295_v3 = vpop.f32.mrb[0].mxu0  ;;  %v371_v48 = vpop.f32.mrb[0].mxu1 }
  0xe7   :  { %v11533_v37 = vadd.f32 %v295_v3, %v184_v56  ;;  %v9312_v27 = vpop.f32.mrb[1].mxu0  ;;  %v11537_v26 = vadd.f32 %v371_v48, %v188_v59  ;;  %v9317_v50 = vpop.f32.mrb[1].mxu1  ;;  %v200_v3 = vrot.slane %v162_v41, %v11527_v53  ;;  %v178_v56 = vcombine.high %v162_v41, %v162_v41 }
  0xe8   :  { %v180_v59 = vcombine.high %v176_v52, %v176_v52 }
  0xe9   :  { %13717 = vst [vmem:[#allocation45_spill] sm:$0xff] %v11537_v26  ;;  %v208_v63 = vrot.slane %v178_v56, %v11527_v53 }
  0xea   :  { %v447_v61 = vpop.f32.mrb[2].mxu0  ;;  %v523_v54 = vpop.f32.mrb[2].mxu1 }
  0xeb   :  { %v11541_v36 = vadd.f32 %v447_v61, %v192_v49  ;;  %v9322_v25 = vpop.f32.mrb[3].mxu0  ;;  %v11544_v27 = vadd.f32 %v523_v54, %v196_v51  ;;  %v9327_v58 = vpop.f32.mrb[3].mxu1 }
  0xec   :  { %v212_v25 = vrot.slane %v180_v59, %v11527_v53 }
  0xee   :  { %v599_v48 = vpop.f32.mrb[4].mxu0  ;;  %v675_v60 = vpop.f32.mrb[4].mxu1 }
  0xef   :  { %v11547_v50 = vadd.f32 %v599_v48, %v200_v3  ;;  %v9332_v26 = vpop.f32.mrb[5].mxu0  ;;  %v11550_v61 = vadd.f32 %v675_v60, %v204_v55  ;;  %v9337_v49 = vpop.f32.mrb[5].mxu1 }
  0xf2   :  { %v751_v47 = vpop.f32.mrb[6].mxu0  ;;  %v827_v51 = vpop.f32.mrb[6].mxu1 }
  0xf3   :  { %v11553_v41 = vadd.f32 %v751_v47, %v208_v63  ;;  %v9342_v54 = vpop.f32.mrb[7].mxu0  ;;  %v11555_v58 = vadd.f32 %v827_v51, %v212_v25  ;;  %v9347_v52 = vpop.f32.mrb[7].mxu1 }
  0xf5   :  { %13718 = vst [vmem:[#allocation46_spill] sm:$0xff] %v11555_v58 }
  0xf6 LB: > { %v13720_v53 = vld [vmem:[#allocation44_spill] sm:$0xff]  ;;  %v13721_v0 = vld [vmem:[#allocation3_spill] sm:$0xff]  ;;  %v11166_v3 = vmov 0.0|0.0   ;;  %v13725_v2 = vld [vmem:[#allocation5_spill] sm:$0xff]  ;;  %vm11167_vm3 = vmmov 0   ;;  %v11168_v59 = vmov 0.0   ;;  %v11133_v45 = vphi %v841_v45, %v13762_v45   ;;  %v11129_v46 = vphi %v842_v46, %v13761_v46   ;;  %s11161_s1 = sphi %s11573_s1, %s848_s1   ;;  %v11157_v38 = vphi %v835_v38, %v13768_v38   ;;  %v11153_v39 = vphi %v836_v39, %v13767_v39   ;;  %v11149_v40 = vphi %v837_v40, %v13766_v40   ;;  %v11145_v42 = vphi %v838_v42, %v13765_v42   ;;  %v11141_v43 = vphi %v839_v43, %v13764_v43   ;;  %v11137_v44 = vphi %v840_v44, %v13763_v44  }
  0xf7   : > { %v13722_v1 = vld [vmem:[#allocation4_spill] sm:$0xff]  ;;  %v13723_v5 = vld [vmem:[#allocation7_spill] sm:$0xff]  ;;  %10140 = vmatprep.subr.bf16.mxu0 %v11166_v3  ;;  %10146 = vmatprep.subr.bf16.mxu1 %v11166_v3  ;;  %v13726_v4 = vld [vmem:[#allocation6_spill] sm:$0xff]  ;;  %vm857_vm4 = vcmask 261120   ;;  %s11169_s4 = smov 64   ;;  %s11170_s12 = smov 32  }
  0xf8   : > { %v11604_v47 = vpack.c.bf16 %v13722_v1, %v13721_v0  ;;  %v13724_v6 = vld [vmem:[#allocation8_spill] sm:$0xff]  ;;  %v11614_v56 = vpack.c.bf16 %v13726_v4, %v13725_v2  ;;  %v13727_v7 = vld [vmem:[#allocation9_spill] sm:$0xff]  ;;  %v13728_v8 = vld [vmem:[#allocation10_spill] sm:$0xff]  ;;  %9356 = vmatprep.mubr.msk.f32.mxu0 %vm11167_vm3, %v11168_v59  ;;  %9367 = vmatprep.mubr.msk.f32.mxu1 %vm11167_vm3, %v11168_v59  ;;  %s11171_s13 = smov 96   ;;  %s848_s1 = sadd.s32 1, %s11161_s1  }
  0xf9   : > { %v11608_v26 = vpack.c.bf16 %v13724_v6, %v13723_v5  ;;  %v11618_v55 = vpack.c.bf16 %v13728_v8, %v13727_v7  ;;  %v13729_v9 = vld [vmem:[#allocation11_spill] sm:$0xff]  ;;  %v13730_v10 = vld [vmem:[#allocation12_spill] sm:$0xff]  ;;  %v13733_v11 = vld [vmem:[#allocation13_spill] sm:$0xff]  ;;  %p845_p0 = scmp.ge.s32.totalorder %s848_s1, 200  }
  0xfa   : > { %10142 = vmatpush3.bf16.msra.mxu0 %v11604_v47  ;;  %v11626_v48 = vpack.c.bf16 %v13730_v10, %v13729_v9  ;;  %v13731_v13 = vld [vmem:[#allocation15_spill] sm:$0xff]  ;;  %v13732_v14 = vld [vmem:[#allocation16_spill] sm:$0xff]  ;;  %v13734_v12 = vld [vmem:[#allocation14_spill] sm:$0xff]  ;;  %vm1874_vm5 = vcmask (%p845_p0), 253952   ;;  %s11173_s5 = smov (%p845_p0), 64   ;;  %s11174_s14 = smov (%p845_p0), 32  }
  0xfb   : > { %10148 = vmatpush3.bf16.msra.mxu1 %v11608_v26  ;;  %10143 = vmatprep.subr.bf16.mxu0 %v11166_v3  ;;  %v11630_v60 = vpack.c.bf16 %v13732_v14, %v13731_v13  ;;  %v11640_v63 = vpack.c.bf16 %v13734_v12, %v13733_v11  ;;  %v13735_v15 = vld [vmem:[#allocation17_spill] sm:$0xff]  ;;  %v13736_v16 = vld [vmem:[#allocation18_spill] sm:$0xff]  ;;  %v13737_v17 = vld [vmem:[#allocation19_spill] sm:$0xff]  ;;  %s11175_s15 = smov (%p845_p0), 96   ;;  %vm8668_vm6 = vcmask (%p845_p0), 1040384   ;;  %vm8677_vm7 = vcmask (%p845_p0), 1041408  }
  0xfc   : > { %v13719_v58 = vld [vmem:[#allocation46_spill] sm:$0xff]  ;;  %10149 = vmatprep.subr.bf16.mxu1 %v11166_v3  ;;  %v11644_v49 = vpack.c.bf16 %v13736_v16, %v13735_v15  ;;  %v13738_v18 = vld [vmem:[#allocation20_spill] sm:$0xff]  ;;  %v13739_v21 = vld [vmem:[#allocation23_spill] sm:$0xff]  ;;  %vm8686_vm8 = vcmask (%p845_p0), 1042432   ;;  %vm8703_vm9 = vcmask (%p845_p0), 1044480   ;;  %vm8712_vm10 = vcmask (%p845_p0), 1045504  }
  0xfd   : > { %v11652_v25 = vpack.c.bf16 %v13738_v18, %v13737_v17  ;;  %v13740_v22 = vld [vmem:[#allocation24_spill] sm:$0xff]  ;;  %v13741_v19 = vld [vmem:[#allocation21_spill] sm:$0xff]  ;;  %v13742_v20 = vld [vmem:[#allocation22_spill] sm:$0xff]  ;;  %vm8721_vm11 = vcmask (%p845_p0), 1046528   ;;  %vm8802_vm12 = vcmask (%p845_p0), 261127  }
  0xfe   : > { %10145 = vmatpush3.bf16.msra.mxu0 %v11614_v56  ;;  %v11656_v51 = vpack.c.bf16 %v13740_v22, %v13739_v21  ;;  %v11666_v54 = vpack.c.bf16 %v13742_v20, %v13741_v19  ;;  %v13743_v23 = vld [vmem:[#allocation25_spill] sm:$0xff]  ;;  %v13744_v24 = vld [vmem:[#allocation26_spill] sm:$0xff]  ;;  %v13745_v28 = vld [vmem:[#allocation27_spill] sm:$0xff] }
  0xff   : > { %10151 = vmatpush3.bf16.msra.mxu1 %v11618_v55  ;;  %10152 = vmatprep.subr.bf16.mxu0 %v11166_v3  ;;  %v11670_v52 = vpack.c.bf16 %v13744_v24, %v13743_v23  ;;  %v13746_v29 = vld [vmem:[#allocation28_spill] sm:$0xff]  ;;  %v13747_v32 = vld [vmem:[#allocation31_spill] sm:$0xff]  ;;  %v13749_v30 = vld [vmem:[#allocation29_spill] sm:$0xff] }
 0x100   : > { %10158 = vmatprep.subr.bf16.mxu1 %v11166_v3  ;;  %v11678_v0 = vpack.c.bf16 %v13746_v29, %v13745_v28  ;;  %v13748_v33 = vld [vmem:[#allocation32_spill] sm:$0xff]  ;;  %v13750_v31 = vld [vmem:[#allocation30_spill] sm:$0xff]  ;;  %v13751_v34 = vld [vmem:[#allocation33_spill] sm:$0xff] }
 0x101   : > { %9357 = vmatmul.mubr.msk.f32.vlgmr.msra.gmra.mrb[0].mxu0 %vm857_vm4, %v11157_v38  ;;  %v11682_v1 = vpack.c.bf16 %v13748_v33, %v13747_v32  ;;  %v11692_v2 = vpack.c.bf16 %v13750_v31, %v13749_v30  ;;  %v13752_v35 = vld [vmem:[#allocation34_spill] sm:$0xff]  ;;  %v13753_v11 = vld [vmem:[#allocation39_spill] sm:$0xff]  ;;  %v13756_v18 = vld [vmem:[#allocation40_spill] sm:$0xff] }
 0x102   : > { %9368 = vmatmul.mubr.msk.f32.vlgmr.msra.gmra.mrb[0].mxu1 %vm857_vm4, %v11153_v39  ;;  %10154 = vmatpush3.bf16.msra.mxu0 %v11626_v48  ;;  %v11696_v4 = vpack.c.bf16 %v13752_v35, %v13751_v34  ;;  %v13754_v15 = vld [vmem:[#allocation42_spill] sm:$0xff]  ;;  %v13758_v21 = vld [vmem:[#allocation43_spill] sm:$0xff] }
 0x103   : > { %10160 = vmatpush3.bf16.msra.mxu1 %v11630_v60  ;;  %10155 = vmatprep.subr.bf16.mxu0 %v11166_v3 }
 0x104   : > { %10161 = vmatprep.subr.bf16.mxu1 %v11166_v3  ;;  %9378 = vmatprep.mubr.msk.f32.mxu0 %vm11167_vm3, %v11168_v59 }
 0x105   : > { %9389 = vmatprep.mubr.msk.f32.mxu1 %vm11167_vm3, %v11168_v59 }
 0x106   : > { %10157 = vmatpush3.bf16.msra.mxu0 %v11640_v63 }
 0x107   : > { %10163 = vmatpush3.bf16.msra.mxu1 %v11644_v49  ;;  %10164 = vmatprep.subr.bf16.mxu0 %v11166_v3 }
 0x108   : > { %10170 = vmatprep.subr.bf16.mxu1 %v11166_v3 }
 0x109   : > { %9379 = vmatmul.mubr.msk.f32.vlgmr.msra.gmra.mrb[2].mxu0 %vm857_vm4, %v11149_v40 }
 0x10a   : > { %9390 = vmatmul.mubr.msk.f32.vlgmr.msra.gmra.mrb[2].mxu1 %vm857_vm4, %v11145_v42  ;;  %10166 = vmatpush3.bf16.msra.mxu0 %v11652_v25 }
 0x10b   : > { %10172 = vmatpush3.bf16.msra.mxu1 %v11656_v51  ;;  %10167 = vmatprep.subr.bf16.mxu0 %v11166_v3 }
 0x10c   : > { %10173 = vmatprep.subr.bf16.mxu1 %v11166_v3  ;;  %9400 = vmatprep.mubr.msk.f32.mxu0 %vm11167_vm3, %v11168_v59 }
 0x10d   : > { %9411 = vmatprep.mubr.msk.f32.mxu1 %vm11167_vm3, %v11168_v59 }
 0x10e   : > { %10169 = vmatpush3.bf16.msra.mxu0 %v11666_v54 }
 0x10f   : > { %10175 = vmatpush3.bf16.msra.mxu1 %v11670_v52  ;;  %10176 = vmatprep.subr.bf16.mxu0 %v11166_v3 }
 0x110   : > { %10182 = vmatprep.subr.bf16.mxu1 %v11166_v3 }
 0x111   : > { %9401 = vmatmul.mubr.msk.f32.vlgmr.msra.gmra.mrb[4].mxu0 %vm857_vm4, %v11141_v43 }
 0x112   : > { %9412 = vmatmul.mubr.msk.f32.vlgmr.msra.gmra.mrb[4].mxu1 %vm857_vm4, %v11137_v44  ;;  %10178 = vmatpush3.bf16.msra.mxu0 %v11678_v0 }
 0x113   : > { %10184 = vmatpush3.bf16.msra.mxu1 %v11682_v1  ;;  %10179 = vmatprep.subr.bf16.mxu0 %v11166_v3 }
 0x114   : > { %10185 = vmatprep.subr.bf16.mxu1 %v11166_v3  ;;  %9422 = vmatprep.mubr.msk.f32.mxu0 %vm11167_vm3, %v11168_v59 }
 0x115   : > { %9433 = vmatprep.mubr.msk.f32.mxu1 %vm11167_vm3, %v11168_v59 }
 0x116   : > { %10181 = vmatpush3.bf16.msra.mxu0 %v11692_v2 }
 0x117   : > { %10187 = vmatpush3.bf16.msra.mxu1 %v11696_v4 }
 0x119   : > { %9423 = vmatmul.mubr.msk.f32.vlgmr.msra.gmra.mrb[6].mxu0 %vm857_vm4, %v11133_v45 }
 0x11a   : > { %9434 = vmatmul.mubr.msk.f32.vlgmr.msra.gmra.mrb[6].mxu1 %vm857_vm4, %v11129_v46 }
 0x1d4   : > { %v927_v5 = vpop.f32.mrb[0].mxu0 }
 0x1d5   : > { %v1000_v6 = vpop.f32.mrb[0].mxu1  ;;  %v928_v7 = vadd.f32 %v927_v5, %v11447_v57  ;;  %v9358_v8 = vpop.f32.mrb[1].mxu0 }
 0x1d6   : > { %v9369_v3 = vpop.f32.mrb[1].mxu1  ;;  %v1001_v59 = vadd.f32 %v1000_v6, %v11464_v62 }
 0x1d7   : > { %1506 = vrot.lane.b32.xlu0 %v928_v7, %s11169_s4  ;;  %v13755_v3 = vld [vmem:[#allocation37_spill] sm:$0xff] }
 0x1db   : > { %1508 = vrot.lane.b32.xlu0 %v1001_v59, %s11169_s4 }
 0x1dc   : > { %v1073_v9 = vpop.f32.mrb[2].mxu0 }
 0x1dd   : > { %v1146_v10 = vpop.f32.mrb[2].mxu1  ;;  %v1074_v12 = vadd.f32 %v1073_v9, %v13753_v11  ;;  %v9380_v13 = vpop.f32.mrb[3].mxu0 }
 0x1de   : > { %v9391_v14 = vpop.f32.mrb[3].mxu1  ;;  %v1147_v16 = vadd.f32 %v1146_v10, %v13754_v15  ;;  %v13757_v13 = vld [vmem:[#allocation41_spill] sm:$0xff] }
 0x1df   : > { %1510 = vrot.lane.b32.xlu1 %v1074_v12, %s11169_s4  ;;  %v1444_v23 = vadd.f32 %v1074_v12, %v11541_v36 }
 0x1e3   : > { %1512 = vrot.lane.b32.xlu1 %v1147_v16, %s11169_s4 }
 0x1e4   : > { %v1219_v5 = vpop.f32.mrb[4].mxu0 }
 0x1e5   : > { %v1292_v8 = vpop.f32.mrb[4].mxu1  ;;  %v1220_v17 = vadd.f32 %v1219_v5, %v13755_v3  ;;  %v9402_v19 = vpop.f32.mrb[5].mxu0 }
 0x1e6   : > { %v1293_v6 = vadd.f32 %v1292_v8, %v13756_v18  ;;  %v9413_v20 = vpop.f32.mrb[5].mxu1  ;;  %v1442_v18 = vadd.f32 %v928_v7, %v11533_v37 }
 0x1e7   : > { %1514 = vrot.lane.b32.xlu0 %v1220_v17, %s11169_s4  ;;  %v13759_v20 = vld [vmem:[#allocation45_spill] sm:$0xff] }
 0x1e8   : > { %1516 = vrot.lane.b32.xlu1 %v1293_v6, %s11169_s4  ;;  %v1450_v19 = vsub.f32 0.0, %v1442_v18  ;;  %v1443_v5 = vadd.f32 %v1001_v59, %v13759_v20 }
 0x1ea   : > { %v1458_v8 = vmul.f32 1.442695, %v1450_v19  ;;  %v1451_v3 = vsub.f32 0.0, %v1443_v5 }
 0x1ec   : > { %v1365_v9 = vpop.f32.mrb[6].mxu0  ;;  %10659 = vpow2.f32 %v1458_v8  ;;  %v1460_v24 = vmul.f32 1.442695, %v1451_v3 }
 0x1ed   : > { %v1438_v11 = vpop.f32.mrb[6].mxu1  ;;  %v1366_v14 = vadd.f32 %v1365_v9, %v13757_v13  ;;  %v9424_v15 = vpop.f32.mrb[7].mxu0  ;;  %v1452_v9 = vsub.f32 0.0, %v1444_v23 }
 0x1ee   : > { %v1439_v10 = vadd.f32 %v1438_v11, %v13758_v21  ;;  %v9435_v22 = vpop.f32.mrb[7].mxu1  ;;  %v1445_v21 = vadd.f32 %v1147_v16, %v11544_v27  ;;  %10661 = vpow2.f32 %v1460_v24  ;;  %v1447_v15 = vadd.f32 %v1293_v6, %v11550_v61 }
 0x1ef   : > { %1518 = vrot.lane.b32.xlu0 %v1366_v14, %s11169_s4  ;;  %v1446_v22 = vadd.f32 %v1220_v17, %v11547_v50  ;;  %v1462_v11 = vmul.f32 1.442695, %v1452_v9  ;;  %v1448_v12 = vadd.f32 %v1366_v14, %v11553_v41 }
 0x1f0   : > { %1520 = vrot.lane.b32.xlu1 %v1439_v10, %s11169_s4  ;;  %v1453_v13 = vsub.f32 0.0, %v1445_v21  ;;  %v1455_v59 = vsub.f32 0.0, %v1447_v15  ;;  %v1449_v23 = vadd.f32 %v1439_v10, %v13719_v58 }
 0x1f1   : > { %v1454_v7 = vsub.f32 0.0, %v1446_v22  ;;  %10663 = vpow2.f32 %v1462_v11  ;;  %v1456_v17 = vsub.f32 0.0, %v1448_v12 }
 0x1f2   : > { %v1464_v18 = vmul.f32 1.442695, %v1453_v13  ;;  %v1468_v8 = vmul.f32 1.442695, %v1455_v59  ;;  %v1457_v24 = vsub.f32 0.0, %v1449_v23 }
 0x1f3   : > { %v1466_v5 = vmul.f32 1.442695, %v1454_v7  ;;  %v1470_v21 = vmul.f32 1.442695, %v1456_v17 }
 0x1f4   : > { %10665 = vpow2.f32 %v1464_v18  ;;  %v1472_v22 = vmul.f32 1.442695, %v1457_v24 }
 0x1f5   : > { %10667 = vpow2.f32 %v1466_v5 }
 0x1f6   : > { %v10660_v19 = vpop.eup %10659  ;;  %10669 = vpow2.f32 %v1468_v8 }
 0x1f7   : > { %v1474_v16 = vadd.f32 1.0, %v10660_v19 }
 0x1f8   : > { %v10662_v3 = vpop.eup %10661 }
 0x1f9   : > { %10671 = vrcp.f32 %v1474_v16  ;;  %v1475_v6 = vadd.f32 1.0, %v10662_v3 }
 0x1fb   : > { %v10664_v9 = vpop.eup %10663  ;;  %10673 = vrcp.f32 %v1475_v6 }
 0x1fc   : > { %v1476_v11 = vadd.f32 1.0, %v10664_v9  ;;  %10675 = vpow2.f32 %v1470_v21 }
 0x1fd   : > { %10677 = vpow2.f32 %v1472_v22 }
 0x1fe   : > { %v10666_v13 = vpop.eup %10665  ;;  %10679 = vrcp.f32 %v1476_v11 }
 0x1ff   : > { %v10668_v14 = vpop.eup %10667  ;;  %v1477_v15 = vadd.f32 1.0, %v10666_v13 }
 0x200   : > { %v10670_v10 = vpop.eup %10669  ;;  %v1478_v59 = vadd.f32 1.0, %v10668_v14 }
 0x201   : > { %10681 = vrcp.f32 %v1477_v15  ;;  %v1479_v5 = vadd.f32 1.0, %v10670_v10 }
 0x202   : > { %10683 = vrcp.f32 %v1478_v59 }
 0x203   : > { %v11730_v7 = vpop.eup %10671  ;;  %10685 = vrcp.f32 %v1479_v5 }
 0x205   : > { %v11734_v12 = vpop.eup %10673 }
 0x206   : > { %v10676_v16 = vpop.eup %10675 }
 0x207   : > { %v10678_v3 = vpop.eup %10677  ;;  %v1480_v6 = vadd.f32 1.0, %v10676_v16 }
 0x208   : > { %v11738_v17 = vpop.eup %10679  ;;  %v1481_v21 = vadd.f32 1.0, %v10678_v3 }
 0x209   : > { %10687 = vrcp.f32 %v1480_v6  ;;  %v1637_v6 = vrot.slane %v11157_v38, %v13720_v53  ;;  %v1588_v31 = vsub.f32 1.0, %v11738_v17 }
 0x20a   : > { %10689 = vrcp.f32 %v1481_v21  ;;  %v1645_v21 = vrot.slane %v11149_v40, %v13720_v53 }
 0x20b   : > { %v11742_v22 = vpop.eup %10681 }
 0x20c   : > { %v11745_v14 = vpop.eup %10683 }
 0x20d   : > { %v11748_v15 = vpop.eup %10685 }
 0x213   : > { %v11754_v5 = vpop.eup %10687 }
 0x249   : > { %v1507_v18 = vpop.permute.xlu0 %1506 }
 0x24a   : > { %v1530_v19 = vmul.f32 %v11730_v7, %v1507_v18 }
 0x24c   : > { %1546 = vrot.lane.b32.xlu0 %v1530_v19, %s11169_s4 }
 0x24d   : > { %v1509_v8 = vpop.permute.xlu0 %1508 }
 0x24e   : > { %v1531_v23 = vmul.f32 %v11734_v12, %v1509_v8  ;;  %v11756_v8 = vpop.eup %10689 }
 0x250   : > { %1548 = vrot.lane.b32.xlu1 %v1531_v23, %s11169_s4 }
 0x251   : > { %v1511_v24 = vpop.permute.xlu1 %1510 }
 0x252   : > { %v1532_v9 = vmul.f32 %v11738_v17, %v1511_v24 }
 0x254   : > { %1550 = vrot.lane.b32.xlu0 %v1532_v9, %s11169_s4  ;;  %v1641_v9 = vrot.slane %v11153_v39, %v13720_v53 }
 0x255   : > { %v1513_v11 = vpop.permute.xlu1 %1512 }
 0x256   : > { %v1533_v13 = vmul.f32 %v11742_v22, %v1513_v11  ;;  %v1649_v11 = vrot.slane %v11145_v42, %v13720_v53 }
 0x258   : > { %1552 = vrot.lane.b32.xlu1 %v1533_v13, %s11169_s4  ;;  %v1653_v13 = vrot.slane %v11141_v43, %v13720_v53 }
 0x259   : > { %v1515_v10 = vpop.permute.xlu0 %1514 }
 0x25a   : > { %v1517_v18 = vpop.permute.xlu1 %1516  ;;  %v1534_v59 = vmul.f32 %v11745_v14, %v1515_v10  ;;  %v1657_v10 = vrot.slane %v11137_v44, %v13720_v53 }
 0x25b   : > { %v1535_v19 = vmul.f32 %v11748_v15, %v1517_v18 }
 0x25c   : > { %1554 = vrot.lane.b32.xlu0 %v1534_v59, %s11169_s4 }
 0x25d   : > { %1556 = vrot.lane.b32.xlu1 %v1535_v19, %s11169_s4 }
 0x261   : > { %v1519_v23 = vpop.permute.xlu0 %1518 }
 0x262   : > { %v1521_v16 = vpop.permute.xlu1 %1520  ;;  %v1536_v3 = vmul.f32 %v11754_v5, %v1519_v23 }
 0x263   : > { %v1537_v24 = vmul.f32 %v11756_v8, %v1521_v16 }
 0x264   : > { %1558 = vrot.lane.b32.xlu0 %v1536_v3, %s11169_s4 }
 0x265   : > { %1560 = vrot.lane.b32.xlu1 %v1537_v24, %s11169_s4 }
 0x268   : > { %1666 = vrot.lane.b32.xlu0 %v1637_v6, %s11170_s12 }
 0x269   : > { %1668 = vrot.lane.b32.xlu1 %v1641_v9, %s11170_s12 }
 0x26c   : > { %1670 = vrot.lane.b32.xlu0 %v1645_v21, %s11170_s12 }
 0x26d   : > { %1672 = vrot.lane.b32.xlu1 %v1649_v11, %s11170_s12 }
 0x270   : > { %1674 = vrot.lane.b32.xlu0 %v1653_v13, %s11170_s12 }
 0x271   : > { %1676 = vrot.lane.b32.xlu1 %v1657_v10, %s11170_s12 }
 0x2be   : > { %v1547_v18 = vpop.permute.xlu0 %1546 }
 0x2bf   : > { %v1570_v59 = vadd.f32 %v1547_v18, %v11533_v37 }
 0x2c1   : > { %10691 = vtanh.f32 %v1570_v59 }
 0x2c2   : > { %v1549_v19 = vpop.permute.xlu1 %1548 }
 0x2c3   : > { %v1571_v23 = vadd.f32 %v1549_v19, %v13759_v20 }
 0x2c5   : > { %10693 = vtanh.f32 %v1571_v23 }
 0x2c6   : > { %v1551_v16 = vpop.permute.xlu0 %1550 }
 0x2c7   : > { %v1572_v3 = vadd.f32 %v1551_v16, %v11541_v36 }
 0x2c9   : > { %10695 = vtanh.f32 %v1572_v3 }
 0x2ca   : > { %v1553_v24 = vpop.permute.xlu1 %1552 }
 0x2cb   : > { %v10692_v6 = vpop.eup %10691  ;;  %v1573_v9 = vadd.f32 %v1553_v24, %v11544_v27 }
 0x2cc   : > { %1602 = vrot.lane.b32.xlu0 %v10692_v6, %s11171_s13 }
 0x2cd   : > { %10697 = vtanh.f32 %v1573_v9 }
 0x2ce   : > { %v1555_v21 = vpop.permute.xlu0 %1554 }
 0x2cf   : > { %v1557_v11 = vpop.permute.xlu1 %1556  ;;  %v10694_v13 = vpop.eup %10693  ;;  %v1574_v10 = vadd.f32 %v1555_v21, %v11547_v50 }
 0x2d0   : > { %v1575_v20 = vadd.f32 %v1557_v11, %v11550_v61  ;;  %1604 = vrot.lane.b32.xlu1 %v10694_v13, %s11171_s13  ;;  %v1661_v11 = vrot.slane %v11133_v45, %v13720_v53  ;;  %v1665_v13 = vrot.slane %v11129_v46, %v13720_v53 }
 0x2d1   : > { %10699 = vtanh.f32 %v1574_v10 }
 0x2d2   : > { %10701 = vtanh.f32 %v1575_v20 }
 0x2d3   : > { %v10696_v18 = vpop.eup %10695 }
 0x2d4   : > { %1606 = vrot.lane.b32.xlu0 %v10696_v18, %s11171_s13 }
 0x2d6   : > { %v1559_v59 = vpop.permute.xlu0 %1558 }
 0x2d7   : > { %v1561_v19 = vpop.permute.xlu1 %1560  ;;  %v10698_v23 = vpop.eup %10697  ;;  %v1576_v16 = vadd.f32 %v1559_v59, %v11553_v41 }
 0x2d8   : > { %v1577_v3 = vadd.f32 %v1561_v19, %v13719_v58  ;;  %1608 = vrot.lane.b32.xlu1 %v10698_v23, %s11171_s13  ;;  %v1586_v23 = vsub.f32 1.0, %v11730_v7  ;;  %v13760_v58 = vld [vmem:[#allocation35_spill] sm:$0xff] }
 0x2d9   : > { %10703 = vtanh.f32 %v1576_v16 }
 0x2da   : > { %10705 = vtanh.f32 %v1577_v3  ;;  %v1667_v10 = vpop.permute.xlu0 %1666 }
 0x2db   : > { %v10700_v24 = vpop.eup %10699  ;;  %v1669_v20 = vpop.permute.xlu1 %1668 }
 0x2dc   : > { %v10702_v6 = vpop.eup %10701  ;;  %1610 = vrot.lane.b32.xlu0 %v10700_v24, %s11171_s13  ;;  %v1690_v24 = vmul.f32 %v11730_v7, %v1667_v10 }
 0x2dd   : > { %1612 = vrot.lane.b32.xlu1 %v10702_v6, %s11171_s13 }
 0x2de   : > { %v1671_v18 = vpop.permute.xlu0 %1670 }
 0x2df   : > { %v1673_v59 = vpop.permute.xlu1 %1672  ;;  %v1692_v34 = vmul.f32 %v11738_v17, %v1671_v18 }
 0x2e2   : > { %v1675_v19 = vpop.permute.xlu0 %1674 }
 0x2e3   : > { %v10704_v9 = vpop.eup %10703  ;;  %v1677_v16 = vpop.permute.xlu1 %1676 }
 0x2e4   : > { %v10706_v21 = vpop.eup %10705  ;;  %1614 = vrot.lane.b32.xlu0 %v10704_v9, %s11171_s13 }
 0x2e5   : > { %1616 = vrot.lane.b32.xlu1 %v10706_v21, %s11171_s13  ;;  %v1587_v21 = vsub.f32 1.0, %v11734_v12 }
 0x2e8   : > { %1678 = vrot.lane.b32.xlu0 %v1661_v11, %s11170_s12  ;;  %v1691_v11 = vmul.f32 %v11734_v12, %v1669_v20 }
 0x2e9   : > { %1680 = vrot.lane.b32.xlu1 %v1665_v13, %s11170_s12 }
 0x33e   : > { %v1603_v3 = vpop.permute.xlu0 %1602 }
 0x33f   : > { %v1626_v6 = vmul.f32 %v1603_v3, %v1586_v23  ;;  %v1589_v3 = vsub.f32 1.0, %v11742_v22 }
 0x341   : > { %v1698_v9 = vadd.f32 %v1690_v24, %v1626_v6 }
 0x342   : > { %v1605_v28 = vpop.permute.xlu1 %1604 }
 0x343   : > { %v1706_v29 = vsub.f32 %v1698_v9, %v1667_v10  ;;  %v1627_v13 = vmul.f32 %v1605_v28, %v1587_v21  ;;  %v1693_v28 = vmul.f32 %v11742_v22, %v1673_v59  ;;  %v1695_v21 = vmul.f32 %v11748_v15, %v1677_v16 }
 0x345   : > { %v1699_v30 = vadd.f32 %v1691_v11, %v1627_v13  ;;  %v1714_v32 = vmul.f32 0.5, %v1706_v29 }
 0x346   : > { %v1607_v33 = vpop.permute.xlu0 %1606 }
 0x347   : > { %v1707_v35 = vsub.f32 %v1699_v30, %v1669_v20  ;;  %v1628_v53 = vmul.f32 %v1607_v33, %v1588_v31  ;;  %v1736_v7 = vrot.slane %v1714_v32, %v13760_v58  ;;  %v1590_v30 = vsub.f32 1.0, %v11745_v14 }
 0x349   : > { %v1700_v23 = vadd.f32 %v1692_v34, %v1628_v53  ;;  %v1743_v24 = vrot.slane %v1736_v7, %v13760_v58  ;;  %v1715_v6 = vmul.f32 0.5, %v1707_v35  ;;  %v1591_v34 = vsub.f32 1.0, %v11748_v15 }
 0x34a   : > { %v1609_v12 = vpop.permute.xlu1 %1608  ;;  %v1694_v35 = vmul.f32 %v11745_v14, %v1675_v19 }
 0x34b   : > { %v1708_v10 = vsub.f32 %v1700_v23, %v1671_v18  ;;  %v1629_v9 = vmul.f32 %v1609_v12, %v1589_v3  ;;  %1842 = vrot.lane.b32.xlu0 %v1743_v24, %s11171_s13  ;;  %v1750_v29 = vrot.slane %v1715_v6, %v13760_v58 }
 0x34d   : > { %v1701_v17 = vadd.f32 %v1693_v28, %v1629_v9  ;;  %v1757_v31 = vrot.slane %v1750_v29, %v13760_v58  ;;  %v1716_v32 = vmul.f32 0.5, %v1708_v10 }
 0x34e   : > { %v1611_v33 = vpop.permute.xlu0 %1610 }
 0x34f   : > { %v1709_v53 = vsub.f32 %v1701_v17, %v1673_v59  ;;  %v1630_v20 = vmul.f32 %v1611_v33, %v1590_v30  ;;  %v1613_v22 = vpop.permute.xlu1 %1612  ;;  %1844 = vrot.lane.b32.xlu1 %v1757_v31, %s11171_s13  ;;  %v1764_v18 = vrot.slane %v1716_v32, %v13760_v58  ;;  %v1592_v17 = vsub.f32 1.0, %v11754_v5 }
 0x350   : > { %v1631_v11 = vmul.f32 %v1613_v22, %v1591_v34  ;;  %v1593_v30 = vsub.f32 1.0, %v11756_v8 }
 0x351   : > { %v1702_v13 = vadd.f32 %v1694_v35, %v1630_v20  ;;  %v1771_v7 = vrot.slane %v1764_v18, %v13760_v58  ;;  %v1717_v23 = vmul.f32 0.5, %v1709_v53 }
 0x352   : > { %v1703_v3 = vadd.f32 %v1695_v21, %v1631_v11 }
 0x353   : > { %v1710_v24 = vsub.f32 %v1702_v13, %v1675_v19  ;;  %1846 = vrot.lane.b32.xlu0 %v1771_v7, %s11171_s13  ;;  %v1778_v14 = vrot.slane %v1717_v23, %v13760_v58 }
 0x354   : > { %v1711_v59 = vsub.f32 %v1703_v3, %v1677_v16 }
 0x355   : > { %v1785_v6 = vrot.slane %v1778_v14, %v13760_v58  ;;  %v1718_v12 = vmul.f32 0.5, %v1710_v24 }
 0x356   : > { %v1615_v28 = vpop.permute.xlu0 %1614  ;;  %v1719_v10 = vmul.f32 0.5, %v1711_v59 }
 0x357   : > { %v1617_v9 = vpop.permute.xlu1 %1616  ;;  %1848 = vrot.lane.b32.xlu1 %v1785_v6, %s11171_s13  ;;  %v1792_v15 = vrot.slane %v1718_v12, %v13760_v58  ;;  %v1632_v32 = vmul.f32 %v1615_v28, %v1592_v17 }
 0x358   : > { %v1806_v29 = vrot.slane %v1719_v10, %v13760_v58  ;;  %v1633_v35 = vmul.f32 %v1617_v9, %v1593_v30 }
 0x359   : > { %v1799_v19 = vrot.slane %v1792_v15, %v13760_v58 }
 0x35a   : > { %v1679_v31 = vpop.permute.xlu0 %1678  ;;  %v1813_v16 = vrot.slane %v1806_v29, %v13760_v58 }
 0x35b   : > { %v1696_v33 = vmul.f32 %v11754_v5, %v1679_v31  ;;  %v1681_v34 = vpop.permute.xlu1 %1680  ;;  %1850 = vrot.lane.b32.xlu0 %v1799_v19, %s11171_s13 }
 0x35c   : > { %v1697_v53 = vmul.f32 %v11756_v8, %v1681_v34  ;;  %1852 = vrot.lane.b32.xlu1 %v1813_v16, %s11171_s13 }
 0x35d   : > { %v1704_v20 = vadd.f32 %v1696_v33, %v1632_v32  ;;  %v13663_v32 = vmov (%p845_p0), 0.0|0.0  }
 0x35e   : > { %v1705_v22 = vadd.f32 %v1697_v53, %v1633_v35  ;;  %10188 = vmatprep.subr.bf16.mxu0 (%p845_p0), %v13663_v32  ;;  %10194 = vmatprep.subr.bf16.mxu1 (%p845_p0), %v13663_v32 }
 0x35f   : > { %v1712_v18 = vsub.f32 %v1704_v20, %v1679_v31  ;;  %10190 = vmatpush3.bf16.msra.mxu0 (%p845_p0), %v11604_v47  ;;  %10196 = vmatpush3.bf16.msra.mxu1 (%p845_p0), %v11608_v26 }
 0x360   : > { %v1713_v21 = vsub.f32 %v1705_v22, %v1681_v34  ;;  %10191 = vmatprep.subr.bf16.mxu0 (%p845_p0), %v13663_v32  ;;  %10197 = vmatprep.subr.bf16.mxu1 (%p845_p0), %v13663_v32 }
 0x361   : > { %v1720_v11 = vmul.f32 0.5, %v1712_v18 }
 0x362   : > { %v1721_v13 = vmul.f32 0.5, %v1713_v21 }
 0x363   : > { %v1820_v7 = vrot.slane %v1720_v11, %v13760_v58  ;;  %10193 = vmatpush3.bf16.msra.mxu0 (%p845_p0), %v11614_v56  ;;  %10199 = vmatpush3.bf16.msra.mxu1 (%p845_p0), %v11618_v55  ;;  %v13770_v11 = vld [vmem:[#allocation39_spill] sm:$0xff] (%p845_p0) }
 0x364   : > { %v1834_v23 = vrot.slane %v1721_v13, %v13760_v58  ;;  %10200 = vmatprep.subr.bf16.mxu0 (%p845_p0), %v13663_v32  ;;  %10206 = vmatprep.subr.bf16.mxu1 (%p845_p0), %v13663_v32 }
 0x365   : > { %v1827_v5 = vrot.slane %v1820_v7, %v13760_v58 }
 0x366   : > { %v1841_v3 = vrot.slane %v1834_v23, %v13760_v58 }
 0x367   : > { %1854 = vrot.lane.b32.xlu0 %v1827_v5, %s11171_s13  ;;  %v13771_v5 = vld [vmem:[#allocation42_spill] sm:$0xff] (%p845_p0) }
 0x368   : > { %1856 = vrot.lane.b32.xlu1 %v1841_v3, %s11171_s13 }
 0x3bd   : > { %v1843_v8 = vpop.permute.xlu0 %1842 }
 0x3be   : > { %v1866_v24 = vadd.f32 %v11157_v38, %v1843_v8  }
 0x3c0   : > { %v13768_v38 = vmov %v1866_v24  ;;  %1875 = vst.msk [vmem:[#allocation2] sm:$0x1] (%p845_p0), %vm1874_vm5, %v1866_v24 }
 0x3c1   : > { %v1845_v14 = vpop.permute.xlu1 %1844  ;;  %v13769_v38 = vmov (%p845_p0), 0.0  }
 0x3c2   : > { %v1867_v59 = vadd.f32 %v11153_v39, %v1845_v14   ;;  %9444 = vmatprep.mubr.msk.f32.mxu0 (%p845_p0), %vm11164_vm0, %v13769_v38  ;;  %9455 = vmatprep.mubr.msk.f32.mxu1 (%p845_p0), %vm11164_vm0, %v13769_v38  ;;  %v13772_v14 = vld [vmem:[#allocation37_spill] sm:$0xff] (%p845_p0) }
 0x3c4   : > { %v13767_v39 = vmov %v1867_v59  ;;  %1876 = vst.msk [vmem:[#allocation2 + $0x1] sm:$0x1] (%p845_p0), %vm1874_vm5, %v1867_v59 }
 0x3c5   : > { %v1847_v6 = vpop.permute.xlu0 %1846 }
 0x3c6   : > { %v1868_v12 = vadd.f32 %v11149_v40, %v1847_v6   ;;  %v13773_v6 = vld [vmem:[#allocation40_spill] sm:$0xff] (%p845_p0) }
 0x3c7   :  { %v11883_v39 = vld [vmem:[#allocation2] sm:$0x1] (%p845_p0) }
 0x3c8   : > { %v13766_v40 = vmov %v1868_v12  ;;  %1877 = vst.msk [vmem:[#allocation2 + $0x2] sm:$0x1] (%p845_p0), %vm1874_vm5, %v1868_v12  ;;  %9445 = vmatmul.mubr.msk.f32.vlgmr.msra.gmra.mrb[0].mxu0 (%p845_p0), %vm857_vm4, %v11883_v39 }
 0x3c9   : > { %v1849_v28 = vpop.permute.xlu1 %1848  ;;  %10202 = vmatpush3.bf16.msra.mxu0 (%p845_p0), %v11626_v48  ;;  %9466 = vmatprep.mubr.msk.f32.mxu0 (%p845_p0), %vm11164_vm0, %v13769_v38 }
 0x3ca   : > { %v1869_v10 = vadd.f32 %v11145_v42, %v1849_v28   ;;  %10203 = vmatprep.subr.bf16.mxu0 (%p845_p0), %v13663_v32 }
 0x3cb   :  { %v11885_v40 = vld [vmem:[#allocation2 + $0x1] sm:$0x1] (%p845_p0) }
 0x3cc   : > { %v13765_v42 = vmov %v1869_v10  ;;  %1878 = vst.msk [vmem:[#allocation2 + $0x3] sm:$0x1] (%p845_p0), %vm1874_vm5, %v1869_v10  ;;  %9456 = vmatmul.mubr.msk.f32.vlgmr.msra.gmra.mrb[0].mxu1 (%p845_p0), %vm857_vm4, %v11885_v40 }
 0x3cd   : > { %v1851_v9 = vpop.permute.xlu0 %1850  ;;  %10208 = vmatpush3.bf16.msra.mxu1 (%p845_p0), %v11630_v60  ;;  %9477 = vmatprep.mubr.msk.f32.mxu1 (%p845_p0), %vm11164_vm0, %v13769_v38 }
 0x3ce   : > { %v1870_v15 = vadd.f32 %v11141_v43, %v1851_v9   ;;  %v1853_v29 = vpop.permute.xlu1 %1852  ;;  %10209 = vmatprep.subr.bf16.mxu1 (%p845_p0), %v13663_v32  ;;  %10205 = vmatpush3.bf16.msra.mxu0 (%p845_p0), %v11640_v63 }
 0x3cf   : > { %v1871_v17 = vadd.f32 %v11137_v44, %v1853_v29   ;;  %v11901_v42 = vld [vmem:[#allocation2 + $0x2] sm:$0x1] (%p845_p0)  ;;  %10212 = vmatprep.subr.bf16.mxu0 (%p845_p0), %v13663_v32  ;;  %v13774_v29 = vld [vmem:[#allocation41_spill] sm:$0xff] (%p845_p0) }
 0x3d0   : > { %v13764_v43 = vmov %v1870_v15  ;;  %1879 = vst.msk [vmem:[#allocation2 + $0x4] sm:$0x1] (%p845_p0), %vm1874_vm5, %v1870_v15 }
 0x3d1   : > { %v13763_v44 = vmov %v1871_v17  ;;  %1880 = vst.msk [vmem:[#allocation2 + $0x5] sm:$0x1] (%p845_p0), %vm1874_vm5, %v1871_v17  ;;  %10211 = vmatpush3.bf16.msra.mxu1 (%p845_p0), %v11644_v49  ;;  %9467 = vmatmul.mubr.msk.f32.vlgmr.msra.gmra.mrb[2].mxu0 (%p845_p0), %vm857_vm4, %v11901_v42 }
 0x3d2   :  { %10218 = vmatprep.subr.bf16.mxu1 (%p845_p0), %v13663_v32  ;;  %10214 = vmatpush3.bf16.msra.mxu0 (%p845_p0), %v11652_v25 }
 0x3d3   :  { %v11903_v43 = vld [vmem:[#allocation2 + $0x3] sm:$0x1] (%p845_p0)  ;;  %10215 = vmatprep.subr.bf16.mxu0 (%p845_p0), %v13663_v32  ;;  %9488 = vmatprep.mubr.msk.f32.mxu0 (%p845_p0), %vm11164_vm0, %v13769_v38 }
 0x3d4   :  { %9478 = vmatmul.mubr.msk.f32.vlgmr.msra.gmra.mrb[2].mxu1 (%p845_p0), %vm857_vm4, %v11903_v43 }
 0x3d5   :  { %10220 = vmatpush3.bf16.msra.mxu1 (%p845_p0), %v11656_v51  ;;  %9499 = vmatprep.mubr.msk.f32.mxu1 (%p845_p0), %vm11164_vm0, %v13769_v38 }
 0x3d6   :  { %10221 = vmatprep.subr.bf16.mxu1 (%p845_p0), %v13663_v32  ;;  %10217 = vmatpush3.bf16.msra.mxu0 (%p845_p0), %v11666_v54 }
 0x3d7   :  { %847 = sbr.rel (!%p845_p0) target bundleno = 246 (0xf6), region = 55  ;;  %v11921_v44 = vld [vmem:[#allocation2 + $0x4] sm:$0x1] (%p845_p0)  ;;  %10224 = vmatprep.subr.bf16.mxu0 (%p845_p0), %v13663_v32 }
 0x3d9   : > { %v1855_v19 = vpop.permute.xlu0 %1854  ;;  %10223 = vmatpush3.bf16.msra.mxu1 (%p845_p0), %v11670_v52  ;;  %9489 = vmatmul.mubr.msk.f32.vlgmr.msra.gmra.mrb[4].mxu0 (%p845_p0), %vm857_vm4, %v11921_v44 }
 0x3da   : > { %v1872_v30 = vadd.f32 %v11133_v45, %v1855_v19   ;;  %v1857_v31 = vpop.permute.xlu1 %1856  ;;  %10230 = vmatprep.subr.bf16.mxu1 (%p845_p0), %v13663_v32  ;;  %10226 = vmatpush3.bf16.msra.mxu0 (%p845_p0), %v11678_v0  ;;  %v13775_v19 = vld [vmem:[#allocation43_spill] sm:$0xff] (%p845_p0) }
 0x3db   : > { %v1873_v16 = vadd.f32 %v11129_v46, %v1857_v31   ;;  %10227 = vmatprep.subr.bf16.mxu0 (%p845_p0), %v13663_v32  ;;  %9510 = vmatprep.mubr.msk.f32.mxu0 (%p845_p0), %vm11164_vm0, %v13769_v38 }
 0x3dc   : > { %v13762_v45 = vmov %v1872_v30  ;;  %1881 = vst.msk [vmem:[#allocation2 + $0x6] sm:$0x1] (%p845_p0), %vm1874_vm5, %v1872_v30 }
 0x3dd   : > { %v13761_v46 = vmov %v1873_v16  ;;  %1882 = vst.msk [vmem:[#allocation2 + $0x7] sm:$0x1] (%p845_p0), %vm1874_vm5, %v1873_v16  ;;  %v11923_v45 = vld [vmem:[#allocation2 + $0x5] sm:$0x1] (%p845_p0) }
 0x3de   :  { %9500 = vmatmul.mubr.msk.f32.vlgmr.msra.gmra.mrb[4].mxu1 %vm857_vm4, %v11923_v45  ;;  %10229 = vmatpush3.bf16.msra.mxu0 %v11692_v2 }
 0x3df   :  { %10232 = vmatpush3.bf16.msra.mxu1 %v11682_v1  ;;  %9521 = vmatprep.mubr.msk.f32.mxu1 %vm11164_vm0, %v13769_v38 }
 0x3e0   :  { %10233 = vmatprep.subr.bf16.mxu1 %v13663_v32  ;;  %10236 = vmatprep.subr.bf16.mxu0 %v13663_v32 }
 0x3e3   :  { %10235 = vmatpush3.bf16.msra.mxu1 %v11696_v4  ;;  %v11941_v46 = vld [vmem:[#allocation2 + $0x6] sm:$0x1] }
 0x3e4   :  { %v11943_v58 = vld [vmem:[#allocation2 + $0x7] sm:$0x1]  ;;  %10242 = vmatprep.subr.bf16.mxu1 %v13663_v32  ;;  %9511 = vmatmul.mubr.msk.f32.vlgmr.msra.gmra.mrb[6].mxu0 %vm857_vm4, %v11941_v46 }
 0x3e5   :  { %10238 = vmatpush3.bf16.msra.mxu0 %v11604_v47  ;;  %9532 = vmatprep.mubr.msk.f32.mxu0 %vm11164_vm0, %v13769_v38 }
 0x3e6   :  { %9522 = vmatmul.mubr.msk.f32.vlgmr.msra.gmra.mrb[6].mxu1 %vm857_vm4, %v11943_v58  ;;  %10239 = vmatprep.subr.bf16.mxu0 %v13663_v32 }
 0x3e7   :  { %10244 = vmatpush3.bf16.msra.mxu1 %v11608_v26  ;;  %9543 = vmatprep.mubr.msk.f32.mxu1 %vm11164_vm0, %v13769_v38 }
 0x3e8   :  { %10245 = vmatprep.subr.bf16.mxu1 %v13663_v32 }
 0x3e9   :  { %10241 = vmatpush3.bf16.msra.mxu0 %v11614_v56 }
 0x3ea   :  { %10248 = vmatprep.subr.bf16.mxu0 %v13663_v32 }
 0x3eb   :  { %10247 = vmatpush3.bf16.msra.mxu1 %v11618_v55 }
 0x3ec   :  { %10254 = vmatprep.subr.bf16.mxu1 %v13663_v32 }
 0x49b   :  { %v1961_v33 = vpop.f32.mrb[0].mxu0 }
 0x49c   :  { %v1962_v35 = vadd.f32 %v1961_v33, %v11447_v57  ;;  %v9446_v53 = vpop.f32.mrb[1].mxu0 }
 0x49d   :  { %v13776_v53 = vld [vmem:[#allocation45_spill] sm:$0xff] }
 0x49e   :  { %2540 = vrot.lane.b32.xlu0 %v1962_v35, %s11173_s5  ;;  %v2476_v33 = vadd.f32 %v1962_v35, %v11533_v37 }
 0x49f   :  { %v2034_v34 = vpop.f32.mrb[0].mxu1 }
 0x4a0   :  { %v9457_v20 = vpop.f32.mrb[1].mxu1  ;;  %v2035_v22 = vadd.f32 %v2034_v34, %v11464_v62  ;;  %v2484_v34 = vsub.f32 0.0, %v2476_v33 }
 0x4a2   :  { %2542 = vrot.lane.b32.xlu0 %v2035_v22, %s11173_s5  ;;  %v2477_v20 = vadd.f32 %v2035_v22, %v13776_v53 }
 0x4a4   :  { %v2107_v18 = vpop.f32.mrb[2].mxu0 }
 0x4a5   :  { %v2108_v13 = vadd.f32 %v2107_v18, %v13770_v11  ;;  %v9468_v7 = vpop.f32.mrb[3].mxu0  ;;  %v2492_v18 = vmul.f32 1.442695, %v2484_v34 }
 0x4a7   :  { %v2180_v21 = vpop.f32.mrb[2].mxu1  ;;  %2544 = vrot.lane.b32.xlu1 %v2108_v13, %s11173_s5  ;;  %v2478_v7 = vadd.f32 %v2108_v13, %v11541_v36  ;;  %10707 = vpow2.f32 %v2492_v18 }
 0x4a8   :  { %v9479_v23 = vpop.f32.mrb[3].mxu1  ;;  %v2181_v3 = vadd.f32 %v2180_v21, %v13771_v5  ;;  %v2485_v21 = vsub.f32 0.0, %v2477_v20  ;;  %v13777_v20 = vld [vmem:[#allocation46_spill] sm:$0xff] }
 0x4aa   :  { %v2494_v23 = vmul.f32 1.442695, %v2485_v21 }
 0x4ab   :  { %2546 = vrot.lane.b32.xlu1 %v2181_v3, %s11173_s5 }
 0x4ac   :  { %v2253_v8 = vpop.f32.mrb[4].mxu0  ;;  %10709 = vpow2.f32 %v2494_v23 }
 0x4ad   :  { %v2254_v59 = vadd.f32 %v2253_v8, %v13772_v14  ;;  %v9490_v28 = vpop.f32.mrb[5].mxu0  ;;  %v2486_v8 = vsub.f32 0.0, %v2478_v7 }
 0x4af   :  { %2548 = vrot.lane.b32.xlu0 %v2254_v59, %s11173_s5  ;;  %v2480_v28 = vadd.f32 %v2254_v59, %v11547_v50 }
 0x4b1   :  { %v2326_v24 = vpop.f32.mrb[4].mxu1  ;;  %v2488_v35 = vsub.f32 0.0, %v2480_v28 }
 0x4b2   :  { %v2327_v12 = vadd.f32 %v2326_v24, %v13773_v6  ;;  %v9501_v10 = vpop.f32.mrb[5].mxu1  ;;  %v2479_v24 = vadd.f32 %v2181_v3, %v11544_v27 }
 0x4b3   :  { %v2496_v10 = vmul.f32 1.442695, %v2486_v8  ;;  %v2500_v33 = vmul.f32 1.442695, %v2488_v35 }
 0x4b4   :  { %2550 = vrot.lane.b32.xlu1 %v2327_v12, %s11173_s5 }
 0x4b5   :  { %10711 = vpow2.f32 %v2496_v10 }
 0x4b7   :  { %v2399_v9 = vpop.f32.mrb[6].mxu0 }
 0x4b8   :  { %v2400_v17 = vadd.f32 %v2399_v9, %v13774_v29  ;;  %v9512_v31 = vpop.f32.mrb[7].mxu0  ;;  %v2487_v9 = vsub.f32 0.0, %v2479_v24 }
 0x4b9   :  { %v2472_v15 = vpop.f32.mrb[6].mxu1 }
 0x4ba   :  { %v2473_v30 = vadd.f32 %v2472_v15, %v13775_v19  ;;  %v9523_v16 = vpop.f32.mrb[7].mxu1  ;;  %2552 = vrot.lane.b32.xlu0 %v2400_v17, %s11173_s5  ;;  %v2481_v15 = vadd.f32 %v2327_v12, %v11550_v61  ;;  %v2498_v31 = vmul.f32 1.442695, %v2487_v9  ;;  %v2482_v13 = vadd.f32 %v2400_v17, %v11553_v41 }
 0x4bb   :  { %v10708_v16 = vpop.eup %10707 }
 0x4bc   :  { %2554 = vrot.lane.b32.xlu1 %v2473_v30, %s11173_s5  ;;  %v2489_v22 = vsub.f32 0.0, %v2481_v15  ;;  %10713 = vpow2.f32 %v2498_v31  ;;  %v2483_v18 = vadd.f32 %v2473_v30, %v13777_v20  ;;  %v2508_v3 = vadd.f32 1.0, %v10708_v16  ;;  %v10710_v21 = vpop.eup %10709 }
 0x4bd   :  { %10715 = vpow2.f32 %v2500_v33  ;;  %v2490_v59 = vsub.f32 0.0, %v2482_v13  ;;  %v2509_v12 = vadd.f32 1.0, %v10710_v21 }
 0x4be   :  { %v2502_v34 = vmul.f32 1.442695, %v2489_v22  ;;  %v2491_v7 = vsub.f32 0.0, %v2483_v18 }
 0x4bf   :  { %v10712_v23 = vpop.eup %10711  ;;  %v2504_v8 = vmul.f32 1.442695, %v2490_v59 }
 0x4c0   :  { %10717 = vpow2.f32 %v2502_v34  ;;  %v2506_v24 = vmul.f32 1.442695, %v2491_v7  ;;  %v2510_v28 = vadd.f32 1.0, %v10712_v23 }
 0x4c1   :  { %10719 = vrcp.f32 %v2508_v3 }
 0x4c2   :  { %10721 = vrcp.f32 %v2509_v12 }
 0x4c3   :  { %10723 = vpow2.f32 %v2504_v8 }
 0x4c4   :  { %10725 = vpow2.f32 %v2506_v24 }
 0x4c5   :  { %10727 = vrcp.f32 %v2510_v28 }
 0x4c6   :  { %v10714_v10 = vpop.eup %10713 }
 0x4c7   :  { %v10716_v17 = vpop.eup %10715  ;;  %v2511_v9 = vadd.f32 1.0, %v10714_v10 }
 0x4c8   :  { %v2512_v31 = vadd.f32 1.0, %v10716_v17 }
 0x4c9   :  { %10729 = vrcp.f32 %v2511_v9 }
 0x4ca   :  { %v10718_v30 = vpop.eup %10717  ;;  %10731 = vrcp.f32 %v2512_v31 }
 0x4cb   :  { %v11987_v15 = vpop.eup %10719  ;;  %v2513_v16 = vadd.f32 1.0, %v10718_v30 }
 0x4cc   :  { %v11991_v33 = vpop.eup %10721 }
 0x4cd   :  { %v10724_v18 = vpop.eup %10723  ;;  %10733 = vrcp.f32 %v2513_v16 }
 0x4ce   :  { %v10726_v3 = vpop.eup %10725  ;;  %v2514_v7 = vadd.f32 1.0, %v10724_v18 }
 0x4cf   :  { %v11995_v21 = vpop.eup %10727  ;;  %v2515_v23 = vadd.f32 1.0, %v10726_v3 }
 0x4d0   :  { %10735 = vrcp.f32 %v2514_v7 }
 0x4d1   :  { %10737 = vrcp.f32 %v2515_v23 }
 0x4d3   :  { %v11999_v8 = vpop.eup %10729 }
 0x4d4   :  { %v12002_v10 = vpop.eup %10731 }
 0x4d7   :  { %v12005_v17 = vpop.eup %10733 }
 0x510   :  { %v2541_v35 = vpop.permute.xlu0 %2540 }
 0x511   :  { %v2564_v22 = vmul.f32 %v11987_v15, %v2541_v35 }
 0x513   :  { %2580 = vrot.lane.b32.xlu0 %v2564_v22, %s11173_s5  ;;  %v12011_v22 = vpop.eup %10735 }
 0x514   :  { %v2543_v13 = vpop.permute.xlu0 %2542  ;;  %v12013_v16 = vpop.eup %10737 }
 0x515   :  { %v2565_v34 = vmul.f32 %v11991_v33, %v2543_v13 }
 0x517   :  { %2582 = vrot.lane.b32.xlu1 %v2565_v34, %s11173_s5 }
 0x519   :  { %v2545_v59 = vpop.permute.xlu1 %2544 }
 0x51a   :  { %v2566_v12 = vmul.f32 %v11995_v21, %v2545_v59  ;;  %v13778_v59 = vld [vmem:[#allocation44_spill] sm:$0xff] }
 0x51b   :  { %v2675_v7 = vrot.slane %v11885_v40, %v13778_v59 }
 0x51c   :  { %2584 = vrot.lane.b32.xlu0 %v2566_v12, %s11173_s5  ;;  %v2671_v12 = vrot.slane %v11883_v39, %v13778_v59 }
 0x51d   :  { %v2547_v24 = vpop.permute.xlu1 %2546 }
 0x51e   :  { %v2567_v28 = vmul.f32 %v11999_v8, %v2547_v24 }
 0x520   :  { %2586 = vrot.lane.b32.xlu1 %v2567_v28, %s11173_s5 }
 0x521   :  { %v2549_v30 = vpop.permute.xlu0 %2548 }
 0x522   :  { %v2568_v31 = vmul.f32 %v12002_v10, %v2549_v30 }
 0x524   :  { %2588 = vrot.lane.b32.xlu0 %v2568_v31, %s11173_s5 }
 0x526   :  { %v2551_v9 = vpop.permute.xlu1 %2550 }
 0x527   :  { %v2569_v35 = vmul.f32 %v12005_v17, %v2551_v9 }
 0x529   :  { %2590 = vrot.lane.b32.xlu1 %v2569_v35, %s11173_s5 }
 0x52c   :  { %v2553_v34 = vpop.permute.xlu0 %2552 }
 0x52d   :  { %v2570_v3 = vmul.f32 %v12011_v22, %v2553_v34 }
 0x52e   :  { %v2555_v13 = vpop.permute.xlu1 %2554 }
 0x52f   :  { %v2571_v18 = vmul.f32 %v12013_v16, %v2555_v13  ;;  %2592 = vrot.lane.b32.xlu0 %v2570_v3, %s11173_s5  ;;  %v2679_v13 = vrot.slane %v11901_v42, %v13778_v59  ;;  %v2687_v42 = vrot.slane %v11921_v44, %v13778_v59 }
 0x531   :  { %2594 = vrot.lane.b32.xlu1 %v2571_v18, %s11173_s5 }
 0x533   :  { %2700 = vrot.lane.b32.xlu0 %v2671_v12, %s11174_s14  ;;  %v2683_v12 = vrot.slane %v11903_v43, %v13778_v59  ;;  %v2691_v43 = vrot.slane %v11923_v45, %v13778_v59  ;;  %v2695_v45 = vrot.slane %v11941_v46, %v13778_v59 }
 0x535   :  { %2702 = vrot.lane.b32.xlu1 %v2675_v7, %s11174_s14 }
 0x585   :  { %v2581_v23 = vpop.permute.xlu0 %2580 }
 0x586   :  { %v2604_v24 = vadd.f32 %v2581_v23, %v11533_v37 }
 0x588   :  { %10739 = vtanh.f32 %v2604_v24 }
 0x589   :  { %v2583_v28 = vpop.permute.xlu1 %2582 }
 0x58a   :  { %v2605_v9 = vadd.f32 %v2583_v28, %v13776_v53 }
 0x58c   :  { %10741 = vtanh.f32 %v2605_v9 }
 0x58e   :  { %v2585_v30 = vpop.permute.xlu0 %2584 }
 0x58f   :  { %v2606_v35 = vadd.f32 %v2585_v30, %v11541_v36 }
 0x591   :  { %10743 = vtanh.f32 %v2606_v35 }
 0x592   :  { %v2587_v40 = vpop.permute.xlu1 %2586  ;;  %v10740_v31 = vpop.eup %10739 }
 0x593   :  { %v2607_v39 = vadd.f32 %v2587_v40, %v11544_v27  ;;  %2636 = vrot.lane.b32.xlu0 %v10740_v31, %s11175_s15 }
 0x595   :  { %10745 = vtanh.f32 %v2607_v39 }
 0x596   :  { %v2589_v18 = vpop.permute.xlu0 %2588  ;;  %v10742_v3 = vpop.eup %10741 }
 0x597   :  { %v2608_v7 = vadd.f32 %v2589_v18, %v11547_v50  ;;  %2638 = vrot.lane.b32.xlu1 %v10742_v3, %s11175_s15  ;;  %2704 = vrot.lane.b32.xlu0 %v2679_v13, %s11174_s14  ;;  %v2620_v3 = vsub.f32 1.0, %v11987_v15 }
 0x599   :  { %10747 = vtanh.f32 %v2608_v7 }
 0x59b   :  { %v2591_v34 = vpop.permute.xlu1 %2590  ;;  %v10744_v24 = vpop.eup %10743  ;;  %2706 = vrot.lane.b32.xlu1 %v2683_v12, %s11174_s14 }
 0x59c   :  { %v2609_v23 = vadd.f32 %v2591_v34, %v11550_v61  ;;  %2640 = vrot.lane.b32.xlu0 %v10744_v24, %s11175_s15  ;;  %v2699_v34 = vrot.slane %v11943_v58, %v13778_v59  ;;  %v2621_v58 = vsub.f32 1.0, %v11991_v33 }
 0x59e   :  { %10749 = vtanh.f32 %v2609_v23 }
 0x59f   :  { %v10746_v30 = vpop.eup %10745 }
 0x5a0   :  { %2642 = vrot.lane.b32.xlu1 %v10746_v30, %s11175_s15  ;;  %2708 = vrot.lane.b32.xlu0 %v2687_v42, %s11174_s14 }
 0x5a1   :  { %v2593_v9 = vpop.permute.xlu0 %2592 }
 0x5a2   :  { %v2610_v40 = vadd.f32 %v2593_v9, %v11553_v41 }
 0x5a3   :  { %v2595_v28 = vpop.permute.xlu1 %2594  ;;  %v10748_v31 = vpop.eup %10747 }
 0x5a4   :  { %v2611_v35 = vadd.f32 %v2595_v28, %v13777_v20  ;;  %2710 = vrot.lane.b32.xlu1 %v2691_v43, %s11174_s14  ;;  %2644 = vrot.lane.b32.xlu0 %v10748_v31, %s11175_s15 }
 0x5a5   :  { %v2701_v18 = vpop.permute.xlu0 %2700 }
 0x5a6   :  { %10751 = vtanh.f32 %v2611_v35  ;;  %v2724_v23 = vmul.f32 %v11987_v15, %v2701_v18  ;;  %v2622_v35 = vsub.f32 1.0, %v11995_v21 }
 0x5a7   :  { %10753 = vtanh.f32 %v2610_v40  ;;  %v2703_v7 = vpop.permute.xlu1 %2702 }
 0x5a8   :  { %v10750_v44 = vpop.eup %10749  ;;  %v2725_v46 = vmul.f32 %v11991_v33, %v2703_v7  ;;  %v2623_v33 = vsub.f32 1.0, %v11999_v8 }
 0x5a9   :  { %2646 = vrot.lane.b32.xlu1 %v10750_v44, %s11175_s15 }
 0x5b0   :  { %v10752_v39 = vpop.eup %10751 }
 0x5b1   :  { %v10754_v13 = vpop.eup %10753  ;;  %2650 = vrot.lane.b32.xlu1 %v10752_v39, %s11175_s15 }
 0x5b2   :  { %2648 = vrot.lane.b32.xlu0 %v10754_v13, %s11175_s15 }
 0x5b5   :  { %2714 = vrot.lane.b32.xlu1 %v2699_v34, %s11174_s14 }
 0x5b6   :  { %2712 = vrot.lane.b32.xlu0 %v2695_v45, %s11174_s14 }
 0x605   :  { %v2637_v12 = vpop.permute.xlu0 %2636 }
 0x606   :  { %v2660_v24 = vmul.f32 %v2637_v12, %v2620_v3 }
 0x608   :  { %v12061_v42 = vadd.f32 %v2724_v23, %v2660_v24  ;;  %v2625_v24 = vsub.f32 1.0, %v12005_v17 }
 0x609   :  { %v2639_v28 = vpop.permute.xlu1 %2638  ;;  %v2705_v9 = vpop.permute.xlu0 %2704 }
 0x60a   :  { %v2661_v59 = vmul.f32 %v2639_v28, %v2621_v58  ;;  %2741 = vrot.lane.b32.xlu0 %v12061_v42, %s11175_s15  ;;  %v2726_v15 = vmul.f32 %v11995_v21, %v2705_v9  ;;  %v2624_v21 = vsub.f32 1.0, %v12002_v10 }
 0x60c   :  { %v12067_v30 = vadd.f32 %v2725_v46, %v2661_v59 }
 0x60d   :  { %v2707_v40 = vpop.permute.xlu1 %2706 }
 0x60e   :  { %v2641_v43 = vpop.permute.xlu0 %2640  ;;  %2816 = vrot.lane.b32.xlu1 %v12067_v30, %s11175_s15  ;;  %v2727_v34 = vmul.f32 %v11999_v8, %v2707_v40  ;;  %v2626_v40 = vsub.f32 1.0, %v12011_v22 }
 0x60f   :  { %v2662_v31 = vmul.f32 %v2641_v43, %v2622_v35 }
 0x611   :  { %v12073_v44 = vadd.f32 %v2726_v15, %v2662_v31 }
 0x612   :  { %v2643_v39 = vpop.permute.xlu1 %2642  ;;  %v2709_v13 = vpop.permute.xlu0 %2708 }
 0x613   :  { %v2663_v45 = vmul.f32 %v2643_v39, %v2623_v33  ;;  %2891 = vrot.lane.b32.xlu0 %v12073_v44, %s11175_s15  ;;  %v2728_v12 = vmul.f32 %v12002_v10, %v2709_v13  ;;  %v2627_v10 = vsub.f32 1.0, %v12013_v16 }
 0x615   :  { %v12079_v18 = vadd.f32 %v2727_v34, %v2663_v45 }
 0x616   :  { %v2711_v3 = vpop.permute.xlu1 %2710  ;;  %v2645_v7 = vpop.permute.xlu0 %2644 }
 0x617   :  { %2966 = vrot.lane.b32.xlu1 %v12079_v18, %s11175_s15  ;;  %v2664_v23 = vmul.f32 %v2645_v7, %v2624_v21  ;;  %v2729_v28 = vmul.f32 %v12005_v17, %v2711_v3 }
 0x619   :  { %v12086_v58 = vadd.f32 %v2728_v12, %v2664_v23 }
 0x61b   :  { %v2647_v8 = vpop.permute.xlu1 %2646  ;;  %3041 = vrot.lane.b32.xlu0 %v12086_v58, %s11175_s15 }
 0x61c   :  { %v2665_v9 = vmul.f32 %v2647_v8, %v2625_v24 }
 0x61e   :  { %v12091_v46 = vadd.f32 %v2729_v28, %v2665_v9 }
 0x620   :  { %3116 = vrot.lane.b32.xlu1 %v12091_v46, %s11175_s15 }
 0x623   :  { %v2651_v59 = vpop.permute.xlu1 %2650 }
 0x624   :  { %v2649_v35 = vpop.permute.xlu0 %2648  ;;  %v2667_v15 = vmul.f32 %v2651_v59, %v2627_v10 }
 0x625   :  { %v2666_v33 = vmul.f32 %v2649_v35, %v2626_v40 }
 0x627   :  { %v2715_v43 = vpop.permute.xlu1 %2714 }
 0x628   :  { %v2731_v31 = vmul.f32 %v12013_v16, %v2715_v43  ;;  %v2713_v17 = vpop.permute.xlu0 %2712 }
 0x629   :  { %v2730_v39 = vmul.f32 %v12011_v22, %v2713_v17 }
 0x62a   :  { %v12099_v13 = vadd.f32 %v2731_v31, %v2667_v15 }
 0x62b   :  { %v12101_v34 = vadd.f32 %v2730_v39, %v2666_v33 }
 0x62c   :  { %3266 = vrot.lane.b32.xlu1 %v12099_v13, %s11175_s15 }
 0x62d   :  { %3191 = vrot.lane.b32.xlu0 %v12101_v34, %s11175_s15 }
 0x67c   :  { %v2742_v45 = vpop.permute.xlu0 %2741 }
 0x67d   :  { %9533 = vmatmul.mubr.msk.f32.vlgmr.msra.gmra.mrb[8].mxu0 %vm857_vm4, %v2742_v45 }
 0x67e   :  { %10250 = vmatpush3.bf16.msra.mxu0 %v11626_v48  ;;  %9554 = vmatprep.mubr.msk.f32.mxu0 %vm11164_vm0, %v13769_v38 }
 0x67f   :  { %10251 = vmatprep.subr.bf16.mxu0 %v13663_v32 }
 0x680   :  { %v2817_v22 = vpop.permute.xlu1 %2816 }
 0x681   :  { %9544 = vmatmul.mubr.msk.f32.vlgmr.msra.gmra.mrb[8].mxu1 %vm857_vm4, %v2817_v22 }
 0x682   :  { %10253 = vmatpush3.bf16.msra.mxu0 %v11640_v63  ;;  %10256 = vmatpush3.bf16.msra.mxu1 %v11630_v60 }
 0x683   :  { %10257 = vmatprep.subr.bf16.mxu1 %v13663_v32  ;;  %10260 = vmatprep.subr.bf16.mxu0 %v13663_v32 }
 0x684   :  { %9565 = vmatprep.mubr.msk.f32.mxu1 %vm11164_vm0, %v13769_v38 }
 0x685   :  { %v2892_v16 = vpop.permute.xlu0 %2891 }
 0x686   :  { %9555 = vmatmul.mubr.msk.f32.vlgmr.msra.gmra.mrb[10].mxu0 %vm857_vm4, %v2892_v16  ;;  %10259 = vmatpush3.bf16.msra.mxu1 %v11644_v49 }
 0x687   :  { %10262 = vmatpush3.bf16.msra.mxu0 %v11652_v25  ;;  %10266 = vmatprep.subr.bf16.mxu1 %v13663_v32 }
 0x688   :  { %10263 = vmatprep.subr.bf16.mxu0 %v13663_v32  ;;  %9576 = vmatprep.mubr.msk.f32.mxu0 %vm11164_vm0, %v13769_v38 }
 0x689   :  { %v2967_v3 = vpop.permute.xlu1 %2966 }
 0x68a   :  { %9566 = vmatmul.mubr.msk.f32.vlgmr.msra.gmra.mrb[10].mxu1 %vm857_vm4, %v2967_v3 }
 0x68b   :  { %10265 = vmatpush3.bf16.msra.mxu0 %v11666_v54  ;;  %10268 = vmatpush3.bf16.msra.mxu1 %v11656_v51 }
 0x68c   :  { %10269 = vmatprep.subr.bf16.mxu1 %v13663_v32  ;;  %9587 = vmatprep.mubr.msk.f32.mxu1 %vm11164_vm0, %v13769_v38 }
 0x68d   :  { %10272 = vmatprep.subr.bf16.mxu0 %v13663_v32  ;;  %v3042_v21 = vpop.permute.xlu0 %3041 }
 0x68e   :  { %9577 = vmatmul.mubr.msk.f32.vlgmr.msra.gmra.mrb[12].mxu0 %vm857_vm4, %v3042_v21 }
 0x68f   :  { %10271 = vmatpush3.bf16.msra.mxu1 %v11670_v52  ;;  %10274 = vmatpush3.bf16.msra.mxu0 %v11678_v0 }
 0x690   :  { %10278 = vmatprep.subr.bf16.mxu1 %v13663_v32  ;;  %10275 = vmatprep.subr.bf16.mxu0 %v13663_v32 }
 0x691   :  { %9598 = vmatprep.mubr.msk.f32.mxu0 %vm11164_vm0, %v13769_v38 }
 0x692   :  { %v3117_v7 = vpop.permute.xlu1 %3116 }
 0x693   :  { %9588 = vmatmul.mubr.msk.f32.vlgmr.msra.gmra.mrb[12].mxu1 %vm857_vm4, %v3117_v7  ;;  %10277 = vmatpush3.bf16.msra.mxu0 %v11692_v2 }
 0x694   :  { %10280 = vmatpush3.bf16.msra.mxu1 %v11682_v1  ;;  %9609 = vmatprep.mubr.msk.f32.mxu1 %vm11164_vm0, %v13769_v38 }
 0x695   :  { %10281 = vmatprep.subr.bf16.mxu1 %v13663_v32  ;;  %10284 = vmatprep.subr.bf16.mxu0 %v13663_v32 }
 0x698   :  { %10283 = vmatpush3.bf16.msra.mxu1 %v11696_v4 }
 0x699   :  { %10290 = vmatprep.subr.bf16.mxu1 %v13663_v32 }
 0x69e   :  { %v3267_v12 = vpop.permute.xlu1 %3266 }
 0x69f   :  { %v3192_v23 = vpop.permute.xlu0 %3191  ;;  %9610 = vmatmul.mubr.msk.f32.vlgmr.msra.gmra.mrb[14].mxu1 %vm857_vm4, %v3267_v12 }
 0x6a0   :  { %9599 = vmatmul.mubr.msk.f32.vlgmr.msra.gmra.mrb[14].mxu0 %vm857_vm4, %v3192_v23  ;;  %10292 = vmatpush3.bf16.msra.mxu1 %v11608_v26 }
 0x6a1   :  { %10286 = vmatpush3.bf16.msra.mxu0 %v11604_v47  ;;  %9620 = vmatprep.mubr.msk.f32.mxu0 %vm11164_vm0, %v13769_v38 }
 0x6a2   :  { %10287 = vmatprep.subr.bf16.mxu0 %v13663_v32  ;;  %10293 = vmatprep.subr.bf16.mxu1 %v13663_v32 }
 0x6a3   :  { %9631 = vmatprep.mubr.msk.f32.mxu1 %vm11164_vm0, %v13769_v38 }
 0x6a4   :  { %10295 = vmatpush3.bf16.msra.mxu1 %v11618_v55 }
 0x6a5   :  { %10289 = vmatpush3.bf16.msra.mxu0 %v11614_v56  ;;  %10302 = vmatprep.subr.bf16.mxu1 %v13663_v32 }
 0x6a6   :  { %10296 = vmatprep.subr.bf16.mxu0 %v13663_v32 }
 0x750   :  { %v2811_v24 = vpop.f32.mrb[8].mxu0 }
 0x751   :  { %v2812_v8 = vadd.f32 %v2811_v24, %v11447_v57  ;;  %v9534_v28 = vpop.f32.mrb[9].mxu0 }
 0x753   :  { %v3348_v9 = vrot.slane %v2812_v8, 7 }
 0x754   :  { %v2886_v59 = vpop.f32.mrb[8].mxu1 }
 0x755   :  { %v2887_v35 = vadd.f32 %v2886_v59, %v11464_v62  ;;  %v9545_v10 = vpop.f32.mrb[9].mxu1  ;;  %3420 = vrot.lane.b32.xlu0 %v3348_v9, %s11173_s5 }
 0x757   :  { %v3349_v40 = vrot.slane %v2887_v35, 7 }
 0x759   :  { %v2961_v43 = vpop.f32.mrb[10].mxu0  ;;  %3422 = vrot.lane.b32.xlu1 %v3349_v40, %s11173_s5 }
 0x75a   :  { %v2962_v15 = vadd.f32 %v2961_v43, %v13770_v11  ;;  %v9556_v31 = vpop.f32.mrb[11].mxu0 }
 0x75c   :  { %v3350_v17 = vrot.slane %v2962_v15, 7 }
 0x75d   :  { %v3036_v33 = vpop.f32.mrb[10].mxu1 }
 0x75e   :  { %v3037_v39 = vadd.f32 %v3036_v33, %v13771_v5  ;;  %v9567_v45 = vpop.f32.mrb[11].mxu1  ;;  %3424 = vrot.lane.b32.xlu0 %v3350_v17, %s11173_s5 }
 0x760   :  { %v3351_v22 = vrot.slane %v3037_v39, 7  ;;  %v3364_v39 = vadd.f32 %v3348_v9, %v11533_v37 }
 0x761   :  { %v3111_v16 = vpop.f32.mrb[12].mxu0 }
 0x762   :  { %3426 = vrot.lane.b32.xlu1 %v3351_v22, %s11173_s5  ;;  %v3112_v3 = vadd.f32 %v3111_v16, %v13772_v14  ;;  %v9578_v21 = vpop.f32.mrb[13].mxu0  ;;  %v3372_v45 = vsub.f32 0.0, %v3364_v39  ;;  %v3365_v16 = vadd.f32 %v3349_v40, %v13776_v53 }
 0x764   :  { %v3352_v7 = vrot.slane %v3112_v3, 7  ;;  %v3380_v3 = vmul.f32 1.442695, %v3372_v45  ;;  %v3373_v21 = vsub.f32 0.0, %v3365_v16 }
 0x766   :  { %v3186_v12 = vpop.f32.mrb[12].mxu1  ;;  %3428 = vrot.lane.b32.xlu0 %v3352_v7, %s11173_s5  ;;  %10755 = vpow2.f32 %v3380_v3 }
 0x767   :  { %v3187_v23 = vadd.f32 %v3186_v12, %v13773_v6  ;;  %v9589_v24 = vpop.f32.mrb[13].mxu1  ;;  %v3366_v12 = vadd.f32 %v3350_v17, %v11541_v36 }
 0x768   :  { %v3382_v24 = vmul.f32 1.442695, %v3373_v21 }
 0x769   :  { %v3353_v8 = vrot.slane %v3187_v23, 7  ;;  %v3367_v23 = vadd.f32 %v3351_v22, %v11544_v27 }
 0x76a   :  { %10757 = vpow2.f32 %v3382_v24 }
 0x76b   :  { %3430 = vrot.lane.b32.xlu1 %v3353_v8, %s11173_s5  ;;  %v3369_v9 = vadd.f32 %v3353_v8, %v11550_v61 }
 0x76d   :  { %v3377_v45 = vsub.f32 0.0, %v3369_v9 }
 0x76f   :  { %v3390_v22 = vmul.f32 1.442695, %v3377_v45 }
 0x772   :  { %v3336_v28 = vpop.f32.mrb[14].mxu1 }
 0x773   :  { %v3261_v59 = vpop.f32.mrb[14].mxu0  ;;  %v3337_v35 = vadd.f32 %v3336_v28, %v13775_v19  ;;  %v9611_v10 = vpop.f32.mrb[15].mxu1  ;;  %v3374_v28 = vsub.f32 0.0, %v3366_v12 }
 0x774   :  { %v3262_v43 = vadd.f32 %v3261_v59, %v13774_v29  ;;  %v9600_v15 = vpop.f32.mrb[15].mxu0  ;;  %v3375_v59 = vsub.f32 0.0, %v3367_v23  ;;  %v3368_v10 = vadd.f32 %v3352_v7, %v11547_v50 }
 0x775   :  { %v3355_v31 = vrot.slane %v3337_v35, 7  ;;  %v3384_v35 = vmul.f32 1.442695, %v3374_v28  ;;  %v10756_v15 = vpop.eup %10755 }
 0x776   :  { %v3354_v33 = vrot.slane %v3262_v43, 7  ;;  %v3386_v43 = vmul.f32 1.442695, %v3375_v59  ;;  %v3376_v40 = vsub.f32 0.0, %v3368_v10  ;;  %v3396_v39 = vadd.f32 1.0, %v10756_v15  ;;  %v10758_v16 = vpop.eup %10757 }
 0x777   :  { %3434 = vrot.lane.b32.xlu1 %v3355_v31, %s11173_s5  ;;  %10759 = vpow2.f32 %v3384_v35  ;;  %v3371_v3 = vadd.f32 %v3355_v31, %v13777_v20  ;;  %v3397_v21 = vadd.f32 1.0, %v10758_v16 }
 0x778   :  { %3432 = vrot.lane.b32.xlu0 %v3354_v33, %s11173_s5  ;;  %10761 = vpow2.f32 %v3386_v43  ;;  %v3388_v17 = vmul.f32 1.442695, %v3376_v40  ;;  %v3370_v12 = vadd.f32 %v3354_v33, %v11553_v41 }
 0x779   :  { %10763 = vrcp.f32 %v3396_v39  ;;  %v3379_v24 = vsub.f32 0.0, %v3371_v3 }
 0x77a   :  { %10765 = vpow2.f32 %v3388_v17  ;;  %v3378_v28 = vsub.f32 0.0, %v3370_v12 }
 0x77b   :  { %10767 = vpow2.f32 %v3390_v22  ;;  %v3394_v35 = vmul.f32 1.442695, %v3379_v24 }
 0x77c   :  { %10769 = vrcp.f32 %v3397_v21  ;;  %v3392_v10 = vmul.f32 1.442695, %v3378_v28 }
 0x781   :  { %v10760_v7 = vpop.eup %10759 }
 0x782   :  { %v10762_v23 = vpop.eup %10761  ;;  %v3398_v8 = vadd.f32 1.0, %v10760_v7 }
 0x783   :  { %v3399_v59 = vadd.f32 1.0, %v10762_v23  ;;  %v12187_v43 = vpop.eup %10763 }
 0x784   :  { %10771 = vrcp.f32 %v3398_v8  ;;  %v10766_v9 = vpop.eup %10765 }
 0x785   :  { %10773 = vrcp.f32 %v3399_v59  ;;  %v10768_v33 = vpop.eup %10767  ;;  %v3400_v40 = vadd.f32 1.0, %v10766_v9 }
 0x786   :  { %10775 = vpow2.f32 %v3394_v35  ;;  %v12191_v39 = vpop.eup %10769  ;;  %v3401_v16 = vadd.f32 1.0, %v10768_v33 }
 0x787   :  { %10777 = vpow2.f32 %v3392_v10 }
 0x788   :  { %10779 = vrcp.f32 %v3400_v40 }
 0x789   :  { %10781 = vrcp.f32 %v3401_v16 }
 0x78e   :  { %v12195_v22 = vpop.eup %10771 }
 0x78f   :  { %v12198_v12 = vpop.eup %10773 }
 0x790   :  { %v10776_v7 = vpop.eup %10775 }
 0x791   :  { %v10778_v23 = vpop.eup %10777  ;;  %v3403_v28 = vadd.f32 1.0, %v10776_v7 }
 0x792   :  { %v3402_v59 = vadd.f32 1.0, %v10778_v23  ;;  %v12203_v35 = vpop.eup %10779 }
 0x793   :  { %10783 = vrcp.f32 %v3403_v28 }
 0x794   :  { %10785 = vrcp.f32 %v3402_v59 }
 0x7c7   :  { %v3421_v31 = vpop.permute.xlu0 %3420 }
 0x7c8   :  { %v3444_v15 = vmul.f32 %v12187_v43, %v3421_v31  ;;  %v12206_v31 = vpop.eup %10781 }
 0x7c9   :  { %v12211_v40 = vpop.eup %10783 }
 0x7ca   :  { %3460 = vrot.lane.b32.xlu0 %v3444_v15, %s11173_s5 }
 0x7cb   :  { %v3423_v45 = vpop.permute.xlu1 %3422 }
 0x7cc   :  { %v3445_v17 = vmul.f32 %v12191_v39, %v3423_v45 }
 0x7ce   :  { %3462 = vrot.lane.b32.xlu1 %v3445_v17, %s11173_s5  ;;  %v12213_v17 = vpop.eup %10785 }
 0x7d0   :  { %v3425_v3 = vpop.permute.xlu0 %3424 }
 0x7d1   :  { %v3446_v21 = vmul.f32 %v12195_v22, %v3425_v3 }
 0x7d3   :  { %3464 = vrot.lane.b32.xlu0 %v3446_v21, %s11173_s5 }
 0x7d4   :  { %v3427_v24 = vpop.permute.xlu1 %3426 }
 0x7d5   :  { %v3447_v8 = vmul.f32 %v12198_v12, %v3427_v24 }
 0x7d7   :  { %3466 = vrot.lane.b32.xlu1 %v3447_v8, %s11173_s5 }
 0x7d8   :  { %v3429_v10 = vpop.permute.xlu0 %3428 }
 0x7d9   :  { %v3448_v9 = vmul.f32 %v12203_v35, %v3429_v10 }
 0x7db   :  { %3468 = vrot.lane.b32.xlu0 %v3448_v9, %s11173_s5 }
 0x7dd   :  { %v3431_v15 = vpop.permute.xlu1 %3430 }
 0x7de   :  { %v3449_v33 = vmul.f32 %v12206_v31, %v3431_v15 }
 0x7e0   :  { %3470 = vrot.lane.b32.xlu1 %v3449_v33, %s11173_s5 }
 0x7e9   :  { %v3435_v45 = vpop.permute.xlu1 %3434 }
 0x7ea   :  { %v3451_v16 = vmul.f32 %v12211_v40, %v3435_v45  ;;  %v3433_v3 = vpop.permute.xlu0 %3432 }
 0x7eb   :  { %v3450_v21 = vmul.f32 %v12213_v17, %v3433_v3 }
 0x7ec   :  { %3474 = vrot.lane.b32.xlu1 %v3451_v16, %s11173_s5 }
 0x7ed   :  { %3472 = vrot.lane.b32.xlu0 %v3450_v21, %s11173_s5 }
 0x83c   :  { %v3461_v7 = vpop.permute.xlu0 %3460 }
 0x83d   :  { %v3484_v23 = vadd.f32 %v3461_v7, %v11533_v37 }
 0x83f   :  { %10787 = vtanh.f32 %v3484_v23 }
 0x840   :  { %v3463_v24 = vpop.permute.xlu1 %3462 }
 0x841   :  { %v3485_v8 = vadd.f32 %v3463_v24, %v13776_v53 }
 0x843   :  { %10789 = vtanh.f32 %v3485_v8 }
 0x845   :  { %v3465_v28 = vpop.permute.xlu0 %3464 }
 0x846   :  { %v3486_v59 = vadd.f32 %v3465_v28, %v11541_v36 }
 0x848   :  { %10791 = vtanh.f32 %v3486_v59 }
 0x849   :  { %v3467_v10 = vpop.permute.xlu1 %3466  ;;  %v10788_v9 = vpop.eup %10787 }
 0x84a   :  { %v3487_v15 = vadd.f32 %v3467_v10, %v11544_v27  ;;  %3516 = vrot.lane.b32.xlu0 %v10788_v9, %s11175_s15 }
 0x84c   :  { %10793 = vtanh.f32 %v3487_v15 }
 0x84d   :  { %v10790_v33 = vpop.eup %10789  ;;  %v3469_v45 = vpop.permute.xlu0 %3468 }
 0x84e   :  { %v3488_v16 = vadd.f32 %v3469_v45, %v11547_v50  ;;  %3518 = vrot.lane.b32.xlu1 %v10790_v33, %s11175_s15  ;;  %v3500_v45 = vsub.f32 1.0, %v12187_v43 }
 0x850   :  { %10795 = vtanh.f32 %v3488_v16  ;;  %v3548_v16 = vrot.slane %v12061_v42, 7 }
 0x852   :  { %v3471_v3 = vpop.permute.xlu1 %3470  ;;  %v10792_v21 = vpop.eup %10791 }
 0x853   :  { %v3489_v7 = vadd.f32 %v3471_v3, %v11550_v61  ;;  %3520 = vrot.lane.b32.xlu0 %v10792_v21, %s11175_s15  ;;  %v3564_v21 = vmul.f32 %v12187_v43, %v3548_v16  ;;  %v3550_v43 = vrot.slane %v12073_v44, 7 }
 0x855   :  { %10797 = vtanh.f32 %v3489_v7  ;;  %v3566_v16 = vmul.f32 %v12195_v22, %v3550_v43 }
 0x856   :  { %v10794_v23 = vpop.eup %10793 }
 0x857   :  { %3522 = vrot.lane.b32.xlu1 %v10794_v23, %s11175_s15 }
 0x85a   :  { %v10796_v59 = vpop.eup %10795 }
 0x85b   :  { %3524 = vrot.lane.b32.xlu0 %v10796_v59, %s11175_s15 }
 0x85e   :  { %v3475_v24 = vpop.permute.xlu1 %3474 }
 0x85f   :  { %v3491_v8 = vadd.f32 %v3475_v24, %v13777_v20  ;;  %v3473_v28 = vpop.permute.xlu0 %3472  ;;  %v10798_v9 = vpop.eup %10797  ;;  %v3501_v24 = vsub.f32 1.0, %v12191_v39 }
 0x860   :  { %v3490_v10 = vadd.f32 %v3473_v28, %v11553_v41  ;;  %3526 = vrot.lane.b32.xlu1 %v10798_v9, %s11175_s15 }
 0x861   :  { %10799 = vtanh.f32 %v3491_v8  ;;  %v3549_v8 = vrot.slane %v12067_v30, 7 }
 0x862   :  { %10801 = vtanh.f32 %v3490_v10 }
 0x863   :  { %v3565_v59 = vmul.f32 %v12191_v39, %v3549_v8  ;;  %v3503_v39 = vsub.f32 1.0, %v12198_v12 }
 0x86b   :  { %v10800_v15 = vpop.eup %10799 }
 0x86c   :  { %v10802_v33 = vpop.eup %10801  ;;  %3530 = vrot.lane.b32.xlu1 %v10800_v15, %s11175_s15 }
 0x86d   :  { %3528 = vrot.lane.b32.xlu0 %v10802_v33, %s11175_s15  ;;  %v3502_v33 = vsub.f32 1.0, %v12195_v22  ;;  %v3504_v22 = vsub.f32 1.0, %v12203_v35 }
 0x8bc   :  { %v3517_v3 = vpop.permute.xlu0 %3516 }
 0x8bd   :  { %v3540_v7 = vmul.f32 %v3517_v3, %v3500_v45 }
 0x8bf   :  { %v12238_v23 = vadd.f32 %v3564_v21, %v3540_v7 }
 0x8c0   :  { %v3519_v28 = vpop.permute.xlu1 %3518 }
 0x8c1   :  { %v3541_v10 = vmul.f32 %v3519_v28, %v3501_v24  ;;  %v3581_v9 = vrot.slane %v12238_v23, 1  ;;  %v3551_v24 = vrot.slane %v12079_v18, 7 }
 0x8c3   :  { %v12244_v15 = vadd.f32 %v3565_v59, %v3541_v10  ;;  %3582 = vrot.lane.b32.xlu0 %v3581_v9, %s11175_s15  ;;  %v3567_v28 = vmul.f32 %v12198_v12, %v3551_v24  ;;  %v3505_v12 = vsub.f32 1.0, %v12206_v31 }
 0x8c5   :  { %v3521_v45 = vpop.permute.xlu0 %3520  ;;  %v3657_v21 = vrot.slane %v12244_v15, 1 }
 0x8c6   :  { %v3542_v3 = vmul.f32 %v3521_v45, %v3502_v33  ;;  %v3552_v33 = vrot.slane %v12086_v58, 7 }
 0x8c7   :  { %3658 = vrot.lane.b32.xlu1 %v3657_v21, %s11175_s15  ;;  %v3553_v21 = vrot.slane %v12091_v46, 7 }
 0x8c8   :  { %v12251_v7 = vadd.f32 %v3566_v16, %v3542_v3  ;;  %v3568_v16 = vmul.f32 %v12203_v35, %v3552_v33  ;;  %v3555_v33 = vrot.slane %v12099_v13, 7 }
 0x8c9   :  { %v3523_v8 = vpop.permute.xlu1 %3522 }
 0x8ca   :  { %v3543_v59 = vmul.f32 %v3523_v8, %v3503_v39  ;;  %v3733_v10 = vrot.slane %v12251_v7, 1  ;;  %v3569_v8 = vmul.f32 %v12206_v31, %v3553_v21  ;;  %v3554_v31 = vrot.slane %v12101_v34, 7 }
 0x8cc   :  { %v12258_v9 = vadd.f32 %v3567_v28, %v3543_v59  ;;  %3734 = vrot.lane.b32.xlu0 %v3733_v10, %s11175_s15  ;;  %v3570_v21 = vmul.f32 %v12213_v17, %v3554_v31 }
 0x8cd   :  { %v3525_v43 = vpop.permute.xlu0 %3524 }
 0x8ce   :  { %v3809_v45 = vrot.slane %v12258_v9, 1  ;;  %v3544_v3 = vmul.f32 %v3525_v43, %v3504_v22  ;;  %v3507_v22 = vsub.f32 1.0, %v12211_v40 }
 0x8d0   :  { %3810 = vrot.lane.b32.xlu1 %v3809_v45, %s11175_s15  ;;  %v12268_v39 = vadd.f32 %v3568_v16, %v3544_v3  ;;  %v3506_v45 = vsub.f32 1.0, %v12213_v17  ;;  %v3571_v16 = vmul.f32 %v12211_v40, %v3555_v33  ;;  %v13779_v40 = vmov 0.0|0.0  }
 0x8d2   :  { %v3527_v24 = vpop.permute.xlu1 %3526  ;;  %v3885_v59 = vrot.slane %v12268_v39, 1 }
 0x8d3   :  { %v3545_v28 = vmul.f32 %v3527_v24, %v3505_v12 }
 0x8d4   :  { %3886 = vrot.lane.b32.xlu0 %v3885_v59, %s11175_s15 }
 0x8d5   :  { %v12272_v10 = vadd.f32 %v3569_v8, %v3545_v28 }
 0x8d7   :  { %v3961_v35 = vrot.slane %v12272_v10, 1 }
 0x8d9   :  { %3962 = vrot.lane.b32.xlu1 %v3961_v35, %s11175_s15 }
 0x8de   :  { %v3531_v43 = vpop.permute.xlu1 %3530 }
 0x8df   :  { %v3547_v3 = vmul.f32 %v3531_v43, %v3507_v22  ;;  %v3529_v12 = vpop.permute.xlu0 %3528 }
 0x8e0   :  { %v3546_v24 = vmul.f32 %v3529_v12, %v3506_v45 }
 0x8e1   :  { %v12283_v8 = vadd.f32 %v3571_v16, %v3547_v3 }
 0x8e2   :  { %v12285_v28 = vadd.f32 %v3570_v21, %v3546_v24 }
 0x8e3   :  { %v4113_v59 = vrot.slane %v12283_v8, 1 }
 0x8e4   :  { %v4037_v35 = vrot.slane %v12285_v28, 1 }
 0x8e5   :  { %4114 = vrot.lane.b32.xlu1 %v4113_v59, %s11175_s15 }
 0x8e6   :  { %4038 = vrot.lane.b32.xlu0 %v4037_v35, %s11175_s15 }
 0x935   :  { %v3583_v32 = vpop.permute.xlu0 %3582 }
 0x936   :  { %9621 = vmatmul.mubr.msk.f32.vlgmr.msra.gmra.mrb[16].mxu0 %vm857_vm4, %v3583_v32 }
 0x937   :  { %10298 = vmatpush3.bf16.msra.mxu0 %v11626_v48  ;;  %9642 = vmatprep.mubr.msk.f32.mxu0 %vm11164_vm0, %v13769_v38 }
 0x938   :  { %10299 = vmatprep.subr.bf16.mxu0 %v13779_v40 }
 0x939   :  { %v3659_v17 = vpop.permute.xlu1 %3658 }
 0x93a   :  { %9632 = vmatmul.mubr.msk.f32.vlgmr.msra.gmra.mrb[16].mxu1 %vm857_vm4, %v3659_v17 }
 0x93b   :  { %10301 = vmatpush3.bf16.msra.mxu0 %v11640_v63  ;;  %10304 = vmatpush3.bf16.msra.mxu1 %v11630_v60 }
 0x93c   :  { %10305 = vmatprep.subr.bf16.mxu1 %v13779_v40  ;;  %10308 = vmatprep.subr.bf16.mxu0 %v13779_v40 }
 0x93d   :  { %9653 = vmatprep.mubr.msk.f32.mxu1 %vm11164_vm0, %v13769_v38 }
 0x93e   :  { %v3735_v22 = vpop.permute.xlu0 %3734 }
 0x93f   :  { %9643 = vmatmul.mubr.msk.f32.vlgmr.msra.gmra.mrb[18].mxu0 %vm857_vm4, %v3735_v22  ;;  %10307 = vmatpush3.bf16.msra.mxu1 %v11644_v49 }
 0x940   :  { %10310 = vmatpush3.bf16.msra.mxu0 %v11652_v25  ;;  %10314 = vmatprep.subr.bf16.mxu1 %v13779_v40 }
 0x941   :  { %10311 = vmatprep.subr.bf16.mxu0 %v13779_v40  ;;  %9664 = vmatprep.mubr.msk.f32.mxu0 %vm11164_vm0, %v13769_v38 }
 0x942   :  { %v3811_v32 = vpop.permute.xlu1 %3810 }
 0x943   :  { %9654 = vmatmul.mubr.msk.f32.vlgmr.msra.gmra.mrb[18].mxu1 %vm857_vm4, %v3811_v32 }
 0x944   :  { %10313 = vmatpush3.bf16.msra.mxu0 %v11666_v54  ;;  %10316 = vmatpush3.bf16.msra.mxu1 %v11656_v51 }
 0x945   :  { %10317 = vmatprep.subr.bf16.mxu1 %v13779_v40  ;;  %9675 = vmatprep.mubr.msk.f32.mxu1 %vm11164_vm0, %v13769_v38 }
 0x946   :  { %10320 = vmatprep.subr.bf16.mxu0 %v13779_v40  ;;  %v3887_v33 = vpop.permute.xlu0 %3886 }
 0x947   :  { %9665 = vmatmul.mubr.msk.f32.vlgmr.msra.gmra.mrb[20].mxu0 %vm857_vm4, %v3887_v33 }
 0x948   :  { %10319 = vmatpush3.bf16.msra.mxu1 %v11670_v52  ;;  %10322 = vmatpush3.bf16.msra.mxu0 %v11678_v0 }
 0x949   :  { %10326 = vmatprep.subr.bf16.mxu1 %v13779_v40  ;;  %10323 = vmatprep.subr.bf16.mxu0 %v13779_v40 }
 0x94a   :  { %9686 = vmatprep.mubr.msk.f32.mxu0 %vm11164_vm0, %v13769_v38 }
 0x94b   :  { %v3963_v43 = vpop.permute.xlu1 %3962 }
 0x94c   :  { %9676 = vmatmul.mubr.msk.f32.vlgmr.msra.gmra.mrb[20].mxu1 %vm857_vm4, %v3963_v43  ;;  %10325 = vmatpush3.bf16.msra.mxu0 %v11692_v2 }
 0x94d   :  { %10328 = vmatpush3.bf16.msra.mxu1 %v11682_v1  ;;  %9697 = vmatprep.mubr.msk.f32.mxu1 %vm11164_vm0, %v13769_v38 }
 0x94e   :  { %10329 = vmatprep.subr.bf16.mxu1 %v13779_v40  ;;  %10332 = vmatprep.subr.bf16.mxu0 %v13779_v40 }
 0x951   :  { %10331 = vmatpush3.bf16.msra.mxu1 %v11696_v4 }
 0x952   :  { %10338 = vmatprep.subr.bf16.mxu1 %v13779_v40 }
 0x957   :  { %v4115_v45 = vpop.permute.xlu1 %4114 }
 0x958   :  { %v4039_v31 = vpop.permute.xlu0 %4038  ;;  %9698 = vmatmul.mubr.msk.f32.vlgmr.msra.gmra.mrb[22].mxu1 %vm857_vm4, %v4115_v45 }
 0x959   :  { %9687 = vmatmul.mubr.msk.f32.vlgmr.msra.gmra.mrb[22].mxu0 %vm857_vm4, %v4039_v31  ;;  %10340 = vmatpush3.bf16.msra.mxu1 %v11608_v26 }
 0x95a   :  { %10334 = vmatpush3.bf16.msra.mxu0 %v11604_v47  ;;  %9708 = vmatprep.mubr.msk.f32.mxu0 %vm11164_vm0, %v13769_v38 }
 0x95b   :  { %10335 = vmatprep.subr.bf16.mxu0 %v13779_v40  ;;  %10341 = vmatprep.subr.bf16.mxu1 %v13779_v40 }
 0x95c   :  { %9719 = vmatprep.mubr.msk.f32.mxu1 %vm11164_vm0, %v13769_v38 }
 0x95d   :  { %10343 = vmatpush3.bf16.msra.mxu1 %v11618_v55 }
 0x95e   :  { %10337 = vmatpush3.bf16.msra.mxu0 %v11614_v56  ;;  %10350 = vmatprep.subr.bf16.mxu1 %v13779_v40 }
 0x95f   :  { %10344 = vmatprep.subr.bf16.mxu0 %v13779_v40 }
 0xa09   :  { %v3652_v16 = vpop.f32.mrb[16].mxu0 }
 0xa0a   :  { %v3653_v3 = vadd.f32 %v3652_v16, %v11447_v57  ;;  %v9622_v12 = vpop.f32.mrb[17].mxu0 }
 0xa0c   :  { %v4196_v21 = vrot.slane %v3653_v3, 6 }
 0xa0d   :  { %v3728_v24 = vpop.f32.mrb[16].mxu1 }
 0xa0e   :  { %v3729_v59 = vadd.f32 %v3728_v24, %v11464_v62  ;;  %v9633_v35 = vpop.f32.mrb[17].mxu1  ;;  %4268 = vrot.lane.b32.xlu0 %v4196_v21, %s11173_s5 }
 0xa10   :  { %v4197_v17 = vrot.slane %v3729_v59, 6 }
 0xa12   :  { %v3804_v22 = vpop.f32.mrb[18].mxu0  ;;  %4270 = vrot.lane.b32.xlu1 %v4197_v17, %s11173_s5 }
 0xa13   :  { %v3805_v32 = vadd.f32 %v3804_v22, %v13770_v11  ;;  %v9644_v33 = vpop.f32.mrb[19].mxu0 }
 0xa15   :  { %v4198_v43 = vrot.slane %v3805_v32, 6 }
 0xa16   :  { %v3880_v45 = vpop.f32.mrb[18].mxu1 }
 0xa17   :  { %v3881_v31 = vadd.f32 %v3880_v45, %v13771_v5  ;;  %v9655_v16 = vpop.f32.mrb[19].mxu1  ;;  %4272 = vrot.lane.b32.xlu0 %v4198_v43, %s11173_s5 }
 0xa19   :  { %v4199_v3 = vrot.slane %v3881_v31, 6 }
 0xa1a   :  { %v3956_v12 = vpop.f32.mrb[20].mxu0 }
 0xa1b   :  { %4274 = vrot.lane.b32.xlu1 %v4199_v3, %s11173_s5  ;;  %v3957_v24 = vadd.f32 %v3956_v12, %v13772_v14  ;;  %v9666_v59 = vpop.f32.mrb[21].mxu0  ;;  %v4214_v14 = vadd.f32 %v4198_v43, %v11541_v36 }
 0xa1d   :  { %v4200_v35 = vrot.slane %v3957_v24, 6  ;;  %v4213_v24 = vadd.f32 %v4197_v17, %v13776_v53 }
 0xa1f   :  { %v4032_v62 = vpop.f32.mrb[20].mxu1  ;;  %4276 = vrot.lane.b32.xlu0 %v4200_v35, %s11173_s5 }
 0xa20   :  { %v4033_v22 = vadd.f32 %v4032_v62, %v13773_v6  ;;  %v9677_v11 = vpop.f32.mrb[21].mxu1  ;;  %v4212_v62 = vadd.f32 %v4196_v21, %v11533_v37  ;;  %v4221_v6 = vsub.f32 0.0, %v4213_v24 }
 0xa22   :  { %v4201_v32 = vrot.slane %v4033_v22, 6  ;;  %v4220_v11 = vsub.f32 0.0, %v4212_v62 }
 0xa24   :  { %4278 = vrot.lane.b32.xlu1 %v4201_v32, %s11173_s5  ;;  %v4228_v22 = vmul.f32 1.442695, %v4220_v11  ;;  %v4217_v21 = vadd.f32 %v4201_v32, %v11550_v61 }
 0xa26   :  { %10803 = vpow2.f32 %v4228_v22  ;;  %v4225_v24 = vsub.f32 0.0, %v4217_v21 }
 0xa2b   :  { %v4184_v33 = vpop.f32.mrb[22].mxu1 }
 0xa2c   :  { %v4108_v45 = vpop.f32.mrb[22].mxu0  ;;  %v4185_v31 = vadd.f32 %v4184_v33, %v13775_v19  ;;  %v9699_v16 = vpop.f32.mrb[23].mxu1  ;;  %v4215_v33 = vadd.f32 %v4199_v3, %v11544_v27  ;;  %v4238_v3 = vmul.f32 1.442695, %v4225_v24 }
 0xa2d   :  { %v4109_v5 = vadd.f32 %v4108_v45, %v13774_v29  ;;  %v9688_v57 = vpop.f32.mrb[23].mxu0  ;;  %v4230_v45 = vmul.f32 1.442695, %v4221_v6  ;;  %v4216_v16 = vadd.f32 %v4200_v35, %v11547_v50 }
 0xa2e   :  { %v4203_v12 = vrot.slane %v4185_v31, 6  ;;  %v4222_v57 = vsub.f32 0.0, %v4214_v14  ;;  %v4223_v31 = vsub.f32 0.0, %v4215_v33 }
 0xa2f   :  { %v4202_v59 = vrot.slane %v4109_v5, 6  ;;  %10805 = vpow2.f32 %v4230_v45  ;;  %v4224_v17 = vsub.f32 0.0, %v4216_v16 }
 0xa30   :  { %4282 = vrot.lane.b32.xlu1 %v4203_v12, %s11173_s5  ;;  %v4232_v5 = vmul.f32 1.442695, %v4222_v57  ;;  %v4234_v29 = vmul.f32 1.442695, %v4223_v31  ;;  %v10804_v62 = vpop.eup %10803  ;;  %v4219_v14 = vadd.f32 %v4203_v12, %v13777_v20 }
 0xa31   :  { %4280 = vrot.lane.b32.xlu0 %v4202_v59, %s11173_s5  ;;  %v4244_v11 = vadd.f32 1.0, %v10804_v62  ;;  %v4236_v43 = vmul.f32 1.442695, %v4224_v17  ;;  %v4218_v22 = vadd.f32 %v4202_v59, %v11553_v41 }
 0xa32   :  { %10807 = vpow2.f32 %v4232_v5  ;;  %v4227_v45 = vsub.f32 0.0, %v4219_v14 }
 0xa33   :  { %10809 = vpow2.f32 %v4234_v29  ;;  %v4226_v57 = vsub.f32 0.0, %v4218_v22 }
 0xa34   :  { %10811 = vrcp.f32 %v4244_v11  ;;  %v4242_v31 = vmul.f32 1.442695, %v4227_v45 }
 0xa35   :  { %10813 = vpow2.f32 %v4236_v43  ;;  %v4240_v5 = vmul.f32 1.442695, %v4226_v57 }
 0xa36   :  { %10815 = vpow2.f32 %v4238_v3 }
 0xa39   :  { %v10806_v19 = vpop.eup %10805 }
 0xa3a   :  { %v4245_v6 = vadd.f32 1.0, %v10806_v19 }
 0xa3c   :  { %v10808_v35 = vpop.eup %10807  ;;  %10817 = vrcp.f32 %v4245_v6 }
 0xa3d   :  { %v10810_v33 = vpop.eup %10809  ;;  %v4246_v32 = vadd.f32 1.0, %v10808_v35 }
 0xa3e   :  { %v4247_v29 = vadd.f32 1.0, %v10810_v33  ;;  %v12371_v16 = vpop.eup %10811 }
 0xa3f   :  { %10819 = vrcp.f32 %v4246_v32  ;;  %v10814_v21 = vpop.eup %10813 }
 0xa40   :  { %10821 = vrcp.f32 %v4247_v29  ;;  %v10816_v59 = vpop.eup %10815  ;;  %v4248_v62 = vadd.f32 1.0, %v10814_v21 }
 0xa41   :  { %10823 = vpow2.f32 %v4242_v31  ;;  %v4249_v43 = vadd.f32 1.0, %v10816_v59 }
 0xa42   :  { %10825 = vpow2.f32 %v4240_v5 }
 0xa43   :  { %10827 = vrcp.f32 %v4248_v62 }
 0xa44   :  { %10829 = vrcp.f32 %v4249_v43 }
 0xa46   :  { %v12375_v17 = vpop.eup %10817 }
 0xa49   :  { %v12379_v3 = vpop.eup %10819 }
 0xa4a   :  { %v12382_v22 = vpop.eup %10821 }
 0xa4b   :  { %v10824_v35 = vpop.eup %10823 }
 0xa4c   :  { %v10826_v33 = vpop.eup %10825  ;;  %v4251_v57 = vadd.f32 1.0, %v10824_v35 }
 0xa4d   :  { %v4250_v29 = vadd.f32 1.0, %v10826_v33  ;;  %v12387_v31 = vpop.eup %10827 }
 0xa4e   :  { %10831 = vrcp.f32 %v4251_v57 }
 0xa4f   :  { %10833 = vrcp.f32 %v4250_v29 }
 0xa80   :  { %v4269_v12 = vpop.permute.xlu0 %4268 }
 0xa81   :  { %v4292_v19 = vmul.f32 %v12371_v16, %v4269_v12  ;;  %v12390_v12 = vpop.eup %10829 }
 0xa82   :  { %v12395_v62 = vpop.eup %10831 }
 0xa83   :  { %4308 = vrot.lane.b32.xlu0 %v4292_v19, %s11173_s5 }
 0xa84   :  { %v4271_v11 = vpop.permute.xlu1 %4270 }
 0xa85   :  { %v4293_v24 = vmul.f32 %v12375_v17, %v4271_v11 }
 0xa87   :  { %4310 = vrot.lane.b32.xlu1 %v4293_v24, %s11173_s5  ;;  %v12397_v24 = vpop.eup %10833 }
 0xa89   :  { %v4273_v14 = vpop.permute.xlu0 %4272 }
 0xa8a   :  { %v4294_v6 = vmul.f32 %v12379_v3, %v4273_v14 }
 0xa8c   :  { %4312 = vrot.lane.b32.xlu0 %v4294_v6, %s11173_s5 }
 0xa8d   :  { %v4275_v45 = vpop.permute.xlu1 %4274 }
 0xa8e   :  { %v4295_v32 = vmul.f32 %v12382_v22, %v4275_v45 }
 0xa90   :  { %4314 = vrot.lane.b32.xlu1 %v4295_v32, %s11173_s5 }
 0xa91   :  { %v4277_v5 = vpop.permute.xlu0 %4276 }
 0xa92   :  { %v4296_v21 = vmul.f32 %v12387_v31, %v4277_v5 }
 0xa94   :  { %4316 = vrot.lane.b32.xlu0 %v4296_v21, %s11173_s5 }
 0xa96   :  { %v4279_v19 = vpop.permute.xlu1 %4278 }
 0xa97   :  { %v4297_v59 = vmul.f32 %v12390_v12, %v4279_v19 }
 0xa99   :  { %4318 = vrot.lane.b32.xlu1 %v4297_v59, %s11173_s5 }
 0xaa2   :  { %v4283_v11 = vpop.permute.xlu1 %4282 }
 0xaa3   :  { %v4299_v43 = vmul.f32 %v12395_v62, %v4283_v11  ;;  %v4281_v14 = vpop.permute.xlu0 %4280 }
 0xaa4   :  { %v4298_v6 = vmul.f32 %v12397_v24, %v4281_v14 }
 0xaa5   :  { %4322 = vrot.lane.b32.xlu1 %v4299_v43, %s11173_s5 }
 0xaa6   :  { %4320 = vrot.lane.b32.xlu0 %v4298_v6, %s11173_s5 }
 0xaf5   :  { %v4309_v35 = vpop.permute.xlu0 %4308 }
 0xaf6   :  { %v4332_v33 = vadd.f32 %v4309_v35, %v11533_v37 }
 0xaf8   :  { %10835 = vtanh.f32 %v4332_v33 }
 0xaf9   :  { %v4311_v45 = vpop.permute.xlu1 %4310 }
 0xafa   :  { %v4333_v32 = vadd.f32 %v4311_v45, %v13776_v53 }
 0xafc   :  { %10837 = vtanh.f32 %v4333_v32 }
 0xafe   :  { %v4313_v57 = vpop.permute.xlu0 %4312 }
 0xaff   :  { %v4334_v29 = vadd.f32 %v4313_v57, %v11541_v36 }
 0xb01   :  { %10839 = vtanh.f32 %v4334_v29 }
 0xb02   :  { %v4315_v5 = vpop.permute.xlu1 %4314  ;;  %v10836_v21 = vpop.eup %10835 }
 0xb03   :  { %v4335_v19 = vadd.f32 %v4315_v5, %v11544_v27  ;;  %4364 = vrot.lane.b32.xlu0 %v10836_v21, %s11175_s15 }
 0xb05   :  { %10841 = vtanh.f32 %v4335_v19 }
 0xb06   :  { %v10838_v59 = vpop.eup %10837  ;;  %v4317_v11 = vpop.permute.xlu0 %4316 }
 0xb07   :  { %v4336_v43 = vadd.f32 %v4317_v11, %v11547_v50  ;;  %4366 = vrot.lane.b32.xlu1 %v10838_v59, %s11175_s15  ;;  %v4348_v11 = vsub.f32 1.0, %v12371_v16 }
 0xb09   :  { %10843 = vtanh.f32 %v4336_v43  ;;  %v4396_v43 = vrot.slane %v12238_v23, 7 }
 0xb0b   :  { %v4319_v14 = vpop.permute.xlu1 %4318  ;;  %v10840_v6 = vpop.eup %10839 }
 0xb0c   :  { %v4337_v35 = vadd.f32 %v4319_v14, %v11550_v61  ;;  %4368 = vrot.lane.b32.xlu0 %v10840_v6, %s11175_s15  ;;  %v4412_v6 = vmul.f32 %v12371_v16, %v4396_v43  ;;  %v4398_v43 = vrot.slane %v12251_v7, 7 }
 0xb0e   :  { %10845 = vtanh.f32 %v4337_v35 }
 0xb0f   :  { %v10842_v33 = vpop.eup %10841 }
 0xb10   :  { %4370 = vrot.lane.b32.xlu1 %v10842_v33, %s11175_s15 }
 0xb13   :  { %v10844_v29 = vpop.eup %10843 }
 0xb14   :  { %4372 = vrot.lane.b32.xlu0 %v10844_v29, %s11175_s15 }
 0xb17   :  { %v4323_v45 = vpop.permute.xlu1 %4322 }
 0xb18   :  { %v4339_v32 = vadd.f32 %v4323_v45, %v13777_v20  ;;  %v4321_v57 = vpop.permute.xlu0 %4320  ;;  %v10846_v21 = vpop.eup %10845  ;;  %v4349_v45 = vsub.f32 1.0, %v12375_v17 }
 0xb19   :  { %v4338_v5 = vadd.f32 %v4321_v57, %v11553_v41  ;;  %4374 = vrot.lane.b32.xlu1 %v10846_v21, %s11175_s15  ;;  %v8669_v57 = vsel %vm8668_vm6, %v12061_v42, %v12238_v23  ;;  %v8670_v42 = vsel %vm8668_vm6, %v12067_v30, %v12244_v15  ;;  %v8671_v30 = vsel %vm8668_vm6, %v12073_v44, %v12251_v7 }
 0xb1a   :  { %10847 = vtanh.f32 %v4339_v32  ;;  %v4397_v32 = vrot.slane %v12244_v15, 7  ;;  %v4352_v44 = vsub.f32 1.0, %v12387_v31  ;;  %v4400_v7 = vrot.slane %v12268_v39, 7 }
 0xb1b   :  { %10849 = vtanh.f32 %v4338_v5 }
 0xb1c   :  { %v4413_v21 = vmul.f32 %v12375_v17, %v4397_v32  ;;  %v4414_v17 = vmul.f32 %v12379_v3, %v4398_v43  ;;  %v4351_v32 = vsub.f32 1.0, %v12382_v22 }
 0xb24   :  { %v10848_v19 = vpop.eup %10847 }
 0xb25   :  { %v10850_v59 = vpop.eup %10849  ;;  %4378 = vrot.lane.b32.xlu1 %v10848_v19, %s11175_s15 }
 0xb26   :  { %4376 = vrot.lane.b32.xlu0 %v10850_v59, %s11175_s15 }
 0xb75   :  { %v4365_v14 = vpop.permute.xlu0 %4364 }
 0xb76   :  { %v4388_v35 = vmul.f32 %v4365_v14, %v4348_v11  ;;  %v4350_v11 = vsub.f32 1.0, %v12379_v3 }
 0xb78   :  { %v12422_v33 = vadd.f32 %v4412_v6, %v4388_v35 }
 0xb79   :  { %v4367_v29 = vpop.permute.xlu1 %4366 }
 0xb7a   :  { %v12431_v5 = vsel %vm8677_vm7, %v8669_v57, %v12422_v33  ;;  %v4389_v16 = vmul.f32 %v4367_v29, %v4349_v45  ;;  %v4429_v19 = vrot.slane %v12422_v33, 2  ;;  %v4399_v57 = vrot.slane %v12258_v9, 7 }
 0xb7c   :  { %v12435_v59 = vadd.f32 %v4413_v21, %v4389_v16  ;;  %4430 = vrot.lane.b32.xlu0 %v4429_v19, %s11175_s15  ;;  %v4415_v3 = vmul.f32 %v12382_v22, %v4399_v57 }
 0xb7e   :  { %v4369_v23 = vpop.permute.xlu0 %4368  ;;  %v12445_v14 = vsel %vm8677_vm7, %v8670_v42, %v12435_v59  ;;  %v4505_v35 = vrot.slane %v12435_v59, 2 }
 0xb7f   :  { %v4390_v6 = vmul.f32 %v4369_v23, %v4350_v11  ;;  %v8672_v11 = vsel %vm8668_vm6, %v12079_v18, %v12258_v9  ;;  %v4416_v23 = vmul.f32 %v12387_v31, %v4400_v7  ;;  %v4401_v18 = vrot.slane %v12272_v10, 7 }
 0xb80   :  { %4506 = vrot.lane.b32.xlu1 %v4505_v35, %s11175_s15  ;;  %v4402_v7 = vrot.slane %v12285_v28, 7 }
 0xb81   :  { %v12449_v45 = vadd.f32 %v4414_v17, %v4390_v6  ;;  %v4353_v6 = vsub.f32 1.0, %v12390_v12  ;;  %v4417_v57 = vmul.f32 %v12390_v12, %v4401_v18  ;;  %v4355_v12 = vsub.f32 1.0, %v12395_v62 }
 0xb82   :  { %v4371_v15 = vpop.permute.xlu1 %4370 }
 0xb83   :  { %v12459_v29 = vsel %vm8677_vm7, %v8671_v30, %v12449_v45  ;;  %v4391_v21 = vmul.f32 %v4371_v15, %v4351_v32  ;;  %v4581_v16 = vrot.slane %v12449_v45, 2  ;;  %v8673_v32 = vsel %vm8668_vm6, %v12086_v58, %v12268_v39 }
 0xb85   :  { %v12463_v19 = vadd.f32 %v4415_v3, %v4391_v21  ;;  %4582 = vrot.lane.b32.xlu0 %v4581_v16, %s11175_s15  ;;  %v8674_v21 = vsel %vm8668_vm6, %v12091_v46, %v12272_v10  ;;  %v4403_v16 = vrot.slane %v12283_v8, 7 }
 0xb86   :  { %v4373_v22 = vpop.permute.xlu0 %4372 }
 0xb87   :  { %v12473_v43 = vsel %vm8677_vm7, %v8672_v11, %v12463_v19  ;;  %v4657_v42 = vrot.slane %v12463_v19, 2  ;;  %v4392_v17 = vmul.f32 %v4373_v22, %v4352_v44  ;;  %v4354_v44 = vsub.f32 1.0, %v12397_v24 }
 0xb88   :  { %v4419_v46 = vmul.f32 %v12395_v62, %v4403_v16  ;;  %v13780_v16 = vld [vmem:[#allocation36_spill] sm:$0xff] }
 0xb89   :  { %4658 = vrot.lane.b32.xlu1 %v4657_v42, %s11175_s15  ;;  %v12480_v9 = vadd.f32 %v4416_v23, %v4392_v17  ;;  %v4418_v42 = vmul.f32 %v12397_v24, %v4402_v7 }
 0xb8b   :  { %v4375_v35 = vpop.permute.xlu1 %4374  ;;  %v12488_v31 = vsel %vm8677_vm7, %v8673_v32, %v12480_v9  ;;  %v4733_v15 = vrot.slane %v12480_v9, 2 }
 0xb8c   :  { %v4393_v30 = vmul.f32 %v4375_v35, %v4353_v6  ;;  %v8676_v6 = vsel %vm8668_vm6, %v12099_v13, %v12283_v8  ;;  %v8675_v35 = vsel %vm8668_vm6, %v12101_v34, %v12285_v28 }
 0xb8d   :  { %4734 = vrot.lane.b32.xlu0 %v4733_v15, %s11175_s15 }
 0xb8e   :  { %v12491_v3 = vadd.f32 %v4417_v57, %v4393_v30 }
 0xb90   :  { %v12499_v58 = vsel %vm8677_vm7, %v8674_v21, %v12491_v3  ;;  %v4809_v39 = vrot.slane %v12491_v3, 2 }
 0xb92   :  { %4810 = vrot.lane.b32.xlu1 %v4809_v39, %s11175_s15 }
 0xb97   :  { %v4379_v11 = vpop.permute.xlu1 %4378 }
 0xb98   :  { %v4395_v10 = vmul.f32 %v4379_v11, %v4355_v12  ;;  %v4377_v22 = vpop.permute.xlu0 %4376 }
 0xb99   :  { %v4394_v23 = vmul.f32 %v4377_v22, %v4354_v44 }
 0xb9a   :  { %v12509_v17 = vadd.f32 %v4419_v46, %v4395_v10  ;;  %v13781_v10 = vld [vmem:[#allocation38_spill] sm:$0xff] }
 0xb9b   :  { %v12514_v18 = vadd.f32 %v4418_v42, %v4394_v23 }
 0xb9c   :  { %v12521_v62 = vsel %vm8677_vm7, %v8676_v6, %v12509_v17  ;;  %v4961_v32 = vrot.slane %v12509_v17, 2 }
 0xb9d   :  { %v12526_v24 = vsel %vm8677_vm7, %v8675_v35, %v12514_v18  ;;  %v4885_v57 = vrot.slane %v12514_v18, 2  ;;  %v13782_v35 = vld [vmem:[#allocation39_spill] sm:$0xff] }
 0xb9e   :  { %4962 = vrot.lane.b32.xlu1 %v4961_v32, %s11175_s15 }
 0xb9f   :  { %4886 = vrot.lane.b32.xlu0 %v4885_v57, %s11175_s15 }
 0xbee   :  { %v4431_v13 = vpop.permute.xlu0 %4430 }
 0xbef   :  { %9709 = vmatmul.mubr.msk.f32.vlgmr.msra.gmra.mrb[24].mxu0 %vm857_vm4, %v4431_v13 }
 0xbf0   :  { %10346 = vmatpush3.bf16.msra.mxu0 %v11626_v48  ;;  %9730 = vmatprep.mubr.msk.f32.mxu0 %vm11164_vm0, %v13769_v38 }
 0xbf1   :  { %10347 = vmatprep.subr.bf16.mxu0 %v13779_v40 }
 0xbf2   :  { %v4507_v34 = vpop.permute.xlu1 %4506 }
 0xbf3   :  { %9720 = vmatmul.mubr.msk.f32.vlgmr.msra.gmra.mrb[24].mxu1 %vm857_vm4, %v4507_v34 }
 0xbf4   :  { %10349 = vmatpush3.bf16.msra.mxu0 %v11640_v63  ;;  %10352 = vmatpush3.bf16.msra.mxu1 %v11630_v60 }
 0xbf5   :  { %10353 = vmatprep.subr.bf16.mxu1 %v13779_v40  ;;  %10356 = vmatprep.subr.bf16.mxu0 %v13779_v40 }
 0xbf6   :  { %9741 = vmatprep.mubr.msk.f32.mxu1 %vm11164_vm0, %v13769_v38 }
 0xbf7   :  { %v4583_v8 = vpop.permute.xlu0 %4582 }
 0xbf8   :  { %9731 = vmatmul.mubr.msk.f32.vlgmr.msra.gmra.mrb[26].mxu0 %vm857_vm4, %v4583_v8  ;;  %10355 = vmatpush3.bf16.msra.mxu1 %v11644_v49  ;;  %v13783_v8 = vld [vmem:[#allocation42_spill] sm:$0xff] }
 0xbf9   :  { %10358 = vmatpush3.bf16.msra.mxu0 %v11652_v25  ;;  %10362 = vmatprep.subr.bf16.mxu1 %v13779_v40 }
 0xbfa   :  { %10359 = vmatprep.subr.bf16.mxu0 %v13779_v40  ;;  %9752 = vmatprep.mubr.msk.f32.mxu0 %vm11164_vm0, %v13769_v38 }
 0xbfb   :  { %v4659_v28 = vpop.permute.xlu1 %4658 }
 0xbfc   :  { %9742 = vmatmul.mubr.msk.f32.vlgmr.msra.gmra.mrb[26].mxu1 %vm857_vm4, %v4659_v28 }
 0xbfd   :  { %10361 = vmatpush3.bf16.msra.mxu0 %v11666_v54  ;;  %10364 = vmatpush3.bf16.msra.mxu1 %v11656_v51 }
 0xbfe   :  { %10365 = vmatprep.subr.bf16.mxu1 %v13779_v40  ;;  %9763 = vmatprep.mubr.msk.f32.mxu1 %vm11164_vm0, %v13769_v38 }
 0xbff   :  { %10368 = vmatprep.subr.bf16.mxu0 %v13779_v40  ;;  %v4735_v30 = vpop.permute.xlu0 %4734 }
 0xc00   :  { %9753 = vmatmul.mubr.msk.f32.vlgmr.msra.gmra.mrb[28].mxu0 %vm857_vm4, %v4735_v30 }
 0xc01   :  { %10367 = vmatpush3.bf16.msra.mxu1 %v11670_v52  ;;  %10370 = vmatpush3.bf16.msra.mxu0 %v11678_v0 }
 0xc02   :  { %10374 = vmatprep.subr.bf16.mxu1 %v13779_v40  ;;  %10371 = vmatprep.subr.bf16.mxu0 %v13779_v40 }
 0xc03   :  { %9774 = vmatprep.mubr.msk.f32.mxu0 %vm11164_vm0, %v13769_v38 }
 0xc04   :  { %v4811_v15 = vpop.permute.xlu1 %4810 }
 0xc05   :  { %9764 = vmatmul.mubr.msk.f32.vlgmr.msra.gmra.mrb[28].mxu1 %vm857_vm4, %v4811_v15  ;;  %10373 = vmatpush3.bf16.msra.mxu0 %v11692_v2 }
 0xc06   :  { %10376 = vmatpush3.bf16.msra.mxu1 %v11682_v1  ;;  %9785 = vmatprep.mubr.msk.f32.mxu1 %vm11164_vm0, %v13769_v38 }
 0xc07   :  { %10377 = vmatprep.subr.bf16.mxu1 %v13779_v40  ;;  %10380 = vmatprep.subr.bf16.mxu0 %v13779_v40 }
 0xc0a   :  { %10379 = vmatpush3.bf16.msra.mxu1 %v11696_v4 }
 0xc0b   :  { %10386 = vmatprep.subr.bf16.mxu1 %v13779_v40 }
 0xc10   :  { %v4963_v21 = vpop.permute.xlu1 %4962 }
 0xc11   :  { %v4887_v39 = vpop.permute.xlu0 %4886  ;;  %9786 = vmatmul.mubr.msk.f32.vlgmr.msra.gmra.mrb[30].mxu1 %vm857_vm4, %v4963_v21 }
 0xc12   :  { %9775 = vmatmul.mubr.msk.f32.vlgmr.msra.gmra.mrb[30].mxu0 %vm857_vm4, %v4887_v39  ;;  %10388 = vmatpush3.bf16.msra.mxu1 %v11608_v26  ;;  %v13784_v39 = vld [vmem:[#allocation37_spill] sm:$0xff] }
 0xc13   :  { %10382 = vmatpush3.bf16.msra.mxu0 %v11604_v47  ;;  %9796 = vmatprep.mubr.msk.f32.mxu0 %vm11164_vm0, %v13769_v38 }
 0xc14   :  { %10383 = vmatprep.subr.bf16.mxu0 %v13779_v40  ;;  %10389 = vmatprep.subr.bf16.mxu1 %v13779_v40 }
 0xc15   :  { %9807 = vmatprep.mubr.msk.f32.mxu1 %vm11164_vm0, %v13769_v38 }
 0xc16   :  { %10391 = vmatpush3.bf16.msra.mxu1 %v11618_v55 }
 0xc17   :  { %10385 = vmatpush3.bf16.msra.mxu0 %v11614_v56  ;;  %10398 = vmatprep.subr.bf16.mxu1 %v13779_v40 }
 0xc18   :  { %10392 = vmatprep.subr.bf16.mxu0 %v13779_v40 }
 0xcc2   :  { %v4500_v12 = vpop.f32.mrb[24].mxu0 }
 0xcc3   :  { %v4501_v11 = vadd.f32 %v4500_v12, %v13780_v16  ;;  %v9710_v44 = vpop.f32.mrb[25].mxu0 }
 0xcc5   :  { %v5044_v7 = vrot.slane %v4501_v11, 5 }
 0xcc6   :  { %v4576_v46 = vpop.f32.mrb[24].mxu1 }
 0xcc7   :  { %v4577_v22 = vadd.f32 %v4576_v46, %v13781_v10  ;;  %v9721_v42 = vpop.f32.mrb[25].mxu1  ;;  %5116 = vrot.lane.b32.xlu0 %v5044_v7, %s11173_s5 }
 0xcc9   :  { %v5045_v23 = vrot.slane %v4577_v22, 5  ;;  %v13785_v22 = vld [vmem:[#allocation40_spill] sm:$0xff] }
 0xccb   :  { %v4652_v6 = vpop.f32.mrb[26].mxu0  ;;  %5118 = vrot.lane.b32.xlu1 %v5045_v23, %s11173_s5 }
 0xccc   :  { %v4653_v32 = vadd.f32 %v4652_v6, %v13782_v35  ;;  %v9732_v57 = vpop.f32.mrb[27].mxu0  ;;  %v13787_v35 = vld [vmem:[#allocation41_spill] sm:$0xff] }
 0xcce   :  { %v5046_v13 = vrot.slane %v4653_v32, 5 }
 0xccf   :  { %v4728_v34 = vpop.f32.mrb[26].mxu1 }
 0xcd0   :  { %v4729_v28 = vadd.f32 %v4728_v34, %v13783_v8  ;;  %v9743_v30 = vpop.f32.mrb[27].mxu1  ;;  %5120 = vrot.lane.b32.xlu0 %v5046_v13, %s11173_s5 }
 0xcd1   :  { %v13786_v30 = vld [vmem:[#allocation43_spill] sm:$0xff] }
 0xcd2   :  { %v5047_v15 = vrot.slane %v4729_v28, 5 }
 0xcd3   :  { %v4804_v21 = vpop.f32.mrb[28].mxu0 }
 0xcd4   :  { %5122 = vrot.lane.b32.xlu1 %v5047_v15, %s11173_s5  ;;  %v4805_v12 = vadd.f32 %v4804_v21, %v13784_v39  ;;  %v9754_v11 = vpop.f32.mrb[29].mxu0  ;;  %v5062_v39 = vadd.f32 %v5046_v13, %v11541_v36 }
 0xcd6   :  { %v5048_v44 = vrot.slane %v4805_v12, 5  ;;  %v5060_v12 = vadd.f32 %v5044_v7, %v11533_v37 }
 0xcd8   :  { %v4880_v46 = vpop.f32.mrb[28].mxu1  ;;  %5124 = vrot.lane.b32.xlu0 %v5048_v44, %s11173_s5 }
 0xcd9   :  { %v4881_v42 = vadd.f32 %v4880_v46, %v13785_v22  ;;  %v9765_v6 = vpop.f32.mrb[29].mxu1  ;;  %v5068_v46 = vsub.f32 0.0, %v5060_v12 }
 0xcdb   :  { %v5049_v32 = vrot.slane %v4881_v42, 5  ;;  %v5061_v42 = vadd.f32 %v5045_v23, %v13776_v53  ;;  %v5076_v6 = vmul.f32 1.442695, %v5068_v46 }
 0xcdd   :  { %5126 = vrot.lane.b32.xlu1 %v5049_v32, %s11173_s5  ;;  %v5069_v22 = vsub.f32 0.0, %v5061_v42  ;;  %10851 = vpow2.f32 %v5076_v6  ;;  %v5065_v7 = vadd.f32 %v5049_v32, %v11550_v61 }
 0xcdf   :  { %v5073_v42 = vsub.f32 0.0, %v5065_v7 }
 0xce4   :  { %v5032_v57 = vpop.f32.mrb[30].mxu1 }
 0xce5   :  { %v4956_v34 = vpop.f32.mrb[30].mxu0  ;;  %v5033_v28 = vadd.f32 %v5032_v57, %v13786_v30  ;;  %v9787_v8 = vpop.f32.mrb[31].mxu1  ;;  %v5078_v57 = vmul.f32 1.442695, %v5069_v22 }
 0xce6   :  { %v4957_v10 = vadd.f32 %v4956_v34, %v13787_v35  ;;  %v9776_v16 = vpop.f32.mrb[31].mxu0  ;;  %v5063_v8 = vadd.f32 %v5047_v15, %v11544_v27  ;;  %v5086_v15 = vmul.f32 1.442695, %v5073_v42 }
 0xce7   :  { %v5051_v21 = vrot.slane %v5033_v28, 5  ;;  %v5070_v16 = vsub.f32 0.0, %v5062_v39  ;;  %10853 = vpow2.f32 %v5078_v57  ;;  %v5064_v28 = vadd.f32 %v5048_v44, %v11547_v50  ;;  %v10852_v12 = vpop.eup %10851 }
 0xce8   :  { %v5050_v11 = vrot.slane %v4957_v10, 5  ;;  %v5071_v34 = vsub.f32 0.0, %v5063_v8  ;;  %v5092_v46 = vadd.f32 1.0, %v10852_v12 }
 0xce9   :  { %5130 = vrot.lane.b32.xlu1 %v5051_v21, %s11173_s5  ;;  %v5080_v10 = vmul.f32 1.442695, %v5070_v16  ;;  %v5072_v23 = vsub.f32 0.0, %v5064_v28  ;;  %v5067_v39 = vadd.f32 %v5051_v21, %v13777_v20 }
 0xcea   :  { %5128 = vrot.lane.b32.xlu0 %v5050_v11, %s11173_s5  ;;  %v5082_v35 = vmul.f32 1.442695, %v5071_v34  ;;  %v5066_v6 = vadd.f32 %v5050_v11, %v11553_v41 }
 0xceb   :  { %10855 = vpow2.f32 %v5080_v10  ;;  %v5084_v13 = vmul.f32 1.442695, %v5072_v23  ;;  %v5075_v57 = vsub.f32 0.0, %v5067_v39 }
 0xcec   :  { %10857 = vpow2.f32 %v5082_v35  ;;  %v5074_v16 = vsub.f32 0.0, %v5066_v6 }
 0xced   :  { %10859 = vrcp.f32 %v5092_v46  ;;  %v5090_v34 = vmul.f32 1.442695, %v5075_v57 }
 0xcee   :  { %10861 = vpow2.f32 %v5084_v13  ;;  %v5088_v10 = vmul.f32 1.442695, %v5074_v16 }
 0xcef   :  { %10863 = vpow2.f32 %v5086_v15 }
 0xcf1   :  { %v10854_v30 = vpop.eup %10853 }
 0xcf2   :  { %v5093_v22 = vadd.f32 1.0, %v10854_v30 }
 0xcf4   :  { %10865 = vrcp.f32 %v5093_v22 }
 0xcf5   :  { %v10856_v44 = vpop.eup %10855 }
 0xcf6   :  { %v10858_v8 = vpop.eup %10857  ;;  %v5094_v32 = vadd.f32 1.0, %v10856_v44 }
 0xcf7   :  { %v5095_v35 = vadd.f32 1.0, %v10858_v8  ;;  %v12611_v28 = vpop.eup %10859 }
 0xcf8   :  { %10867 = vrcp.f32 %v5094_v32  ;;  %v10862_v7 = vpop.eup %10861 }
 0xcf9   :  { %10869 = vrcp.f32 %v5095_v35  ;;  %v10864_v11 = vpop.eup %10863  ;;  %v5096_v12 = vadd.f32 1.0, %v10862_v7 }
 0xcfa   :  { %10871 = vpow2.f32 %v5090_v34  ;;  %v5097_v13 = vadd.f32 1.0, %v10864_v11 }
 0xcfb   :  { %10873 = vpow2.f32 %v5088_v10 }
 0xcfc   :  { %10875 = vrcp.f32 %v5096_v12 }
 0xcfd   :  { %10877 = vrcp.f32 %v5097_v13 }
 0xcfe   :  { %v12615_v23 = vpop.eup %10865 }
 0xd02   :  { %v12619_v15 = vpop.eup %10867 }
 0xd03   :  { %v12622_v6 = vpop.eup %10869 }
 0xd04   :  { %v10872_v44 = vpop.eup %10871 }
 0xd05   :  { %v10874_v8 = vpop.eup %10873  ;;  %v5099_v16 = vadd.f32 1.0, %v10872_v44 }
 0xd06   :  { %v5098_v35 = vadd.f32 1.0, %v10874_v8  ;;  %v12627_v34 = vpop.eup %10875 }
 0xd07   :  { %10879 = vrcp.f32 %v5099_v16 }
 0xd08   :  { %10881 = vrcp.f32 %v5098_v35 }
 0xd39   :  { %v5117_v21 = vpop.permute.xlu0 %5116 }
 0xd3a   :  { %v5140_v30 = vmul.f32 %v12611_v28, %v5117_v21  ;;  %v12630_v21 = vpop.eup %10877 }
 0xd3b   :  { %v12635_v12 = vpop.eup %10879 }
 0xd3c   :  { %5156 = vrot.lane.b32.xlu0 %v5140_v30, %s11173_s5 }
 0xd3d   :  { %v5119_v46 = vpop.permute.xlu1 %5118 }
 0xd3e   :  { %v5141_v42 = vmul.f32 %v12615_v23, %v5119_v46 }
 0xd40   :  { %5158 = vrot.lane.b32.xlu1 %v5141_v42, %s11173_s5  ;;  %v12637_v42 = vpop.eup %10881 }
 0xd42   :  { %v5121_v39 = vpop.permute.xlu0 %5120 }
 0xd43   :  { %v5142_v22 = vmul.f32 %v12619_v15, %v5121_v39 }
 0xd45   :  { %5160 = vrot.lane.b32.xlu0 %v5142_v22, %s11173_s5 }
 0xd46   :  { %v5123_v57 = vpop.permute.xlu1 %5122 }
 0xd47   :  { %v5143_v32 = vmul.f32 %v12622_v6, %v5123_v57 }
 0xd49   :  { %5162 = vrot.lane.b32.xlu1 %v5143_v32, %s11173_s5 }
 0xd4a   :  { %v5125_v10 = vpop.permute.xlu0 %5124 }
 0xd4b   :  { %v5144_v7 = vmul.f32 %v12627_v34, %v5125_v10 }
 0xd4d   :  { %5164 = vrot.lane.b32.xlu0 %v5144_v7, %s11173_s5 }
 0xd4f   :  { %v5127_v30 = vpop.permute.xlu1 %5126 }
 0xd50   :  { %v5145_v11 = vmul.f32 %v12630_v21, %v5127_v30 }
 0xd52   :  { %5166 = vrot.lane.b32.xlu1 %v5145_v11, %s11173_s5 }
 0xd5b   :  { %v5131_v46 = vpop.permute.xlu1 %5130 }
 0xd5c   :  { %v5147_v13 = vmul.f32 %v12635_v12, %v5131_v46  ;;  %v5129_v39 = vpop.permute.xlu0 %5128 }
 0xd5d   :  { %v5146_v22 = vmul.f32 %v12637_v42, %v5129_v39 }
 0xd5e   :  { %5170 = vrot.lane.b32.xlu1 %v5147_v13, %s11173_s5 }
 0xd5f   :  { %5168 = vrot.lane.b32.xlu0 %v5146_v22, %s11173_s5 }
 0xdae   :  { %v5157_v44 = vpop.permute.xlu0 %5156 }
 0xdaf   :  { %v5180_v8 = vadd.f32 %v5157_v44, %v11533_v37 }
 0xdb1   :  { %10883 = vtanh.f32 %v5180_v8 }
 0xdb2   :  { %v5159_v57 = vpop.permute.xlu1 %5158 }
 0xdb3   :  { %v5181_v32 = vadd.f32 %v5159_v57, %v13776_v53 }
 0xdb5   :  { %10885 = vtanh.f32 %v5181_v32 }
 0xdb7   :  { %v5161_v16 = vpop.permute.xlu0 %5160 }
 0xdb8   :  { %v5182_v35 = vadd.f32 %v5161_v16, %v11541_v36 }
 0xdba   :  { %10887 = vtanh.f32 %v5182_v35 }
 0xdbb   :  { %v5163_v10 = vpop.permute.xlu1 %5162  ;;  %v10884_v7 = vpop.eup %10883 }
 0xdbc   :  { %v5183_v30 = vadd.f32 %v5163_v10, %v11544_v27  ;;  %5212 = vrot.lane.b32.xlu0 %v10884_v7, %s11175_s15 }
 0xdbe   :  { %10889 = vtanh.f32 %v5183_v30 }
 0xdbf   :  { %v10886_v11 = vpop.eup %10885  ;;  %v5165_v46 = vpop.permute.xlu0 %5164 }
 0xdc0   :  { %v5184_v13 = vadd.f32 %v5165_v46, %v11547_v50  ;;  %5214 = vrot.lane.b32.xlu1 %v10886_v11, %s11175_s15  ;;  %v5196_v46 = vsub.f32 1.0, %v12611_v28 }
 0xdc2   :  { %10891 = vtanh.f32 %v5184_v13  ;;  %v5244_v13 = vrot.slane %v12422_v33, 7 }
 0xdc4   :  { %v5167_v39 = vpop.permute.xlu1 %5166  ;;  %v10888_v22 = vpop.eup %10887 }
 0xdc5   :  { %v5185_v44 = vadd.f32 %v5167_v39, %v11550_v61  ;;  %5216 = vrot.lane.b32.xlu0 %v10888_v22, %s11175_s15  ;;  %v5260_v22 = vmul.f32 %v12611_v28, %v5244_v13 }
 0xdc7   :  { %10893 = vtanh.f32 %v5185_v44 }
 0xdc8   :  { %v10890_v8 = vpop.eup %10889 }
 0xdc9   :  { %5218 = vrot.lane.b32.xlu1 %v10890_v8, %s11175_s15 }
 0xdcc   :  { %v10892_v35 = vpop.eup %10891 }
 0xdcd   :  { %5220 = vrot.lane.b32.xlu0 %v10892_v35, %s11175_s15 }
 0xdd0   :  { %v5171_v57 = vpop.permute.xlu1 %5170 }
 0xdd1   :  { %v5187_v32 = vadd.f32 %v5171_v57, %v13777_v20  ;;  %v5169_v16 = vpop.permute.xlu0 %5168  ;;  %v10894_v7 = vpop.eup %10893  ;;  %v5197_v57 = vsub.f32 1.0, %v12615_v23 }
 0xdd2   :  { %v5186_v10 = vadd.f32 %v5169_v16, %v11553_v41  ;;  %5222 = vrot.lane.b32.xlu1 %v10894_v7, %s11175_s15 }
 0xdd3   :  { %10895 = vtanh.f32 %v5187_v32  ;;  %v5245_v32 = vrot.slane %v12435_v59, 7 }
 0xdd4   :  { %10897 = vtanh.f32 %v5186_v10 }
 0xdd5   :  { %v5261_v10 = vmul.f32 %v12615_v23, %v5245_v32 }
 0xddd   :  { %v10896_v30 = vpop.eup %10895 }
 0xdde   :  { %v10898_v11 = vpop.eup %10897  ;;  %5226 = vrot.lane.b32.xlu1 %v10896_v30, %s11175_s15  ;;  %v5198_v30 = vsub.f32 1.0, %v12619_v15 }
 0xddf   :  { %5224 = vrot.lane.b32.xlu0 %v10898_v11, %s11175_s15  ;;  %v5246_v11 = vrot.slane %v12449_v45, 7 }
 0xe2e   :  { %v5213_v39 = vpop.permute.xlu0 %5212 }
 0xe2f   :  { %v5236_v44 = vmul.f32 %v5213_v39, %v5196_v46 }
 0xe31   :  { %v12662_v8 = vadd.f32 %v5260_v22, %v5236_v44  ;;  %v5199_v22 = vsub.f32 1.0, %v12622_v6  ;;  %v5247_v44 = vrot.slane %v12463_v19, 7 }
 0xe32   :  { %v5215_v16 = vpop.permute.xlu1 %5214 }
 0xe33   :  { %v12669_v35 = vsel %vm8686_vm8, %v12431_v5, %v12662_v8  ;;  %v5237_v33 = vmul.f32 %v5215_v16, %v5197_v57  ;;  %v5277_v7 = vrot.slane %v12662_v8, 3  ;;  %v5262_v5 = vmul.f32 %v12619_v15, %v5246_v11 }
 0xe34   :  { %v5201_v11 = vsub.f32 1.0, %v12630_v21 }
 0xe35   :  { %v12673_v28 = vadd.f32 %v5261_v10, %v5237_v33  ;;  %5278 = vrot.lane.b32.xlu0 %v5277_v7, %s11175_s15  ;;  %v5200_v10 = vsub.f32 1.0, %v12627_v34  ;;  %v5248_v33 = vrot.slane %v12480_v9, 7 }
 0xe37   :  { %v5217_v59 = vpop.permute.xlu0 %5216  ;;  %v12681_v46 = vsel %vm8686_vm8, %v12445_v14, %v12673_v28  ;;  %v5353_v13 = vrot.slane %v12673_v28, 3  ;;  %v5263_v14 = vmul.f32 %v12622_v6, %v5247_v44  ;;  %v5264_v6 = vmul.f32 %v12627_v34, %v5248_v33 }
 0xe38   :  { %v5238_v23 = vmul.f32 %v5217_v59, %v5198_v30  ;;  %v5249_v59 = vrot.slane %v12491_v3, 7 }
 0xe39   :  { %5354 = vrot.lane.b32.xlu1 %v5353_v13, %s11175_s15 }
 0xe3a   :  { %v12685_v39 = vadd.f32 %v5262_v5, %v5238_v23  ;;  %v5265_v23 = vmul.f32 %v12630_v21, %v5249_v59  ;;  %v5203_v21 = vsub.f32 1.0, %v12635_v12 }
 0xe3b   :  { %v5219_v45 = vpop.permute.xlu1 %5218 }
 0xe3c   :  { %v12693_v57 = vsel %vm8686_vm8, %v12459_v29, %v12685_v39  ;;  %v5239_v15 = vmul.f32 %v5219_v45, %v5199_v22  ;;  %v5429_v32 = vrot.slane %v12685_v39, 3 }
 0xe3e   :  { %v12697_v16 = vadd.f32 %v5263_v14, %v5239_v15  ;;  %5430 = vrot.lane.b32.xlu0 %v5429_v32, %s11175_s15  ;;  %v5202_v14 = vsub.f32 1.0, %v12637_v42  ;;  %v5250_v15 = vrot.slane %v12514_v18, 7 }
 0xe3f   :  { %v5221_v29 = vpop.permute.xlu0 %5220 }
 0xe40   :  { %v12705_v19 = vsel %vm8686_vm8, %v12473_v43, %v12697_v16  ;;  %v5505_v7 = vrot.slane %v12697_v16, 3  ;;  %v5240_v30 = vmul.f32 %v5221_v29, %v5200_v10 }
 0xe42   :  { %5506 = vrot.lane.b32.xlu1 %v5505_v7, %s11175_s15  ;;  %v12712_v5 = vadd.f32 %v5264_v6, %v5240_v30 }
 0xe44   :  { %v5223_v9 = vpop.permute.xlu1 %5222  ;;  %v12718_v43 = vsel %vm8686_vm8, %v12488_v31, %v12712_v5  ;;  %v5581_v34 = vrot.slane %v12712_v5, 3  ;;  %v5251_v31 = vrot.slane %v12509_v17, 7 }
 0xe45   :  { %v5241_v13 = vmul.f32 %v5223_v9, %v5201_v11 }
 0xe46   :  { %5582 = vrot.lane.b32.xlu0 %v5581_v34, %s11175_s15  ;;  %v5267_v32 = vmul.f32 %v12635_v12, %v5251_v31 }
 0xe47   :  { %v12721_v22 = vadd.f32 %v5265_v23, %v5241_v13 }
 0xe49   :  { %v12727_v3 = vsel %vm8686_vm8, %v12499_v58, %v12721_v22  ;;  %v5657_v44 = vrot.slane %v12721_v22, 3  ;;  %v5266_v58 = vmul.f32 %v12637_v42, %v5250_v15  ;;  %v13789_v15 = vld [vmem:[#allocation38_spill] sm:$0xff] }
 0xe4b   :  { %5658 = vrot.lane.b32.xlu1 %v5657_v44, %s11175_s15  ;;  %v13788_v44 = vld [vmem:[#allocation36_spill] sm:$0xff] }
 0xe50   :  { %v5227_v45 = vpop.permute.xlu1 %5226 }
 0xe51   :  { %v5243_v10 = vmul.f32 %v5227_v45, %v5203_v21  ;;  %v5225_v33 = vpop.permute.xlu0 %5224 }
 0xe52   :  { %v5242_v29 = vmul.f32 %v5225_v33, %v5202_v14 }
 0xe53   :  { %v12737_v7 = vadd.f32 %v5267_v32, %v5243_v10 }
 0xe54   :  { %v12739_v6 = vadd.f32 %v5266_v58, %v5242_v29  ;;  %v13790_v29 = vld [vmem:[#allocation39_spill] sm:$0xff] }
 0xe55   :  { %v12744_v17 = vsel %vm8686_vm8, %v12521_v62, %v12737_v7  ;;  %v5809_v30 = vrot.slane %v12737_v7, 3 }
 0xe56   :  { %v12750_v18 = vsel %vm8686_vm8, %v12526_v24, %v12739_v6  ;;  %v5733_v12 = vrot.slane %v12739_v6, 3 }
 0xe57   :  { %5810 = vrot.lane.b32.xlu1 %v5809_v30, %s11175_s15 }
 0xe58   :  { %5734 = vrot.lane.b32.xlu0 %v5733_v12, %s11175_s15 }
 0xea7   :  { %v5279_v42 = vpop.permute.xlu0 %5278 }
 0xea8   :  { %9797 = vmatmul.mubr.msk.f32.vlgmr.msra.gmra.mrb[32].mxu0 %vm857_vm4, %v5279_v42 }
 0xea9   :  { %10394 = vmatpush3.bf16.msra.mxu0 %v11626_v48  ;;  %9818 = vmatprep.mubr.msk.f32.mxu0 %vm11164_vm0, %v13769_v38 }
 0xeaa   :  { %10395 = vmatprep.subr.bf16.mxu0 %v13779_v40 }
 0xeab   :  { %v5355_v62 = vpop.permute.xlu1 %5354 }
 0xeac   :  { %9808 = vmatmul.mubr.msk.f32.vlgmr.msra.gmra.mrb[32].mxu1 %vm857_vm4, %v5355_v62 }
 0xead   :  { %10397 = vmatpush3.bf16.msra.mxu0 %v11640_v63  ;;  %10400 = vmatpush3.bf16.msra.mxu1 %v11630_v60 }
 0xeae   :  { %10401 = vmatprep.subr.bf16.mxu1 %v13779_v40  ;;  %10404 = vmatprep.subr.bf16.mxu0 %v13779_v40 }
 0xeaf   :  { %9829 = vmatprep.mubr.msk.f32.mxu1 %vm11164_vm0, %v13769_v38 }
 0xeb0   :  { %v5431_v24 = vpop.permute.xlu0 %5430 }
 0xeb1   :  { %9819 = vmatmul.mubr.msk.f32.vlgmr.msra.gmra.mrb[34].mxu0 %vm857_vm4, %v5431_v24  ;;  %10403 = vmatpush3.bf16.msra.mxu1 %v11644_v49  ;;  %v13791_v24 = vld [vmem:[#allocation42_spill] sm:$0xff] }
 0xeb2   :  { %10406 = vmatpush3.bf16.msra.mxu0 %v11652_v25  ;;  %10410 = vmatprep.subr.bf16.mxu1 %v13779_v40 }
 0xeb3   :  { %10407 = vmatprep.subr.bf16.mxu0 %v13779_v40  ;;  %9840 = vmatprep.mubr.msk.f32.mxu0 %vm11164_vm0, %v13769_v38 }
 0xeb4   :  { %v5507_v11 = vpop.permute.xlu1 %5506 }
 0xeb5   :  { %9830 = vmatmul.mubr.msk.f32.vlgmr.msra.gmra.mrb[34].mxu1 %vm857_vm4, %v5507_v11 }
 0xeb6   :  { %10409 = vmatpush3.bf16.msra.mxu0 %v11666_v54  ;;  %10412 = vmatpush3.bf16.msra.mxu1 %v11656_v51 }
 0xeb7   :  { %10413 = vmatprep.subr.bf16.mxu1 %v13779_v40  ;;  %9851 = vmatprep.mubr.msk.f32.mxu1 %vm11164_vm0, %v13769_v38 }
 0xeb8   :  { %10416 = vmatprep.subr.bf16.mxu0 %v13779_v40  ;;  %v5583_v59 = vpop.permute.xlu0 %5582 }
 0xeb9   :  { %9841 = vmatmul.mubr.msk.f32.vlgmr.msra.gmra.mrb[36].mxu0 %vm857_vm4, %v5583_v59 }
 0xeba   :  { %10415 = vmatpush3.bf16.msra.mxu1 %v11670_v52  ;;  %10418 = vmatpush3.bf16.msra.mxu0 %v11678_v0 }
 0xebb   :  { %10422 = vmatprep.subr.bf16.mxu1 %v13779_v40  ;;  %10419 = vmatprep.subr.bf16.mxu0 %v13779_v40 }
 0xebc   :  { %9862 = vmatprep.mubr.msk.f32.mxu0 %vm11164_vm0, %v13769_v38 }
 0xebd   :  { %v5659_v9 = vpop.permute.xlu1 %5658 }
 0xebe   :  { %9852 = vmatmul.mubr.msk.f32.vlgmr.msra.gmra.mrb[36].mxu1 %vm857_vm4, %v5659_v9  ;;  %10421 = vmatpush3.bf16.msra.mxu0 %v11692_v2 }
 0xebf   :  { %10424 = vmatpush3.bf16.msra.mxu1 %v11682_v1  ;;  %9873 = vmatprep.mubr.msk.f32.mxu1 %vm11164_vm0, %v13769_v38 }
 0xec0   :  { %10425 = vmatprep.subr.bf16.mxu1 %v13779_v40  ;;  %10428 = vmatprep.subr.bf16.mxu0 %v13779_v40 }
 0xec3   :  { %10427 = vmatpush3.bf16.msra.mxu1 %v11696_v4 }
 0xec4   :  { %10434 = vmatprep.subr.bf16.mxu1 %v13779_v40 }
 0xec9   :  { %v5811_v23 = vpop.permute.xlu1 %5810 }
 0xeca   :  { %v5735_v13 = vpop.permute.xlu0 %5734  ;;  %9874 = vmatmul.mubr.msk.f32.vlgmr.msra.gmra.mrb[38].mxu1 %vm857_vm4, %v5811_v23 }
 0xecb   :  { %9863 = vmatmul.mubr.msk.f32.vlgmr.msra.gmra.mrb[38].mxu0 %vm857_vm4, %v5735_v13  ;;  %10436 = vmatpush3.bf16.msra.mxu1 %v11608_v26  ;;  %v13792_v13 = vld [vmem:[#allocation37_spill] sm:$0xff] }
 0xecc   :  { %10430 = vmatpush3.bf16.msra.mxu0 %v11604_v47  ;;  %9884 = vmatprep.mubr.msk.f32.mxu0 %vm11164_vm0, %v13769_v38 }
 0xecd   :  { %10431 = vmatprep.subr.bf16.mxu0 %v13779_v40  ;;  %10437 = vmatprep.subr.bf16.mxu1 %v13779_v40 }
 0xece   :  { %9895 = vmatprep.mubr.msk.f32.mxu1 %vm11164_vm0, %v13769_v38 }
 0xecf   :  { %10439 = vmatpush3.bf16.msra.mxu1 %v11618_v55 }
 0xed0   :  { %10433 = vmatpush3.bf16.msra.mxu0 %v11614_v56  ;;  %10446 = vmatprep.subr.bf16.mxu1 %v13779_v40 }
 0xed1   :  { %10440 = vmatprep.subr.bf16.mxu0 %v13779_v40 }
 0xf7b   :  { %v5348_v34 = vpop.f32.mrb[32].mxu0 }
 0xf7c   :  { %v5349_v21 = vadd.f32 %v5348_v34, %v13788_v44  ;;  %v9798_v31 = vpop.f32.mrb[33].mxu0 }
 0xf7e   :  { %v5892_v45 = vrot.slane %v5349_v21, 4 }
 0xf7f   :  { %v5424_v14 = vpop.f32.mrb[32].mxu1 }
 0xf80   :  { %v5425_v32 = vadd.f32 %v5424_v14, %v13789_v15  ;;  %v9809_v10 = vpop.f32.mrb[33].mxu1  ;;  %5964 = vrot.lane.b32.xlu0 %v5892_v45, %s11173_s5 }
 0xf82   :  { %v5893_v33 = vrot.slane %v5425_v32, 4  ;;  %v13793_v32 = vld [vmem:[#allocation40_spill] sm:$0xff] }
 0xf84   :  { %v5500_v58 = vpop.f32.mrb[34].mxu0  ;;  %5966 = vrot.lane.b32.xlu1 %v5893_v33, %s11173_s5 }
 0xf85   :  { %v5501_v30 = vadd.f32 %v5500_v58, %v13790_v29  ;;  %v9820_v12 = vpop.f32.mrb[35].mxu0  ;;  %v13795_v29 = vld [vmem:[#allocation41_spill] sm:$0xff] }
 0xf87   :  { %v5894_v42 = vrot.slane %v5501_v30, 4 }
 0xf88   :  { %v5576_v62 = vpop.f32.mrb[34].mxu1 }
 0xf89   :  { %v5577_v11 = vadd.f32 %v5576_v62, %v13791_v24  ;;  %v9831_v59 = vpop.f32.mrb[35].mxu1  ;;  %5968 = vrot.lane.b32.xlu0 %v5894_v42, %s11173_s5 }
 0xf8a   :  { %v13794_v59 = vld [vmem:[#allocation43_spill] sm:$0xff] }
 0xf8b   :  { %v5895_v9 = vrot.slane %v5577_v11, 4 }
 0xf8c   :  { %v5652_v23 = vpop.f32.mrb[36].mxu0 }
 0xf8d   :  { %5970 = vrot.lane.b32.xlu1 %v5895_v9, %s11173_s5  ;;  %v5653_v34 = vadd.f32 %v5652_v23, %v13792_v13  ;;  %v9842_v21 = vpop.f32.mrb[37].mxu0  ;;  %v5910_v13 = vadd.f32 %v5894_v42, %v11541_v36 }
 0xf8f   :  { %v5896_v31 = vrot.slane %v5653_v34, 4  ;;  %v5908_v34 = vadd.f32 %v5892_v45, %v11533_v37 }
 0xf91   :  { %v5728_v14 = vpop.f32.mrb[36].mxu1  ;;  %5972 = vrot.lane.b32.xlu0 %v5896_v31, %s11173_s5 }
 0xf92   :  { %v5729_v10 = vadd.f32 %v5728_v14, %v13793_v32  ;;  %v9853_v58 = vpop.f32.mrb[37].mxu1  ;;  %v5916_v14 = vsub.f32 0.0, %v5908_v34 }
 0xf94   :  { %v5897_v30 = vrot.slane %v5729_v10, 4  ;;  %v5909_v10 = vadd.f32 %v5893_v33, %v13776_v53  ;;  %v5924_v58 = vmul.f32 1.442695, %v5916_v14 }
 0xf96   :  { %5974 = vrot.lane.b32.xlu1 %v5897_v30, %s11173_s5  ;;  %v5917_v32 = vsub.f32 0.0, %v5909_v10  ;;  %10899 = vpow2.f32 %v5924_v58  ;;  %v5913_v45 = vadd.f32 %v5897_v30, %v11550_v61 }
 0xf98   :  { %v5921_v10 = vsub.f32 0.0, %v5913_v45 }
 0xf9d   :  { %v5880_v12 = vpop.f32.mrb[38].mxu1 }
 0xf9e   :  { %v5804_v62 = vpop.f32.mrb[38].mxu0  ;;  %v5881_v11 = vadd.f32 %v5880_v12, %v13794_v59  ;;  %v9875_v24 = vpop.f32.mrb[39].mxu1  ;;  %v5926_v12 = vmul.f32 1.442695, %v5917_v32 }
 0xf9f   :  { %v5805_v15 = vadd.f32 %v5804_v62, %v13795_v29  ;;  %v9864_v44 = vpop.f32.mrb[39].mxu0  ;;  %v5911_v24 = vadd.f32 %v5895_v9, %v11544_v27  ;;  %v5934_v9 = vmul.f32 1.442695, %v5921_v10 }
 0xfa0   :  { %v5899_v23 = vrot.slane %v5881_v11, 4  ;;  %v5918_v44 = vsub.f32 0.0, %v5910_v13  ;;  %10901 = vpow2.f32 %v5926_v12  ;;  %v5912_v11 = vadd.f32 %v5896_v31, %v11547_v50  ;;  %v10900_v34 = vpop.eup %10899 }
 0xfa1   :  { %v5898_v21 = vrot.slane %v5805_v15, 4  ;;  %v5919_v62 = vsub.f32 0.0, %v5911_v24  ;;  %v5940_v14 = vadd.f32 1.0, %v10900_v34 }
 0xfa2   :  { %5978 = vrot.lane.b32.xlu1 %v5899_v23, %s11173_s5  ;;  %v5928_v15 = vmul.f32 1.442695, %v5918_v44  ;;  %v5920_v33 = vsub.f32 0.0, %v5912_v11  ;;  %v5915_v13 = vadd.f32 %v5899_v23, %v13777_v20 }
 0xfa3   :  { %5976 = vrot.lane.b32.xlu0 %v5898_v21, %s11173_s5  ;;  %v5930_v29 = vmul.f32 1.442695, %v5919_v62  ;;  %v5914_v58 = vadd.f32 %v5898_v21, %v11553_v41 }
 0xfa4   :  { %10903 = vpow2.f32 %v5928_v15  ;;  %v5932_v42 = vmul.f32 1.442695, %v5920_v33  ;;  %v5923_v12 = vsub.f32 0.0, %v5915_v13 }
 0xfa5   :  { %10905 = vpow2.f32 %v5930_v29  ;;  %v5922_v44 = vsub.f32 0.0, %v5914_v58 }
 0xfa6   :  { %10907 = vrcp.f32 %v5940_v14  ;;  %v5938_v62 = vmul.f32 1.442695, %v5923_v12 }
 0xfa7   :  { %10909 = vpow2.f32 %v5932_v42  ;;  %v5936_v15 = vmul.f32 1.442695, %v5922_v44 }
 0xfa8   :  { %10911 = vpow2.f32 %v5934_v9 }
 0xfaa   :  { %v10902_v59 = vpop.eup %10901 }
 0xfab   :  { %v5941_v32 = vadd.f32 1.0, %v10902_v59 }
 0xfad   :  { %10913 = vrcp.f32 %v5941_v32 }
 0xfae   :  { %v10904_v31 = vpop.eup %10903 }
 0xfaf   :  { %v10906_v24 = vpop.eup %10905  ;;  %v5942_v30 = vadd.f32 1.0, %v10904_v31 }
 0xfb0   :  { %v5943_v29 = vadd.f32 1.0, %v10906_v24  ;;  %v12835_v11 = vpop.eup %10907 }
 0xfb1   :  { %10915 = vrcp.f32 %v5942_v30  ;;  %v10910_v45 = vpop.eup %10909 }
 0xfb2   :  { %10917 = vrcp.f32 %v5943_v29  ;;  %v10912_v21 = vpop.eup %10911  ;;  %v5944_v34 = vadd.f32 1.0, %v10910_v45 }
 0xfb3   :  { %10919 = vpow2.f32 %v5938_v62  ;;  %v5945_v42 = vadd.f32 1.0, %v10912_v21 }
 0xfb4   :  { %10921 = vpow2.f32 %v5936_v15 }
 0xfb5   :  { %10923 = vrcp.f32 %v5944_v34 }
 0xfb6   :  { %10925 = vrcp.f32 %v5945_v42 }
 0xfb7   :  { %v12839_v33 = vpop.eup %10913 }
 0xfbb   :  { %v12843_v9 = vpop.eup %10915 }
 0xfbc   :  { %v12846_v58 = vpop.eup %10917 }
 0xfbd   :  { %v10920_v31 = vpop.eup %10919 }
 0xfbe   :  { %v10922_v24 = vpop.eup %10921  ;;  %v5947_v44 = vadd.f32 1.0, %v10920_v31 }
 0xfbf   :  { %v5946_v29 = vadd.f32 1.0, %v10922_v24  ;;  %v12851_v62 = vpop.eup %10923 }
 0xfc0   :  { %10927 = vrcp.f32 %v5947_v44 }
 0xfc1   :  { %10929 = vrcp.f32 %v5946_v29 }
 0xff2   :  { %v5965_v23 = vpop.permute.xlu0 %5964 }
 0xff3   :  { %v5988_v59 = vmul.f32 %v12835_v11, %v5965_v23  ;;  %v12854_v23 = vpop.eup %10925 }
 0xff4   :  { %v12859_v34 = vpop.eup %10927 }
 0xff5   :  { %6004 = vrot.lane.b32.xlu0 %v5988_v59, %s11173_s5 }
 0xff6   :  { %v5967_v14 = vpop.permute.xlu1 %5966 }
 0xff7   :  { %v5989_v10 = vmul.f32 %v12839_v33, %v5967_v14 }
 0xff9   :  { %6006 = vrot.lane.b32.xlu1 %v5989_v10, %s11173_s5  ;;  %v12861_v10 = vpop.eup %10929 }
 0xffb   :  { %v5969_v13 = vpop.permute.xlu0 %5968 }
 0xffc   :  { %v5990_v32 = vmul.f32 %v12843_v9, %v5969_v13 }
 0xffe   :  { %6008 = vrot.lane.b32.xlu0 %v5990_v32, %s11173_s5 }
 0xfff   :  { %v5971_v12 = vpop.permute.xlu1 %5970 }
0x1000   :  { %v5991_v30 = vmul.f32 %v12846_v58, %v5971_v12 }
0x1002   :  { %6010 = vrot.lane.b32.xlu1 %v5991_v30, %s11173_s5 }
0x1003   :  { %v5973_v15 = vpop.permute.xlu0 %5972 }
0x1004   :  { %v5992_v45 = vmul.f32 %v12851_v62, %v5973_v15 }
0x1006   :  { %6012 = vrot.lane.b32.xlu0 %v5992_v45, %s11173_s5 }
0x1008   :  { %v5975_v59 = vpop.permute.xlu1 %5974 }
0x1009   :  { %v5993_v21 = vmul.f32 %v12854_v23, %v5975_v59 }
0x100b   :  { %6014 = vrot.lane.b32.xlu1 %v5993_v21, %s11173_s5 }
0x1014   :  { %v5979_v14 = vpop.permute.xlu1 %5978 }
0x1015   :  { %v5995_v42 = vmul.f32 %v12859_v34, %v5979_v14  ;;  %v5977_v13 = vpop.permute.xlu0 %5976 }
0x1016   :  { %v5994_v32 = vmul.f32 %v12861_v10, %v5977_v13 }
0x1017   :  { %6018 = vrot.lane.b32.xlu1 %v5995_v42, %s11173_s5 }
0x1018   :  { %6016 = vrot.lane.b32.xlu0 %v5994_v32, %s11173_s5 }
0x1067   :  { %v6005_v31 = vpop.permute.xlu0 %6004 }
0x1068   :  { %v6028_v24 = vadd.f32 %v6005_v31, %v11533_v37 }
0x106a   :  { %10931 = vtanh.f32 %v6028_v24 }
0x106b   :  { %v6007_v12 = vpop.permute.xlu1 %6006 }
0x106c   :  { %v6029_v30 = vadd.f32 %v6007_v12, %v13776_v53 }
0x106e   :  { %10933 = vtanh.f32 %v6029_v30 }
0x1070   :  { %v6009_v44 = vpop.permute.xlu0 %6008 }
0x1071   :  { %v6030_v29 = vadd.f32 %v6009_v44, %v11541_v36 }
0x1073   :  { %10935 = vtanh.f32 %v6030_v29 }
0x1074   :  { %v6011_v15 = vpop.permute.xlu1 %6010  ;;  %v10932_v45 = vpop.eup %10931 }
0x1075   :  { %v6031_v59 = vadd.f32 %v6011_v15, %v11544_v27  ;;  %6060 = vrot.lane.b32.xlu0 %v10932_v45, %s11175_s15 }
0x1077   :  { %10937 = vtanh.f32 %v6031_v59 }
0x1078   :  { %v10934_v21 = vpop.eup %10933  ;;  %v6013_v14 = vpop.permute.xlu0 %6012 }
0x1079   :  { %v6032_v42 = vadd.f32 %v6013_v14, %v11547_v50  ;;  %6062 = vrot.lane.b32.xlu1 %v10934_v21, %s11175_s15  ;;  %v6044_v14 = vsub.f32 1.0, %v12835_v11 }
0x107b   :  { %10939 = vtanh.f32 %v6032_v42  ;;  %v6092_v42 = vrot.slane %v12662_v8, 7 }
0x107d   :  { %v6015_v13 = vpop.permute.xlu1 %6014  ;;  %v10936_v32 = vpop.eup %10935 }
0x107e   :  { %v6033_v31 = vadd.f32 %v6015_v13, %v11550_v61  ;;  %6064 = vrot.lane.b32.xlu0 %v10936_v32, %s11175_s15  ;;  %v6108_v32 = vmul.f32 %v12835_v11, %v6092_v42  ;;  %v6046_v11 = vsub.f32 1.0, %v12843_v9 }
0x1080   :  { %10941 = vtanh.f32 %v6033_v31 }
0x1081   :  { %v10938_v24 = vpop.eup %10937 }
0x1082   :  { %6066 = vrot.lane.b32.xlu1 %v10938_v24, %s11175_s15 }
0x1085   :  { %v10940_v29 = vpop.eup %10939 }
0x1086   :  { %6068 = vrot.lane.b32.xlu0 %v10940_v29, %s11175_s15 }
0x1089   :  { %v6019_v12 = vpop.permute.xlu1 %6018 }
0x108a   :  { %v6035_v30 = vadd.f32 %v6019_v12, %v13777_v20  ;;  %v6017_v44 = vpop.permute.xlu0 %6016  ;;  %v10942_v45 = vpop.eup %10941  ;;  %v6045_v12 = vsub.f32 1.0, %v12839_v33 }
0x108b   :  { %v6034_v15 = vadd.f32 %v6017_v44, %v11553_v41  ;;  %6070 = vrot.lane.b32.xlu1 %v10942_v45, %s11175_s15 }
0x108c   :  { %10943 = vtanh.f32 %v6035_v30  ;;  %v6093_v30 = vrot.slane %v12673_v28, 7 }
0x108d   :  { %10945 = vtanh.f32 %v6034_v15 }
0x108e   :  { %v6109_v15 = vmul.f32 %v12839_v33, %v6093_v30 }
0x1096   :  { %v10944_v59 = vpop.eup %10943 }
0x1097   :  { %v10946_v21 = vpop.eup %10945  ;;  %6074 = vrot.lane.b32.xlu1 %v10944_v59, %s11175_s15 }
0x1098   :  { %6072 = vrot.lane.b32.xlu0 %v10946_v21, %s11175_s15  ;;  %v6094_v21 = vrot.slane %v12685_v39, 7 }
0x10e7   :  { %v6061_v13 = vpop.permute.xlu0 %6060 }
0x10e8   :  { %v6084_v31 = vmul.f32 %v6061_v13, %v6044_v14 }
0x10ea   :  { %v12886_v24 = vadd.f32 %v6108_v32, %v6084_v31  ;;  %v6047_v32 = vsub.f32 1.0, %v12846_v58  ;;  %v6095_v31 = vrot.slane %v12697_v16, 7 }
0x10eb   :  { %v6063_v44 = vpop.permute.xlu1 %6062 }
0x10ec   :  { %v12893_v29 = vsel %vm225_vm1, %v12669_v35, %v12886_v24  ;;  %v6085_v45 = vmul.f32 %v6063_v44, %v6045_v12  ;;  %v6125_v8 = vrot.slane %v12886_v24, 4  ;;  %v6110_v35 = vmul.f32 %v12843_v9, %v6094_v21 }
0x10ed   :  { %v6049_v21 = vsub.f32 1.0, %v12854_v23 }
0x10ee   :  { %v12897_v59 = vadd.f32 %v6109_v15, %v6085_v45  ;;  %6126 = vrot.lane.b32.xlu0 %v6125_v8, %s11175_s15  ;;  %v6048_v15 = vsub.f32 1.0, %v12851_v62  ;;  %v6096_v45 = vrot.slane %v12712_v5, 7 }
0x10f0   :  { %v6065_v28 = vpop.permute.xlu0 %6064  ;;  %v12905_v14 = vsel %vm225_vm1, %v12681_v46, %v12897_v59  ;;  %v6201_v42 = vrot.slane %v12897_v59, 4  ;;  %v6111_v46 = vmul.f32 %v12846_v58, %v6095_v31  ;;  %v6112_v58 = vmul.f32 %v12851_v62, %v6096_v45 }
0x10f1   :  { %v6086_v33 = vmul.f32 %v6065_v28, %v6046_v11  ;;  %v6097_v28 = vrot.slane %v12721_v22, 7 }
0x10f2   :  { %6202 = vrot.lane.b32.xlu1 %v6201_v42, %s11175_s15 }
0x10f3   :  { %v12909_v13 = vadd.f32 %v6110_v35, %v6086_v33  ;;  %v6113_v33 = vmul.f32 %v12854_v23, %v6097_v28  ;;  %v6051_v23 = vsub.f32 1.0, %v12859_v34 }
0x10f4   :  { %v6067_v39 = vpop.permute.xlu1 %6066 }
0x10f5   :  { %v12917_v12 = vsel %vm225_vm1, %v12693_v57, %v12909_v13  ;;  %v6087_v9 = vmul.f32 %v6067_v39, %v6047_v32  ;;  %v6277_v30 = vrot.slane %v12909_v13, 4 }
0x10f7   :  { %v12921_v44 = vadd.f32 %v6111_v46, %v6087_v9  ;;  %6278 = vrot.lane.b32.xlu0 %v6277_v30, %s11175_s15  ;;  %v6050_v46 = vsub.f32 1.0, %v12861_v10  ;;  %v6098_v9 = vrot.slane %v12739_v6, 7 }
0x10f8   :  { %v6069_v57 = vpop.permute.xlu0 %6068 }
0x10f9   :  { %v12929_v16 = vsel %vm225_vm1, %v12705_v19, %v12921_v44  ;;  %v6353_v8 = vrot.slane %v12921_v44, 4  ;;  %v6088_v11 = vmul.f32 %v6069_v57, %v6048_v15 }
0x10fb   :  { %6354 = vrot.lane.b32.xlu1 %v6353_v8, %s11175_s15  ;;  %v12936_v35 = vadd.f32 %v6112_v58, %v6088_v11 }
0x10fd   :  { %v6071_v5 = vpop.permute.xlu1 %6070  ;;  %v12942_v19 = vsel %vm225_vm1, %v12718_v43, %v12936_v35  ;;  %v6429_v62 = vrot.slane %v12936_v35, 4  ;;  %v6099_v43 = vrot.slane %v12737_v7, 7 }
0x10fe   :  { %v6089_v42 = vmul.f32 %v6071_v5, %v6049_v21 }
0x10ff   :  { %6430 = vrot.lane.b32.xlu0 %v6429_v62, %s11175_s15  ;;  %v6115_v30 = vmul.f32 %v12859_v34, %v6099_v43 }
0x1100   :  { %v12945_v32 = vadd.f32 %v6113_v33, %v6089_v42 }
0x1102   :  { %v12951_v22 = vsel %vm225_vm1, %v12727_v3, %v12945_v32  ;;  %v6505_v31 = vrot.slane %v12945_v32, 4  ;;  %v6114_v3 = vmul.f32 %v12861_v10, %v6098_v9  ;;  %v13797_v9 = vld [vmem:[#allocation38_spill] sm:$0xff] }
0x1104   :  { %6506 = vrot.lane.b32.xlu1 %v6505_v31, %s11175_s15  ;;  %v13796_v31 = vld [vmem:[#allocation36_spill] sm:$0xff] }
0x1109   :  { %v6075_v39 = vpop.permute.xlu1 %6074 }
0x110a   :  { %v6091_v15 = vmul.f32 %v6075_v39, %v6051_v23  ;;  %v6073_v45 = vpop.permute.xlu0 %6072 }
0x110b   :  { %v6090_v57 = vmul.f32 %v6073_v45, %v6050_v46 }
0x110c   :  { %v12961_v8 = vadd.f32 %v6115_v30, %v6091_v15 }
0x110d   :  { %v12963_v58 = vadd.f32 %v6114_v3, %v6090_v57  ;;  %v13798_v57 = vld [vmem:[#allocation39_spill] sm:$0xff] }
0x110e   :  { %v12968_v7 = vsel %vm225_vm1, %v12744_v17, %v12961_v8  ;;  %v6657_v11 = vrot.slane %v12961_v8, 4 }
0x110f   :  { %v12974_v6 = vsel %vm225_vm1, %v12750_v18, %v12963_v58  ;;  %v6581_v34 = vrot.slane %v12963_v58, 4 }
0x1110   :  { %6658 = vrot.lane.b32.xlu1 %v6657_v11, %s11175_s15 }
0x1111   :  { %6582 = vrot.lane.b32.xlu0 %v6581_v34, %s11175_s15 }
0x1160   :  { %v6127_v10 = vpop.permute.xlu0 %6126 }
0x1161   :  { %9885 = vmatmul.mubr.msk.f32.vlgmr.msra.gmra.mrb[40].mxu0 %vm857_vm4, %v6127_v10 }
0x1162   :  { %10442 = vmatpush3.bf16.msra.mxu0 %v11626_v48  ;;  %9906 = vmatprep.mubr.msk.f32.mxu0 %vm11164_vm0, %v13769_v38 }
0x1163   :  { %10443 = vmatprep.subr.bf16.mxu0 %v13779_v40 }
0x1164   :  { %v6203_v17 = vpop.permute.xlu1 %6202 }
0x1165   :  { %9896 = vmatmul.mubr.msk.f32.vlgmr.msra.gmra.mrb[40].mxu1 %vm857_vm4, %v6203_v17 }
0x1166   :  { %10445 = vmatpush3.bf16.msra.mxu0 %v11640_v63  ;;  %10448 = vmatpush3.bf16.msra.mxu1 %v11630_v60 }
0x1167   :  { %10449 = vmatprep.subr.bf16.mxu1 %v13779_v40  ;;  %10452 = vmatprep.subr.bf16.mxu0 %v13779_v40 }
0x1168   :  { %9917 = vmatprep.mubr.msk.f32.mxu1 %vm11164_vm0, %v13769_v38 }
0x1169   :  { %v6279_v18 = vpop.permute.xlu0 %6278 }
0x116a   :  { %9907 = vmatmul.mubr.msk.f32.vlgmr.msra.gmra.mrb[42].mxu0 %vm857_vm4, %v6279_v18  ;;  %10451 = vmatpush3.bf16.msra.mxu1 %v11644_v49  ;;  %v13799_v18 = vld [vmem:[#allocation42_spill] sm:$0xff] }
0x116b   :  { %10454 = vmatpush3.bf16.msra.mxu0 %v11652_v25  ;;  %10458 = vmatprep.subr.bf16.mxu1 %v13779_v40 }
0x116c   :  { %10455 = vmatprep.subr.bf16.mxu0 %v13779_v40  ;;  %9928 = vmatprep.mubr.msk.f32.mxu0 %vm11164_vm0, %v13769_v38 }
0x116d   :  { %v6355_v21 = vpop.permute.xlu1 %6354 }
0x116e   :  { %9918 = vmatmul.mubr.msk.f32.vlgmr.msra.gmra.mrb[42].mxu1 %vm857_vm4, %v6355_v21 }
0x116f   :  { %10457 = vmatpush3.bf16.msra.mxu0 %v11666_v54  ;;  %10460 = vmatpush3.bf16.msra.mxu1 %v11656_v51 }
0x1170   :  { %10461 = vmatprep.subr.bf16.mxu1 %v13779_v40  ;;  %9939 = vmatprep.mubr.msk.f32.mxu1 %vm11164_vm0, %v13769_v38 }
0x1171   :  { %10464 = vmatprep.subr.bf16.mxu0 %v13779_v40  ;;  %v6431_v28 = vpop.permute.xlu0 %6430 }
0x1172   :  { %9929 = vmatmul.mubr.msk.f32.vlgmr.msra.gmra.mrb[44].mxu0 %vm857_vm4, %v6431_v28 }
0x1173   :  { %10463 = vmatpush3.bf16.msra.mxu1 %v11670_v52  ;;  %10466 = vmatpush3.bf16.msra.mxu0 %v11678_v0 }
0x1174   :  { %10470 = vmatprep.subr.bf16.mxu1 %v13779_v40  ;;  %10467 = vmatprep.subr.bf16.mxu0 %v13779_v40 }
0x1175   :  { %9950 = vmatprep.mubr.msk.f32.mxu0 %vm11164_vm0, %v13769_v38 }
0x1176   :  { %v6507_v5 = vpop.permute.xlu1 %6506 }
0x1177   :  { %9940 = vmatmul.mubr.msk.f32.vlgmr.msra.gmra.mrb[44].mxu1 %vm857_vm4, %v6507_v5  ;;  %10469 = vmatpush3.bf16.msra.mxu0 %v11692_v2 }
0x1178   :  { %10472 = vmatpush3.bf16.msra.mxu1 %v11682_v1  ;;  %9961 = vmatprep.mubr.msk.f32.mxu1 %vm11164_vm0, %v13769_v38 }
0x1179   :  { %10473 = vmatprep.subr.bf16.mxu1 %v13779_v40  ;;  %10476 = vmatprep.subr.bf16.mxu0 %v13779_v40 }
0x117c   :  { %10475 = vmatpush3.bf16.msra.mxu1 %v11696_v4 }
0x117d   :  { %10482 = vmatprep.subr.bf16.mxu1 %v13779_v40 }
0x1182   :  { %v6659_v33 = vpop.permute.xlu1 %6658 }
0x1183   :  { %v6583_v42 = vpop.permute.xlu0 %6582  ;;  %9962 = vmatmul.mubr.msk.f32.vlgmr.msra.gmra.mrb[46].mxu1 %vm857_vm4, %v6659_v33 }
0x1184   :  { %9951 = vmatmul.mubr.msk.f32.vlgmr.msra.gmra.mrb[46].mxu0 %vm857_vm4, %v6583_v42  ;;  %10484 = vmatpush3.bf16.msra.mxu1 %v11608_v26  ;;  %v13800_v42 = vld [vmem:[#allocation37_spill] sm:$0xff] }
0x1185   :  { %10478 = vmatpush3.bf16.msra.mxu0 %v11604_v47  ;;  %9972 = vmatprep.mubr.msk.f32.mxu0 %vm11164_vm0, %v13769_v38 }
0x1186   :  { %10479 = vmatprep.subr.bf16.mxu0 %v13779_v40  ;;  %10485 = vmatprep.subr.bf16.mxu1 %v13779_v40 }
0x1187   :  { %9983 = vmatprep.mubr.msk.f32.mxu1 %vm11164_vm0, %v13769_v38 }
0x1188   :  { %10487 = vmatpush3.bf16.msra.mxu1 %v11618_v55 }
0x1189   :  { %10481 = vmatpush3.bf16.msra.mxu0 %v11614_v56  ;;  %10494 = vmatprep.subr.bf16.mxu1 %v13779_v40 }
0x118a   :  { %10488 = vmatprep.subr.bf16.mxu0 %v13779_v40 }
0x1234   :  { %v6196_v62 = vpop.f32.mrb[40].mxu0 }
0x1235   :  { %v6197_v23 = vadd.f32 %v6196_v62, %v13796_v31  ;;  %v9886_v43 = vpop.f32.mrb[41].mxu0 }
0x1237   :  { %v6740_v39 = vrot.slane %v6197_v23, 3 }
0x1238   :  { %v6272_v46 = vpop.f32.mrb[40].mxu1 }
0x1239   :  { %v6273_v30 = vadd.f32 %v6272_v46, %v13797_v9  ;;  %v9897_v15 = vpop.f32.mrb[41].mxu1  ;;  %6812 = vrot.lane.b32.xlu0 %v6740_v39, %s11173_s5 }
0x123b   :  { %v6741_v45 = vrot.slane %v6273_v30, 3  ;;  %v13801_v30 = vld [vmem:[#allocation40_spill] sm:$0xff] }
0x123d   :  { %v6348_v3 = vpop.f32.mrb[42].mxu0  ;;  %6814 = vrot.lane.b32.xlu1 %v6741_v45, %s11173_s5 }
0x123e   :  { %v6349_v11 = vadd.f32 %v6348_v3, %v13798_v57  ;;  %v9908_v34 = vpop.f32.mrb[43].mxu0  ;;  %v13803_v57 = vld [vmem:[#allocation41_spill] sm:$0xff] }
0x1240   :  { %v6742_v10 = vrot.slane %v6349_v11, 3 }
0x1241   :  { %v6424_v17 = vpop.f32.mrb[42].mxu1 }
0x1242   :  { %v6425_v21 = vadd.f32 %v6424_v17, %v13799_v18  ;;  %v9919_v28 = vpop.f32.mrb[43].mxu1  ;;  %6816 = vrot.lane.b32.xlu0 %v6742_v10, %s11173_s5 }
0x1243   :  { %v13802_v28 = vld [vmem:[#allocation43_spill] sm:$0xff] }
0x1244   :  { %v6743_v5 = vrot.slane %v6425_v21, 3 }
0x1245   :  { %v6500_v33 = vpop.f32.mrb[44].mxu0 }
0x1246   :  { %6818 = vrot.lane.b32.xlu1 %v6743_v5, %s11173_s5  ;;  %v6501_v62 = vadd.f32 %v6500_v33, %v13800_v42  ;;  %v9930_v23 = vpop.f32.mrb[45].mxu0  ;;  %v6758_v42 = vadd.f32 %v6742_v10, %v11541_v36 }
0x1248   :  { %v6744_v43 = vrot.slane %v6501_v62, 3  ;;  %v6756_v62 = vadd.f32 %v6740_v39, %v11533_v37 }
0x124a   :  { %v6576_v46 = vpop.f32.mrb[44].mxu1  ;;  %6820 = vrot.lane.b32.xlu0 %v6744_v43, %s11173_s5 }
0x124b   :  { %v6577_v15 = vadd.f32 %v6576_v46, %v13801_v30  ;;  %v9941_v3 = vpop.f32.mrb[45].mxu1  ;;  %v6764_v46 = vsub.f32 0.0, %v6756_v62 }
0x124d   :  { %v6745_v11 = vrot.slane %v6577_v15, 3  ;;  %v6757_v15 = vadd.f32 %v6741_v45, %v13776_v53  ;;  %v6772_v3 = vmul.f32 1.442695, %v6764_v46 }
0x124f   :  { %6822 = vrot.lane.b32.xlu1 %v6745_v11, %s11173_s5  ;;  %v6765_v30 = vsub.f32 0.0, %v6757_v15  ;;  %10947 = vpow2.f32 %v6772_v3  ;;  %v6761_v39 = vadd.f32 %v6745_v11, %v11550_v61 }
0x1251   :  { %v6769_v15 = vsub.f32 0.0, %v6761_v39 }
0x1256   :  { %v6728_v34 = vpop.f32.mrb[46].mxu1 }
0x1257   :  { %v6652_v17 = vpop.f32.mrb[46].mxu0  ;;  %v6729_v21 = vadd.f32 %v6728_v34, %v13802_v28  ;;  %v9963_v18 = vpop.f32.mrb[47].mxu1  ;;  %v6774_v34 = vmul.f32 1.442695, %v6765_v30 }
0x1258   :  { %v6653_v9 = vadd.f32 %v6652_v17, %v13803_v57  ;;  %v9952_v31 = vpop.f32.mrb[47].mxu0  ;;  %v6759_v18 = vadd.f32 %v6743_v5, %v11544_v27  ;;  %v6782_v5 = vmul.f32 1.442695, %v6769_v15 }
0x1259   :  { %v6747_v33 = vrot.slane %v6729_v21, 3  ;;  %v6766_v31 = vsub.f32 0.0, %v6758_v42  ;;  %10949 = vpow2.f32 %v6774_v34  ;;  %v6760_v21 = vadd.f32 %v6744_v43, %v11547_v50  ;;  %v10948_v62 = vpop.eup %10947 }
0x125a   :  { %v6746_v23 = vrot.slane %v6653_v9, 3  ;;  %v6767_v17 = vsub.f32 0.0, %v6759_v18  ;;  %v6788_v46 = vadd.f32 1.0, %v10948_v62 }
0x125b   :  { %6826 = vrot.lane.b32.xlu1 %v6747_v33, %s11173_s5  ;;  %v6776_v9 = vmul.f32 1.442695, %v6766_v31  ;;  %v6768_v45 = vsub.f32 0.0, %v6760_v21  ;;  %v6763_v42 = vadd.f32 %v6747_v33, %v13777_v20 }
0x125c   :  { %6824 = vrot.lane.b32.xlu0 %v6746_v23, %s11173_s5  ;;  %v6778_v57 = vmul.f32 1.442695, %v6767_v17  ;;  %v6762_v3 = vadd.f32 %v6746_v23, %v11553_v41 }
0x125d   :  { %10951 = vpow2.f32 %v6776_v9  ;;  %v6780_v10 = vmul.f32 1.442695, %v6768_v45  ;;  %v6771_v34 = vsub.f32 0.0, %v6763_v42 }
0x125e   :  { %10953 = vpow2.f32 %v6778_v57  ;;  %v6770_v31 = vsub.f32 0.0, %v6762_v3 }
0x125f   :  { %10955 = vrcp.f32 %v6788_v46  ;;  %v6786_v17 = vmul.f32 1.442695, %v6771_v34 }
0x1260   :  { %10957 = vpow2.f32 %v6780_v10  ;;  %v6784_v9 = vmul.f32 1.442695, %v6770_v31 }
0x1261   :  { %10959 = vpow2.f32 %v6782_v5 }
0x1263   :  { %v10950_v28 = vpop.eup %10949 }
0x1264   :  { %v6789_v30 = vadd.f32 1.0, %v10950_v28 }
0x1266   :  { %10961 = vrcp.f32 %v6789_v30 }
0x1267   :  { %v10952_v43 = vpop.eup %10951 }
0x1268   :  { %v10954_v18 = vpop.eup %10953  ;;  %v6790_v11 = vadd.f32 1.0, %v10952_v43 }
0x1269   :  { %v6791_v57 = vadd.f32 1.0, %v10954_v18  ;;  %v13059_v21 = vpop.eup %10955 }
0x126a   :  { %10963 = vrcp.f32 %v6790_v11  ;;  %v10958_v39 = vpop.eup %10957 }
0x126b   :  { %10965 = vrcp.f32 %v6791_v57  ;;  %v10960_v23 = vpop.eup %10959  ;;  %v6792_v62 = vadd.f32 1.0, %v10958_v39 }
0x126c   :  { %10967 = vpow2.f32 %v6786_v17  ;;  %v6793_v10 = vadd.f32 1.0, %v10960_v23 }
0x126d   :  { %10969 = vpow2.f32 %v6784_v9 }
0x126e   :  { %10971 = vrcp.f32 %v6792_v62 }
0x126f   :  { %10973 = vrcp.f32 %v6793_v10 }
0x1270   :  { %v13063_v45 = vpop.eup %10961 }
0x1274   :  { %v13067_v5 = vpop.eup %10963 }
0x1275   :  { %v13070_v3 = vpop.eup %10965 }
0x1276   :  { %v10968_v43 = vpop.eup %10967 }
0x1277   :  { %v10970_v18 = vpop.eup %10969  ;;  %v6795_v31 = vadd.f32 1.0, %v10968_v43 }
0x1278   :  { %v6794_v57 = vadd.f32 1.0, %v10970_v18  ;;  %v13075_v17 = vpop.eup %10971 }
0x1279   :  { %10975 = vrcp.f32 %v6795_v31 }
0x127a   :  { %10977 = vrcp.f32 %v6794_v57 }
0x12ab   :  { %v6813_v33 = vpop.permute.xlu0 %6812 }
0x12ac   :  { %v6836_v28 = vmul.f32 %v13059_v21, %v6813_v33  ;;  %v13078_v33 = vpop.eup %10973 }
0x12ad   :  { %v13083_v62 = vpop.eup %10975 }
0x12ae   :  { %6852 = vrot.lane.b32.xlu0 %v6836_v28, %s11173_s5 }
0x12af   :  { %v6815_v46 = vpop.permute.xlu1 %6814 }
0x12b0   :  { %v6837_v15 = vmul.f32 %v13063_v45, %v6815_v46 }
0x12b2   :  { %6854 = vrot.lane.b32.xlu1 %v6837_v15, %s11173_s5  ;;  %v13085_v15 = vpop.eup %10977 }
0x12b4   :  { %v6817_v42 = vpop.permute.xlu0 %6816 }
0x12b5   :  { %v6838_v30 = vmul.f32 %v13067_v5, %v6817_v42 }
0x12b7   :  { %6856 = vrot.lane.b32.xlu0 %v6838_v30, %s11173_s5 }
0x12b8   :  { %v6819_v34 = vpop.permute.xlu1 %6818 }
0x12b9   :  { %v6839_v11 = vmul.f32 %v13070_v3, %v6819_v34 }
0x12bb   :  { %6858 = vrot.lane.b32.xlu1 %v6839_v11, %s11173_s5 }
0x12bc   :  { %v6821_v9 = vpop.permute.xlu0 %6820 }
0x12bd   :  { %v6840_v39 = vmul.f32 %v13075_v17, %v6821_v9 }
0x12bf   :  { %6860 = vrot.lane.b32.xlu0 %v6840_v39, %s11173_s5 }
0x12c1   :  { %v6823_v28 = vpop.permute.xlu1 %6822 }
0x12c2   :  { %v6841_v23 = vmul.f32 %v13078_v33, %v6823_v28 }
0x12c4   :  { %6862 = vrot.lane.b32.xlu1 %v6841_v23, %s11173_s5 }
0x12cd   :  { %v6827_v46 = vpop.permute.xlu1 %6826 }
0x12ce   :  { %v6843_v10 = vmul.f32 %v13083_v62, %v6827_v46  ;;  %v6825_v42 = vpop.permute.xlu0 %6824 }
0x12cf   :  { %v6842_v30 = vmul.f32 %v13085_v15, %v6825_v42 }
0x12d0   :  { %6866 = vrot.lane.b32.xlu1 %v6843_v10, %s11173_s5 }
0x12d1   :  { %6864 = vrot.lane.b32.xlu0 %v6842_v30, %s11173_s5 }
0x1320   :  { %v6853_v43 = vpop.permute.xlu0 %6852 }
0x1321   :  { %v6876_v18 = vadd.f32 %v6853_v43, %v11533_v37 }
0x1323   :  { %10979 = vtanh.f32 %v6876_v18 }
0x1324   :  { %v6855_v34 = vpop.permute.xlu1 %6854 }
0x1325   :  { %v6877_v11 = vadd.f32 %v6855_v34, %v13776_v53 }
0x1327   :  { %10981 = vtanh.f32 %v6877_v11 }
0x1329   :  { %v6857_v31 = vpop.permute.xlu0 %6856 }
0x132a   :  { %v6878_v57 = vadd.f32 %v6857_v31, %v11541_v36 }
0x132c   :  { %10983 = vtanh.f32 %v6878_v57 }
0x132d   :  { %v6859_v9 = vpop.permute.xlu1 %6858  ;;  %v10980_v39 = vpop.eup %10979 }
0x132e   :  { %v6879_v28 = vadd.f32 %v6859_v9, %v11544_v27  ;;  %6908 = vrot.lane.b32.xlu0 %v10980_v39, %s11175_s15 }
0x1330   :  { %10985 = vtanh.f32 %v6879_v28 }
0x1331   :  { %v10982_v23 = vpop.eup %10981  ;;  %v6861_v46 = vpop.permute.xlu0 %6860 }
0x1332   :  { %v6880_v10 = vadd.f32 %v6861_v46, %v11547_v50  ;;  %6910 = vrot.lane.b32.xlu1 %v10982_v23, %s11175_s15  ;;  %v6892_v46 = vsub.f32 1.0, %v13059_v21 }
0x1334   :  { %10987 = vtanh.f32 %v6880_v10  ;;  %v6940_v10 = vrot.slane %v12886_v24, 7 }
0x1336   :  { %v6863_v42 = vpop.permute.xlu1 %6862  ;;  %v10984_v30 = vpop.eup %10983 }
0x1337   :  { %v6881_v43 = vadd.f32 %v6863_v42, %v11550_v61  ;;  %6912 = vrot.lane.b32.xlu0 %v10984_v30, %s11175_s15  ;;  %v6956_v30 = vmul.f32 %v13059_v21, %v6940_v10 }
0x1339   :  { %10989 = vtanh.f32 %v6881_v43 }
0x133a   :  { %v10986_v18 = vpop.eup %10985 }
0x133b   :  { %6914 = vrot.lane.b32.xlu1 %v10986_v18, %s11175_s15 }
0x133e   :  { %v10988_v57 = vpop.eup %10987 }
0x133f   :  { %6916 = vrot.lane.b32.xlu0 %v10988_v57, %s11175_s15 }
0x1342   :  { %v6867_v34 = vpop.permute.xlu1 %6866 }
0x1343   :  { %v6883_v11 = vadd.f32 %v6867_v34, %v13777_v20  ;;  %v6865_v31 = vpop.permute.xlu0 %6864  ;;  %v10990_v39 = vpop.eup %10989  ;;  %v6893_v34 = vsub.f32 1.0, %v13063_v45 }
0x1344   :  { %v6882_v9 = vadd.f32 %v6865_v31, %v11553_v41  ;;  %6918 = vrot.lane.b32.xlu1 %v10990_v39, %s11175_s15 }
0x1345   :  { %10991 = vtanh.f32 %v6883_v11  ;;  %v6941_v11 = vrot.slane %v12897_v59, 7 }
0x1346   :  { %10993 = vtanh.f32 %v6882_v9 }
0x1347   :  { %v6957_v24 = vmul.f32 %v13063_v45, %v6941_v11 }
0x134f   :  { %v10992_v28 = vpop.eup %10991 }
0x1350   :  { %v10994_v23 = vpop.eup %10993  ;;  %6922 = vrot.lane.b32.xlu1 %v10992_v28, %s11175_s15  ;;  %v6894_v28 = vsub.f32 1.0, %v13067_v5 }
0x1351   :  { %6920 = vrot.lane.b32.xlu0 %v10994_v23, %s11175_s15  ;;  %v6942_v23 = vrot.slane %v12909_v13, 7 }
0x13a0   :  { %v6909_v42 = vpop.permute.xlu0 %6908 }
0x13a1   :  { %v6932_v43 = vmul.f32 %v6909_v42, %v6892_v46 }
0x13a3   :  { %v13110_v18 = vadd.f32 %v6956_v30, %v6932_v43  ;;  %v6895_v30 = vsub.f32 1.0, %v13070_v3  ;;  %v6943_v43 = vrot.slane %v12921_v44, 7 }
0x13a4   :  { %v6911_v31 = vpop.permute.xlu1 %6910 }
0x13a5   :  { %v6973_v57 = vrot.slane %v13110_v18, 5  ;;  %v13118_v9 = vsel %vm8703_vm9, %v12893_v29, %v13110_v18  ;;  %v6933_v39 = vmul.f32 %v6911_v31, %v6893_v34  ;;  %v6958_v29 = vmul.f32 %v13067_v5, %v6942_v23 }
0x13a6   :  { %v6897_v23 = vsub.f32 1.0, %v13078_v33 }
0x13a7   :  { %v13121_v21 = vadd.f32 %v6957_v24, %v6933_v39  ;;  %6974 = vrot.lane.b32.xlu0 %v6973_v57, %s11175_s15  ;;  %v6896_v57 = vsub.f32 1.0, %v13075_v17  ;;  %v6944_v24 = vrot.slane %v12936_v35, 7 }
0x13a9   :  { %v6913_v59 = vpop.permute.xlu0 %6912  ;;  %v7049_v46 = vrot.slane %v13121_v21, 5  ;;  %v13130_v10 = vsel %vm8703_vm9, %v12905_v14, %v13121_v21  ;;  %v6959_v14 = vmul.f32 %v13070_v3, %v6943_v43 }
0x13aa   :  { %v6934_v45 = vmul.f32 %v6913_v59, %v6894_v28  ;;  %v6960_v28 = vmul.f32 %v13075_v17, %v6944_v24  ;;  %v6945_v59 = vrot.slane %v12945_v32, 7 }
0x13ab   :  { %7050 = vrot.lane.b32.xlu1 %v7049_v46, %s11175_s15 }
0x13ac   :  { %v13133_v42 = vadd.f32 %v6958_v29, %v6934_v45  ;;  %v6961_v29 = vmul.f32 %v13078_v33, %v6945_v59  ;;  %v6899_v33 = vsub.f32 1.0, %v13083_v62 }
0x13ad   :  { %v6915_v13 = vpop.permute.xlu1 %6914 }
0x13ae   :  { %v7125_v34 = vrot.slane %v13133_v42, 5  ;;  %v13142_v11 = vsel %vm8703_vm9, %v12917_v12, %v13133_v42  ;;  %v6935_v5 = vmul.f32 %v6915_v13, %v6895_v30  ;;  %v6947_v13 = vrot.slane %v12961_v8, 7 }
0x13b0   :  { %v13145_v31 = vadd.f32 %v6959_v14, %v6935_v5  ;;  %7126 = vrot.lane.b32.xlu0 %v7125_v34, %s11175_s15  ;;  %v6946_v14 = vrot.slane %v12963_v58, 7  ;;  %v6963_v5 = vmul.f32 %v13083_v62, %v6947_v13 }
0x13b1   :  { %v6917_v12 = vpop.permute.xlu0 %6916 }
0x13b2   :  { %v7201_v44 = vrot.slane %v13145_v31, 5  ;;  %v13154_v39 = vsel %vm8703_vm9, %v12929_v16, %v13145_v31  ;;  %v6936_v3 = vmul.f32 %v6917_v12, %v6896_v57 }
0x13b4   :  { %7202 = vrot.lane.b32.xlu1 %v7201_v44, %s11175_s15  ;;  %v13160_v46 = vadd.f32 %v6960_v28, %v6936_v3  ;;  %v6962_v44 = vmul.f32 %v13085_v15, %v6946_v14 }
0x13b6   :  { %v6919_v35 = vpop.permute.xlu1 %6918  ;;  %v7277_v30 = vrot.slane %v13160_v46, 5  ;;  %v13167_v16 = vsel %vm8703_vm9, %v12942_v19, %v13160_v46  ;;  %v6898_v19 = vsub.f32 1.0, %v13085_v15 }
0x13b7   :  { %v6937_v45 = vmul.f32 %v6919_v35, %v6897_v23 }
0x13b8   :  { %7278 = vrot.lane.b32.xlu0 %v7277_v30, %s11175_s15 }
0x13b9   :  { %v13169_v17 = vadd.f32 %v6961_v29, %v6937_v45 }
0x13bb   :  { %v7353_v43 = vrot.slane %v13169_v17, 5  ;;  %v13176_v32 = vsel %vm8703_vm9, %v12951_v22, %v13169_v17 }
0x13bd   :  { %7354 = vrot.lane.b32.xlu1 %v7353_v43, %s11175_s15 }
0x13c2   :  { %v6923_v34 = vpop.permute.xlu1 %6922 }
0x13c3   :  { %v6939_v57 = vmul.f32 %v6923_v34, %v6899_v33  ;;  %v6921_v24 = vpop.permute.xlu0 %6920  ;;  %v13805_v34 = vld [vmem:[#allocation38_spill] sm:$0xff] }
0x13c4   :  { %v6938_v12 = vmul.f32 %v6921_v24, %v6898_v19 }
0x13c5   :  { %v13185_v22 = vadd.f32 %v6963_v5, %v6939_v57 }
0x13c6   :  { %v13187_v28 = vadd.f32 %v6962_v44, %v6938_v12 }
0x13c7   :  { %v7505_v3 = vrot.slane %v13185_v22, 5  ;;  %v13193_v8 = vsel %vm8703_vm9, %v12968_v7, %v13185_v22 }
0x13c8   :  { %v7429_v58 = vrot.slane %v13187_v28, 5  ;;  %v13199_v62 = vsel %vm8703_vm9, %v12974_v6, %v13187_v28 }
0x13c9   :  { %7506 = vrot.lane.b32.xlu1 %v7505_v3, %s11175_s15  ;;  %v13807_v3 = vld [vmem:[#allocation42_spill] sm:$0xff] }
0x13ca   :  { %7430 = vrot.lane.b32.xlu0 %v7429_v58, %s11175_s15 }
0x1419   :  { %v6975_v15 = vpop.permute.xlu0 %6974 }
0x141a   :  { %9973 = vmatmul.mubr.msk.f32.vlgmr.msra.gmra.mrb[48].mxu0 %vm857_vm4, %v6975_v15 }
0x141b   :  { %10490 = vmatpush3.bf16.msra.mxu0 %v11626_v48  ;;  %9994 = vmatprep.mubr.msk.f32.mxu0 %vm11164_vm0, %v13769_v38 }
0x141c   :  { %10491 = vmatprep.subr.bf16.mxu0 %v13779_v40 }
0x141d   :  { %v7051_v7 = vpop.permute.xlu1 %7050 }
0x141e   :  { %9984 = vmatmul.mubr.msk.f32.vlgmr.msra.gmra.mrb[48].mxu1 %vm857_vm4, %v7051_v7 }
0x141f   :  { %10493 = vmatpush3.bf16.msra.mxu0 %v11640_v63  ;;  %10496 = vmatpush3.bf16.msra.mxu1 %v11630_v60 }
0x1420   :  { %10497 = vmatprep.subr.bf16.mxu1 %v13779_v40  ;;  %10500 = vmatprep.subr.bf16.mxu0 %v13779_v40 }
0x1421   :  { %10005 = vmatprep.mubr.msk.f32.mxu1 %vm11164_vm0, %v13769_v38 }
0x1422   :  { %v7127_v6 = vpop.permute.xlu0 %7126 }
0x1423   :  { %9995 = vmatmul.mubr.msk.f32.vlgmr.msra.gmra.mrb[50].mxu0 %vm857_vm4, %v7127_v6  ;;  %10499 = vmatpush3.bf16.msra.mxu1 %v11644_v49 }
0x1424   :  { %10502 = vmatpush3.bf16.msra.mxu0 %v11652_v25  ;;  %10506 = vmatprep.subr.bf16.mxu1 %v13779_v40 }
0x1425   :  { %10503 = vmatprep.subr.bf16.mxu0 %v13779_v40  ;;  %10016 = vmatprep.mubr.msk.f32.mxu0 %vm11164_vm0, %v13769_v38 }
0x1426   :  { %v7203_v23 = vpop.permute.xlu1 %7202 }
0x1427   :  { %10006 = vmatmul.mubr.msk.f32.vlgmr.msra.gmra.mrb[50].mxu1 %vm857_vm4, %v7203_v23  ;;  %v13808_v23 = vld [vmem:[#allocation37_spill] sm:$0xff] }
0x1428   :  { %10505 = vmatpush3.bf16.msra.mxu0 %v11666_v54  ;;  %10508 = vmatpush3.bf16.msra.mxu1 %v11656_v51 }
0x1429   :  { %10509 = vmatprep.subr.bf16.mxu1 %v13779_v40  ;;  %10027 = vmatprep.mubr.msk.f32.mxu1 %vm11164_vm0, %v13769_v38 }
0x142a   :  { %10512 = vmatprep.subr.bf16.mxu0 %v13779_v40  ;;  %v7279_v59 = vpop.permute.xlu0 %7278 }
0x142b   :  { %10017 = vmatmul.mubr.msk.f32.vlgmr.msra.gmra.mrb[52].mxu0 %vm857_vm4, %v7279_v59 }
0x142c   :  { %10511 = vmatpush3.bf16.msra.mxu1 %v11670_v52  ;;  %10514 = vmatpush3.bf16.msra.mxu0 %v11678_v0 }
0x142d   :  { %10518 = vmatprep.subr.bf16.mxu1 %v13779_v40  ;;  %10515 = vmatprep.subr.bf16.mxu0 %v13779_v40 }
0x142e   :  { %10038 = vmatprep.mubr.msk.f32.mxu0 %vm11164_vm0, %v13769_v38 }
0x142f   :  { %v7355_v35 = vpop.permute.xlu1 %7354 }
0x1430   :  { %10028 = vmatmul.mubr.msk.f32.vlgmr.msra.gmra.mrb[52].mxu1 %vm857_vm4, %v7355_v35  ;;  %10517 = vmatpush3.bf16.msra.mxu0 %v11692_v2 }
0x1431   :  { %10520 = vmatpush3.bf16.msra.mxu1 %v11682_v1  ;;  %10049 = vmatprep.mubr.msk.f32.mxu1 %vm11164_vm0, %v13769_v38 }
0x1432   :  { %10521 = vmatprep.subr.bf16.mxu1 %v13779_v40  ;;  %10524 = vmatprep.subr.bf16.mxu0 %v13779_v40 }
0x1435   :  { %10523 = vmatpush3.bf16.msra.mxu1 %v11696_v4 }
0x1436   :  { %10530 = vmatprep.subr.bf16.mxu1 %v13779_v40 }
0x143b   :  { %v7507_v29 = vpop.permute.xlu1 %7506 }
0x143c   :  { %v7431_v45 = vpop.permute.xlu0 %7430  ;;  %10050 = vmatmul.mubr.msk.f32.vlgmr.msra.gmra.mrb[54].mxu1 %vm857_vm4, %v7507_v29 }
0x143d   :  { %10039 = vmatmul.mubr.msk.f32.vlgmr.msra.gmra.mrb[54].mxu0 %vm857_vm4, %v7431_v45  ;;  %10532 = vmatpush3.bf16.msra.mxu1 %v11608_v26 }
0x143e   :  { %10526 = vmatpush3.bf16.msra.mxu0 %v11604_v47  ;;  %10060 = vmatprep.mubr.msk.f32.mxu0 %vm11164_vm0, %v13769_v38  ;;  %v13804_v47 = vld [vmem:[#allocation36_spill] sm:$0xff] }
0x143f   :  { %10527 = vmatprep.subr.bf16.mxu0 %v13779_v40  ;;  %10533 = vmatprep.subr.bf16.mxu1 %v13779_v40 }
0x1440   :  { %10071 = vmatprep.mubr.msk.f32.mxu1 %vm11164_vm0, %v13769_v38 }
0x1441   :  { %10535 = vmatpush3.bf16.msra.mxu1 %v11618_v55  ;;  %v13806_v55 = vld [vmem:[#allocation39_spill] sm:$0xff] }
0x1442   :  { %10529 = vmatpush3.bf16.msra.mxu0 %v11614_v56  ;;  %10542 = vmatprep.subr.bf16.mxu1 %v13779_v40 }
0x1443   :  { %10536 = vmatprep.subr.bf16.mxu0 %v13779_v40 }
0x14ed   :  { %v7044_v26 = vpop.f32.mrb[48].mxu0 }
0x14ee   :  { %v7045_v30 = vadd.f32 %v7044_v26, %v13804_v47  ;;  %v9974_v43 = vpop.f32.mrb[49].mxu0  ;;  %v13809_v26 = vld [vmem:[#allocation40_spill] sm:$0xff] }
0x14f0   :  { %v7588_v33 = vrot.slane %v7045_v30, 2 }
0x14f1   :  { %v7120_v13 = vpop.f32.mrb[48].mxu1 }
0x14f2   :  { %v7121_v19 = vadd.f32 %v7120_v13, %v13805_v34  ;;  %v9985_v14 = vpop.f32.mrb[49].mxu1  ;;  %7660 = vrot.lane.b32.xlu0 %v7588_v33, %s11173_s5 }
0x14f4   :  { %v7589_v5 = vrot.slane %v7121_v19, 2 }
0x14f6   :  { %v7196_v57 = vpop.f32.mrb[50].mxu0  ;;  %7662 = vrot.lane.b32.xlu1 %v7589_v5, %s11173_s5 }
0x14f7   :  { %v7197_v24 = vadd.f32 %v7196_v57, %v13806_v55  ;;  %v9996_v56 = vpop.f32.mrb[51].mxu0  ;;  %v13810_v57 = vld [vmem:[#allocation43_spill] sm:$0xff] }
0x14f9   :  { %v7590_v44 = vrot.slane %v7197_v24, 2 }
0x14fa   :  { %v7272_v12 = vpop.f32.mrb[50].mxu1 }
0x14fb   :  { %v7273_v58 = vadd.f32 %v7272_v12, %v13807_v3  ;;  %v10007_v15 = vpop.f32.mrb[51].mxu1  ;;  %7664 = vrot.lane.b32.xlu0 %v7590_v44, %s11173_s5  ;;  %v13811_v12 = vld [vmem:[#allocation41_spill] sm:$0xff] }
0x14fd   :  { %v7591_v7 = vrot.slane %v7273_v58, 2 }
0x14fe   :  { %v7348_v6 = vpop.f32.mrb[52].mxu0 }
0x14ff   :  { %7666 = vrot.lane.b32.xlu1 %v7591_v7, %s11173_s5  ;;  %v7349_v59 = vadd.f32 %v7348_v6, %v13808_v23  ;;  %v10018_v35 = vpop.f32.mrb[53].mxu0  ;;  %v7606_v23 = vadd.f32 %v7590_v44, %v11541_v36 }
0x1501   :  { %v7592_v29 = vrot.slane %v7349_v59, 2  ;;  %v7604_v59 = vadd.f32 %v7588_v33, %v11533_v37 }
0x1503   :  { %v7424_v45 = vpop.f32.mrb[52].mxu1  ;;  %7668 = vrot.lane.b32.xlu0 %v7592_v29, %s11173_s5 }
0x1504   :  { %v7425_v30 = vadd.f32 %v7424_v45, %v13809_v26  ;;  %v10029_v43 = vpop.f32.mrb[53].mxu1  ;;  %v7612_v45 = vsub.f32 0.0, %v7604_v59 }
0x1506   :  { %v7593_v13 = vrot.slane %v7425_v30, 2  ;;  %v7605_v30 = vadd.f32 %v7589_v5, %v13776_v53  ;;  %v7620_v43 = vmul.f32 1.442695, %v7612_v45 }
0x1508   :  { %7670 = vrot.lane.b32.xlu1 %v7593_v13, %s11173_s5  ;;  %v7613_v26 = vsub.f32 0.0, %v7605_v30  ;;  %10995 = vpow2.f32 %v7620_v43  ;;  %v7609_v33 = vadd.f32 %v7593_v13, %v11550_v61 }
0x150a   :  { %v7617_v30 = vsub.f32 0.0, %v7609_v33 }
0x150f   :  { %v7576_v19 = vpop.f32.mrb[54].mxu1 }
0x1510   :  { %v7500_v14 = vpop.f32.mrb[54].mxu0  ;;  %v7577_v24 = vadd.f32 %v7576_v19, %v13810_v57  ;;  %v10051_v56 = vpop.f32.mrb[55].mxu1  ;;  %v7607_v19 = vadd.f32 %v7591_v7, %v11544_v27  ;;  %v7630_v7 = vmul.f32 1.442695, %v7617_v30 }
0x1511   :  { %v7501_v58 = vadd.f32 %v7500_v14, %v13811_v12  ;;  %v10040_v15 = vpop.f32.mrb[55].mxu0  ;;  %v7622_v14 = vmul.f32 1.442695, %v7613_v26  ;;  %v7614_v56 = vsub.f32 0.0, %v7606_v23 }
0x1512   :  { %v7595_v6 = vrot.slane %v7577_v24, 2  ;;  %v7615_v24 = vsub.f32 0.0, %v7607_v19  ;;  %v7608_v15 = vadd.f32 %v7592_v29, %v11547_v50  ;;  %v10996_v59 = vpop.eup %10995 }
0x1513   :  { %v7594_v35 = vrot.slane %v7501_v58, 2  ;;  %10997 = vpow2.f32 %v7622_v14  ;;  %v7624_v58 = vmul.f32 1.442695, %v7614_v56  ;;  %v7636_v45 = vadd.f32 1.0, %v10996_v59 }
0x1514   :  { %7674 = vrot.lane.b32.xlu1 %v7595_v6, %s11173_s5  ;;  %v7626_v12 = vmul.f32 1.442695, %v7615_v24  ;;  %v7616_v5 = vsub.f32 0.0, %v7608_v15  ;;  %v7611_v23 = vadd.f32 %v7595_v6, %v13777_v20 }
0x1515   :  { %7672 = vrot.lane.b32.xlu0 %v7594_v35, %s11173_s5  ;;  %10999 = vpow2.f32 %v7624_v58  ;;  %v7610_v43 = vadd.f32 %v7594_v35, %v11553_v41 }
0x1516   :  { %11001 = vpow2.f32 %v7626_v12  ;;  %v7628_v44 = vmul.f32 1.442695, %v7616_v5  ;;  %v7619_v14 = vsub.f32 0.0, %v7611_v23 }
0x1517   :  { %11003 = vrcp.f32 %v7636_v45  ;;  %v7618_v56 = vsub.f32 0.0, %v7610_v43 }
0x1518   :  { %11005 = vpow2.f32 %v7628_v44  ;;  %v7634_v24 = vmul.f32 1.442695, %v7619_v14 }
0x1519   :  { %11007 = vpow2.f32 %v7630_v7  ;;  %v7632_v58 = vmul.f32 1.442695, %v7618_v56 }
0x151d   :  { %v10998_v57 = vpop.eup %10997 }
0x151e   :  { %v7637_v26 = vadd.f32 1.0, %v10998_v57 }
0x151f   :  { %v11000_v29 = vpop.eup %10999 }
0x1520   :  { %v11002_v19 = vpop.eup %11001  ;;  %11009 = vrcp.f32 %v7637_v26  ;;  %v7638_v13 = vadd.f32 1.0, %v11000_v29 }
0x1521   :  { %v7639_v12 = vadd.f32 1.0, %v11002_v19  ;;  %v13283_v15 = vpop.eup %11003 }
0x1522   :  { %11011 = vrcp.f32 %v7638_v13  ;;  %v11006_v33 = vpop.eup %11005 }
0x1523   :  { %11013 = vrcp.f32 %v7639_v12  ;;  %v11008_v35 = vpop.eup %11007  ;;  %v7640_v59 = vadd.f32 1.0, %v11006_v33 }
0x1524   :  { %11015 = vpow2.f32 %v7634_v24  ;;  %v7641_v44 = vadd.f32 1.0, %v11008_v35 }
0x1525   :  { %11017 = vpow2.f32 %v7632_v58 }
0x1526   :  { %11019 = vrcp.f32 %v7640_v59 }
0x1527   :  { %11021 = vrcp.f32 %v7641_v44 }
0x152a   :  { %v13287_v5 = vpop.eup %11009 }
0x152c   :  { %v13291_v7 = vpop.eup %11011 }
0x152d   :  { %v13294_v43 = vpop.eup %11013 }
0x152e   :  { %v11016_v29 = vpop.eup %11015 }
0x152f   :  { %v11018_v19 = vpop.eup %11017  ;;  %v7643_v56 = vadd.f32 1.0, %v11016_v29 }
0x1530   :  { %v7642_v12 = vadd.f32 1.0, %v11018_v19  ;;  %v13299_v24 = vpop.eup %11019 }
0x1531   :  { %11023 = vrcp.f32 %v7643_v56 }
0x1532   :  { %11025 = vrcp.f32 %v7642_v12 }
0x1564   :  { %v7661_v6 = vpop.permute.xlu0 %7660 }
0x1565   :  { %v7684_v57 = vmul.f32 %v13283_v15, %v7661_v6  ;;  %v13302_v6 = vpop.eup %11021 }
0x1566   :  { %v13307_v59 = vpop.eup %11023 }
0x1567   :  { %7700 = vrot.lane.b32.xlu0 %v7684_v57, %s11173_s5 }
0x1568   :  { %v7663_v45 = vpop.permute.xlu1 %7662 }
0x1569   :  { %v7685_v30 = vmul.f32 %v13287_v5, %v7663_v45 }
0x156b   :  { %7702 = vrot.lane.b32.xlu1 %v7685_v30, %s11173_s5  ;;  %v13309_v30 = vpop.eup %11025 }
0x156d   :  { %v7665_v23 = vpop.permute.xlu0 %7664 }
0x156e   :  { %v7686_v26 = vmul.f32 %v13291_v7, %v7665_v23 }
0x1570   :  { %7704 = vrot.lane.b32.xlu0 %v7686_v26, %s11173_s5 }
0x1571   :  { %v7667_v14 = vpop.permute.xlu1 %7666 }
0x1572   :  { %v7687_v13 = vmul.f32 %v13294_v43, %v7667_v14 }
0x1574   :  { %7706 = vrot.lane.b32.xlu1 %v7687_v13, %s11173_s5 }
0x1575   :  { %v7669_v58 = vpop.permute.xlu0 %7668 }
0x1576   :  { %v7688_v33 = vmul.f32 %v13299_v24, %v7669_v58 }
0x1578   :  { %7708 = vrot.lane.b32.xlu0 %v7688_v33, %s11173_s5 }
0x157a   :  { %v7671_v57 = vpop.permute.xlu1 %7670 }
0x157b   :  { %v7689_v35 = vmul.f32 %v13302_v6, %v7671_v57 }
0x157d   :  { %7710 = vrot.lane.b32.xlu1 %v7689_v35, %s11173_s5 }
0x1586   :  { %v7675_v45 = vpop.permute.xlu1 %7674 }
0x1587   :  { %v7691_v44 = vmul.f32 %v13307_v59, %v7675_v45  ;;  %v7673_v23 = vpop.permute.xlu0 %7672 }
0x1588   :  { %v7690_v26 = vmul.f32 %v13309_v30, %v7673_v23 }
0x1589   :  { %7714 = vrot.lane.b32.xlu1 %v7691_v44, %s11173_s5 }
0x158a   :  { %7712 = vrot.lane.b32.xlu0 %v7690_v26, %s11173_s5 }
0x15d9   :  { %v7701_v29 = vpop.permute.xlu0 %7700 }
0x15da   :  { %v7724_v19 = vadd.f32 %v7701_v29, %v11533_v37 }
0x15dc   :  { %11027 = vtanh.f32 %v7724_v19 }
0x15dd   :  { %v7703_v14 = vpop.permute.xlu1 %7702 }
0x15de   :  { %v7725_v13 = vadd.f32 %v7703_v14, %v13776_v53 }
0x15e0   :  { %11029 = vtanh.f32 %v7725_v13 }
0x15e2   :  { %v7705_v56 = vpop.permute.xlu0 %7704 }
0x15e3   :  { %v7726_v12 = vadd.f32 %v7705_v56, %v11541_v36 }
0x15e5   :  { %11031 = vtanh.f32 %v7726_v12 }
0x15e6   :  { %v7707_v58 = vpop.permute.xlu1 %7706  ;;  %v11028_v33 = vpop.eup %11027 }
0x15e7   :  { %v7727_v57 = vadd.f32 %v7707_v58, %v11544_v27  ;;  %7756 = vrot.lane.b32.xlu0 %v11028_v33, %s11175_s15 }
0x15e9   :  { %11033 = vtanh.f32 %v7727_v57 }
0x15ea   :  { %v11030_v35 = vpop.eup %11029  ;;  %v7709_v45 = vpop.permute.xlu0 %7708 }
0x15eb   :  { %v7728_v44 = vadd.f32 %v7709_v45, %v11547_v50  ;;  %7758 = vrot.lane.b32.xlu1 %v11030_v35, %s11175_s15  ;;  %v7740_v45 = vsub.f32 1.0, %v13283_v15 }
0x15ed   :  { %11035 = vtanh.f32 %v7728_v44  ;;  %v7788_v44 = vrot.slane %v13110_v18, 7 }
0x15ef   :  { %v7711_v23 = vpop.permute.xlu1 %7710  ;;  %v11032_v26 = vpop.eup %11031 }
0x15f0   :  { %v7729_v29 = vadd.f32 %v7711_v23, %v11550_v61  ;;  %7760 = vrot.lane.b32.xlu0 %v11032_v26, %s11175_s15  ;;  %v7804_v26 = vmul.f32 %v13283_v15, %v7788_v44 }
0x15f2   :  { %11037 = vtanh.f32 %v7729_v29 }
0x15f3   :  { %v11034_v19 = vpop.eup %11033 }
0x15f4   :  { %7762 = vrot.lane.b32.xlu1 %v11034_v19, %s11175_s15 }
0x15f7   :  { %v11036_v12 = vpop.eup %11035 }
0x15f8   :  { %7764 = vrot.lane.b32.xlu0 %v11036_v12, %s11175_s15 }
0x15fb   :  { %v7715_v14 = vpop.permute.xlu1 %7714 }
0x15fc   :  { %v7731_v13 = vadd.f32 %v7715_v14, %v13777_v20  ;;  %v7713_v56 = vpop.permute.xlu0 %7712  ;;  %v11038_v33 = vpop.eup %11037  ;;  %v7741_v14 = vsub.f32 1.0, %v13287_v5 }
0x15fd   :  { %v7730_v58 = vadd.f32 %v7713_v56, %v11553_v41  ;;  %7766 = vrot.lane.b32.xlu1 %v11038_v33, %s11175_s15 }
0x15fe   :  { %11039 = vtanh.f32 %v7731_v13  ;;  %v7789_v13 = vrot.slane %v13121_v21, 7 }
0x15ff   :  { %11041 = vtanh.f32 %v7730_v58 }
0x1600   :  { %v7805_v58 = vmul.f32 %v13287_v5, %v7789_v13 }
0x1608   :  { %v11040_v57 = vpop.eup %11039 }
0x1609   :  { %v11042_v35 = vpop.eup %11041  ;;  %7770 = vrot.lane.b32.xlu1 %v11040_v57, %s11175_s15  ;;  %v7742_v57 = vsub.f32 1.0, %v13291_v7 }
0x160a   :  { %7768 = vrot.lane.b32.xlu0 %v11042_v35, %s11175_s15  ;;  %v7790_v35 = vrot.slane %v13133_v42, 7 }
0x160c   :  { %v7806_v44 = vmul.f32 %v13291_v7, %v7790_v35  ;;  %v7745_v35 = vsub.f32 1.0, %v13302_v6 }
0x1659   :  { %v7757_v23 = vpop.permute.xlu0 %7756 }
0x165a   :  { %v7780_v29 = vmul.f32 %v7757_v23, %v7740_v45 }
0x165c   :  { %v13334_v19 = vadd.f32 %v7804_v26, %v7780_v29  ;;  %v7743_v26 = vsub.f32 1.0, %v13294_v43  ;;  %v7791_v29 = vrot.slane %v13145_v31, 7 }
0x165d   :  { %v7759_v56 = vpop.permute.xlu1 %7758 }
0x165e   :  { %v7821_v12 = vrot.slane %v13334_v19, 6  ;;  %v7781_v33 = vmul.f32 %v7759_v56, %v7741_v14  ;;  %v13343_v18 = vsel %vm8712_vm10, %v13118_v9, %v13334_v19  ;;  %v7807_v13 = vmul.f32 %v13294_v43, %v7791_v29 }
0x1660   :  { %v13345_v15 = vadd.f32 %v7805_v58, %v7781_v33  ;;  %7822 = vrot.lane.b32.xlu0 %v7821_v12, %s11175_s15  ;;  %v7744_v12 = vsub.f32 1.0, %v13299_v24  ;;  %v7792_v58 = vrot.slane %v13160_v46, 7 }
0x1662   :  { %v7761_v21 = vpop.permute.xlu0 %7760  ;;  %v7897_v45 = vrot.slane %v13345_v15, 6  ;;  %v13355_v23 = vsel %vm8712_vm10, %v13130_v10, %v13345_v15 }
0x1663   :  { %v7782_v5 = vmul.f32 %v7761_v21, %v7742_v57  ;;  %v7808_v57 = vmul.f32 %v13299_v24, %v7792_v58  ;;  %v7793_v21 = vrot.slane %v13169_v17, 7 }
0x1664   :  { %7898 = vrot.lane.b32.xlu1 %v7897_v45, %s11175_s15 }
0x1665   :  { %v13357_v9 = vadd.f32 %v7806_v44, %v7782_v5  ;;  %v7809_v44 = vmul.f32 %v13302_v6, %v7793_v21  ;;  %v7747_v6 = vsub.f32 1.0, %v13307_v59 }
0x1666   :  { %v7763_v42 = vpop.permute.xlu1 %7762 }
0x1667   :  { %v7973_v14 = vrot.slane %v13357_v9, 6  ;;  %v7783_v7 = vmul.f32 %v7763_v42, %v7743_v26  ;;  %v13367_v56 = vsel %vm8712_vm10, %v13142_v11, %v13357_v9  ;;  %v7795_v42 = vrot.slane %v13185_v22, 7 }
0x1669   :  { %v13369_v10 = vadd.f32 %v7807_v13, %v7783_v7  ;;  %7974 = vrot.lane.b32.xlu0 %v7973_v14, %s11175_s15  ;;  %v7794_v13 = vrot.slane %v13187_v28, 7  ;;  %v7811_v7 = vmul.f32 %v13307_v59, %v7795_v42 }
0x166a   :  { %v7765_v33 = vpop.permute.xlu0 %7764 }
0x166b   :  { %v8049_v31 = vrot.slane %v13369_v10, 6  ;;  %v13378_v43 = vsel %vm8712_vm10, %v13154_v39, %v13369_v10  ;;  %v7784_v11 = vmul.f32 %v7765_v33, %v7744_v12 }
0x166d   :  { %8050 = vrot.lane.b32.xlu1 %v8049_v31, %s11175_s15  ;;  %v13384_v45 = vadd.f32 %v7808_v57, %v7784_v11  ;;  %v7810_v31 = vmul.f32 %v13309_v30, %v7794_v13 }
0x166f   :  { %v7767_v46 = vpop.permute.xlu1 %7766  ;;  %v8125_v26 = vrot.slane %v13384_v45, 6  ;;  %v13391_v39 = vsel %vm8712_vm10, %v13167_v16, %v13384_v45  ;;  %v7746_v16 = vsub.f32 1.0, %v13309_v30 }
0x1670   :  { %v7785_v5 = vmul.f32 %v7767_v46, %v7745_v35 }
0x1671   :  { %8126 = vrot.lane.b32.xlu0 %v8125_v26, %s11175_s15 }
0x1672   :  { %v13393_v24 = vadd.f32 %v7809_v44, %v7785_v5 }
0x1674   :  { %v8201_v29 = vrot.slane %v13393_v24, 6  ;;  %v13400_v17 = vsel %vm8712_vm10, %v13176_v32, %v13393_v24 }
0x1676   :  { %8202 = vrot.lane.b32.xlu1 %v8201_v29, %s11175_s15 }
0x167b   :  { %v7771_v14 = vpop.permute.xlu1 %7770 }
0x167c   :  { %v7787_v12 = vmul.f32 %v7771_v14, %v7747_v6  ;;  %v7769_v58 = vpop.permute.xlu0 %7768 }
0x167d   :  { %v7786_v33 = vmul.f32 %v7769_v58, %v7746_v16 }
0x167e   :  { %v13409_v32 = vadd.f32 %v7811_v7, %v7787_v12 }
0x167f   :  { %v13411_v57 = vadd.f32 %v7810_v31, %v7786_v33  ;;  %v13814_v31 = vld [vmem:[#allocation43_spill] sm:$0xff] }
0x1680   :  { %v8353_v11 = vrot.slane %v13409_v32, 6  ;;  %v13417_v22 = vsel %vm8712_vm10, %v13193_v8, %v13409_v32 }
0x1681   :  { %v8277_v28 = vrot.slane %v13411_v57, 6  ;;  %v13423_v59 = vsel %vm8712_vm10, %v13199_v62, %v13411_v57 }
0x1682   :  { %8354 = vrot.lane.b32.xlu1 %v8353_v11, %s11175_s15 }
0x1683   :  { %8278 = vrot.lane.b32.xlu0 %v8277_v28, %s11175_s15  ;;  %v13815_v28 = vld [vmem:[#allocation41_spill] sm:$0xff] }
0x16d2   :  { %v7823_v30 = vpop.permute.xlu0 %7822 }
0x16d3   :  { %10061 = vmatmul.mubr.msk.f32.vlgmr.msra.gmra.mrb[56].mxu0 %vm857_vm4, %v7823_v30 }
0x16d4   :  { %10538 = vmatpush3.bf16.msra.mxu0 %v11626_v48  ;;  %10082 = vmatprep.mubr.msk.f32.mxu0 %vm11164_vm0, %v13769_v38 }
0x16d5   :  { %10539 = vmatprep.subr.bf16.mxu0 %v13779_v40 }
0x16d6   :  { %v7899_v8 = vpop.permute.xlu1 %7898 }
0x16d7   :  { %10072 = vmatmul.mubr.msk.f32.vlgmr.msra.gmra.mrb[56].mxu1 %vm857_vm4, %v7899_v8 }
0x16d8   :  { %10541 = vmatpush3.bf16.msra.mxu0 %v11640_v63  ;;  %10544 = vmatpush3.bf16.msra.mxu1 %v11630_v60 }
0x16d9   :  { %10545 = vmatprep.subr.bf16.mxu1 %v13779_v40  ;;  %10548 = vmatprep.subr.bf16.mxu0 %v13779_v40 }
0x16da   :  { %10093 = vmatprep.mubr.msk.f32.mxu1 %vm11164_vm0, %v13769_v38 }
0x16db   :  { %v7975_v62 = vpop.permute.xlu0 %7974 }
0x16dc   :  { %10083 = vmatmul.mubr.msk.f32.vlgmr.msra.gmra.mrb[58].mxu0 %vm857_vm4, %v7975_v62  ;;  %10547 = vmatpush3.bf16.msra.mxu1 %v11644_v49 }
0x16dd   :  { %10550 = vmatpush3.bf16.msra.mxu0 %v11652_v25  ;;  %10554 = vmatprep.subr.bf16.mxu1 %v13779_v40 }
0x16de   :  { %10551 = vmatprep.subr.bf16.mxu0 %v13779_v40  ;;  %10104 = vmatprep.mubr.msk.f32.mxu0 %vm11164_vm0, %v13769_v38 }
0x16df   :  { %v8051_v48 = vpop.permute.xlu1 %8050 }
0x16e0   :  { %10094 = vmatmul.mubr.msk.f32.vlgmr.msra.gmra.mrb[58].mxu1 %vm857_vm4, %v8051_v48 }
0x16e1   :  { %10553 = vmatpush3.bf16.msra.mxu0 %v11666_v54  ;;  %10556 = vmatpush3.bf16.msra.mxu1 %v11656_v51 }
0x16e2   :  { %10557 = vmatprep.subr.bf16.mxu1 %v13779_v40  ;;  %10115 = vmatprep.mubr.msk.f32.mxu1 %vm11164_vm0, %v13769_v38 }
0x16e3   :  { %10560 = vmatprep.subr.bf16.mxu0 %v13779_v40  ;;  %v8127_v60 = vpop.permute.xlu0 %8126 }
0x16e4   :  { %10105 = vmatmul.mubr.msk.f32.vlgmr.msra.gmra.mrb[60].mxu0 %vm857_vm4, %v8127_v60 }
0x16e5   :  { %10559 = vmatpush3.bf16.msra.mxu1 %v11670_v52  ;;  %10562 = vmatpush3.bf16.msra.mxu0 %v11678_v0 }
0x16e6   :  { %10566 = vmatprep.subr.bf16.mxu1 %v13779_v40  ;;  %10563 = vmatprep.subr.bf16.mxu0 %v13779_v40 }
0x16e7   :  { %10126 = vmatprep.mubr.msk.f32.mxu0 %vm11164_vm0, %v13769_v38 }
0x16e8   :  { %v8203_v63 = vpop.permute.xlu1 %8202 }
0x16e9   :  { %10116 = vmatmul.mubr.msk.f32.vlgmr.msra.gmra.mrb[60].mxu1 %vm857_vm4, %v8203_v63  ;;  %10565 = vmatpush3.bf16.msra.mxu0 %v11692_v2 }
0x16ea   :  { %10568 = vmatpush3.bf16.msra.mxu1 %v11682_v1  ;;  %10137 = vmatprep.mubr.msk.f32.mxu1 %vm11164_vm0, %v13769_v38 }
0x16eb   :  { %10569 = vmatprep.subr.bf16.mxu1 %v13779_v40 }
0x16ee   :  { %10571 = vmatpush3.bf16.msra.mxu1 %v11696_v4 }
0x16f4   :  { %v8355_v0 = vpop.permute.xlu1 %8354 }
0x16f5   :  { %v8279_v49 = vpop.permute.xlu0 %8278  ;;  %10138 = vmatmul.mubr.msk.f32.vlgmr.msra.gmra.mrb[62].mxu1 %vm857_vm4, %v8355_v0 }
0x16f6   :  { %10127 = vmatmul.mubr.msk.f32.vlgmr.msra.gmra.mrb[62].mxu0 %vm857_vm4, %v8279_v49 }
0x17a6   :  { %v7892_v25 = vpop.f32.mrb[56].mxu0 }
0x17a7   :  { %v7893_v51 = vadd.f32 %v7892_v25, %v13804_v47  ;;  %v10062_v54 = vpop.f32.mrb[57].mxu0 }
0x17a9   :  { %v8436_v1 = vrot.slane %v7893_v51, 1 }
0x17aa   :  { %v7968_v52 = vpop.f32.mrb[56].mxu1 }
0x17ab   :  { %v7969_v38 = vadd.f32 %v7968_v52, %v13805_v34  ;;  %v10073_v35 = vpop.f32.mrb[57].mxu1  ;;  %8508 = vrot.lane.b32.xlu0 %v8436_v1, %s11173_s5  ;;  %v13812_v34 = vld [vmem:[#allocation37_spill] sm:$0xff]  ;;  %v8452_v60 = vadd.f32 %v8436_v1, %v11533_v37 }
0x17ad   :  { %v8437_v2 = vrot.slane %v7969_v38, 1  ;;  %v8460_v63 = vsub.f32 0.0, %v8452_v60 }
0x17af   :  { %v8044_v40 = vpop.f32.mrb[58].mxu0  ;;  %8510 = vrot.lane.b32.xlu1 %v8437_v2, %s11173_s5  ;;  %v8453_v0 = vadd.f32 %v8437_v2, %v13776_v53  ;;  %v8468_v49 = vmul.f32 1.442695, %v8460_v63 }
0x17b0   :  { %v8045_v4 = vadd.f32 %v8044_v40, %v13806_v55  ;;  %v10084_v21 = vpop.f32.mrb[59].mxu0  ;;  %v13813_v55 = vld [vmem:[#allocation40_spill] sm:$0xff] }
0x17b1   :  { %v8461_v25 = vsub.f32 0.0, %v8453_v0  ;;  %11043 = vpow2.f32 %v8468_v49 }
0x17b2   :  { %v8438_v46 = vrot.slane %v8045_v4, 1 }
0x17b3   :  { %v8120_v44 = vpop.f32.mrb[58].mxu1  ;;  %v8470_v52 = vmul.f32 1.442695, %v8461_v25 }
0x17b4   :  { %v8121_v5 = vadd.f32 %v8120_v44, %v13807_v3  ;;  %v10095_v47 = vpop.f32.mrb[59].mxu1  ;;  %8512 = vrot.lane.b32.xlu0 %v8438_v46, %s11173_s5  ;;  %v8454_v51 = vadd.f32 %v8438_v46, %v11541_v36 }
0x17b5   :  { %11045 = vpow2.f32 %v8470_v52 }
0x17b6   :  { %v8439_v26 = vrot.slane %v8121_v5, 1  ;;  %v8462_v38 = vsub.f32 0.0, %v8454_v51 }
0x17b7   :  { %v8196_v29 = vpop.f32.mrb[60].mxu0 }
0x17b8   :  { %8514 = vrot.lane.b32.xlu1 %v8439_v26, %s11173_s5  ;;  %v8197_v6 = vadd.f32 %v8196_v29, %v13812_v34  ;;  %v10106_v42 = vpop.f32.mrb[61].mxu0  ;;  %v8455_v54 = vadd.f32 %v8439_v26, %v11544_v27  ;;  %v8472_v40 = vmul.f32 1.442695, %v8462_v38 }
0x17ba   :  { %v8440_v14 = vrot.slane %v8197_v6, 1  ;;  %v8463_v35 = vsub.f32 0.0, %v8455_v54  ;;  %11047 = vpow2.f32 %v8472_v40 }
0x17bb   :  { %v11044_v44 = vpop.eup %11043 }
0x17bc   :  { %v8272_v16 = vpop.f32.mrb[60].mxu1  ;;  %8516 = vrot.lane.b32.xlu0 %v8440_v14, %s11173_s5  ;;  %v8456_v4 = vadd.f32 %v8440_v14, %v11547_v50  ;;  %v8474_v21 = vmul.f32 1.442695, %v8463_v35  ;;  %v8484_v5 = vadd.f32 1.0, %v11044_v44 }
0x17bd   :  { %v8273_v13 = vadd.f32 %v8272_v16, %v13813_v55  ;;  %v10117_v7 = vpop.f32.mrb[61].mxu1 }
0x17be   :  { %v8464_v2 = vsub.f32 0.0, %v8456_v4  ;;  %11049 = vpow2.f32 %v8474_v21 }
0x17bf   :  { %v8441_v12 = vrot.slane %v8273_v13, 1  ;;  %v11046_v29 = vpop.eup %11045  ;;  %11051 = vrcp.f32 %v8484_v5 }
0x17c0   :  { %v8476_v46 = vmul.f32 1.442695, %v8464_v2  ;;  %v8485_v6 = vadd.f32 1.0, %v11046_v29 }
0x17c1   :  { %8518 = vrot.lane.b32.xlu1 %v8441_v12, %s11173_s5  ;;  %v8457_v1 = vadd.f32 %v8441_v12, %v11550_v61 }
0x17c2   :  { %11053 = vpow2.f32 %v8476_v46 }
0x17c3   :  { %v8465_v47 = vsub.f32 0.0, %v8457_v1 }
0x17c4   :  { %v11048_v14 = vpop.eup %11047 }
0x17c5   :  { %v8478_v26 = vmul.f32 1.442695, %v8465_v47  ;;  %v8486_v13 = vadd.f32 1.0, %v11048_v14 }
0x17c7   :  { %11055 = vpow2.f32 %v8478_v26 }
0x17c8   :  { %v8424_v3 = vpop.f32.mrb[62].mxu1  ;;  %v11050_v16 = vpop.eup %11049  ;;  %11057 = vrcp.f32 %v8485_v6 }
0x17c9   :  { %v8348_v58 = vpop.f32.mrb[62].mxu0  ;;  %v8425_v33 = vadd.f32 %v8424_v3, %v13814_v31  ;;  %v10139_v11 = vpop.f32.mrb[63].mxu1  ;;  %v8487_v12 = vadd.f32 1.0, %v11050_v16  ;;  %11059 = vrcp.f32 %v8486_v13 }
0x17ca   :  { %v8349_v30 = vadd.f32 %v8348_v58, %v13815_v28  ;;  %v10128_v8 = vpop.f32.mrb[63].mxu0  ;;  %v13493_v31 = vpop.eup %11051 }
0x17cb   :  { %v8443_v62 = vrot.slane %v8425_v33, 1  ;;  %11061 = vrcp.f32 %v8487_v12 }
0x17cc   :  { %v8442_v48 = vrot.slane %v8349_v30, 1  ;;  %v11054_v33 = vpop.eup %11053 }
0x17cd   :  { %8522 = vrot.lane.b32.xlu1 %v8443_v62, %s11173_s5  ;;  %v8459_v34 = vadd.f32 %v8443_v62, %v13777_v20  ;;  %v8488_v8 = vadd.f32 1.0, %v11054_v33 }
0x17ce   :  { %8520 = vrot.lane.b32.xlu0 %v8442_v48, %s11173_s5  ;;  %v8458_v42 = vadd.f32 %v8442_v48, %v11553_v41 }
0x17cf   :  { %v8467_v55 = vsub.f32 0.0, %v8459_v34 }
0x17d0   :  { %v8466_v7 = vsub.f32 0.0, %v8458_v42 }
0x17d1   :  { %v8482_v3 = vmul.f32 1.442695, %v8467_v55  ;;  %v11056_v30 = vpop.eup %11055 }
0x17d2   :  { %v8480_v58 = vmul.f32 1.442695, %v8466_v7  ;;  %v13497_v62 = vpop.eup %11057  ;;  %v8489_v63 = vadd.f32 1.0, %v11056_v30 }
0x17d3   :  { %11063 = vpow2.f32 %v8482_v3  ;;  %v13501_v0 = vpop.eup %11059 }
0x17d4   :  { %11065 = vpow2.f32 %v8480_v58 }
0x17d5   :  { %11067 = vrcp.f32 %v8488_v8  ;;  %v13504_v51 = vpop.eup %11061 }
0x17d6   :  { %11069 = vrcp.f32 %v8489_v63 }
0x17dd   :  { %v11064_v54 = vpop.eup %11063 }
0x17de   :  { %v11066_v52 = vpop.eup %11065  ;;  %v8491_v40 = vadd.f32 1.0, %v11064_v54  ;;  %v8588_v54 = vsub.f32 1.0, %v13493_v31 }
0x17df   :  { %v8490_v4 = vadd.f32 1.0, %v11066_v52  ;;  %v13509_v21 = vpop.eup %11067 }
0x17e0   :  { %11071 = vrcp.f32 %v8491_v40  ;;  %v13512_v2 = vpop.eup %11069  ;;  %v8589_v40 = vsub.f32 1.0, %v13497_v62 }
0x17e1   :  { %11073 = vrcp.f32 %v8490_v4  ;;  %v8637_v4 = vrot.slane %v13345_v15, 7 }
0x17ea   :  { %v13517_v46 = vpop.eup %11071 }
0x17eb   :  { %v13519_v26 = vpop.eup %11073 }
0x181d   :  { %v8509_v11 = vpop.permute.xlu0 %8508 }
0x181e   :  { %v8532_v28 = vmul.f32 %v13493_v31, %v8509_v11 }
0x1820   :  { %8548 = vrot.lane.b32.xlu0 %v8532_v28, %s11173_s5 }
0x1821   :  { %v8511_v48 = vpop.permute.xlu1 %8510 }
0x1822   :  { %v8533_v60 = vmul.f32 %v13497_v62, %v8511_v48 }
0x1824   :  { %8550 = vrot.lane.b32.xlu1 %v8533_v60, %s11173_s5 }
0x1826   :  { %v8513_v49 = vpop.permute.xlu0 %8512 }
0x1827   :  { %v8534_v25 = vmul.f32 %v13501_v0, %v8513_v49 }
0x1829   :  { %8552 = vrot.lane.b32.xlu0 %v8534_v25, %s11173_s5 }
0x182a   :  { %v8515_v38 = vpop.permute.xlu1 %8514 }
0x182b   :  { %v8535_v35 = vmul.f32 %v13504_v51, %v8515_v38 }
0x182d   :  { %8554 = vrot.lane.b32.xlu1 %v8535_v35, %s11173_s5 }
0x182e   :  { %v8517_v1 = vpop.permute.xlu0 %8516 }
0x182f   :  { %v8536_v44 = vmul.f32 %v13509_v21, %v8517_v1 }
0x1831   :  { %8556 = vrot.lane.b32.xlu0 %v8536_v44, %s11173_s5  ;;  %v8653_v44 = vmul.f32 %v13497_v62, %v8637_v4 }
0x1833   :  { %v8519_v5 = vpop.permute.xlu1 %8518 }
0x1834   :  { %v8537_v47 = vmul.f32 %v13512_v2, %v8519_v5 }
0x1836   :  { %8558 = vrot.lane.b32.xlu1 %v8537_v47, %s11173_s5 }
0x183f   :  { %v8523_v29 = vpop.permute.xlu1 %8522 }
0x1840   :  { %v8539_v34 = vmul.f32 %v13517_v46, %v8523_v29  ;;  %v8521_v6 = vpop.permute.xlu0 %8520  ;;  %v8590_v29 = vsub.f32 1.0, %v13501_v0 }
0x1841   :  { %v8538_v42 = vmul.f32 %v13519_v26, %v8521_v6 }
0x1842   :  { %8562 = vrot.lane.b32.xlu1 %v8539_v34, %s11173_s5 }
0x1843   :  { %8560 = vrot.lane.b32.xlu0 %v8538_v42, %s11173_s5 }
0x1892   :  { %v8549_v14 = vpop.permute.xlu0 %8548 }
0x1893   :  { %v8572_v16 = vadd.f32 %v8549_v14, %v11533_v37  ;;  %v8591_v14 = vsub.f32 1.0, %v13504_v51 }
0x1895   :  { %11075 = vtanh.f32 %v8572_v16 }
0x1896   :  { %v8551_v55 = vpop.permute.xlu1 %8550 }
0x1897   :  { %v8573_v13 = vadd.f32 %v8551_v55, %v13776_v53 }
0x1899   :  { %11077 = vtanh.f32 %v8573_v13 }
0x189b   :  { %v8553_v7 = vpop.permute.xlu0 %8552 }
0x189c   :  { %v8574_v12 = vadd.f32 %v8553_v7, %v11541_v36  ;;  %v8592_v7 = vsub.f32 1.0, %v13509_v21 }
0x189e   :  { %11079 = vtanh.f32 %v8574_v12 }
0x189f   :  { %v8555_v3 = vpop.permute.xlu1 %8554  ;;  %v11076_v58 = vpop.eup %11075 }
0x18a0   :  { %v8575_v33 = vadd.f32 %v8555_v3, %v11544_v27  ;;  %8604 = vrot.lane.b32.xlu0 %v11076_v58, %s11175_s15  ;;  %v8593_v58 = vsub.f32 1.0, %v13512_v2 }
0x18a2   :  { %11081 = vtanh.f32 %v8575_v33 }
0x18a3   :  { %v11078_v11 = vpop.eup %11077  ;;  %v8557_v28 = vpop.permute.xlu0 %8556 }
0x18a4   :  { %v8576_v37 = vadd.f32 %v8557_v28, %v11547_v50  ;;  %8606 = vrot.lane.b32.xlu1 %v11078_v11, %s11175_s15 }
0x18a6   :  { %11083 = vtanh.f32 %v8576_v37 }
0x18a8   :  { %v8559_v53 = vpop.permute.xlu1 %8558  ;;  %v11080_v30 = vpop.eup %11079 }
0x18a9   :  { %v8577_v8 = vadd.f32 %v8559_v53, %v11550_v61  ;;  %8608 = vrot.lane.b32.xlu0 %v11080_v30, %s11175_s15  ;;  %v8594_v30 = vsub.f32 1.0, %v13519_v26 }
0x18ab   :  { %11085 = vtanh.f32 %v8577_v8  ;;  %v8642_v8 = vrot.slane %v13411_v57, 7 }
0x18ac   :  { %v11082_v36 = vpop.eup %11081 }
0x18ad   :  { %8610 = vrot.lane.b32.xlu1 %v11082_v36, %s11175_s15 }
0x18b0   :  { %v11084_v63 = vpop.eup %11083 }
0x18b1   :  { %8612 = vrot.lane.b32.xlu0 %v11084_v63, %s11175_s15 }
0x18b4   :  { %v8563_v27 = vpop.permute.xlu1 %8562 }
0x18b5   :  { %v8579_v48 = vadd.f32 %v8563_v27, %v13777_v20  ;;  %v8561_v60 = vpop.permute.xlu0 %8560  ;;  %v11086_v49 = vpop.eup %11085  ;;  %v8636_v20 = vrot.slane %v13334_v19, 7 }
0x18b6   :  { %v8578_v50 = vadd.f32 %v8561_v60, %v11553_v41  ;;  %8614 = vrot.lane.b32.xlu1 %v11086_v49, %s11175_s15 }
0x18b7   :  { %11087 = vtanh.f32 %v8579_v48  ;;  %v8652_v41 = vmul.f32 %v13493_v31, %v8636_v20  ;;  %v8638_v31 = vrot.slane %v13357_v9, 7  ;;  %v8658_v48 = vmul.f32 %v13519_v26, %v8642_v8 }
0x18b8   :  { %11089 = vtanh.f32 %v8578_v50 }
0x18b9   :  { %v8654_v6 = vmul.f32 %v13501_v0, %v8638_v31 }
0x18c1   :  { %v11088_v61 = vpop.eup %11087 }
0x18c2   :  { %v11090_v25 = vpop.eup %11089  ;;  %8618 = vrot.lane.b32.xlu1 %v11088_v61, %s11175_s15 }
0x18c3   :  { %8616 = vrot.lane.b32.xlu0 %v11090_v25, %s11175_s15 }
0x1912   :  { %v8605_v52 = vpop.permute.xlu0 %8604 }
0x1913   :  { %v8628_v38 = vmul.f32 %v8605_v52, %v8588_v54 }
0x1915   :  { %v8660_v35 = vadd.f32 %v8652_v41, %v8628_v38 }
0x1916   :  { %v8607_v1 = vpop.permute.xlu1 %8606 }
0x1917   :  { %v8629_v5 = vmul.f32 %v8607_v1, %v8589_v40  ;;  %8778 = vrot.lane.b32.xlu0 %v8660_v35, %s11175_s15  ;;  %v8722_v47 = vsel %vm8721_vm11, %v13343_v18, %v8660_v35  ;;  %v8639_v18 = vrot.slane %v13369_v10, 7 }
0x1919   :  { %v8661_v19 = vadd.f32 %v8653_v44, %v8629_v5  ;;  %v8655_v55 = vmul.f32 %v13504_v51, %v8639_v18 }
0x191b   :  { %v8609_v34 = vpop.permute.xlu0 %8608  ;;  %8780 = vrot.lane.b32.xlu1 %v8661_v19, %s11175_s15  ;;  %8738 = vrot.lane.b32.xlu0 %v8722_v47, %s11175_s15  ;;  %v8723_v15 = vsel %vm8721_vm11, %v13355_v23, %v8661_v19  ;;  %v8640_v23 = vrot.slane %v13384_v45, 7 }
0x191c   :  { %v8630_v42 = vmul.f32 %v8609_v34, %v8590_v29 }
0x191d   :  { %v8656_v51 = vmul.f32 %v13509_v21, %v8640_v23 }
0x191e   :  { %v8662_v62 = vadd.f32 %v8654_v6, %v8630_v42 }
0x191f   :  { %v8611_v16 = vpop.permute.xlu1 %8610  ;;  %8740 = vrot.lane.b32.xlu1 %v8723_v15, %s11175_s15 }
0x1920   :  { %v8631_v9 = vmul.f32 %v8611_v16, %v8591_v14  ;;  %8782 = vrot.lane.b32.xlu0 %v8662_v62, %s11175_s15  ;;  %v8724_v0 = vsel %vm8721_vm11, %v13367_v56, %v8662_v62  ;;  %v8641_v56 = vrot.slane %v13393_v24, 7  ;;  %v8595_v24 = vsub.f32 1.0, %v13517_v46 }
0x1922   :  { %v8663_v13 = vadd.f32 %v8655_v55, %v8631_v9  ;;  %v8657_v28 = vmul.f32 %v13512_v2, %v8641_v56  ;;  %v8643_v2 = vrot.slane %v13409_v32, 7 }
0x1923   :  { %v8613_v12 = vpop.permute.xlu0 %8612 }
0x1924   :  { %8784 = vrot.lane.b32.xlu1 %v8663_v13, %s11175_s15  ;;  %8742 = vrot.lane.b32.xlu0 %v8724_v0, %s11175_s15  ;;  %v8725_v10 = vsel %vm8721_vm11, %v13378_v43, %v8663_v13  ;;  %v8632_v3 = vmul.f32 %v8613_v12, %v8592_v7  ;;  %v8659_v36 = vmul.f32 %v13517_v46, %v8643_v2 }
0x1926   :  { %v8664_v33 = vadd.f32 %v8656_v51, %v8632_v3 }
0x1928   :  { %v8615_v11 = vpop.permute.xlu1 %8614  ;;  %8744 = vrot.lane.b32.xlu1 %v8725_v10, %s11175_s15  ;;  %8786 = vrot.lane.b32.xlu0 %v8664_v33, %s11175_s15  ;;  %v8726_v37 = vsel %vm8721_vm11, %v13391_v39, %v8664_v33 }
0x1929   :  { %v8633_v45 = vmul.f32 %v8615_v11, %v8593_v58 }
0x192b   :  { %v8665_v43 = vadd.f32 %v8657_v28, %v8633_v45 }
0x192c   :  { %8746 = vrot.lane.b32.xlu0 %v8726_v37, %s11175_s15 }
0x192d   :  { %8788 = vrot.lane.b32.xlu1 %v8665_v43, %s11175_s15  ;;  %v8727_v21 = vsel %vm8721_vm11, %v13400_v17, %v8665_v43 }
0x1931   :  { %8748 = vrot.lane.b32.xlu1 %v8727_v21, %s11175_s15 }
0x1934   :  { %v8619_v53 = vpop.permute.xlu1 %8618 }
0x1935   :  { %v8635_v39 = vmul.f32 %v8619_v53, %v8595_v24  ;;  %v8617_v27 = vpop.permute.xlu0 %8616 }
0x1936   :  { %v8634_v17 = vmul.f32 %v8617_v27, %v8594_v30 }
0x1937   :  { %v8667_v60 = vadd.f32 %v8659_v36, %v8635_v39 }
0x1938   :  { %v8666_v63 = vadd.f32 %v8658_v48, %v8634_v17 }
0x1939   :  { %v8729_v50 = vsel %vm8721_vm11, %v13417_v22, %v8667_v60 }
0x193a   :  { %8752 = vrot.lane.b32.xlu1 %v8729_v50, %s11175_s15  ;;  %v8728_v32 = vsel %vm8721_vm11, %v13423_v59, %v8666_v63 }
0x193b   :  { %8750 = vrot.lane.b32.xlu0 %v8728_v32, %s11175_s15 }
0x193e   :  { %8792 = vrot.lane.b32.xlu1 %v8667_v60, %s11175_s15 }
0x193f   :  { %8790 = vrot.lane.b32.xlu0 %v8666_v63, %s11175_s15 }
0x1989   :  { %v8779_v57 = vpop.permute.xlu0 %8778 }
0x198a   :  { %8803 = vst.msk [vmem:[#allocation2 - $0x7] sm:$0x80] %vm8802_vm12, %v8779_v57 }
0x198d   :  { %v8781_v46 = vpop.permute.xlu1 %8780  ;;  %v8739_v26 = vpop.permute.xlu0 %8738 }
0x198e   :  { %8804 = vst.msk [vmem:[#allocation2 - $0x6] sm:$0x80] %vm8802_vm12, %v8781_v46 }
0x198f   :  { %8762 = vst.msk [vmem:[%s13638_s6] sm:$0xff] %vm857_vm4, %v8739_v26 }
0x1991   :  { %v8741_v22 = vpop.permute.xlu1 %8740 }
0x1992   :  { %v8783_v59 = vpop.permute.xlu0 %8782  ;;  %8763 = vst.msk [vmem:[%s13638_s6 + $0x8] sm:$0xff] %vm857_vm4, %v8741_v22 }
0x1993   :  { %8805 = vst.msk [vmem:[#allocation2 - $0x5] sm:$0x80] %vm8802_vm12, %v8783_v59 }
0x1996   :  { %v8785_v49 = vpop.permute.xlu1 %8784  ;;  %v8743_v61 = vpop.permute.xlu0 %8742 }
0x1997   :  { %8806 = vst.msk [vmem:[#allocation2 - $0x4] sm:$0x80] %vm8802_vm12, %v8785_v49 }
0x1998   :  { %8764 = vst.msk [vmem:[%s13638_s6 + $0x10] sm:$0xff] %vm857_vm4, %v8743_v61 }
0x199a   :  { %v8745_v25 = vpop.permute.xlu1 %8744  ;;  %v8787_v54 = vpop.permute.xlu0 %8786 }
0x199b   :  { %8765 = vst.msk [vmem:[%s13638_s6 + $0x18] sm:$0xff] %vm857_vm4, %v8745_v25 }
0x199c   :  { %8807 = vst.msk [vmem:[#allocation2 - $0x3] sm:$0x80] %vm8802_vm12, %v8787_v54 }
0x199e   :  { %v8747_v52 = vpop.permute.xlu0 %8746 }
0x199f   :  { %v8789_v20 = vpop.permute.xlu1 %8788  ;;  %8766 = vst.msk [vmem:[%s13638_s6 + $0x20] sm:$0xff] %vm857_vm4, %v8747_v52 }
0x19a0   :  { %8808 = vst.msk [vmem:[#allocation2 - $0x2] sm:$0x80] %vm8802_vm12, %v8789_v20 }
0x19a3   :  { %v8749_v41 = vpop.permute.xlu1 %8748 }
0x19a4   :  { %8767 = vst.msk [vmem:[%s13638_s6 + $0x28] sm:$0xff] %vm857_vm4, %v8749_v41 }
0x19ac   :  { %v8753_v38 = vpop.permute.xlu1 %8752 }
0x19ad   :  { %8769 = vst.msk [vmem:[%s13638_s6 + $0x38] sm:$0xff] %vm857_vm4, %v8753_v38  ;;  %v8751_v35 = vpop.permute.xlu0 %8750 }
0x19ae   :  { %8768 = vst.msk [vmem:[%s13638_s6 + $0x30] sm:$0xff] %vm857_vm4, %v8751_v35 }
0x19b0   :  { %v8793_v40 = vpop.permute.xlu1 %8792 }
0x19b1   :  { %8810 = vst.msk [vmem:[#allocation2] sm:$0x80] %vm8802_vm12, %v8793_v40  ;;  %v8791_v4 = vpop.permute.xlu0 %8790 }
0x19b2   :  { %8809 = vst.msk [vmem:[#allocation2 - $0x1] sm:$0x80] %vm8802_vm12, %v8791_v4 }

</bundles_post_ra>
